<compile_context>
chip_gen: v6e
topology: v6e:2x2x1
jax: 0.10.0
libtpu: 0.0.40
codegen_flags: <defaults>
</compile_context>

<pallas_src>
import functools

import jax
import jax.numpy as jnp
from jax.experimental import pallas as pl
from jax.experimental.pallas import tpu as pltpu


def _round_up(x, m):
    return (x + m - 1) // m * m


def _cdiv(a, b):
    return (a + b - 1) // b


def _pick_tn(cp):
    # cp is a multiple of 128; keep the whole Cout resident when it fits.
    if cp <= 512:
        return cp
    for tn in (512, 256, 128):
        if cp % tn == 0:
            return tn
    return 128


_VMEM_LIMIT = 40 * 1024 * 1024  # v7x-safe; raise to 64-96 MiB on v5e/v6e.


# ---------------------------------------------------------------------------
# Kernel 1: implicit-im2col 3x3 stride-1 conv + folded BN (+residual)(+ReLU)
# ---------------------------------------------------------------------------
def _conv3x3_kernel(*refs, wp, apply_relu, has_residual):
    if has_residual:
        a_ref, b_ref, w_ref, bias_ref, r_ref, out_ref, xcat_ref, acc_ref = refs
    else:
        a_ref, b_ref, w_ref, bias_ref, out_ref, xcat_ref, acc_ref = refs
        r_ref = None
    tm, _ = out_ref.shape
    th = b_ref.shape[0]

    # Stage the row tile plus its halo in an f32 scratch; the nine shifted
    # (sublane-unaligned) reads below then stay on the cheapest relayout path.
    xcat_ref[0:tm, :] = a_ref[...].astype(jnp.float32)
    xcat_ref[tm:tm + th, :] = b_ref[...].astype(jnp.float32)

    first = True
    for kh in range(3):
        for kw in range(3):
            off = kh * wp + kw                       # static shift on the flat grid
            xs = xcat_ref[off:off + tm, :].astype(jnp.bfloat16)
            contrib = jnp.dot(xs, w_ref[kh * 3 + kw],
                              preferred_element_type=jnp.float32)
            if first:
                acc_ref[...] = contrib
                first = False
            else:
                acc_ref[...] += contrib

    out = acc_ref[...] + bias_ref[...]
    if has_residual:
        out = out + r_ref[...].astype(jnp.float32)
    if apply_relu:
        out = jnp.maximum(out, 0.0)
    out_ref[...] = out.astype(out_ref.dtype)


def _conv3x3_s1(x_nhwc, w_oihw, scale, bias, residual=None, *,
                apply_relu, out_dtype, tile_m=512):
    """3x3 / stride 1 / pad 1 conv with folded BN (+residual)(+ReLU).

    x_nhwc: (N,H,W,Cin);  residual (optional): (N,H,W,Cout).
    Returns (N,H,W,Cout) in out_dtype.  Implicit im2col: no patch matrix.
    """
    N, H, W, Cin = x_nhwc.shape
    Cout = w_oihw.shape[0]
    Hp, Wp = H + 2, W + 2
    Ho, Wo = H, W

    Cinp = _round_up(Cin, 16)          # clean bf16 sublane tile for the MXU K dim
    Cp = _round_up(Cout, 128)          # lane-dense output stores
    TN = _pick_tn(Cp)

    # Fold BN scale into the 9 per-tap (Cin, Cout) weight slices, bf16.
    w9 = jnp.transpose(w_oihw, (2, 3, 1, 0)).reshape(9, Cin, Cout)
    w9 = w9 * scale.reshape(1, 1, -1)
    w9 = jnp.pad(w9, ((0, 0), (0, Cinp - Cin), (0, Cp - Cout))).astype(jnp.bfloat16)
    b = jnp.pad(bias.reshape(1, -1).astype(jnp.float32),
                ((0, 0), (0, Cp - Cout)))

    # Padded image, flattened to a (pixel, channel) slab in bf16.  Output pixel
    # q = n*Hp*Wp + ho*Wp + wo reads input rows q + kh*Wp + kw, so one row tile
    # plus a (2*Wp+2)-row halo block covers all nine taps.
    xflat = jnp.pad(x_nhwc.astype(jnp.bfloat16),
                    ((0, 0), (1, 1), (1, 1), (0, Cinp - Cin)))
    xflat = xflat.reshape(N * Hp * Wp, Cinp)
    Mflat = N * Hp * Wp
    halo = 2 * Wp + 2
    TH = _round_up(halo, 8)
    TM0 = max(TH, (tile_m // TH) * TH)
    nb = max(_cdiv(Mflat, TM0), 2 if Mflat > TH else 1)   # >=2 tiles for v7x 2xTC
    TM = _round_up(_cdiv(Mflat, nb), TH)                  # multiple of TH
    Mp = nb * TM
    rows_total = Mp + TM                                  # room for last halo block
    xflat = jnp.pad(xflat, ((0, rows_total - Mflat), (0, 0)))

    step_b = TM // TH
    in_specs = [
        pl.BlockSpec((TM, Cinp), lambda i, j: (i, 0)),
        pl.BlockSpec((TH, Cinp), lambda i, j: ((i + 1) * step_b, 0)),
        pl.BlockSpec((9, Cinp, TN), lambda i, j: (0, 0, j)),   # grid-resident
        pl.BlockSpec((1, TN), lambda i, j: (0, j)),            # grid-resident
    ]
    args = [xflat, xflat, w9, b]

    has_residual = residual is not None
    if has_residual:
        r = jnp.pad(residual.astype(jnp.bfloat16),
                    ((0, 0), (0, 2), (0, 2), (0, 0))).reshape(Mflat, Cout)
        r = jnp.pad(r, ((0, Mp - Mflat), (0, Cp - Cout)))
        in_specs.append(pl.BlockSpec((TM, TN), lambda i, j: (i, j)))
        args.append(r)

    out_isize = jnp.dtype(out_dtype).itemsize
    cost = pl.CostEstimate(
        flops=int(2 * Mp * 9 * Cinp * Cp),
        transcendentals=0,
        bytes_accessed=int(rows_total * Cinp * 2 * 1.2 + 9 * Cinp * Cp * 2
                           + Mp * Cp * (out_isize + 2 * int(has_residual))),
    )

    out = pl.pallas_call(
        functools.partial(_conv3x3_kernel, wp=Wp, apply_relu=apply_relu,
                          has_residual=has_residual),
        out_shape=jax.ShapeDtypeStruct((Mp, Cp), out_dtype),
        grid=(nb, Cp // TN),
        in_specs=in_specs,
        out_specs=pl.BlockSpec((TM, TN), lambda i, j: (i, j)),
        scratch_shapes=[pltpu.VMEM((TM + TH, Cinp), jnp.float32),
                        pltpu.VMEM((TM, TN), jnp.float32)],
        compiler_params=pltpu.CompilerParams(
            dimension_semantics=("parallel", "parallel"),
            vmem_limit_bytes=_VMEM_LIMIT),
        cost_estimate=cost,
    )(*args)

    return out[:Mflat].reshape(N, Hp, Wp, Cp)[:, :Ho, :Wo, :Cout]


# ---------------------------------------------------------------------------
# Kernel 2: fused GEMM + folded BN (+ReLU) for the stride!=1 conv1 and the
#           1x1 shortcut (no im2col blowup on that path).
# ---------------------------------------------------------------------------
def _gemm_kernel(p_ref, w_ref, b_ref, o_ref, *, apply_relu):
    acc = jnp.dot(p_ref[...], w_ref[...], preferred_element_type=jnp.float32)
    out = acc + b_ref[...]
    if apply_relu:
        out = jnp.maximum(out, 0.0)
    o_ref[...] = out.astype(o_ref.dtype)


def _gemm_bn_act(patches, w_mat, scale, bias, *, apply_relu, out_dtype,
                 tile_m=512):
    """(M,K) @ (K,Cout)*scale + bias (+ReLU).  Patches expected bf16."""
    M, K = patches.shape
    Cout = w_mat.shape[1]
    Kp = _round_up(K, 128)             # 256 on v6e/v7x is also fine; 128 is safe
    Cp = _round_up(Cout, 128)
    TN = _pick_tn(Cp)

    w = w_mat * scale.reshape(1, -1)
    w = jnp.pad(w, ((0, Kp - K), (0, Cp - Cout))).astype(jnp.bfloat16)
    b = jnp.pad(bias.reshape(1, -1).astype(jnp.float32),
                ((0, 0), (0, Cp - Cout)))

    nb = max(_cdiv(M, tile_m), 2 if M > 8 else 1)   # >=2 row tiles for v7x
    TM = _round_up(_cdiv(M, nb), 8)
    Mp = nb * TM
    p = jnp.pad(patches.astype(jnp.bfloat16), ((0, Mp - M), (0, Kp - K)))

    out_isize = jnp.dtype(out_dtype).itemsize
    cost = pl.CostEstimate(
        flops=int(2 * Mp * Kp * Cp),
        transcendentals=0,
        bytes_accessed=int(Mp * Kp * 2 + Kp * Cp * 2 + Mp * Cp * out_isize),
    )

    out = pl.pallas_call(
        functools.partial(_gemm_kernel, apply_relu=apply_relu),
        out_shape=jax.ShapeDtypeStruct((Mp, Cp), out_dtype),
        grid=(nb, Cp // TN),
        in_specs=[
            pl.BlockSpec((TM, Kp), lambda i, j: (i, 0)),
            pl.BlockSpec((Kp, TN), lambda i, j: (0, j)),   # weight grid-resident
            pl.BlockSpec((1, TN), lambda i, j: (0, j)),
        ],
        out_specs=pl.BlockSpec((TM, TN), lambda i, j: (i, j)),
        compiler_params=pltpu.CompilerParams(
            dimension_semantics=("parallel", "parallel"),
            vmem_limit_bytes=_VMEM_LIMIT),
        cost_estimate=cost,
    )(p, w, b)
    return out[:M, :Cout]


# ---------------------------------------------------------------------------
# Glue: explicit im2col (fallback path only), weight layout, BN folding
# ---------------------------------------------------------------------------
def _im2col(x_nhwc, k, stride, pad):
    N, H, W, C = x_nhwc.shape
    xp = jnp.pad(x_nhwc, ((0, 0), (pad, pad), (pad, pad), (0, 0)))
    Ho = (H + 2 * pad - k) // stride + 1
    Wo = (W + 2 * pad - k) // stride + 1
    cols = []
    for kh in range(k):
        for kw in range(k):
            cols.append(xp[:, kh:kh + stride * Ho:stride,
                           kw:kw + stride * Wo:stride, :])
    patches = jnp.concatenate(cols, axis=-1)         # (N, Ho, Wo, k*k*C)
    return patches.reshape(N * Ho * Wo, k * k * C), (N, Ho, Wo)


def _w_to_mat(w_oihw):
    # (Cout, Cin, kh, kw) -> (kh*kw*Cin, Cout), matching im2col column order
    co, ci, kh, kw = w_oihw.shape
    return jnp.transpose(w_oihw, (2, 3, 1, 0)).reshape(kh * kw * ci, co)


def _fold_bn(gamma, beta, mean, var, eps=1e-5):
    scale = gamma / jnp.sqrt(var + eps)
    bias = beta - mean * scale
    return scale.astype(jnp.float32), bias.astype(jnp.float32)


# ---------------------------------------------------------------------------
# BasicBlock forward (Pallas)
# ---------------------------------------------------------------------------
def basic_block_forward(params, x_nchw, stride=1, eps=1e-5):
    x = jnp.transpose(x_nchw, (0, 2, 3, 1)).astype(jnp.bfloat16)   # NHWC bf16
    N, H, W, Cin = x.shape
    planes = params["conv1_w"].shape[0]

    # conv1 -> bn1 -> relu
    s1, b1 = _fold_bn(params["bn1_gamma"], params["bn1_beta"],
                      params["bn1_mean"], params["bn1_var"], eps)
    if stride == 1:
        out1 = _conv3x3_s1(x, params["conv1_w"], s1, b1,
                           apply_relu=True, out_dtype=jnp.bfloat16)
        Ho, Wo = H, W
    else:
        p1, (_, Ho, Wo) = _im2col(x, 3, stride, 1)
        out1 = _gemm_bn_act(p1, _w_to_mat(params["conv1_w"]), s1, b1,
                            apply_relu=True, out_dtype=jnp.bfloat16)
        out1 = out1.reshape(N, Ho, Wo, planes)

    # shortcut path (bf16)
    if stride != 1 or Cin != planes:
        ps = x[:, ::stride, ::stride, :].reshape(N * Ho * Wo, Cin)
        ss, bs = _fold_bn(params["bn_s_gamma"], params["bn_s_beta"],
                          params["bn_s_mean"], params["bn_s_var"], eps)
        shortcut = _gemm_bn_act(ps, _w_to_mat(params["sc_w"]), ss, bs,
                                apply_relu=False, out_dtype=jnp.bfloat16)
        shortcut = shortcut.reshape(N, Ho, Wo, planes)
    else:
        shortcut = x

    # conv2 -> bn2 -> (+ shortcut) -> relu, fused in one implicit-conv call
    s2, b2 = _fold_bn(params["bn2_gamma"], params["bn2_beta"],
                      params["bn2_mean"], params["bn2_var"], eps)
    out = _conv3x3_s1(out1, params["conv2_w"], s2, b2, residual=shortcut,
                      apply_relu=True, out_dtype=jnp.float32)
    return jnp.transpose(out, (0, 3, 1, 2))          # back to NCHW


# ---------------------------------------------------------------------------
# Pure-JAX reference for validation
# ---------------------------------------------------------------------------
def _ref_forward(params, x, stride=1):
    def conv(x, w, s, p):
        return jax.lax.conv_general_dilated(
            x, w, (s, s), [(p, p), (p, p)],
            dimension_numbers=("NCHW", "OIHW", "NCHW"))

    def bn(x, g, b, m, v, eps=1e-5):
        g, b, m, v = (t[None, :, None, None] for t in (g, b, m, v))
        return (x - m) / jnp.sqrt(v + eps) * g + b

    out = jax.nn.relu(bn(conv(x, params["conv1_w"], stride, 1),
                         params["bn1_gamma"], params["bn1_beta"],
                         params["bn1_mean"], params["bn1_var"]))
    out = bn(conv(out, params["conv2_w"], 1, 1),
             params["bn2_gamma"], params["bn2_beta"],
             params["bn2_mean"], params["bn2_var"])
    cin, planes = x.shape[1], params["conv1_w"].shape[0]
    if stride != 1 or cin != planes:
        sc = bn(conv(x, params["sc_w"], stride, 0),
                params["bn_s_gamma"], params["bn_s_beta"],
                params["bn_s_mean"], params["bn_s_var"])
    else:
        sc = x
    return jax.nn.relu(out + sc)


# ---------------------------------------------------------------------------
def _make_params(key, in_planes, planes, stride):
    ks = jax.random.split(key, 8)
    params = {
        "conv1_w": 0.1 * jax.random.normal(ks[0], (planes, in_planes, 3, 3), jnp.float32),
        "bn1_gamma": 0.5 + 0.1 * jnp.arange(planes, dtype=jnp.float32),
        "bn1_beta": 0.05 * jnp.arange(planes, dtype=jnp.float32),
        "bn1_mean": 0.1 * jax.random.normal(ks[1], (planes,), jnp.float32),
        "bn1_var": 0.5 + jax.random.uniform(ks[2], (planes,), jnp.float32),
        "conv2_w": 0.1 * jax.random.normal(ks[3], (planes, planes, 3, 3), jnp.float32),
        "bn2_gamma": 1.0 - 0.05 * jnp.arange(planes, dtype=jnp.float32),
        "bn2_beta": -0.02 * jnp.arange(planes, dtype=jnp.float32),
        "bn2_mean": 0.1 * jax.random.normal(ks[4], (planes,), jnp.float32),
        "bn2_var": 0.5 + jax.random.uniform(ks[5], (planes,), jnp.float32),
    }
    if stride != 1 or in_planes != planes:
        params.update({
            "sc_w": 0.1 * jax.random.normal(ks[6], (planes, in_planes, 1, 1), jnp.float32),
            "bn_s_gamma": jnp.ones((planes,), jnp.float32),
            "bn_s_beta": jnp.zeros((planes,), jnp.float32),
            "bn_s_mean": 0.1 * jax.random.normal(ks[7], (planes,), jnp.float32),
            "bn_s_var": jnp.ones((planes,), jnp.float32),
        })
    return params


if __name__ == "__main__":
    key = jax.random.PRNGKey(0)
    k_x, k_p1, k_p2 = jax.random.split(key, 3)

    fwd = jax.jit(basic_block_forward, static_argnames=("stride",))

    # bf16 activations + bf16 MXU operands (f32 accumulate) -> loosened tol.
    TOL = dict(atol=5e-2, rtol=5e-2)

    # case 1: identity shortcut (stride=1, in_planes == planes)
    in_planes, planes, stride = 4, 4, 1
    x = jax.random.normal(k_x, (2, in_planes, 16, 16), jnp.float32)  # NCHW
    params = _make_params(k_p1, in_planes, planes, stride)
    out = jax.block_until_ready(fwd(params, x, stride=stride))
    ref = jax.block_until_ready(_ref_forward(params, x, stride=stride))
    assert out.shape == ref.shape == (2, planes, 16, 16)
    assert jnp.allclose(out, ref, **TOL), \
        f"identity-path mismatch: max abs err {jnp.max(jnp.abs(out - ref))}"

    # case 2: conv shortcut (stride=2, channel change)
    in_planes, planes, stride = 4, 8, 2
    params = _make_params(k_p2, in_planes, planes, stride)
    out = jax.block_until_ready(fwd(params, x, stride=stride))
    ref = jax.block_until_ready(_ref_forward(params, x, stride=stride))
    assert out.shape == ref.shape == (2, planes, 8, 8)
    assert jnp.allclose(out, ref, **TOL), \
        f"downsample-path mismatch: max abs err {jnp.max(jnp.abs(out - ref))}"

    print("KERNEL_OK")
</pallas_src>

<mosaic_0001>
module attributes {stable_mosaic.version = 11 : i64} {
  func.func @_conv3x3_kernel(%arg0: i32, %arg1: i32, %arg2: memref<360x16xbf16, #tpu.memory_space<vmem>>, %arg3: memref<40x16xbf16, #tpu.memory_space<vmem>>, %arg4: memref<9x16x128xbf16, #tpu.memory_space<vmem>>, %arg5: memref<1x128xf32, #tpu.memory_space<vmem>>, %arg6: memref<360x128xbf16, #tpu.memory_space<vmem>>, %arg7: memref<400x16xf32, #tpu.memory_space<vmem>>, %arg8: memref<360x128xf32, #tpu.memory_space<vmem>>) attributes {dimension_semantics = [#tpu.dimension_semantics<parallel>, #tpu.dimension_semantics<parallel>], iteration_bounds = array<i64: 2, 1>, scalar_prefetch = 0 : i64, scratch_operands = 2 : i64, tpu.core_type = #tpu.core_type<tc>, window_params = [{transform_indices = @transform_0, window_bounds = array<i64: 360, 16>}, {transform_indices = @transform_1, window_bounds = array<i64: 40, 16>}, {transform_indices = @transform_2, window_bounds = array<i64: 9, 16, 128>}, {transform_indices = @transform_3, window_bounds = array<i64: 1, 128>}, {transform_indices = @transform_4, window_bounds = array<i64: 360, 128>}]} {
    %c0 = arith.constant 0 : index
    %c0_0 = arith.constant 0 : index
    %0 = vector.load %arg2[%c0, %c0_0] : memref<360x16xbf16, #tpu.memory_space<vmem>>, vector<360x16xbf16>
    %1 = arith.extf %0 : vector<360x16xbf16> to vector<360x16xf32>
    %c0_1 = arith.constant 0 : index
    %c0_2 = arith.constant 0 : index
    %2 = vector.load %arg7[%c0_1, %c0_2] : memref<400x16xf32, #tpu.memory_space<vmem>>, vector<360x16xf32>
    tpu.vector_store %arg7[%c0_1, %c0_2], %1 {strides = array<i32>} : memref<400x16xf32, #tpu.memory_space<vmem>>, vector<360x16xf32>,
    %c0_3 = arith.constant 0 : index
    %c0_4 = arith.constant 0 : index
    %3 = vector.load %arg3[%c0_3, %c0_4] : memref<40x16xbf16, #tpu.memory_space<vmem>>, vector<40x16xbf16>
    %4 = arith.extf %3 : vector<40x16xbf16> to vector<40x16xf32>
    %c360 = arith.constant 360 : index
    %c0_5 = arith.constant 0 : index
    %5 = vector.load %arg7[%c360, %c0_5] : memref<400x16xf32, #tpu.memory_space<vmem>>, vector<40x16xf32>
    tpu.vector_store %arg7[%c360, %c0_5], %4 {strides = array<i32>} : memref<400x16xf32, #tpu.memory_space<vmem>>, vector<40x16xf32>,
    %c0_6 = arith.constant 0 : index
    %c0_7 = arith.constant 0 : index
    %6 = vector.load %arg7[%c0_6, %c0_7] : memref<400x16xf32, #tpu.memory_space<vmem>>, vector<360x16xf32>
    %7 = arith.truncf %6 : vector<360x16xf32> to vector<360x16xbf16>
    %c0_8 = arith.constant 0 : index
    %c0_9 = arith.constant 0 : index
    %c0_10 = arith.constant 0 : index
    %8 = vector.load %arg4[%c0_8, %c0_9, %c0_10] : memref<9x16x128xbf16, #tpu.memory_space<vmem>>, vector<1x16x128xbf16>
    %9 = vector.shape_cast %8 : vector<1x16x128xbf16> to vector<16x128xbf16>
    %cst = arith.constant dense<0.000000e+00> : vector<360x128xf32>
    %10 = tpu.matmul %7, %9, %cst {dimension_numbers = #tpu.dot_dimension_numbers<[1], [0], [0], [1], [0, 0, 1, 1], [], []>} : vector<360x16xbf16>, vector<16x128xbf16>, vector<360x128xf32> -> vector<360x128xf32>
    %c0_11 = arith.constant 0 : index
    %c0_12 = arith.constant 0 : index
    %11 = vector.load %arg8[%c0_11, %c0_12] : memref<360x128xf32, #tpu.memory_space<vmem>>, vector<360x128xf32>
    tpu.vector_store %arg8[%c0_11, %c0_12], %10 {strides = array<i32>} : memref<360x128xf32, #tpu.memory_space<vmem>>, vector<360x128xf32>,
    %c1 = arith.constant 1 : index
    %c0_13 = arith.constant 0 : index
    %12 = vector.load %arg7[%c1, %c0_13] : memref<400x16xf32, #tpu.memory_space<vmem>>, vector<360x16xf32>
    %13 = arith.truncf %12 : vector<360x16xf32> to vector<360x16xbf16>
    %c1_14 = arith.constant 1 : index
    %c0_15 = arith.constant 0 : index
    %c0_16 = arith.constant 0 : index
    %14 = vector.load %arg4[%c1_14, %c0_15, %c0_16] : memref<9x16x128xbf16, #tpu.memory_space<vmem>>, vector<1x16x128xbf16>
    %15 = vector.shape_cast %14 : vector<1x16x128xbf16> to vector<16x128xbf16>
    %cst_17 = arith.constant dense<0.000000e+00> : vector<360x128xf32>
    %16 = tpu.matmul %13, %15, %cst_17 {dimension_numbers = #tpu.dot_dimension_numbers<[1], [0], [0], [1], [0, 0, 1, 1], [], []>} : vector<360x16xbf16>, vector<16x128xbf16>, vector<360x128xf32> -> vector<360x128xf32>
    %c0_18 = arith.constant 0 : index
    %c0_19 = arith.constant 0 : index
    %17 = vector.load %arg8[%c0_18, %c0_19] : memref<360x128xf32, #tpu.memory_space<vmem>>, vector<360x128xf32>
    %18 = arith.addf %17, %16 : vector<360x128xf32>
    %c0_20 = arith.constant 0 : index
    %c0_21 = arith.constant 0 : index
    %19 = vector.load %arg8[%c0_20, %c0_21] : memref<360x128xf32, #tpu.memory_space<vmem>>, vector<360x128xf32>
    tpu.vector_store %arg8[%c0_20, %c0_21], %18 {strides = array<i32>} : memref<360x128xf32, #tpu.memory_space<vmem>>, vector<360x128xf32>,
    %c2 = arith.constant 2 : index
    %c0_22 = arith.constant 0 : index
    %20 = vector.load %arg7[%c2, %c0_22] : memref<400x16xf32, #tpu.memory_space<vmem>>, vector<360x16xf32>
    %21 = arith.truncf %20 : vector<360x16xf32> to vector<360x16xbf16>
    %c2_23 = arith.constant 2 : index
    %c0_24 = arith.constant 0 : index
    %c0_25 = arith.constant 0 : index
    %22 = vector.load %arg4[%c2_23, %c0_24, %c0_25] : memref<9x16x128xbf16, #tpu.memory_space<vmem>>, vector<1x16x128xbf16>
    %23 = vector.shape_cast %22 : vector<1x16x128xbf16> to vector<16x128xbf16>
    %cst_26 = arith.constant dense<0.000000e+00> : vector<360x128xf32>
    %24 = tpu.matmul %21, %23, %cst_26 {dimension_numbers = #tpu.dot_dimension_numbers<[1], [0], [0], [1], [0, 0, 1, 1], [], []>} : vector<360x16xbf16>, vector<16x128xbf16>, vector<360x128xf32> -> vector<360x128xf32>
    %c0_27 = arith.constant 0 : index
    %c0_28 = arith.constant 0 : index
    %25 = vector.load %arg8[%c0_27, %c0_28] : memref<360x128xf32, #tpu.memory_space<vmem>>, vector<360x128xf32>
    %26 = arith.addf %25, %24 : vector<360x128xf32>
    %c0_29 = arith.constant 0 : index
    %c0_30 = arith.constant 0 : index
    %27 = vector.load %arg8[%c0_29, %c0_30] : memref<360x128xf32, #tpu.memory_space<vmem>>, vector<360x128xf32>
    tpu.vector_store %arg8[%c0_29, %c0_30], %26 {strides = array<i32>} : memref<360x128xf32, #tpu.memory_space<vmem>>, vector<360x128xf32>,
    %c18 = arith.constant 18 : index
    %c0_31 = arith.constant 0 : index
    %28 = vector.load %arg7[%c18, %c0_31] : memref<400x16xf32, #tpu.memory_space<vmem>>, vector<360x16xf32>
    %29 = arith.truncf %28 : vector<360x16xf32> to vector<360x16xbf16>
    %c3 = arith.constant 3 : index
    %c0_32 = arith.constant 0 : index
    %c0_33 = arith.constant 0 : index
    %30 = vector.load %arg4[%c3, %c0_32, %c0_33] : memref<9x16x128xbf16, #tpu.memory_space<vmem>>, vector<1x16x128xbf16>
    %31 = vector.shape_cast %30 : vector<1x16x128xbf16> to vector<16x128xbf16>
    %cst_34 = arith.constant dense<0.000000e+00> : vector<360x128xf32>
    %32 = tpu.matmul %29, %31, %cst_34 {dimension_numbers = #tpu.dot_dimension_numbers<[1], [0], [0], [1], [0, 0, 1, 1], [], []>} : vector<360x16xbf16>, vector<16x128xbf16>, vector<360x128xf32> -> vector<360x128xf32>
    %c0_35 = arith.constant 0 : index
    %c0_36 = arith.constant 0 : index
    %33 = vector.load %arg8[%c0_35, %c0_36] : memref<360x128xf32, #tpu.memory_space<vmem>>, vector<360x128xf32>
    %34 = arith.addf %33, %32 : vector<360x128xf32>
    %c0_37 = arith.constant 0 : index
    %c0_38 = arith.constant 0 : index
    %35 = vector.load %arg8[%c0_37, %c0_38] : memref<360x128xf32, #tpu.memory_space<vmem>>, vector<360x128xf32>
    tpu.vector_store %arg8[%c0_37, %c0_38], %34 {strides = array<i32>} : memref<360x128xf32, #tpu.memory_space<vmem>>, vector<360x128xf32>,
    %c19 = arith.constant 19 : index
    %c0_39 = arith.constant 0 : index
    %36 = vector.load %arg7[%c19, %c0_39] : memref<400x16xf32, #tpu.memory_space<vmem>>, vector<360x16xf32>
    %37 = arith.truncf %36 : vector<360x16xf32> to vector<360x16xbf16>
    %c4 = arith.constant 4 : index
    %c0_40 = arith.constant 0 : index
    %c0_41 = arith.constant 0 : index
    %38 = vector.load %arg4[%c4, %c0_40, %c0_41] : memref<9x16x128xbf16, #tpu.memory_space<vmem>>, vector<1x16x128xbf16>
    %39 = vector.shape_cast %38 : vector<1x16x128xbf16> to vector<16x128xbf16>
    %cst_42 = arith.constant dense<0.000000e+00> : vector<360x128xf32>
    %40 = tpu.matmul %37, %39, %cst_42 {dimension_numbers = #tpu.dot_dimension_numbers<[1], [0], [0], [1], [0, 0, 1, 1], [], []>} : vector<360x16xbf16>, vector<16x128xbf16>, vector<360x128xf32> -> vector<360x128xf32>
    %c0_43 = arith.constant 0 : index
    %c0_44 = arith.constant 0 : index
    %41 = vector.load %arg8[%c0_43, %c0_44] : memref<360x128xf32, #tpu.memory_space<vmem>>, vector<360x128xf32>
    %42 = arith.addf %41, %40 : vector<360x128xf32>
    %c0_45 = arith.constant 0 : index
    %c0_46 = arith.constant 0 : index
    %43 = vector.load %arg8[%c0_45, %c0_46] : memref<360x128xf32, #tpu.memory_space<vmem>>, vector<360x128xf32>
    tpu.vector_store %arg8[%c0_45, %c0_46], %42 {strides = array<i32>} : memref<360x128xf32, #tpu.memory_space<vmem>>, vector<360x128xf32>,
    %c20 = arith.constant 20 : index
    %c0_47 = arith.constant 0 : index
    %44 = vector.load %arg7[%c20, %c0_47] : memref<400x16xf32, #tpu.memory_space<vmem>>, vector<360x16xf32>
    %45 = arith.truncf %44 : vector<360x16xf32> to vector<360x16xbf16>
    %c5 = arith.constant 5 : index
    %c0_48 = arith.constant 0 : index
    %c0_49 = arith.constant 0 : index
    %46 = vector.load %arg4[%c5, %c0_48, %c0_49] : memref<9x16x128xbf16, #tpu.memory_space<vmem>>, vector<1x16x128xbf16>
    %47 = vector.shape_cast %46 : vector<1x16x128xbf16> to vector<16x128xbf16>
    %cst_50 = arith.constant dense<0.000000e+00> : vector<360x128xf32>
    %48 = tpu.matmul %45, %47, %cst_50 {dimension_numbers = #tpu.dot_dimension_numbers<[1], [0], [0], [1], [0, 0, 1, 1], [], []>} : vector<360x16xbf16>, vector<16x128xbf16>, vector<360x128xf32> -> vector<360x128xf32>
    %c0_51 = arith.constant 0 : index
    %c0_52 = arith.constant 0 : index
    %49 = vector.load %arg8[%c0_51, %c0_52] : memref<360x128xf32, #tpu.memory_space<vmem>>, vector<360x128xf32>
    %50 = arith.addf %49, %48 : vector<360x128xf32>
    %c0_53 = arith.constant 0 : index
    %c0_54 = arith.constant 0 : index
    %51 = vector.load %arg8[%c0_53, %c0_54] : memref<360x128xf32, #tpu.memory_space<vmem>>, vector<360x128xf32>
    tpu.vector_store %arg8[%c0_53, %c0_54], %50 {strides = array<i32>} : memref<360x128xf32, #tpu.memory_space<vmem>>, vector<360x128xf32>,
    %c36 = arith.constant 36 : index
    %c0_55 = arith.constant 0 : index
    %52 = vector.load %arg7[%c36, %c0_55] : memref<400x16xf32, #tpu.memory_space<vmem>>, vector<360x16xf32>
    %53 = arith.truncf %52 : vector<360x16xf32> to vector<360x16xbf16>
    %c6 = arith.constant 6 : index
    %c0_56 = arith.constant 0 : index
    %c0_57 = arith.constant 0 : index
    %54 = vector.load %arg4[%c6, %c0_56, %c0_57] : memref<9x16x128xbf16, #tpu.memory_space<vmem>>, vector<1x16x128xbf16>
    %55 = vector.shape_cast %54 : vector<1x16x128xbf16> to vector<16x128xbf16>
    %cst_58 = arith.constant dense<0.000000e+00> : vector<360x128xf32>
    %56 = tpu.matmul %53, %55, %cst_58 {dimension_numbers = #tpu.dot_dimension_numbers<[1], [0], [0], [1], [0, 0, 1, 1], [], []>} : vector<360x16xbf16>, vector<16x128xbf16>, vector<360x128xf32> -> vector<360x128xf32>
    %c0_59 = arith.constant 0 : index
    %c0_60 = arith.constant 0 : index
    %57 = vector.load %arg8[%c0_59, %c0_60] : memref<360x128xf32, #tpu.memory_space<vmem>>, vector<360x128xf32>
    %58 = arith.addf %57, %56 : vector<360x128xf32>
    %c0_61 = arith.constant 0 : index
    %c0_62 = arith.constant 0 : index
    %59 = vector.load %arg8[%c0_61, %c0_62] : memref<360x128xf32, #tpu.memory_space<vmem>>, vector<360x128xf32>
    tpu.vector_store %arg8[%c0_61, %c0_62], %58 {strides = array<i32>} : memref<360x128xf32, #tpu.memory_space<vmem>>, vector<360x128xf32>,
    %c37 = arith.constant 37 : index
    %c0_63 = arith.constant 0 : index
    %60 = vector.load %arg7[%c37, %c0_63] : memref<400x16xf32, #tpu.memory_space<vmem>>, vector<360x16xf32>
    %61 = arith.truncf %60 : vector<360x16xf32> to vector<360x16xbf16>
    %c7 = arith.constant 7 : index
    %c0_64 = arith.constant 0 : index
    %c0_65 = arith.constant 0 : index
    %62 = vector.load %arg4[%c7, %c0_64, %c0_65] : memref<9x16x128xbf16, #tpu.memory_space<vmem>>, vector<1x16x128xbf16>
    %63 = vector.shape_cast %62 : vector<1x16x128xbf16> to vector<16x128xbf16>
    %cst_66 = arith.constant dense<0.000000e+00> : vector<360x128xf32>
    %64 = tpu.matmul %61, %63, %cst_66 {dimension_numbers = #tpu.dot_dimension_numbers<[1], [0], [0], [1], [0, 0, 1, 1], [], []>} : vector<360x16xbf16>, vector<16x128xbf16>, vector<360x128xf32> -> vector<360x128xf32>
    %c0_67 = arith.constant 0 : index
    %c0_68 = arith.constant 0 : index
    %65 = vector.load %arg8[%c0_67, %c0_68] : memref<360x128xf32, #tpu.memory_space<vmem>>, vector<360x128xf32>
    %66 = arith.addf %65, %64 : vector<360x128xf32>
    %c0_69 = arith.constant 0 : index
    %c0_70 = arith.constant 0 : index
    %67 = vector.load %arg8[%c0_69, %c0_70] : memref<360x128xf32, #tpu.memory_space<vmem>>, vector<360x128xf32>
    tpu.vector_store %arg8[%c0_69, %c0_70], %66 {strides = array<i32>} : memref<360x128xf32, #tpu.memory_space<vmem>>, vector<360x128xf32>,
    %c38 = arith.constant 38 : index
    %c0_71 = arith.constant 0 : index
    %68 = vector.load %arg7[%c38, %c0_71] : memref<400x16xf32, #tpu.memory_space<vmem>>, vector<360x16xf32>
    %69 = arith.truncf %68 : vector<360x16xf32> to vector<360x16xbf16>
    %c8 = arith.constant 8 : index
    %c0_72 = arith.constant 0 : index
    %c0_73 = arith.constant 0 : index
    %70 = vector.load %arg4[%c8, %c0_72, %c0_73] : memref<9x16x128xbf16, #tpu.memory_space<vmem>>, vector<1x16x128xbf16>
    %71 = vector.shape_cast %70 : vector<1x16x128xbf16> to vector<16x128xbf16>
    %cst_74 = arith.constant dense<0.000000e+00> : vector<360x128xf32>
    %72 = tpu.matmul %69, %71, %cst_74 {dimension_numbers = #tpu.dot_dimension_numbers<[1], [0], [0], [1], [0, 0, 1, 1], [], []>} : vector<360x16xbf16>, vector<16x128xbf16>, vector<360x128xf32> -> vector<360x128xf32>
    %c0_75 = arith.constant 0 : index
    %c0_76 = arith.constant 0 : index
    %73 = vector.load %arg8[%c0_75, %c0_76] : memref<360x128xf32, #tpu.memory_space<vmem>>, vector<360x128xf32>
    %74 = arith.addf %73, %72 : vector<360x128xf32>
    %c0_77 = arith.constant 0 : index
    %c0_78 = arith.constant 0 : index
    %75 = vector.load %arg8[%c0_77, %c0_78] : memref<360x128xf32, #tpu.memory_space<vmem>>, vector<360x128xf32>
    tpu.vector_store %arg8[%c0_77, %c0_78], %74 {strides = array<i32>} : memref<360x128xf32, #tpu.memory_space<vmem>>, vector<360x128xf32>,
    %c0_79 = arith.constant 0 : index
    %c0_80 = arith.constant 0 : index
    %76 = vector.load %arg8[%c0_79, %c0_80] : memref<360x128xf32, #tpu.memory_space<vmem>>, vector<360x128xf32>
    %c0_81 = arith.constant 0 : index
    %c0_82 = arith.constant 0 : index
    %77 = vector.load %arg5[%c0_81, %c0_82] : memref<1x128xf32, #tpu.memory_space<vmem>>, vector<1x128xf32>
    %78 = vector.broadcast %77 : vector<1x128xf32> to vector<360x128xf32>
    %79 = arith.addf %76, %78 : vector<360x128xf32>
    %cst_83 = arith.constant 0.000000e+00 : f32
    %80 = vector.broadcast %cst_83 : f32 to vector<360x128xf32>
    %81 = arith.maximumf %79, %80 : vector<360x128xf32>
    %82 = arith.truncf %81 : vector<360x128xf32> to vector<360x128xbf16>
    %c0_84 = arith.constant 0 : index
    %c0_85 = arith.constant 0 : index
    %83 = vector.load %arg6[%c0_84, %c0_85] : memref<360x128xbf16, #tpu.memory_space<vmem>>, vector<360x128xbf16>
    tpu.vector_store %arg6[%c0_84, %c0_85], %82 {strides = array<i32>} : memref<360x128xbf16, #tpu.memory_space<vmem>>, vector<360x128xbf16>,
    return
  }
  func.func @transform_0(%arg0: i32, %arg1: i32) -> (i32, i32) {
    %c0_i32 = arith.constant 0 : i32
    %c0_i32_0 = arith.constant 0 : i32
    return %arg0, %c0_i32 : i32, i32
  }
  func.func @transform_1(%arg0: i32, %arg1: i32) -> (i32, i32) {
    %c1_i32 = arith.constant 1 : i32
    %0 = arith.addi %arg0, %c1_i32 : i32
    %c9_i32 = arith.constant 9 : i32
    %1 = arith.muli %0, %c9_i32 : i32
    %c0_i32 = arith.constant 0 : i32
    %c0_i32_0 = arith.constant 0 : i32
    return %1, %c0_i32 : i32, i32
  }
  func.func @transform_2(%arg0: i32, %arg1: i32) -> (i32, i32, i32) {
    %c0_i32 = arith.constant 0 : i32
    %c0_i32_0 = arith.constant 0 : i32
    %c0_i32_1 = arith.constant 0 : i32
    return %c0_i32, %c0_i32_0, %arg1 : i32, i32, i32
  }
  func.func @transform_3(%arg0: i32, %arg1: i32) -> (i32, i32) {
    %c0_i32 = arith.constant 0 : i32
    %c0_i32_0 = arith.constant 0 : i32
    return %c0_i32, %arg1 : i32, i32
  }
  func.func @transform_4(%arg0: i32, %arg1: i32) -> (i32, i32) {
    %c0_i32 = arith.constant 0 : i32
    return %arg0, %arg1 : i32, i32
  }
}

module attributes {stable_mosaic.version = 11 : i64} {
  func.func @_conv3x3_kernel(%arg0: i32, %arg1: i32, %arg2: memref<360x16xbf16, #tpu.memory_space<vmem>>, %arg3: memref<40x16xbf16, #tpu.memory_space<vmem>>, %arg4: memref<9x16x128xbf16, #tpu.memory_space<vmem>>, %arg5: memref<1x128xf32, #tpu.memory_space<vmem>>, %arg6: memref<360x128xbf16, #tpu.memory_space<vmem>>, %arg7: memref<360x128xf32, #tpu.memory_space<vmem>>, %arg8: memref<400x16xf32, #tpu.memory_space<vmem>>, %arg9: memref<360x128xf32, #tpu.memory_space<vmem>>) attributes {dimension_semantics = [#tpu.dimension_semantics<parallel>, #tpu.dimension_semantics<parallel>], iteration_bounds = array<i64: 2, 1>, scalar_prefetch = 0 : i64, scratch_operands = 2 : i64, tpu.core_type = #tpu.core_type<tc>, window_params = [{transform_indices = @transform_0, window_bounds = array<i64: 360, 16>}, {transform_indices = @transform_1, window_bounds = array<i64: 40, 16>}, {transform_indices = @transform_2, window_bounds = array<i64: 9, 16, 128>}, {transform_indices = @transform_3, window_bounds = array<i64: 1, 128>}, {transform_indices = @transform_4, window_bounds = array<i64: 360, 128>}, {transform_indices = @transform_5, window_bounds = array<i64: 360, 128>}]} {
    %c0 = arith.constant 0 : index
    %c0_0 = arith.constant 0 : index
    %0 = vector.load %arg2[%c0, %c0_0] : memref<360x16xbf16, #tpu.memory_space<vmem>>, vector<360x16xbf16>
    %1 = arith.extf %0 : vector<360x16xbf16> to vector<360x16xf32>
    %c0_1 = arith.constant 0 : index
    %c0_2 = arith.constant 0 : index
    %2 = vector.load %arg8[%c0_1, %c0_2] : memref<400x16xf32, #tpu.memory_space<vmem>>, vector<360x16xf32>
    tpu.vector_store %arg8[%c0_1, %c0_2], %1 {strides = array<i32>} : memref<400x16xf32, #tpu.memory_space<vmem>>, vector<360x16xf32>,
    %c0_3 = arith.constant 0 : index
    %c0_4 = arith.constant 0 : index
    %3 = vector.load %arg3[%c0_3, %c0_4] : memref<40x16xbf16, #tpu.memory_space<vmem>>, vector<40x16xbf16>
    %4 = arith.extf %3 : vector<40x16xbf16> to vector<40x16xf32>
    %c360 = arith.constant 360 : index
    %c0_5 = arith.constant 0 : index
    %5 = vector.load %arg8[%c360, %c0_5] : memref<400x16xf32, #tpu.memory_space<vmem>>, vector<40x16xf32>
    tpu.vector_store %arg8[%c360, %c0_5], %4 {strides = array<i32>} : memref<400x16xf32, #tpu.memory_space<vmem>>, vector<40x16xf32>,
    %c0_6 = arith.constant 0 : index
    %c0_7 = arith.constant 0 : index
    %6 = vector.load %arg8[%c0_6, %c0_7] : memref<400x16xf32, #tpu.memory_space<vmem>>, vector<360x16xf32>
    %7 = arith.truncf %6 : vector<360x16xf32> to vector<360x16xbf16>
    %c0_8 = arith.constant 0 : index
    %c0_9 = arith.constant 0 : index
    %c0_10 = arith.constant 0 : index
    %8 = vector.load %arg4[%c0_8, %c0_9, %c0_10] : memref<9x16x128xbf16, #tpu.memory_space<vmem>>, vector<1x16x128xbf16>
    %9 = vector.shape_cast %8 : vector<1x16x128xbf16> to vector<16x128xbf16>
    %cst = arith.constant dense<0.000000e+00> : vector<360x128xf32>
    %10 = tpu.matmul %7, %9, %cst {dimension_numbers = #tpu.dot_dimension_numbers<[1], [0], [0], [1], [0, 0, 1, 1], [], []>} : vector<360x16xbf16>, vector<16x128xbf16>, vector<360x128xf32> -> vector<360x128xf32>
    %c0_11 = arith.constant 0 : index
    %c0_12 = arith.constant 0 : index
    %11 = vector.load %arg9[%c0_11, %c0_12] : memref<360x128xf32, #tpu.memory_space<vmem>>, vector<360x128xf32>
    tpu.vector_store %arg9[%c0_11, %c0_12], %10 {strides = array<i32>} : memref<360x128xf32, #tpu.memory_space<vmem>>, vector<360x128xf32>,
    %c1 = arith.constant 1 : index
    %c0_13 = arith.constant 0 : index
    %12 = vector.load %arg8[%c1, %c0_13] : memref<400x16xf32, #tpu.memory_space<vmem>>, vector<360x16xf32>
    %13 = arith.truncf %12 : vector<360x16xf32> to vector<360x16xbf16>
    %c1_14 = arith.constant 1 : index
    %c0_15 = arith.constant 0 : index
    %c0_16 = arith.constant 0 : index
    %14 = vector.load %arg4[%c1_14, %c0_15, %c0_16] : memref<9x16x128xbf16, #tpu.memory_space<vmem>>, vector<1x16x128xbf16>
    %15 = vector.shape_cast %14 : vector<1x16x128xbf16> to vector<16x128xbf16>
    %cst_17 = arith.constant dense<0.000000e+00> : vector<360x128xf32>
    %16 = tpu.matmul %13, %15, %cst_17 {dimension_numbers = #tpu.dot_dimension_numbers<[1], [0], [0], [1], [0, 0, 1, 1], [], []>} : vector<360x16xbf16>, vector<16x128xbf16>, vector<360x128xf32> -> vector<360x128xf32>
    %c0_18 = arith.constant 0 : index
    %c0_19 = arith.constant 0 : index
    %17 = vector.load %arg9[%c0_18, %c0_19] : memref<360x128xf32, #tpu.memory_space<vmem>>, vector<360x128xf32>
    %18 = arith.addf %17, %16 : vector<360x128xf32>
    %c0_20 = arith.constant 0 : index
    %c0_21 = arith.constant 0 : index
    %19 = vector.load %arg9[%c0_20, %c0_21] : memref<360x128xf32, #tpu.memory_space<vmem>>, vector<360x128xf32>
    tpu.vector_store %arg9[%c0_20, %c0_21], %18 {strides = array<i32>} : memref<360x128xf32, #tpu.memory_space<vmem>>, vector<360x128xf32>,
    %c2 = arith.constant 2 : index
    %c0_22 = arith.constant 0 : index
    %20 = vector.load %arg8[%c2, %c0_22] : memref<400x16xf32, #tpu.memory_space<vmem>>, vector<360x16xf32>
    %21 = arith.truncf %20 : vector<360x16xf32> to vector<360x16xbf16>
    %c2_23 = arith.constant 2 : index
    %c0_24 = arith.constant 0 : index
    %c0_25 = arith.constant 0 : index
    %22 = vector.load %arg4[%c2_23, %c0_24, %c0_25] : memref<9x16x128xbf16, #tpu.memory_space<vmem>>, vector<1x16x128xbf16>
    %23 = vector.shape_cast %22 : vector<1x16x128xbf16> to vector<16x128xbf16>
    %cst_26 = arith.constant dense<0.000000e+00> : vector<360x128xf32>
    %24 = tpu.matmul %21, %23, %cst_26 {dimension_numbers = #tpu.dot_dimension_numbers<[1], [0], [0], [1], [0, 0, 1, 1], [], []>} : vector<360x16xbf16>, vector<16x128xbf16>, vector<360x128xf32> -> vector<360x128xf32>
    %c0_27 = arith.constant 0 : index
    %c0_28 = arith.constant 0 : index
    %25 = vector.load %arg9[%c0_27, %c0_28] : memref<360x128xf32, #tpu.memory_space<vmem>>, vector<360x128xf32>
    %26 = arith.addf %25, %24 : vector<360x128xf32>
    %c0_29 = arith.constant 0 : index
    %c0_30 = arith.constant 0 : index
    %27 = vector.load %arg9[%c0_29, %c0_30] : memref<360x128xf32, #tpu.memory_space<vmem>>, vector<360x128xf32>
    tpu.vector_store %arg9[%c0_29, %c0_30], %26 {strides = array<i32>} : memref<360x128xf32, #tpu.memory_space<vmem>>, vector<360x128xf32>,
    %c18 = arith.constant 18 : index
    %c0_31 = arith.constant 0 : index
    %28 = vector.load %arg8[%c18, %c0_31] : memref<400x16xf32, #tpu.memory_space<vmem>>, vector<360x16xf32>
    %29 = arith.truncf %28 : vector<360x16xf32> to vector<360x16xbf16>
    %c3 = arith.constant 3 : index
    %c0_32 = arith.constant 0 : index
    %c0_33 = arith.constant 0 : index
    %30 = vector.load %arg4[%c3, %c0_32, %c0_33] : memref<9x16x128xbf16, #tpu.memory_space<vmem>>, vector<1x16x128xbf16>
    %31 = vector.shape_cast %30 : vector<1x16x128xbf16> to vector<16x128xbf16>
    %cst_34 = arith.constant dense<0.000000e+00> : vector<360x128xf32>
    %32 = tpu.matmul %29, %31, %cst_34 {dimension_numbers = #tpu.dot_dimension_numbers<[1], [0], [0], [1], [0, 0, 1, 1], [], []>} : vector<360x16xbf16>, vector<16x128xbf16>, vector<360x128xf32> -> vector<360x128xf32>
    %c0_35 = arith.constant 0 : index
    %c0_36 = arith.constant 0 : index
    %33 = vector.load %arg9[%c0_35, %c0_36] : memref<360x128xf32, #tpu.memory_space<vmem>>, vector<360x128xf32>
    %34 = arith.addf %33, %32 : vector<360x128xf32>
    %c0_37 = arith.constant 0 : index
    %c0_38 = arith.constant 0 : index
    %35 = vector.load %arg9[%c0_37, %c0_38] : memref<360x128xf32, #tpu.memory_space<vmem>>, vector<360x128xf32>
    tpu.vector_store %arg9[%c0_37, %c0_38], %34 {strides = array<i32>} : memref<360x128xf32, #tpu.memory_space<vmem>>, vector<360x128xf32>,
    %c19 = arith.constant 19 : index
    %c0_39 = arith.constant 0 : index
    %36 = vector.load %arg8[%c19, %c0_39] : memref<400x16xf32, #tpu.memory_space<vmem>>, vector<360x16xf32>
    %37 = arith.truncf %36 : vector<360x16xf32> to vector<360x16xbf16>
    %c4 = arith.constant 4 : index
    %c0_40 = arith.constant 0 : index
    %c0_41 = arith.constant 0 : index
    %38 = vector.load %arg4[%c4, %c0_40, %c0_41] : memref<9x16x128xbf16, #tpu.memory_space<vmem>>, vector<1x16x128xbf16>
    %39 = vector.shape_cast %38 : vector<1x16x128xbf16> to vector<16x128xbf16>
    %cst_42 = arith.constant dense<0.000000e+00> : vector<360x128xf32>
    %40 = tpu.matmul %37, %39, %cst_42 {dimension_numbers = #tpu.dot_dimension_numbers<[1], [0], [0], [1], [0, 0, 1, 1], [], []>} : vector<360x16xbf16>, vector<16x128xbf16>, vector<360x128xf32> -> vector<360x128xf32>
    %c0_43 = arith.constant 0 : index
    %c0_44 = arith.constant 0 : index
    %41 = vector.load %arg9[%c0_43, %c0_44] : memref<360x128xf32, #tpu.memory_space<vmem>>, vector<360x128xf32>
    %42 = arith.addf %41, %40 : vector<360x128xf32>
    %c0_45 = arith.constant 0 : index
    %c0_46 = arith.constant 0 : index
    %43 = vector.load %arg9[%c0_45, %c0_46] : memref<360x128xf32, #tpu.memory_space<vmem>>, vector<360x128xf32>
    tpu.vector_store %arg9[%c0_45, %c0_46], %42 {strides = array<i32>} : memref<360x128xf32, #tpu.memory_space<vmem>>, vector<360x128xf32>,
    %c20 = arith.constant 20 : index
    %c0_47 = arith.constant 0 : index
    %44 = vector.load %arg8[%c20, %c0_47] : memref<400x16xf32, #tpu.memory_space<vmem>>, vector<360x16xf32>
    %45 = arith.truncf %44 : vector<360x16xf32> to vector<360x16xbf16>
    %c5 = arith.constant 5 : index
    %c0_48 = arith.constant 0 : index
    %c0_49 = arith.constant 0 : index
    %46 = vector.load %arg4[%c5, %c0_48, %c0_49] : memref<9x16x128xbf16, #tpu.memory_space<vmem>>, vector<1x16x128xbf16>
    %47 = vector.shape_cast %46 : vector<1x16x128xbf16> to vector<16x128xbf16>
    %cst_50 = arith.constant dense<0.000000e+00> : vector<360x128xf32>
    %48 = tpu.matmul %45, %47, %cst_50 {dimension_numbers = #tpu.dot_dimension_numbers<[1], [0], [0], [1], [0, 0, 1, 1], [], []>} : vector<360x16xbf16>, vector<16x128xbf16>, vector<360x128xf32> -> vector<360x128xf32>
    %c0_51 = arith.constant 0 : index
    %c0_52 = arith.constant 0 : index
    %49 = vector.load %arg9[%c0_51, %c0_52] : memref<360x128xf32, #tpu.memory_space<vmem>>, vector<360x128xf32>
    %50 = arith.addf %49, %48 : vector<360x128xf32>
    %c0_53 = arith.constant 0 : index
    %c0_54 = arith.constant 0 : index
    %51 = vector.load %arg9[%c0_53, %c0_54] : memref<360x128xf32, #tpu.memory_space<vmem>>, vector<360x128xf32>
    tpu.vector_store %arg9[%c0_53, %c0_54], %50 {strides = array<i32>} : memref<360x128xf32, #tpu.memory_space<vmem>>, vector<360x128xf32>,
    %c36 = arith.constant 36 : index
    %c0_55 = arith.constant 0 : index
    %52 = vector.load %arg8[%c36, %c0_55] : memref<400x16xf32, #tpu.memory_space<vmem>>, vector<360x16xf32>
    %53 = arith.truncf %52 : vector<360x16xf32> to vector<360x16xbf16>
    %c6 = arith.constant 6 : index
    %c0_56 = arith.constant 0 : index
    %c0_57 = arith.constant 0 : index
    %54 = vector.load %arg4[%c6, %c0_56, %c0_57] : memref<9x16x128xbf16, #tpu.memory_space<vmem>>, vector<1x16x128xbf16>
    %55 = vector.shape_cast %54 : vector<1x16x128xbf16> to vector<16x128xbf16>
    %cst_58 = arith.constant dense<0.000000e+00> : vector<360x128xf32>
    %56 = tpu.matmul %53, %55, %cst_58 {dimension_numbers = #tpu.dot_dimension_numbers<[1], [0], [0], [1], [0, 0, 1, 1], [], []>} : vector<360x16xbf16>, vector<16x128xbf16>, vector<360x128xf32> -> vector<360x128xf32>
    %c0_59 = arith.constant 0 : index
    %c0_60 = arith.constant 0 : index
    %57 = vector.load %arg9[%c0_59, %c0_60] : memref<360x128xf32, #tpu.memory_space<vmem>>, vector<360x128xf32>
    %58 = arith.addf %57, %56 : vector<360x128xf32>
    %c0_61 = arith.constant 0 : index
    %c0_62 = arith.constant 0 : index
    %59 = vector.load %arg9[%c0_61, %c0_62] : memref<360x128xf32, #tpu.memory_space<vmem>>, vector<360x128xf32>
    tpu.vector_store %arg9[%c0_61, %c0_62], %58 {strides = array<i32>} : memref<360x128xf32, #tpu.memory_space<vmem>>, vector<360x128xf32>,
    %c37 = arith.constant 37 : index
    %c0_63 = arith.constant 0 : index
    %60 = vector.load %arg8[%c37, %c0_63] : memref<400x16xf32, #tpu.memory_space<vmem>>, vector<360x16xf32>
    %61 = arith.truncf %60 : vector<360x16xf32> to vector<360x16xbf16>
    %c7 = arith.constant 7 : index
    %c0_64 = arith.constant 0 : index
    %c0_65 = arith.constant 0 : index
    %62 = vector.load %arg4[%c7, %c0_64, %c0_65] : memref<9x16x128xbf16, #tpu.memory_space<vmem>>, vector<1x16x128xbf16>
    %63 = vector.shape_cast %62 : vector<1x16x128xbf16> to vector<16x128xbf16>
    %cst_66 = arith.constant dense<0.000000e+00> : vector<360x128xf32>
    %64 = tpu.matmul %61, %63, %cst_66 {dimension_numbers = #tpu.dot_dimension_numbers<[1], [0], [0], [1], [0, 0, 1, 1], [], []>} : vector<360x16xbf16>, vector<16x128xbf16>, vector<360x128xf32> -> vector<360x128xf32>
    %c0_67 = arith.constant 0 : index
    %c0_68 = arith.constant 0 : index
    %65 = vector.load %arg9[%c0_67, %c0_68] : memref<360x128xf32, #tpu.memory_space<vmem>>, vector<360x128xf32>
    %66 = arith.addf %65, %64 : vector<360x128xf32>
    %c0_69 = arith.constant 0 : index
    %c0_70 = arith.constant 0 : index
    %67 = vector.load %arg9[%c0_69, %c0_70] : memref<360x128xf32, #tpu.memory_space<vmem>>, vector<360x128xf32>
    tpu.vector_store %arg9[%c0_69, %c0_70], %66 {strides = array<i32>} : memref<360x128xf32, #tpu.memory_space<vmem>>, vector<360x128xf32>,
    %c38 = arith.constant 38 : index
    %c0_71 = arith.constant 0 : index
    %68 = vector.load %arg8[%c38, %c0_71] : memref<400x16xf32, #tpu.memory_space<vmem>>, vector<360x16xf32>
    %69 = arith.truncf %68 : vector<360x16xf32> to vector<360x16xbf16>
    %c8 = arith.constant 8 : index
    %c0_72 = arith.constant 0 : index
    %c0_73 = arith.constant 0 : index
    %70 = vector.load %arg4[%c8, %c0_72, %c0_73] : memref<9x16x128xbf16, #tpu.memory_space<vmem>>, vector<1x16x128xbf16>
    %71 = vector.shape_cast %70 : vector<1x16x128xbf16> to vector<16x128xbf16>
    %cst_74 = arith.constant dense<0.000000e+00> : vector<360x128xf32>
    %72 = tpu.matmul %69, %71, %cst_74 {dimension_numbers = #tpu.dot_dimension_numbers<[1], [0], [0], [1], [0, 0, 1, 1], [], []>} : vector<360x16xbf16>, vector<16x128xbf16>, vector<360x128xf32> -> vector<360x128xf32>
    %c0_75 = arith.constant 0 : index
    %c0_76 = arith.constant 0 : index
    %73 = vector.load %arg9[%c0_75, %c0_76] : memref<360x128xf32, #tpu.memory_space<vmem>>, vector<360x128xf32>
    %74 = arith.addf %73, %72 : vector<360x128xf32>
    %c0_77 = arith.constant 0 : index
    %c0_78 = arith.constant 0 : index
    %75 = vector.load %arg9[%c0_77, %c0_78] : memref<360x128xf32, #tpu.memory_space<vmem>>, vector<360x128xf32>
    tpu.vector_store %arg9[%c0_77, %c0_78], %74 {strides = array<i32>} : memref<360x128xf32, #tpu.memory_space<vmem>>, vector<360x128xf32>,
    %c0_79 = arith.constant 0 : index
    %c0_80 = arith.constant 0 : index
    %76 = vector.load %arg9[%c0_79, %c0_80] : memref<360x128xf32, #tpu.memory_space<vmem>>, vector<360x128xf32>
    %c0_81 = arith.constant 0 : index
    %c0_82 = arith.constant 0 : index
    %77 = vector.load %arg5[%c0_81, %c0_82] : memref<1x128xf32, #tpu.memory_space<vmem>>, vector<1x128xf32>
    %78 = vector.broadcast %77 : vector<1x128xf32> to vector<360x128xf32>
    %79 = arith.addf %76, %78 : vector<360x128xf32>
    %c0_83 = arith.constant 0 : index
    %c0_84 = arith.constant 0 : index
    %80 = vector.load %arg6[%c0_83, %c0_84] : memref<360x128xbf16, #tpu.memory_space<vmem>>, vector<360x128xbf16>
    %81 = arith.extf %80 : vector<360x128xbf16> to vector<360x128xf32>
    %82 = arith.addf %79, %81 : vector<360x128xf32>
    %cst_85 = arith.constant 0.000000e+00 : f32
    %83 = vector.broadcast %cst_85 : f32 to vector<360x128xf32>
    %84 = arith.maximumf %82, %83 : vector<360x128xf32>
    %c0_86 = arith.constant 0 : index
    %c0_87 = arith.constant 0 : index
    %85 = vector.load %arg7[%c0_86, %c0_87] : memref<360x128xf32, #tpu.memory_space<vmem>>, vector<360x128xf32>
    tpu.vector_store %arg7[%c0_86, %c0_87], %84 {strides = array<i32>} : memref<360x128xf32, #tpu.memory_space<vmem>>, vector<360x128xf32>,
    return
  }
  func.func @transform_0(%arg0: i32, %arg1: i32) -> (i32, i32) {
    %c0_i32 = arith.constant 0 : i32
    %c0_i32_0 = arith.constant 0 : i32
    return %arg0, %c0_i32 : i32, i32
  }
  func.func @transform_1(%arg0: i32, %arg1: i32) -> (i32, i32) {
    %c1_i32 = arith.constant 1 : i32
    %0 = arith.addi %arg0, %c1_i32 : i32
    %c9_i32 = arith.constant 9 : i32
    %1 = arith.muli %0, %c9_i32 : i32
    %c0_i32 = arith.constant 0 : i32
    %c0_i32_0 = arith.constant 0 : i32
    return %1, %c0_i32 : i32, i32
  }
  func.func @transform_2(%arg0: i32, %arg1: i32) -> (i32, i32, i32) {
    %c0_i32 = arith.constant 0 : i32
    %c0_i32_0 = arith.constant 0 : i32
    %c0_i32_1 = arith.constant 0 : i32
    return %c0_i32, %c0_i32_0, %arg1 : i32, i32, i32
  }
  func.func @transform_3(%arg0: i32, %arg1: i32) -> (i32, i32) {
    %c0_i32 = arith.constant 0 : i32
    %c0_i32_0 = arith.constant 0 : i32
    return %c0_i32, %arg1 : i32, i32
  }
  func.func @transform_4(%arg0: i32, %arg1: i32) -> (i32, i32) {
    %c0_i32 = arith.constant 0 : i32
    return %arg0, %arg1 : i32, i32
  }
  func.func @transform_5(%arg0: i32, %arg1: i32) -> (i32, i32) {
    %c0_i32 = arith.constant 0 : i32
    return %arg0, %arg1 : i32, i32
  }
}

</mosaic_0001>

<bundles_post_ra>
// kernel: basic_block_forward.2
= control target key start
LH: loop header
LB: loop body
LE: loop exit
PB: predicated region body
PF: predicated region fallthrough
CT: control target
= control target key end

     0   :  { %s7039_s15 = smov 0   ;;  %s7041_s16 = smov 0   ;;  %s8535_s0 = inlined_call_operand.vmem [shape: bf16[1080,16], index: 0, kind: input, shape index: {}, may-alias: {0,1}]   ;;  %s8536_s1 = inlined_call_operand.vmem [shape: bf16[1080,16], index: 1, kind: input, shape index: {}, may-alias: {0,1}]   ;;  %s8537_s2 = inlined_call_operand.vmem [shape: bf16[9,16,128], index: 2, kind: input, shape index: {}]   ;;  %s8538_s3 = inlined_call_operand.vmem [shape: f32[1,128], index: 3, kind: input, shape index: {}]   ;;  %s8539_s4 = inlined_call_operand.vmem [shape: bf16[720,128], index: 4, kind: output, shape index: {}]  }
   0x1   :  { %s7043_s17 = smov 0  }
   0x2 LB: > { %s26_s18 = sadd.s32 1, %s7006_s16  ;;  %p5310_p0 = scmp.ge.s32.totalorder %s7010_s17, 1  ;;  %s7010_s17 = sphi %s7043_s17, %s14_s17   ;;  %s7006_s16 = sphi %s7041_s16, %s8584_s16   ;;  %s7002_s15 = sphi %s7039_s15, %s8583_s15  }
   0x3   : > { %p28_p1 = scmp.ge.s32.totalorder %s26_s18, 2  ;;  %p213_p2 = scmp.lt.s32.totalorder %s7010_s17, 3 }
   0x5   : > { %s8586_s18 = smov (%p28_p1, %s26_s18), 0  ;;  %p214_p3 = pnand %p5310_p0, %p213_p2 }
   0x7   : > { %217 = sbr.rel (%p214_p3) target bundleno = 1059 (0x423), region = 36 }
   0xc   : > { %v6979_v0 = vld [vmem:[%s8537_s2] sm:$0xff]   ;;  %v8543_v1 = vmov 0.0   ;;  %s7065_s21 = smul.u32 45, %s7002_s15  ;;  %vm7013_vm0 = vmmov 0   ;;  %vm379_vm1 = vcmask 130048   ;;  %v6980_v56 = vld [vmem:[%s8537_s2 + $0x10] sm:$0xff]  }
   0xd   : > { %6105 = vmatprep.subr.bf16.mxu0 %v8543_v1  ;;  %6951 = vmatprep.subr.bf16.mxu1 %v8543_v1  ;;  %s262_s9 = sadd.s32 1, %s7002_s15 }
   0xe   : > { %6106 = vmatpush3.bf16.msra.mxu0 %v6979_v0  ;;  %6952 = vmatpush3.bf16.msra.mxu1 %v6979_v0  ;;  %p257_p4 = scmp.lt.s32.totalorder %s7065_s21, 134  ;;  %s5312_s10 = smul.u32 45, %s262_s9 }
   0xf   : > { %6107 = vmatprep.mubr.msk.bf16.mxu0 %vm7013_vm0, %v8543_v1  ;;  %6155 = vmatprep.mubr.msk.bf16.mxu1 %vm7013_vm0, %v8543_v1  ;;  %p280_p6 = scmp.lt.s32.totalorder %s7065_s21, 89 }
  0x10   : > { %6293 = vmatprep.subr.bf16.mxu0 %v8543_v1  ;;  %6199 = vmatprep.subr.bf16.mxu1 %v8543_v1  ;;  %s258_s22 = scalar_select %p257_p4, %s7065_s21, 134 }
  0x11   : > { %p265_p5 = scmp.lt.s32.totalorder %s5312_s10, 134  ;;  %s8590_s21 = smov (!%p280_p6, %s7065_s21), 89 }
  0x12   : > { %s5311_s23 = sshll.u32 %s258_s22, 2  ;;  %s5314_s29 = sshll.u32 %s8590_s21, 2 }
  0x13   : > { %s7078_s26 = scalar_lea.vmem %s8535_s0, %s5311_s23  ;;  %s8588_s10 = smov (!%p265_p5, %s5312_s10), 134 }
  0x14   : > { %v5641_v2 = vld [vmem:[%s7078_s26] sm:$0xff]   ;;  %v5846_v4 = vld [vmem:[%s7078_s26 + $0x8] sm:$0xff]   ;;  %v5847_v10 = vld [vmem:[%s7078_s26 + $0x10] sm:$0xff]   ;;  %s5313_s11 = sshll.u32 %s8588_s10, 2  ;;  %s8416_s6 = scalar_lea.vmem %s8539_s4, %s5314_s29 }
  0x15   : > { %v5857_v3 = vld [vmem:[%s7078_s26 + $0x60] sm:$0xff]   ;;  %v5642_v5 = vunpack.c.l.bf16 %v5641_v2  ;;  %v5643_v6 = vunpack.c.h.bf16 %v5641_v2  ;;  %v5858_v9 = vld [vmem:[%s7078_s26 + $0x68] sm:$0xff]   ;;  %v5859_v11 = vld [vmem:[%s7078_s26 + $0x70] sm:$0xff]   ;;  %v5646_v12 = vunpack.c.l.bf16 %v5846_v4  ;;  %v5647_v13 = vunpack.c.h.bf16 %v5846_v4  ;;  %s7273_s14 = scalar_lea.vmem %s8536_s1, %s5313_s11 }
  0x16   : > { %v5690_v7 = vunpack.c.l.bf16 %v5857_v3  ;;  %v5691_v8 = vunpack.c.h.bf16 %v5857_v3  ;;  %v5694_v14 = vunpack.c.l.bf16 %v5858_v9  ;;  %v5695_v15 = vunpack.c.h.bf16 %v5858_v9  ;;  %v5848_v16 = vld [vmem:[%s7078_s26 + $0x18] sm:$0xff]   ;;  %v5849_v18 = vld [vmem:[%s7078_s26 + $0x20] sm:$0xff]   ;;  %v5850_v24 = vld [vmem:[%s7078_s26 + $0x28] sm:$0xff]  }
  0x17   : > { %v5860_v17 = vld [vmem:[%s7078_s26 + $0x78] sm:$0xff]   ;;  %380 = vst.msk [vmem:[#allocation2] sm:$0xff] %vm379_vm1, %v5642_v5  ;;  %381 = vst.msk [vmem:[#allocation2 + $0x8] sm:$0xff] %vm379_vm1, %v5643_v6  ;;  %v5650_v19 = vunpack.c.l.bf16 %v5847_v10  ;;  %v5651_v20 = vunpack.c.h.bf16 %v5847_v10  ;;  %v5698_v21 = vunpack.c.l.bf16 %v5859_v11  ;;  %v5699_v22 = vunpack.c.h.bf16 %v5859_v11  ;;  %v5861_v23 = vld [vmem:[%s7078_s26 + $0x80] sm:$0xff]  }
  0x18   : > { %404 = vst.msk [vmem:[#allocation2 + $0xc0] sm:$0xff] %vm379_vm1, %v5690_v7  ;;  %405 = vst.msk [vmem:[#allocation2 + $0xc8] sm:$0xff] %vm379_vm1, %v5691_v8  ;;  %v5862_v25 = vld [vmem:[%s7078_s26 + $0x88] sm:$0xff]   ;;  %v5654_v26 = vunpack.c.l.bf16 %v5848_v16  ;;  %v5655_v27 = vunpack.c.h.bf16 %v5848_v16  ;;  %v5702_v28 = vunpack.c.l.bf16 %v5860_v17  ;;  %v5703_v29 = vunpack.c.h.bf16 %v5860_v17  ;;  %v5851_v30 = vld [vmem:[%s7078_s26 + $0x30] sm:$0xff]  }
  0x19   : > { %382 = vst.msk [vmem:[#allocation2 + $0x10] sm:$0xff] %vm379_vm1, %v5646_v12  ;;  %383 = vst.msk [vmem:[#allocation2 + $0x18] sm:$0xff] %vm379_vm1, %v5647_v13  ;;  %v5863_v31 = vld [vmem:[%s7078_s26 + $0x90] sm:$0xff]   ;;  %v5658_v32 = vunpack.c.l.bf16 %v5849_v18  ;;  %v5659_v33 = vunpack.c.h.bf16 %v5849_v18  ;;  %v5706_v34 = vunpack.c.l.bf16 %v5861_v23  ;;  %v5707_v35 = vunpack.c.h.bf16 %v5861_v23  ;;  %v5852_v36 = vld [vmem:[%s7078_s26 + $0x38] sm:$0xff]  }
  0x1a   : > { %406 = vst.msk [vmem:[#allocation2 + $0xd0] sm:$0xff] %vm379_vm1, %v5694_v14  ;;  %407 = vst.msk [vmem:[#allocation2 + $0xd8] sm:$0xff] %vm379_vm1, %v5695_v15  ;;  %v5864_v37 = vld [vmem:[%s7078_s26 + $0x98] sm:$0xff]   ;;  %v5662_v38 = vunpack.c.l.bf16 %v5850_v24  ;;  %v5663_v39 = vunpack.c.h.bf16 %v5850_v24  ;;  %v5710_v40 = vunpack.c.l.bf16 %v5862_v25  ;;  %v5711_v41 = vunpack.c.h.bf16 %v5862_v25  ;;  %v5853_v42 = vld [vmem:[%s7078_s26 + $0x40] sm:$0xff]  }
  0x1b   : > { %384 = vst.msk [vmem:[#allocation2 + $0x20] sm:$0xff] %vm379_vm1, %v5650_v19  ;;  %385 = vst.msk [vmem:[#allocation2 + $0x28] sm:$0xff] %vm379_vm1, %v5651_v20  ;;  %v5865_v43 = vld [vmem:[%s7078_s26 + $0xa0] sm:$0xff]   ;;  %v5666_v44 = vunpack.c.l.bf16 %v5851_v30  ;;  %v5667_v45 = vunpack.c.h.bf16 %v5851_v30  ;;  %v5714_v46 = vunpack.c.l.bf16 %v5863_v31  ;;  %v5715_v47 = vunpack.c.h.bf16 %v5863_v31  ;;  %v5854_v48 = vld [vmem:[%s7078_s26 + $0x48] sm:$0xff]  }
  0x1c   : > { %408 = vst.msk [vmem:[#allocation2 + $0xe0] sm:$0xff] %vm379_vm1, %v5698_v21  ;;  %409 = vst.msk [vmem:[#allocation2 + $0xe8] sm:$0xff] %vm379_vm1, %v5699_v22  ;;  %v5866_v49 = vld [vmem:[%s7078_s26 + $0xa8] sm:$0xff]   ;;  %v5670_v50 = vunpack.c.l.bf16 %v5852_v36  ;;  %v5671_v51 = vunpack.c.h.bf16 %v5852_v36  ;;  %v5718_v52 = vunpack.c.l.bf16 %v5864_v37  ;;  %v5719_v53 = vunpack.c.h.bf16 %v5864_v37  ;;  %v5855_v54 = vld [vmem:[%s7078_s26 + $0x50] sm:$0xff]  }
  0x1d   : > { %386 = vst.msk [vmem:[#allocation2 + $0x30] sm:$0xff] %vm379_vm1, %v5654_v26  ;;  %387 = vst.msk [vmem:[#allocation2 + $0x38] sm:$0xff] %vm379_vm1, %v5655_v27  ;;  %v333_v55 = vld [vmem:[%s7078_s26 + $0xb0] sm:$0xf]  ;;  %v5674_v57 = vunpack.c.l.bf16 %v5853_v42  ;;  %v5675_v58 = vunpack.c.h.bf16 %v5853_v42  ;;  %v5722_v59 = vunpack.c.l.bf16 %v5865_v43  ;;  %v5723_v60 = vunpack.c.h.bf16 %v5865_v43  ;;  %v5856_v61 = vld [vmem:[%s7078_s26 + $0x58] sm:$0xff]  }
  0x1e   : > { %410 = vst.msk [vmem:[#allocation2 + $0xf0] sm:$0xff] %vm379_vm1, %v5702_v28  ;;  %411 = vst.msk [vmem:[#allocation2 + $0xf8] sm:$0xff] %vm379_vm1, %v5703_v29  ;;  %v440_v62 = vld [vmem:[#allocation2] sm:$0xff]  ;;  %v441_v63 = vld [vmem:[#allocation2 + $0x8] sm:$0xff]  ;;  %v5678_v2 = vunpack.c.l.bf16 %v5854_v48  ;;  %v5679_v3 = vunpack.c.h.bf16 %v5854_v48  ;;  %v5726_v4 = vunpack.c.l.bf16 %v5866_v49  ;;  %v5727_v5 = vunpack.c.h.bf16 %v5866_v49 }
  0x1f   : > { %388 = vst.msk [vmem:[#allocation2 + $0x40] sm:$0xff] %vm379_vm1, %v5658_v32  ;;  %389 = vst.msk [vmem:[#allocation2 + $0x48] sm:$0xff] %vm379_vm1, %v5659_v33  ;;  %v464_v0 = vld [vmem:[#allocation2 + $0xc0] sm:$0xff]  ;;  %v485_v6 = vpack.c.bf16 %v441_v63, %v440_v62  ;;  %v465_v7 = vld [vmem:[#allocation2 + $0xc8] sm:$0xff]  ;;  %v5682_v9 = vunpack.c.l.bf16 %v5855_v54  ;;  %v5683_v10 = vunpack.c.h.bf16 %v5855_v54  ;;  %v378_v11 = vunpack.c.l.bf16 %v333_v55 }
  0x20   : > { %412 = vst.msk [vmem:[#allocation2 + $0x100] sm:$0xff] %vm379_vm1, %v5706_v34  ;;  %413 = vst.msk [vmem:[#allocation2 + $0x108] sm:$0xff] %vm379_vm1, %v5707_v35  ;;  %v6981_v8 = vld [vmem:[%s8537_s2 + $0x8] sm:$0xff]   ;;  %v497_v12 = vpack.c.bf16 %v465_v7, %v464_v0  ;;  %v5686_v13 = vunpack.c.l.bf16 %v5856_v61  ;;  %v5687_v14 = vunpack.c.h.bf16 %v5856_v61  ;;  %v442_v15 = vld [vmem:[#allocation2 + $0x10] sm:$0xff] }
  0x21   : > { %390 = vst.msk [vmem:[#allocation2 + $0x50] sm:$0xff] %vm379_vm1, %v5662_v38  ;;  %391 = vst.msk [vmem:[#allocation2 + $0x58] sm:$0xff] %vm379_vm1, %v5663_v39  ;;  %6108 = vmatmul.mubr.msk.bf16.vlgmr.msra.gmra.mxu0 %vm379_vm1, %v485_v6  ;;  %v443_v16 = vld [vmem:[#allocation2 + $0x18] sm:$0xff]  ;;  %v466_v17 = vld [vmem:[#allocation2 + $0xd0] sm:$0xff] }
  0x22   : > { %414 = vst.msk [vmem:[#allocation2 + $0x110] sm:$0xff] %vm379_vm1, %v5710_v40  ;;  %415 = vst.msk [vmem:[#allocation2 + $0x118] sm:$0xff] %vm379_vm1, %v5711_v41  ;;  %6156 = vmatmul.mubr.msk.bf16.vlgmr.msra.gmra.mxu1 %vm379_vm1, %v497_v12  ;;  %6294 = vmatpush3.bf16.msra.mxu0 %v6980_v56  ;;  %v467_v18 = vld [vmem:[#allocation2 + $0xd8] sm:$0xff]  ;;  %v486_v19 = vpack.c.bf16 %v443_v16, %v442_v15  ;;  %v444_v21 = vld [vmem:[#allocation2 + $0x20] sm:$0xff] }
  0x23   : > { %392 = vst.msk [vmem:[#allocation2 + $0x60] sm:$0xff] %vm379_vm1, %v5666_v44  ;;  %393 = vst.msk [vmem:[#allocation2 + $0x68] sm:$0xff] %vm379_vm1, %v5667_v45  ;;  %6200 = vmatpush3.bf16.msra.mxu1 %v6981_v8  ;;  %6111 = vmatprep.mubr.msk.bf16.mxu0 %vm7013_vm0, %v8543_v1  ;;  %v498_v20 = vpack.c.bf16 %v467_v18, %v466_v17  ;;  %v445_v22 = vld [vmem:[#allocation2 + $0x28] sm:$0xff]  ;;  %v468_v23 = vld [vmem:[#allocation2 + $0xe0] sm:$0xff] }
  0x24   : > { %416 = vst.msk [vmem:[#allocation2 + $0x120] sm:$0xff] %vm379_vm1, %v5714_v46  ;;  %417 = vst.msk [vmem:[#allocation2 + $0x128] sm:$0xff] %vm379_vm1, %v5715_v47  ;;  %6159 = vmatprep.mubr.msk.bf16.mxu1 %vm7013_vm0, %v8543_v1  ;;  %6387 = vmatprep.subr.bf16.mxu1 %v8543_v1  ;;  %v469_v24 = vld [vmem:[#allocation2 + $0xe8] sm:$0xff]  ;;  %v487_v25 = vpack.c.bf16 %v445_v22, %v444_v21  ;;  %v446_v27 = vld [vmem:[#allocation2 + $0x30] sm:$0xff] }
  0x25   : > { %394 = vst.msk [vmem:[#allocation2 + $0x70] sm:$0xff] %vm379_vm1, %v5670_v50  ;;  %395 = vst.msk [vmem:[#allocation2 + $0x78] sm:$0xff] %vm379_vm1, %v5671_v51  ;;  %6481 = vmatprep.subr.bf16.mxu0 %v8543_v1  ;;  %v499_v26 = vpack.c.bf16 %v469_v24, %v468_v23  ;;  %v447_v28 = vld [vmem:[#allocation2 + $0x38] sm:$0xff]  ;;  %v470_v29 = vld [vmem:[#allocation2 + $0xf0] sm:$0xff] }
  0x26   : > { %418 = vst.msk [vmem:[#allocation2 + $0x130] sm:$0xff] %vm379_vm1, %v5718_v52  ;;  %419 = vst.msk [vmem:[#allocation2 + $0x138] sm:$0xff] %vm379_vm1, %v5719_v53  ;;  %v471_v30 = vld [vmem:[#allocation2 + $0xf8] sm:$0xff]  ;;  %v488_v31 = vpack.c.bf16 %v447_v28, %v446_v27  ;;  %v448_v33 = vld [vmem:[#allocation2 + $0x40] sm:$0xff] }
  0x27   : > { %396 = vst.msk [vmem:[#allocation2 + $0x80] sm:$0xff] %vm379_vm1, %v5674_v57  ;;  %397 = vst.msk [vmem:[#allocation2 + $0x88] sm:$0xff] %vm379_vm1, %v5675_v58  ;;  %v500_v32 = vpack.c.bf16 %v471_v30, %v470_v29  ;;  %v449_v34 = vld [vmem:[#allocation2 + $0x48] sm:$0xff]  ;;  %v472_v35 = vld [vmem:[#allocation2 + $0x100] sm:$0xff] }
  0x28   : > { %420 = vst.msk [vmem:[#allocation2 + $0x140] sm:$0xff] %vm379_vm1, %v5722_v59  ;;  %421 = vst.msk [vmem:[#allocation2 + $0x148] sm:$0xff] %vm379_vm1, %v5723_v60  ;;  %v473_v36 = vld [vmem:[#allocation2 + $0x108] sm:$0xff]  ;;  %v489_v37 = vpack.c.bf16 %v449_v34, %v448_v33  ;;  %v450_v39 = vld [vmem:[#allocation2 + $0x50] sm:$0xff] }
  0x29   : > { %398 = vst.msk [vmem:[#allocation2 + $0x90] sm:$0xff] %vm379_vm1, %v5678_v2  ;;  %399 = vst.msk [vmem:[#allocation2 + $0x98] sm:$0xff] %vm379_vm1, %v5679_v3  ;;  %6112 = vmatmul.mubr.msk.bf16.gmra.mxu0 %vm379_vm1, %v486_v19  ;;  %v501_v38 = vpack.c.bf16 %v473_v36, %v472_v35  ;;  %v451_v40 = vld [vmem:[#allocation2 + $0x58] sm:$0xff]  ;;  %v474_v41 = vld [vmem:[#allocation2 + $0x110] sm:$0xff] }
  0x2a   : > { %422 = vst.msk [vmem:[#allocation2 + $0x150] sm:$0xff] %vm379_vm1, %v5726_v4  ;;  %423 = vst.msk [vmem:[#allocation2 + $0x158] sm:$0xff] %vm379_vm1, %v5727_v5  ;;  %6160 = vmatmul.mubr.msk.bf16.gmra.mxu1 %vm379_vm1, %v498_v20  ;;  %6115 = vmatprep.mubr.msk.bf16.mxu0 %vm7013_vm0, %v8543_v1  ;;  %v475_v42 = vld [vmem:[#allocation2 + $0x118] sm:$0xff]  ;;  %v490_v43 = vpack.c.bf16 %v451_v40, %v450_v39  ;;  %v452_v45 = vld [vmem:[#allocation2 + $0x60] sm:$0xff] }
  0x2b   : > { %400 = vst.msk [vmem:[#allocation2 + $0xa0] sm:$0xff] %vm379_vm1, %v5682_v9  ;;  %401 = vst.msk [vmem:[#allocation2 + $0xa8] sm:$0xff] %vm379_vm1, %v5683_v10  ;;  %6163 = vmatprep.mubr.msk.bf16.mxu1 %vm7013_vm0, %v8543_v1  ;;  %v502_v44 = vpack.c.bf16 %v475_v42, %v474_v41  ;;  %v453_v46 = vld [vmem:[#allocation2 + $0x68] sm:$0xff]  ;;  %v476_v47 = vld [vmem:[#allocation2 + $0x120] sm:$0xff] }
  0x2c   : > { %424 = vst.msk [vmem:[#allocation2 + $0x160] sm:$0xff] %vm379_vm1, %v378_v11  ;;  %402 = vst.msk [vmem:[#allocation2 + $0xb0] sm:$0xff] %vm379_vm1, %v5686_v13  ;;  %v477_v48 = vld [vmem:[#allocation2 + $0x128] sm:$0xff]  ;;  %v491_v49 = vpack.c.bf16 %v453_v46, %v452_v45  ;;  %v454_v51 = vld [vmem:[#allocation2 + $0x70] sm:$0xff] }
  0x2d   : > { %403 = vst.msk [vmem:[#allocation2 + $0xb8] sm:$0xff] %vm379_vm1, %v5687_v14  ;;  %v503_v50 = vpack.c.bf16 %v477_v48, %v476_v47  ;;  %v455_v52 = vld [vmem:[#allocation2 + $0x78] sm:$0xff]  ;;  %v478_v53 = vld [vmem:[#allocation2 + $0x130] sm:$0xff]  ;;  %v846_v13 = vld [vmem:[#allocation2 + $0x1] sm:$0xff] }
  0x2e   : > { %v479_v54 = vld [vmem:[#allocation2 + $0x138] sm:$0xff]  ;;  %v492_v55 = vpack.c.bf16 %v455_v52, %v454_v51  ;;  %v456_v57 = vld [vmem:[#allocation2 + $0x80] sm:$0xff]  ;;  %v457_v58 = vld [vmem:[#allocation2 + $0x88] sm:$0xff] }
  0x2f   : > { %v504_v56 = vpack.c.bf16 %v479_v54, %v478_v53  ;;  %v480_v59 = vld [vmem:[#allocation2 + $0x140] sm:$0xff]  ;;  %v481_v60 = vld [vmem:[#allocation2 + $0x148] sm:$0xff]  ;;  %v493_v61 = vpack.c.bf16 %v457_v58, %v456_v57  ;;  %v6982_v17 = vld [vmem:[%s8537_s2 + $0x18] sm:$0xff]  }
  0x30   : > { %v505_v62 = vpack.c.bf16 %v481_v60, %v480_v59  ;;  %v458_v63 = vld [vmem:[#allocation2 + $0x90] sm:$0xff]  ;;  %v459_v0 = vld [vmem:[#allocation2 + $0x98] sm:$0xff]  ;;  %v1343_v18 = vld [vmem:[#allocation2 + $0x2] sm:$0xff] }
  0x31   : > { %6116 = vmatmul.mubr.msk.bf16.gmra.mxu0 %vm379_vm1, %v487_v25  ;;  %v482_v2 = vld [vmem:[#allocation2 + $0x150] sm:$0xff]  ;;  %v483_v3 = vld [vmem:[#allocation2 + $0x158] sm:$0xff]  ;;  %v494_v4 = vpack.c.bf16 %v459_v0, %v458_v63  ;;  %v6983_v24 = vld [vmem:[%s8537_s2 + $0x20] sm:$0xff]  }
  0x32   : > { %6164 = vmatmul.mubr.msk.bf16.gmra.mxu1 %vm379_vm1, %v499_v26  ;;  %6119 = vmatprep.mubr.msk.bf16.mxu0 %vm7013_vm0, %v8543_v1  ;;  %v506_v5 = vpack.c.bf16 %v483_v3, %v482_v2  ;;  %v460_v6 = vld [vmem:[#allocation2 + $0xa0] sm:$0xff]  ;;  %v461_v7 = vld [vmem:[#allocation2 + $0xa8] sm:$0xff]  ;;  %v848_v20 = vld [vmem:[#allocation2 + $0x11] sm:$0xff] }
  0x33   : > { %6167 = vmatprep.mubr.msk.bf16.mxu1 %vm7013_vm0, %v8543_v1  ;;  %v484_v8 = vld [vmem:[#allocation2 + $0x160] sm:$0xff]  ;;  %v495_v9 = vpack.c.bf16 %v461_v7, %v460_v6  ;;  %v462_v11 = vld [vmem:[#allocation2 + $0xb0] sm:$0xff] }
  0x34   : > { %v507_v10 = vpack.c.bf16 %v484_v8, %v484_v8  ;;  %v463_v12 = vld [vmem:[#allocation2 + $0xb8] sm:$0xff]  ;;  %v847_v14 = vld [vmem:[#allocation2 + $0x9] sm:$0xff]  ;;  %v850_v27 = vld [vmem:[#allocation2 + $0x21] sm:$0xff] }
  0x35   : > { %v496_v15 = vpack.c.bf16 %v463_v12, %v462_v11  ;;  %v891_v16 = vpack.c.bf16 %v847_v14, %v846_v13  ;;  %v1344_v19 = vld [vmem:[#allocation2 + $0xa] sm:$0xff]  ;;  %v849_v21 = vld [vmem:[#allocation2 + $0x19] sm:$0xff]  ;;  %v854_v39 = vld [vmem:[#allocation2 + $0x41] sm:$0xff] }
  0x36   : > { %v1388_v22 = vpack.c.bf16 %v1344_v19, %v1343_v18  ;;  %v892_v23 = vpack.c.bf16 %v849_v21, %v848_v20  ;;  %v1345_v25 = vld [vmem:[#allocation2 + $0x12] sm:$0xff]  ;;  %v1346_v26 = vld [vmem:[#allocation2 + $0x1a] sm:$0xff]  ;;  %v851_v28 = vld [vmem:[#allocation2 + $0x29] sm:$0xff] }
  0x37   : > { %v7242_v29 = vpack.c.bf16 %v1346_v26, %v1345_v25  ;;  %v893_v30 = vpack.c.bf16 %v851_v28, %v850_v27  ;;  %v852_v33 = vld [vmem:[#allocation2 + $0x31] sm:$0xff]  ;;  %v853_v34 = vld [vmem:[#allocation2 + $0x39] sm:$0xff]  ;;  %v855_v40 = vld [vmem:[#allocation2 + $0x49] sm:$0xff] }
  0x38   : > { %v894_v36 = vpack.c.bf16 %v853_v34, %v852_v33  ;;  %v895_v42 = vpack.c.bf16 %v855_v40, %v854_v39  ;;  %v856_v45 = vld [vmem:[#allocation2 + $0x51] sm:$0xff]  ;;  %v857_v46 = vld [vmem:[#allocation2 + $0x59] sm:$0xff]  ;;  %v858_v53 = vld [vmem:[#allocation2 + $0x61] sm:$0xff] }
  0x39   : > { %6120 = vmatmul.mubr.msk.bf16.gmra.mxu0 %vm379_vm1, %v488_v31  ;;  %v1347_v31 = vld [vmem:[#allocation2 + $0x22] sm:$0xff]  ;;  %v1353_v51 = vld [vmem:[#allocation2 + $0x52] sm:$0xff]  ;;  %v1354_v52 = vld [vmem:[#allocation2 + $0x5a] sm:$0xff] }
  0x3a   : > { %6168 = vmatmul.mubr.msk.bf16.gmra.mxu1 %vm379_vm1, %v500_v32  ;;  %6123 = vmatprep.mubr.msk.bf16.mxu0 %vm7013_vm0, %v8543_v1  ;;  %v1348_v32 = vld [vmem:[#allocation2 + $0x2a] sm:$0xff]  ;;  %v7278_v48 = vld [vmem:[%s7273_s14] sm:$0xff]   ;;  %v1357_v63 = vld [vmem:[#allocation2 + $0x72] sm:$0xff] }
  0x3b   : > { %6171 = vmatprep.mubr.msk.bf16.mxu1 %vm7013_vm0, %v8543_v1  ;;  %v7251_v35 = vpack.c.bf16 %v1348_v32, %v1347_v31  ;;  %v859_v54 = vld [vmem:[#allocation2 + $0x69] sm:$0xff]  ;;  %v860_v59 = vld [vmem:[#allocation2 + $0x71] sm:$0xff]  ;;  %v861_v60 = vld [vmem:[#allocation2 + $0x79] sm:$0xff] }
  0x3c   : > { %v1355_v57 = vld [vmem:[#allocation2 + $0x62] sm:$0xff]  ;;  %v1356_v58 = vld [vmem:[#allocation2 + $0x6a] sm:$0xff]  ;;  %v1358_v0 = vld [vmem:[#allocation2 + $0x7a] sm:$0xff] }
  0x3d   : > { %v862_v2 = vld [vmem:[#allocation2 + $0x81] sm:$0xff]  ;;  %v863_v3 = vld [vmem:[#allocation2 + $0x89] sm:$0xff]  ;;  %v864_v8 = vld [vmem:[#allocation2 + $0x91] sm:$0xff] }
  0x3e   : > { %v1359_v6 = vld [vmem:[#allocation2 + $0x82] sm:$0xff]  ;;  %v1360_v7 = vld [vmem:[#allocation2 + $0x8a] sm:$0xff]  ;;  %v1361_v12 = vld [vmem:[#allocation2 + $0x92] sm:$0xff] }
  0x3f   : > { %v1362_v13 = vld [vmem:[#allocation2 + $0x9a] sm:$0xff]  ;;  %v1363_v18 = vld [vmem:[#allocation2 + $0xa2] sm:$0xff]  ;;  %v1364_v19 = vld [vmem:[#allocation2 + $0xaa] sm:$0xff] }
  0x40   : > { %v866_v14 = vld [vmem:[#allocation2 + $0xa1] sm:$0xff]  ;;  %v868_v20 = vld [vmem:[#allocation2 + $0xb1] sm:$0xff]  ;;  %v869_v21 = vld [vmem:[#allocation2 + $0xb9] sm:$0xff] }
  0x41   : > { %6124 = vmatmul.mubr.msk.bf16.gmra.mxu0 %vm379_vm1, %v489_v37  ;;  %v1349_v37 = vld [vmem:[#allocation2 + $0x32] sm:$0xff]  ;;  %v1366_v25 = vld [vmem:[#allocation2 + $0xba] sm:$0xff]  ;;  %v871_v27 = vld [vmem:[#allocation2 + $0xc9] sm:$0xff] }
  0x42   : > { %6172 = vmatmul.mubr.msk.bf16.gmra.mxu1 %vm379_vm1, %v501_v38  ;;  %6127 = vmatprep.mubr.msk.bf16.mxu0 %vm7013_vm0, %v8543_v1  ;;  %v1350_v38 = vld [vmem:[#allocation2 + $0x3a] sm:$0xff]  ;;  %v1367_v31 = vld [vmem:[#allocation2 + $0xc2] sm:$0xff]  ;;  %v1368_v32 = vld [vmem:[#allocation2 + $0xca] sm:$0xff] }
  0x43   : > { %6175 = vmatprep.mubr.msk.bf16.mxu1 %vm7013_vm0, %v8543_v1  ;;  %v7261_v41 = vpack.c.bf16 %v1350_v38, %v1349_v37  ;;  %v870_v26 = vld [vmem:[#allocation2 + $0xc1] sm:$0xff]  ;;  %v872_v33 = vld [vmem:[#allocation2 + $0xd1] sm:$0xff]  ;;  %v873_v34 = vld [vmem:[#allocation2 + $0xd9] sm:$0xff] }
  0x44   : > { %v904_v37 = vpack.c.bf16 %v873_v34, %v872_v33  ;;  %v1369_v40 = vld [vmem:[#allocation2 + $0xd2] sm:$0xff] }
  0x45   : > { %v880_v33 = vld [vmem:[#allocation2 + $0x111] sm:$0xff]  ;;  %v881_v34 = vld [vmem:[#allocation2 + $0x119] sm:$0xff] }
  0x49   : > { %6128 = vmatmul.mubr.msk.bf16.gmra.mxu0 %vm379_vm1, %v490_v43  ;;  %v1351_v43 = vld [vmem:[#allocation2 + $0x42] sm:$0xff] }
  0x4a   : > { %6176 = vmatmul.mubr.msk.bf16.gmra.mxu1 %vm379_vm1, %v502_v44  ;;  %6131 = vmatprep.mubr.msk.bf16.mxu0 %vm7013_vm0, %v8543_v1  ;;  %v1352_v44 = vld [vmem:[#allocation2 + $0x4a] sm:$0xff] }
  0x4b   : > { %6179 = vmatprep.mubr.msk.bf16.mxu1 %vm7013_vm0, %v8543_v1  ;;  %v7275_v47 = vpack.c.bf16 %v1352_v44, %v1351_v43  ;;  %v874_v44 = vld [vmem:[#allocation2 + $0xe1] sm:$0xff] }
  0x51   : > { %6132 = vmatmul.mubr.msk.bf16.gmra.mxu0 %vm379_vm1, %v491_v49  ;;  %v896_v49 = vpack.c.bf16 %v857_v46, %v856_v45  ;;  %v875_v45 = vld [vmem:[#allocation2 + $0xe9] sm:$0xff] }
  0x52   : > { %6180 = vmatmul.mubr.msk.bf16.gmra.mxu1 %vm379_vm1, %v503_v50  ;;  %6135 = vmatprep.mubr.msk.bf16.mxu0 %vm7013_vm0, %v8543_v1  ;;  %v5730_v50 = vunpack.c.l.bf16 %v7278_v48 }
  0x53   : > { %6183 = vmatprep.mubr.msk.bf16.mxu1 %vm7013_vm0, %v8543_v1 }
  0x54   : > { %435 = vst.msk [vmem:[#allocation2 + $0x168] sm:$0xff] %vm379_vm1, %v5730_v50 }
  0x59   : > { %6136 = vmatmul.mubr.msk.bf16.gmra.mxu0 %vm379_vm1, %v492_v55  ;;  %v7289_v55 = vpack.c.bf16 %v1354_v52, %v1353_v51  ;;  %v905_v52 = vpack.c.bf16 %v875_v45, %v874_v44  ;;  %v908_v44 = vpack.c.bf16 %v881_v34, %v880_v33 }
  0x5a   : > { %6184 = vmatmul.mubr.msk.bf16.gmra.mxu1 %vm379_vm1, %v504_v56  ;;  %6139 = vmatprep.mubr.msk.bf16.mxu0 %vm7013_vm0, %v8543_v1  ;;  %v897_v56 = vpack.c.bf16 %v859_v54, %v858_v53 }
  0x5b   : > { %6187 = vmatprep.mubr.msk.bf16.mxu1 %vm7013_vm0, %v8543_v1 }
  0x61   : > { %6140 = vmatmul.mubr.msk.bf16.gmra.mxu0 %vm379_vm1, %v493_v61  ;;  %v7298_v61 = vpack.c.bf16 %v1356_v58, %v1355_v57  ;;  %v1371_v58 = vld [vmem:[#allocation2 + $0xe2] sm:$0xff] }
  0x62   : > { %6188 = vmatmul.mubr.msk.bf16.gmra.mxu1 %vm379_vm1, %v505_v62  ;;  %6143 = vmatprep.mubr.msk.bf16.mxu0 %vm7013_vm0, %v8543_v1  ;;  %v898_v62 = vpack.c.bf16 %v861_v60, %v860_v59  ;;  %v1372_v59 = vld [vmem:[#allocation2 + $0xea] sm:$0xff] }
  0x63   : > { %6191 = vmatprep.mubr.msk.bf16.mxu1 %vm7013_vm0, %v8543_v1 }
  0x69   : > { %6144 = vmatmul.mubr.msk.bf16.gmra.mxu0 %vm379_vm1, %v494_v4  ;;  %v7307_v4 = vpack.c.bf16 %v1358_v0, %v1357_v63  ;;  %v877_v63 = vld [vmem:[#allocation2 + $0xf9] sm:$0xff] }
  0x6a   : > { %6192 = vmatmul.mubr.msk.bf16.gmra.mxu1 %vm379_vm1, %v506_v5  ;;  %6147 = vmatprep.mubr.msk.bf16.mxu0 %vm7013_vm0, %v8543_v1  ;;  %v899_v5 = vpack.c.bf16 %v863_v3, %v862_v2  ;;  %v7384_v3 = vpack.c.bf16 %v1372_v59, %v1371_v58  ;;  %v1378_v58 = vld [vmem:[#allocation2 + $0x11a] sm:$0xff] }
  0x6b   : > { %6195 = vmatprep.mubr.msk.bf16.mxu1 %vm7013_vm0, %v8543_v1 }
  0x71   : > { %6148 = vmatmul.mubr.msk.bf16.gmra.mxu0 %vm379_vm1, %v495_v9  ;;  %v865_v9 = vld [vmem:[#allocation2 + $0x99] sm:$0xff] }
  0x72   : > { %6196 = vmatmul.mubr.msk.bf16.gmra.mxu1 %vm379_vm1, %v507_v10  ;;  %6151 = vmatprep.mubr.msk.bf16.mxu0 %vm7013_vm0, %v8543_v1  ;;  %v7316_v10 = vpack.c.bf16 %v1360_v7, %v1359_v6  ;;  %v900_v11 = vpack.c.bf16 %v865_v9, %v864_v8 }
  0x73   : > { %6201 = vmatprep.mubr.msk.bf16.mxu1 %vm7013_vm0, %v8543_v1 }
  0x79   : > { %6152 = vmatmul.mubr.msk.bf16.gmra.mxu0 %vm379_vm1, %v496_v15  ;;  %v867_v15 = vld [vmem:[#allocation2 + $0xa9] sm:$0xff] }
  0x7a   : > { %6202 = vmatmul.mubr.msk.bf16.vlgmr.msra.gmra.mxu1 %vm379_vm1, %v891_v16  ;;  %6295 = vmatprep.mubr.msk.bf16.mxu0 %vm7013_vm0, %v8543_v1  ;;  %v7325_v16 = vpack.c.bf16 %v1362_v13, %v1361_v12  ;;  %v1373_v12 = vld [vmem:[#allocation2 + $0xf2] sm:$0xff]  ;;  %v1374_v13 = vld [vmem:[#allocation2 + $0xfa] sm:$0xff] }
  0x7b   : > { %6388 = vmatpush3.bf16.msra.mxu1 %v6982_v17  ;;  %6205 = vmatprep.mubr.msk.bf16.mxu1 %vm7013_vm0, %v8543_v1  ;;  %v901_v17 = vpack.c.bf16 %v867_v15, %v866_v14  ;;  %v878_v15 = vld [vmem:[#allocation2 + $0x101] sm:$0xff] }
  0x7c   : > { %6575 = vmatprep.subr.bf16.mxu1 %v8543_v1 }
  0x81   : > { %6296 = vmatmul.mubr.msk.bf16.vlgmr.msra.gmra.mxu0 %vm379_vm1, %v1388_v22  ;;  %v7334_v22 = vpack.c.bf16 %v1364_v19, %v1363_v18 }
  0x82   : > { %6206 = vmatmul.mubr.msk.bf16.gmra.mxu1 %vm379_vm1, %v892_v23  ;;  %6482 = vmatpush3.bf16.msra.mxu0 %v6983_v24  ;;  %v902_v23 = vpack.c.bf16 %v869_v21, %v868_v20  ;;  %v1365_v24 = vld [vmem:[#allocation2 + $0xb2] sm:$0xff]  ;;  %v7401_v20 = vpack.c.bf16 %v1374_v13, %v1373_v12 }
  0x83   : > { %6209 = vmatprep.mubr.msk.bf16.mxu1 %vm7013_vm0, %v8543_v1  ;;  %6299 = vmatprep.mubr.msk.bf16.mxu0 %vm7013_vm0, %v8543_v1  ;;  %v7343_v28 = vpack.c.bf16 %v1366_v25, %v1365_v24 }
  0x84   : > { %6669 = vmatprep.subr.bf16.mxu0 %v8543_v1 }
  0x89   : > { %6300 = vmatmul.mubr.msk.bf16.gmra.mxu0 %vm379_vm1, %v7242_v29 }
  0x8a   : > { %6210 = vmatmul.mubr.msk.bf16.gmra.mxu1 %vm379_vm1, %v893_v30  ;;  %6303 = vmatprep.mubr.msk.bf16.mxu0 %vm7013_vm0, %v8543_v1  ;;  %v903_v30 = vpack.c.bf16 %v871_v27, %v870_v26 }
  0x8b   : > { %6213 = vmatprep.mubr.msk.bf16.mxu1 %vm7013_vm0, %v8543_v1 }
  0x91   : > { %6304 = vmatmul.mubr.msk.bf16.gmra.mxu0 %vm379_vm1, %v7251_v35 }
  0x92   : > { %6214 = vmatmul.mubr.msk.bf16.gmra.mxu1 %vm379_vm1, %v894_v36  ;;  %6307 = vmatprep.mubr.msk.bf16.mxu0 %vm7013_vm0, %v8543_v1  ;;  %v7352_v36 = vpack.c.bf16 %v1368_v32, %v1367_v31  ;;  %v1376_v31 = vld [vmem:[#allocation2 + $0x10a] sm:$0xff] }
  0x93   : > { %6217 = vmatprep.mubr.msk.bf16.mxu1 %vm7013_vm0, %v8543_v1 }
  0x99   : > { %6308 = vmatmul.mubr.msk.bf16.gmra.mxu0 %vm379_vm1, %v7261_v41 }
  0x9a   : > { %6218 = vmatmul.mubr.msk.bf16.gmra.mxu1 %vm379_vm1, %v895_v42  ;;  %6311 = vmatprep.mubr.msk.bf16.mxu0 %vm7013_vm0, %v8543_v1  ;;  %v1370_v42 = vld [vmem:[#allocation2 + $0xda] sm:$0xff] }
  0x9b   : > { %6221 = vmatprep.mubr.msk.bf16.mxu1 %vm7013_vm0, %v8543_v1  ;;  %v7367_v50 = vpack.c.bf16 %v1370_v42, %v1369_v40 }
  0xa1   : > { %6312 = vmatmul.mubr.msk.bf16.gmra.mxu0 %vm379_vm1, %v7275_v47 }
  0xa2   : > { %6222 = vmatmul.mubr.msk.bf16.gmra.mxu1 %vm379_vm1, %v896_v49  ;;  %6315 = vmatprep.mubr.msk.bf16.mxu0 %vm7013_vm0, %v8543_v1 }
  0xa3   : > { %6225 = vmatprep.mubr.msk.bf16.mxu1 %vm7013_vm0, %v8543_v1 }
  0xa9   : > { %6316 = vmatmul.mubr.msk.bf16.gmra.mxu0 %vm379_vm1, %v7289_v55 }
  0xaa   : > { %6226 = vmatmul.mubr.msk.bf16.gmra.mxu1 %vm379_vm1, %v897_v56  ;;  %6319 = vmatprep.mubr.msk.bf16.mxu0 %vm7013_vm0, %v8543_v1 }
  0xab   : > { %6229 = vmatprep.mubr.msk.bf16.mxu1 %vm7013_vm0, %v8543_v1 }
  0xb1   : > { %6320 = vmatmul.mubr.msk.bf16.gmra.mxu0 %vm379_vm1, %v7298_v61 }
  0xb2   : > { %6230 = vmatmul.mubr.msk.bf16.gmra.mxu1 %vm379_vm1, %v898_v62  ;;  %6323 = vmatprep.mubr.msk.bf16.mxu0 %vm7013_vm0, %v8543_v1  ;;  %v876_v62 = vld [vmem:[#allocation2 + $0xf1] sm:$0xff] }
  0xb3   : > { %6233 = vmatprep.mubr.msk.bf16.mxu1 %vm7013_vm0, %v8543_v1  ;;  %v906_v6 = vpack.c.bf16 %v877_v63, %v876_v62  ;;  %v883_v62 = vld [vmem:[#allocation2 + $0x129] sm:$0xff] }
  0xb9   : > { %6324 = vmatmul.mubr.msk.bf16.gmra.mxu0 %vm379_vm1, %v7307_v4 }
  0xba   : > { %6234 = vmatmul.mubr.msk.bf16.gmra.mxu1 %vm379_vm1, %v899_v5  ;;  %6327 = vmatprep.mubr.msk.bf16.mxu0 %vm7013_vm0, %v8543_v1 }
  0xbb   : > { %6237 = vmatprep.mubr.msk.bf16.mxu1 %vm7013_vm0, %v8543_v1 }
  0xc1   : > { %6328 = vmatmul.mubr.msk.bf16.gmra.mxu0 %vm379_vm1, %v7316_v10 }
  0xc2   : > { %6238 = vmatmul.mubr.msk.bf16.gmra.mxu1 %vm379_vm1, %v900_v11  ;;  %6331 = vmatprep.mubr.msk.bf16.mxu0 %vm7013_vm0, %v8543_v1 }
  0xc3   : > { %6241 = vmatprep.mubr.msk.bf16.mxu1 %vm7013_vm0, %v8543_v1 }
  0xc9   : > { %6332 = vmatmul.mubr.msk.bf16.gmra.mxu0 %vm379_vm1, %v7325_v16 }
  0xca   : > { %6242 = vmatmul.mubr.msk.bf16.gmra.mxu1 %vm379_vm1, %v901_v17  ;;  %6335 = vmatprep.mubr.msk.bf16.mxu0 %vm7013_vm0, %v8543_v1  ;;  %v879_v17 = vld [vmem:[#allocation2 + $0x109] sm:$0xff] }
  0xcb   : > { %6245 = vmatprep.mubr.msk.bf16.mxu1 %vm7013_vm0, %v8543_v1 }
  0xd1   : > { %6336 = vmatmul.mubr.msk.bf16.gmra.mxu0 %vm379_vm1, %v7334_v22 }
  0xd2   : > { %6246 = vmatmul.mubr.msk.bf16.gmra.mxu1 %vm379_vm1, %v902_v23  ;;  %6339 = vmatprep.mubr.msk.bf16.mxu0 %vm7013_vm0, %v8543_v1  ;;  %v907_v23 = vpack.c.bf16 %v879_v17, %v878_v15  ;;  %v1379_v17 = vld [vmem:[#allocation2 + $0x122] sm:$0xff] }
  0xd3   : > { %6249 = vmatprep.mubr.msk.bf16.mxu1 %vm7013_vm0, %v8543_v1 }
  0xd9   : > { %6340 = vmatmul.mubr.msk.bf16.gmra.mxu0 %vm379_vm1, %v7343_v28 }
  0xda   : > { %6250 = vmatmul.mubr.msk.bf16.gmra.mxu1 %vm379_vm1, %v903_v30  ;;  %6343 = vmatprep.mubr.msk.bf16.mxu0 %vm7013_vm0, %v8543_v1  ;;  %v1375_v30 = vld [vmem:[#allocation2 + $0x102] sm:$0xff] }
  0xdb   : > { %6253 = vmatprep.mubr.msk.bf16.mxu1 %vm7013_vm0, %v8543_v1  ;;  %v7418_v42 = vpack.c.bf16 %v1376_v31, %v1375_v30 }
  0xe1   : > { %v7354_v38 = vpop.f32.mrf.mxu0  ;;  %6344 = vmatmul.mubr.msk.bf16.gmra.mxu0 %vm379_vm1, %v7352_v36 }
  0xe2   : > { %v7358_v39 = vpop.f32.mrf.mxu1  ;;  %6254 = vmatmul.mubr.msk.bf16.gmra.mxu1 %vm379_vm1, %v904_v37  ;;  %6347 = vmatprep.mubr.msk.bf16.mxu0 %vm7013_vm0, %v8543_v1 }
  0xe3   : > { %v6109_v43 = vpop.f32.mrf.mxu0  ;;  %6257 = vmatprep.mubr.msk.bf16.mxu1 %vm7013_vm0, %v8543_v1 }
  0xe4   : > { %v6157_v46 = vpop.f32.mrf.mxu1 }
  0xe5   : > { %v7365_v49 = vpop.f32.mrf.mxu0 }
  0xe6   : > { %v7369_v51 = vpop.f32.mrf.mxu1 }
  0xe7   : > { %v6110_v53 = vpop.f32.mrf.mxu0 }
  0xe8   : > { %v6158_v54 = vpop.f32.mrf.mxu1 }
  0xe9   : > { %v7371_v56 = vpop.f32.mrf.mxu0  ;;  %6348 = vmatmul.mubr.msk.bf16.gmra.mxu0 %vm379_vm1, %v7367_v50  ;;  %v1377_v54 = vld [vmem:[#allocation2 + $0x112] sm:$0xff] }
  0xea   : > { %v7375_v57 = vpop.f32.mrf.mxu1  ;;  %6258 = vmatmul.mubr.msk.bf16.gmra.mxu1 %vm379_vm1, %v905_v52  ;;  %6351 = vmatprep.mubr.msk.bf16.mxu0 %vm7013_vm0, %v8543_v1 }
  0xeb   : > { %v6113_v60 = vpop.f32.mrf.mxu0  ;;  %6261 = vmatprep.mubr.msk.bf16.mxu1 %vm7013_vm0, %v8543_v1 }
  0xec   : > { %v6161_v0 = vpop.f32.mrf.mxu1  ;;  %v882_v60 = vld [vmem:[#allocation2 + $0x121] sm:$0xff] }
  0xed   : > { %v7382_v2 = vpop.f32.mrf.mxu0 }
  0xee   : > { %v7386_v5 = vpop.f32.mrf.mxu1 }
  0xef   : > { %v6114_v7 = vpop.f32.mrf.mxu0 }
  0xf0   : > { %v6162_v8 = vpop.f32.mrf.mxu1 }
  0xf1   : > { %v7388_v9 = vpop.f32.mrf.mxu0  ;;  %6352 = vmatmul.mubr.msk.bf16.gmra.mxu0 %vm379_vm1, %v7384_v3  ;;  %v909_v8 = vpack.c.bf16 %v883_v62, %v882_v60  ;;  %v886_v60 = vld [vmem:[#allocation2 + $0x141] sm:$0xff]  ;;  %v887_v62 = vld [vmem:[#allocation2 + $0x149] sm:$0xff] }
  0xf2   : > { %v7392_v11 = vpop.f32.mrf.mxu1  ;;  %6262 = vmatmul.mubr.msk.bf16.gmra.mxu1 %vm379_vm1, %v906_v6  ;;  %6355 = vmatprep.mubr.msk.bf16.mxu0 %vm7013_vm0, %v8543_v1  ;;  %v7435_v6 = vpack.c.bf16 %v1378_v58, %v1377_v54  ;;  %v1381_v54 = vld [vmem:[#allocation2 + $0x132] sm:$0xff]  ;;  %v1382_v58 = vld [vmem:[#allocation2 + $0x13a] sm:$0xff] }
  0xf3   : > { %v6117_v14 = vpop.f32.mrf.mxu0  ;;  %6265 = vmatprep.mubr.msk.bf16.mxu1 %vm7013_vm0, %v8543_v1 }
  0xf4   : > { %v6165_v18 = vpop.f32.mrf.mxu1 }
  0xf5   : > { %v7399_v19 = vpop.f32.mrf.mxu0  ;;  %v1380_v18 = vld [vmem:[#allocation2 + $0x12a] sm:$0xff] }
  0xf6   : > { %v7403_v21 = vpop.f32.mrf.mxu1 }
  0xf7   : > { %v6118_v24 = vpop.f32.mrf.mxu0 }
  0xf8   : > { %v6166_v25 = vpop.f32.mrf.mxu1  ;;  %v884_v24 = vld [vmem:[#allocation2 + $0x131] sm:$0xff] }
  0xf9   : > { %v7405_v26 = vpop.f32.mrf.mxu0  ;;  %6356 = vmatmul.mubr.msk.bf16.gmra.mxu0 %vm379_vm1, %v7401_v20  ;;  %v885_v25 = vld [vmem:[#allocation2 + $0x139] sm:$0xff] }
  0xfa   : > { %v7409_v27 = vpop.f32.mrf.mxu1  ;;  %6266 = vmatmul.mubr.msk.bf16.gmra.mxu1 %vm379_vm1, %v907_v23  ;;  %6359 = vmatprep.mubr.msk.bf16.mxu0 %vm7013_vm0, %v8543_v1  ;;  %v910_v34 = vpack.c.bf16 %v885_v25, %v884_v24 }
  0xfb   : > { %v6121_v32 = vpop.f32.mrf.mxu0  ;;  %6269 = vmatprep.mubr.msk.bf16.mxu1 %vm7013_vm0, %v8543_v1 }
  0xfc   : > { %v6169_v37 = vpop.f32.mrf.mxu1  ;;  %v7452_v32 = vpack.c.bf16 %v1380_v18, %v1379_v17  ;;  %v911_v17 = vpack.c.bf16 %v887_v62, %v886_v60 }
  0xfd   : > { %v7416_v40 = vpop.f32.mrf.mxu0 }
  0xfe   : > { %v7420_v43 = vpop.f32.mrf.mxu1 }
  0xff   : > { %v6122_v45 = vpop.f32.mrf.mxu0 }
 0x100   : > { %v6170_v46 = vpop.f32.mrf.mxu1 }
 0x101   : > { %v7422_v52 = vpop.f32.mrf.mxu0  ;;  %6360 = vmatmul.mubr.msk.bf16.gmra.mxu0 %vm379_vm1, %v7418_v42 }
 0x102   : > { %v7426_v53 = vpop.f32.mrf.mxu1  ;;  %6270 = vmatmul.mubr.msk.bf16.gmra.mxu1 %vm379_vm1, %v908_v44  ;;  %6363 = vmatprep.mubr.msk.bf16.mxu0 %vm7013_vm0, %v8543_v1 }
 0x103   : > { %8546 = vst [vmem:[#allocation4_spill] sm:$0xff] %v7426_v53  ;;  %v6125_v59 = vpop.f32.mrf.mxu0  ;;  %6273 = vmatprep.mubr.msk.bf16.mxu1 %vm7013_vm0, %v8543_v1 }
 0x104   : > { %v6173_v63 = vpop.f32.mrf.mxu1 }
 0x105   : > { %v7433_v0 = vpop.f32.mrf.mxu0 }
 0x106   : > { %v7437_v7 = vpop.f32.mrf.mxu1 }
 0x107   : > { %8547 = vst [vmem:[#allocation5_spill] sm:$0xff] %v7437_v7  ;;  %v6126_v12 = vpop.f32.mrf.mxu0 }
 0x108   : > { %v6174_v13 = vpop.f32.mrf.mxu1  ;;  %v7469_v12 = vpack.c.bf16 %v1382_v58, %v1381_v54  ;;  %v889_v54 = vld [vmem:[#allocation2 + $0x159] sm:$0xff] }
 0x109   : > { %v7439_v14 = vpop.f32.mrf.mxu0  ;;  %6364 = vmatmul.mubr.msk.bf16.gmra.mxu0 %vm379_vm1, %v7435_v6 }
 0x10a   : > { %v7443_v15 = vpop.f32.mrf.mxu1  ;;  %6274 = vmatmul.mubr.msk.bf16.gmra.mxu1 %vm379_vm1, %v909_v8  ;;  %6367 = vmatprep.mubr.msk.bf16.mxu0 %vm7013_vm0, %v8543_v1  ;;  %8551 = vst [vmem:[#allocation9_spill] sm:$0xff] %v7469_v12 }
 0x10b   : > { %8548 = vst [vmem:[#allocation6_spill] sm:$0xff] %v7443_v15  ;;  %v6129_v23 = vpop.f32.mrf.mxu0  ;;  %6277 = vmatprep.mubr.msk.bf16.mxu1 %vm7013_vm0, %v8543_v1 }
 0x10c   : > { %v6177_v30 = vpop.f32.mrf.mxu1 }
 0x10d   : > { %v7450_v31 = vpop.f32.mrf.mxu0  ;;  %v1383_v30 = vld [vmem:[#allocation2 + $0x142] sm:$0xff] }
 0x10e   : > { %v7454_v33 = vpop.f32.mrf.mxu1 }
 0x10f   : > { %8549 = vst [vmem:[#allocation7_spill] sm:$0xff] %v7454_v33  ;;  %v6130_v37 = vpop.f32.mrf.mxu0 }
 0x110   : > { %v6178_v44 = vpop.f32.mrf.mxu1 }
 0x111   : > { %v7456_v45 = vpop.f32.mrf.mxu0  ;;  %6368 = vmatmul.mubr.msk.bf16.gmra.mxu0 %vm379_vm1, %v7452_v32  ;;  %v888_v44 = vld [vmem:[#allocation2 + $0x151] sm:$0xff] }
 0x112   : > { %v7460_v46 = vpop.f32.mrf.mxu1  ;;  %6278 = vmatmul.mubr.msk.bf16.gmra.mxu1 %vm379_vm1, %v910_v34  ;;  %6371 = vmatprep.mubr.msk.bf16.mxu0 %vm7013_vm0, %v8543_v1  ;;  %v1384_v34 = vld [vmem:[#allocation2 + $0x14a] sm:$0xff] }
 0x113   : > { %8550 = vst [vmem:[#allocation8_spill] sm:$0xff] %v7460_v46  ;;  %v6133_v59 = vpop.f32.mrf.mxu0  ;;  %6281 = vmatprep.mubr.msk.bf16.mxu1 %vm7013_vm0, %v8543_v1  ;;  %v7486_v60 = vpack.c.bf16 %v1384_v34, %v1383_v30  ;;  %v1386_v30 = vld [vmem:[#allocation2 + $0x15a] sm:$0xff] }
 0x114   : > { %v6181_v63 = vpop.f32.mrf.mxu1 }
 0x115   : > { %v7467_v8 = vpop.f32.mrf.mxu0  ;;  %8554 = vst [vmem:[#allocation12_spill] sm:$0xff] %v7486_v60  ;;  %v912_v63 = vpack.c.bf16 %v889_v54, %v888_v44  ;;  %v890_v44 = vld [vmem:[#allocation2 + $0x161] sm:$0xff] }
 0x116   : > { %v7471_v13 = vpop.f32.mrf.mxu1 }
 0x117   : > { %8552 = vst [vmem:[#allocation10_spill] sm:$0xff] %v7471_v13  ;;  %v6134_v18 = vpop.f32.mrf.mxu0 }
 0x118   : > { %v6182_v23 = vpop.f32.mrf.mxu1 }
 0x119   : > { %v7473_v24 = vpop.f32.mrf.mxu0  ;;  %6372 = vmatmul.mubr.msk.bf16.gmra.mxu0 %vm379_vm1, %v7469_v12  ;;  %v2342_v12 = vld [vmem:[#allocation2 + $0x3b] sm:$0xff] }
 0x11a   : > { %v7477_v25 = vpop.f32.mrf.mxu1  ;;  %6282 = vmatmul.mubr.msk.bf16.gmra.mxu1 %vm379_vm1, %v911_v17  ;;  %6375 = vmatprep.mubr.msk.bf16.mxu0 %vm7013_vm0, %v8543_v1 }
 0x11b   : > { %8553 = vst [vmem:[#allocation11_spill] sm:$0xff] %v7477_v25  ;;  %v6137_v37 = vpop.f32.mrf.mxu0  ;;  %6285 = vmatprep.mubr.msk.bf16.mxu1 %vm7013_vm0, %v8543_v1 }
 0x11c   : > { %v6185_v58 = vpop.f32.mrf.mxu1 }
 0x11d   : > { %v7484_v59 = vpop.f32.mrf.mxu0  ;;  %v1385_v58 = vld [vmem:[#allocation2 + $0x152] sm:$0xff] }
 0x11e   : > { %v7488_v62 = vpop.f32.mrf.mxu1 }
 0x11f   : > { %8555 = vst [vmem:[#allocation13_spill] sm:$0xff] %v7488_v62  ;;  %v6138_v17 = vpop.f32.mrf.mxu0 }
 0x120   : > { %v6186_v18 = vpop.f32.mrf.mxu1 }
 0x121   : > { %v7490_v23 = vpop.f32.mrf.mxu0  ;;  %6376 = vmatmul.mubr.msk.bf16.gmra.mxu0 %vm379_vm1, %v7486_v60  ;;  %v7503_v18 = vpack.c.bf16 %v1386_v30, %v1385_v58 }
 0x122   : > { %v7494_v37 = vpop.f32.mrf.mxu1  ;;  %6286 = vmatmul.mubr.msk.bf16.gmra.mxu1 %vm379_vm1, %v912_v63  ;;  %6379 = vmatprep.mubr.msk.bf16.mxu0 %vm7013_vm0, %v8543_v1 }
 0x123   : > { %8556 = vst [vmem:[#allocation14_spill] sm:$0xff] %v7494_v37  ;;  %v6141_v34 = vpop.f32.mrf.mxu0  ;;  %6289 = vmatprep.mubr.msk.bf16.mxu1 %vm7013_vm0, %v8543_v1  ;;  %8557 = vst [vmem:[#allocation15_spill] sm:$0xff] %v7503_v18  ;;  %v913_v37 = vpack.c.bf16 %v890_v44, %v890_v44 }
 0x124   : > { %v6189_v54 = vpop.f32.mrf.mxu1 }
 0x125   : > { %v7501_v17 = vpop.f32.mrf.mxu0  ;;  %v7516_v54 = vld [vmem:[#allocation2 + $0x162] sm:$0xff] }
 0x126   : > { %v7505_v62 = vpop.f32.mrf.mxu1  ;;  %8560 = vst [vmem:[#allocation18_spill] sm:$0xff] %v7516_v54  ;;  %v1410_v44 = vpack.c.bf16 %v7516_v54, %v7516_v54 }
 0x127   : > { %8558 = vst [vmem:[#allocation16_spill] sm:$0xff] %v7505_v62  ;;  %v6142_v25 = vpop.f32.mrf.mxu0 }
 0x128   : > { %v6190_v63 = vpop.f32.mrf.mxu1 }
 0x129   : > { %v7507_v13 = vpop.f32.mrf.mxu0  ;;  %6380 = vmatmul.mubr.msk.bf16.gmra.mxu0 %vm379_vm1, %v7503_v18 }
 0x12a   : > { %v7511_v34 = vpop.f32.mrf.mxu1  ;;  %6290 = vmatmul.mubr.msk.bf16.gmra.mxu1 %vm379_vm1, %v913_v37  ;;  %6383 = vmatprep.mubr.msk.bf16.mxu0 %vm7013_vm0, %v8543_v1  ;;  %v6984_v37 = vld [vmem:[%s8537_s2 + $0x28] sm:$0xff]  }
 0x12b   : > { %8559 = vst [vmem:[#allocation17_spill] sm:$0xff] %v7511_v34  ;;  %v6145_v58 = vpop.f32.mrf.mxu0  ;;  %6389 = vmatprep.mubr.msk.bf16.mxu1 %vm7013_vm0, %v8543_v1 }
 0x12c   : > { %v6193_v25 = vpop.f32.mrf.mxu1 }
 0x12d   : > { %v7520_v30 = vpop.f32.mrf.mxu0  ;;  %v2337_v25 = vld [vmem:[#allocation2 + $0x13] sm:$0xff] }
 0x12e   : > { %v7524_v63 = vpop.f32.mrf.mxu1 }
 0x12f   : > { %8561 = vst [vmem:[#allocation19_spill] sm:$0xff] %v7524_v63  ;;  %v6146_v34 = vpop.f32.mrf.mxu0  ;;  %v2338_v63 = vld [vmem:[#allocation2 + $0x1b] sm:$0xff] }
 0x130   : > { %v6194_v62 = vpop.f32.mrf.mxu1 }
 0x131   : > { %v7529_v18 = vpop.f32.mrf.mxu0  ;;  %6384 = vmatmul.mubr.msk.bf16.gmra.mxu0 %vm379_vm1, %v1410_v44  ;;  %v2382_v44 = vpack.c.bf16 %v2338_v63, %v2337_v25  ;;  %v8563_v63 = vmov 0.0  }
 0x132   : > { %v7532_v58 = vpop.f32.mrf.mxu1  ;;  %6390 = vmatmul.mubr.msk.bf16.vlgmr.msra.gmra.mxu1 %vm379_vm1, %v7242_v29  ;;  %6483 = vmatprep.mubr.msk.bf16.mxu0 %vm7013_vm0, %v8543_v1  ;;  %v6985_v29 = vld [vmem:[%s8537_s2 + $0x30] sm:$0xff]  }
 0x133   : > { %8562 = vst [vmem:[#allocation20_spill] sm:$0xff] %v7532_v58  ;;  %v6149_v34 = vpop.f32.mrf.mxu0  ;;  %6576 = vmatpush3.bf16.msra.mxu1 %v6984_v37  ;;  %6393 = vmatprep.mubr.msk.bf16.mxu1 %vm7013_vm0, %v8543_v1 }
 0x134   : > { %v6197_v62 = vpop.f32.mrf.mxu1  ;;  %6763 = vmatprep.subr.bf16.mxu1 %v8543_v1  ;;  %v2339_v34 = vld [vmem:[#allocation2 + $0x23] sm:$0xff] }
 0x135   : > { %v7541_v54 = vpop.f32.mrf.mxu0  ;;  %v2340_v62 = vld [vmem:[#allocation2 + $0x2b] sm:$0xff] }
 0x136   : > { %v798_v58 = vpop.f32.mrf.mxu1 }
 0x137   : > { %v6150_v46 = vpop.f32.mrf.mxu0  ;;  %v2383_v58 = vpack.c.bf16 %v2340_v62, %v2339_v34 }
 0x138   : > { %v6198_v33 = vpop.f32.mrf.mxu1 }
 0x139   : > { %v7546_v60 = vpop.f32.mrf.mxu0  ;;  %6484 = vmatmul.mubr.msk.bf16.vlgmr.msra.gmra.mxu0 %vm379_vm1, %v2382_v44 }
 0x13a   : > { %v1026_v37 = vpop.f32.mrf.mxu1  ;;  %6394 = vmatmul.mubr.msk.bf16.gmra.mxu1 %vm379_vm1, %v7251_v35  ;;  %6670 = vmatpush3.bf16.msra.mxu0 %v6985_v29 }
 0x13b   : > { %v6153_v1 = vpop.f32.mrf.mxu0  ;;  %6397 = vmatprep.mubr.msk.bf16.mxu1 %vm7013_vm0, %v8563_v63  ;;  %6487 = vmatprep.mubr.msk.bf16.mxu0 %vm7013_vm0, %v8563_v63  ;;  %v1253_v35 = vadd.f32 %v1026_v37, %v7354_v38 }
 0x13c   : > { %v6203_v46 = vpop.f32.mrf.mxu1  ;;  %6857 = vmatprep.subr.bf16.mxu0 %v8563_v63 }
 0x13d   : > { %v7556_v33 = vpop.f32.mrf.mxu0  ;;  %v2341_v46 = vld [vmem:[#allocation2 + $0x33] sm:$0xff] }
 0x13e   : > { %v1029_v25 = vpop.f32.mrf.mxu1 }
 0x13f   : > { %v6154_v44 = vpop.f32.mrf.mxu0  ;;  %v1254_v38 = vadd.f32 %v1029_v25, %v7365_v49  ;;  %v2343_v49 = vld [vmem:[#allocation2 + $0x43] sm:$0xff] }
 0x140   : > { %v6204_v29 = vpop.f32.mrf.mxu1 }
 0x141   : > { %v1523_v15 = vpop.f32.mrf.mxu0  ;;  %6488 = vmatmul.mubr.msk.bf16.gmra.mxu0 %vm379_vm1, %v2383_v58  ;;  %v2384_v58 = vpack.c.bf16 %v2342_v12, %v2341_v46  ;;  %v2344_v12 = vld [vmem:[#allocation2 + $0x4b] sm:$0xff] }
 0x142   : > { %v1034_v1 = vpop.f32.mrf.mxu1  ;;  %v7560_v7 = vadd.f32 %v1523_v15, %v1253_v35  ;;  %6398 = vmatmul.mubr.msk.bf16.gmra.mxu1 %vm379_vm1, %v7261_v41  ;;  %6491 = vmatprep.mubr.msk.bf16.mxu0 %vm7013_vm0, %v8563_v63 }
 0x143   : > { %v6297_v34 = vpop.f32.mrf.mxu0  ;;  %6401 = vmatprep.mubr.msk.bf16.mxu1 %vm7013_vm0, %v8563_v63  ;;  %v1255_v41 = vadd.f32 %v1034_v1, %v7371_v56 }
 0x144   : > { %8564 = vst [vmem:[#allocation21_spill] sm:$0xff] %v7560_v7  ;;  %v6207_v37 = vpop.f32.mrf.mxu1 }
 0x145   : > { %v1526_v62 = vpop.f32.mrf.mxu0 }
 0x146   : > { %v1037_v44 = vpop.f32.mrf.mxu1  ;;  %v7569_v15 = vadd.f32 %v1526_v62, %v1254_v38  ;;  %v2385_v38 = vpack.c.bf16 %v2344_v12, %v2343_v49  ;;  %v5731_v62 = vunpack.c.h.bf16 %v7278_v48  ;;  %v2345_v48 = vld [vmem:[#allocation2 + $0x53] sm:$0xff] }
 0x147   : > { %v6298_v35 = vpop.f32.mrf.mxu0  ;;  %v1256_v56 = vadd.f32 %v1037_v44, %v7382_v2  ;;  %v2346_v44 = vld [vmem:[#allocation2 + $0x5b] sm:$0xff] }
 0x148   : > { %v6208_v29 = vpop.f32.mrf.mxu1  ;;  %436 = vst.msk [vmem:[#allocation2 + $0x170] sm:$0xff] %vm379_vm1, %v5731_v62 }
 0x149   : > { %v1531_v7 = vpop.f32.mrf.mxu0  ;;  %6492 = vmatmul.mubr.msk.bf16.gmra.mxu0 %vm379_vm1, %v2384_v58 }
 0x14a   : > { %v1042_v53 = vpop.f32.mrf.mxu1  ;;  %v7573_v34 = vadd.f32 %v1531_v7, %v1255_v41  ;;  %6402 = vmatmul.mubr.msk.bf16.gmra.mxu1 %vm379_vm1, %v7275_v47  ;;  %6495 = vmatprep.mubr.msk.bf16.mxu0 %vm7013_vm0, %v8563_v63 }
 0x14b   : > { %v6301_v25 = vpop.f32.mrf.mxu0  ;;  %6405 = vmatprep.mubr.msk.bf16.mxu1 %vm7013_vm0, %v8563_v63  ;;  %v1257_v58 = vadd.f32 %v1042_v53, %v7388_v9 }
 0x14c   : > { %v6211_v1 = vpop.f32.mrf.mxu1  ;;  %v2386_v25 = vpack.c.bf16 %v2346_v44, %v2345_v48 }
 0x14d   : > { %v1534_v46 = vpop.f32.mrf.mxu0 }
 0x14e   : > { %v1045_v37 = vpop.f32.mrf.mxu1  ;;  %v7582_v7 = vadd.f32 %v1534_v46, %v1256_v56  ;;  %v7598_v56 = vld [vmem:[%s7273_s14 + $0x8] sm:$0xff]  }
 0x14f   : > { %v6302_v47 = vpop.f32.mrf.mxu0  ;;  %v1258_v9 = vadd.f32 %v1045_v37, %v7399_v19 }
 0x150   : > { %v6212_v35 = vpop.f32.mrf.mxu1 }
 0x151   : > { %v1539_v41 = vpop.f32.mrf.mxu0  ;;  %6496 = vmatmul.mubr.msk.bf16.gmra.mxu0 %vm379_vm1, %v2385_v38  ;;  %v2347_v35 = vld [vmem:[#allocation2 + $0x63] sm:$0xff] }
 0x152   : > { %v1050_v29 = vpop.f32.mrf.mxu1  ;;  %v7588_v2 = vadd.f32 %v1539_v41, %v1257_v58  ;;  %6406 = vmatmul.mubr.msk.bf16.gmra.mxu1 %vm379_vm1, %v7289_v55  ;;  %6499 = vmatprep.mubr.msk.bf16.mxu0 %vm7013_vm0, %v8563_v63  ;;  %v5734_v55 = vunpack.c.l.bf16 %v7598_v56  ;;  %v2348_v41 = vld [vmem:[#allocation2 + $0x6b] sm:$0xff] }
 0x153   : > { %v6305_v49 = vpop.f32.mrf.mxu0  ;;  %6409 = vmatprep.mubr.msk.bf16.mxu1 %vm7013_vm0, %v8563_v63  ;;  %v1259_v62 = vadd.f32 %v1050_v29, %v7405_v26 }
 0x154   : > { %v6215_v53 = vpop.f32.mrf.mxu1  ;;  %437 = vst.msk [vmem:[#allocation2 + $0x178] sm:$0xff] %vm379_vm1, %v5734_v55  ;;  %v2387_v49 = vpack.c.bf16 %v2348_v41, %v2347_v35 }
 0x155   : > { %v1542_v12 = vpop.f32.mrf.mxu0 }
 0x156   : > { %v1053_v1 = vpop.f32.mrf.mxu1  ;;  %v7600_v46 = vadd.f32 %v1542_v12, %v1258_v9 }
 0x157   : > { %v6306_v38 = vpop.f32.mrf.mxu0  ;;  %v1260_v26 = vadd.f32 %v1053_v1, %v7416_v40  ;;  %v2349_v40 = vld [vmem:[#allocation2 + $0x73] sm:$0xff]  ;;  %v2350_v1 = vld [vmem:[#allocation2 + $0x7b] sm:$0xff] }
 0x158   : > { %v6216_v47 = vpop.f32.mrf.mxu1  ;;  %v2388_v35 = vpack.c.bf16 %v2350_v1, %v2349_v40 }
 0x159   : > { %v1547_v58 = vpop.f32.mrf.mxu0  ;;  %6500 = vmatmul.mubr.msk.bf16.gmra.mxu0 %vm379_vm1, %v2386_v25 }
 0x15a   : > { %v1058_v19 = vpop.f32.mrf.mxu1  ;;  %v7606_v37 = vadd.f32 %v1547_v58, %v1259_v62  ;;  %6410 = vmatmul.mubr.msk.bf16.gmra.mxu1 %vm379_vm1, %v7298_v61  ;;  %6503 = vmatprep.mubr.msk.bf16.mxu0 %vm7013_vm0, %v8563_v63 }
 0x15b   : > { %v6309_v48 = vpop.f32.mrf.mxu0  ;;  %6413 = vmatprep.mubr.msk.bf16.mxu1 %vm7013_vm0, %v8563_v63  ;;  %v1261_v61 = vadd.f32 %v1058_v19, %v7422_v52 }
 0x15c   : > { %v6219_v29 = vpop.f32.mrf.mxu1 }
 0x15d   : > { %v1550_v44 = vpop.f32.mrf.mxu0 }
 0x15e   : > { %v1061_v9 = vpop.f32.mrf.mxu1  ;;  %v7615_v53 = vadd.f32 %v1550_v44, %v1260_v26 }
 0x15f   : > { %v6310_v12 = vpop.f32.mrf.mxu0  ;;  %v1262_v52 = vadd.f32 %v1061_v9, %v7433_v0  ;;  %v2351_v0 = vld [vmem:[#allocation2 + $0x83] sm:$0xff]  ;;  %v2352_v9 = vld [vmem:[#allocation2 + $0x8b] sm:$0xff] }
 0x160   : > { %v6220_v25 = vpop.f32.mrf.mxu1 }
 0x161   : > { %v1555_v55 = vpop.f32.mrf.mxu0  ;;  %6504 = vmatmul.mubr.msk.bf16.gmra.mxu0 %vm379_vm1, %v2387_v49 }
 0x162   : > { %v1066_v38 = vpop.f32.mrf.mxu1  ;;  %v7619_v62 = vadd.f32 %v1555_v55, %v1261_v61  ;;  %6414 = vmatmul.mubr.msk.bf16.gmra.mxu1 %vm379_vm1, %v7307_v4  ;;  %6507 = vmatprep.mubr.msk.bf16.mxu0 %vm7013_vm0, %v8563_v63 }
 0x163   : > { %v6313_v47 = vpop.f32.mrf.mxu0  ;;  %6417 = vmatprep.mubr.msk.bf16.mxu1 %vm7013_vm0, %v8563_v63  ;;  %v1263_v4 = vadd.f32 %v1066_v38, %v7439_v14  ;;  %v2389_v38 = vpack.c.bf16 %v2352_v9, %v2351_v0 }
 0x164   : > { %v6223_v58 = vpop.f32.mrf.mxu1 }
 0x165   : > { %v1558_v19 = vpop.f32.mrf.mxu0 }
 0x166   : > { %v1069_v41 = vpop.f32.mrf.mxu1  ;;  %v7628_v48 = vadd.f32 %v1558_v19, %v1262_v52 }
 0x167   : > { %v6314_v26 = vpop.f32.mrf.mxu0  ;;  %v1264_v14 = vadd.f32 %v1069_v41, %v7450_v31  ;;  %v2353_v31 = vld [vmem:[#allocation2 + $0x93] sm:$0xff]  ;;  %v2354_v41 = vld [vmem:[#allocation2 + $0x9b] sm:$0xff] }
 0x168   : > { %v6224_v29 = vpop.f32.mrf.mxu1 }
 0x169   : > { %v1563_v44 = vpop.f32.mrf.mxu0  ;;  %6508 = vmatmul.mubr.msk.bf16.gmra.mxu0 %vm379_vm1, %v2388_v35 }
 0x16a   : > { %v1074_v49 = vpop.f32.mrf.mxu1  ;;  %v7632_v12 = vadd.f32 %v1563_v44, %v1263_v4  ;;  %6418 = vmatmul.mubr.msk.bf16.gmra.mxu1 %vm379_vm1, %v7316_v10  ;;  %6511 = vmatprep.mubr.msk.bf16.mxu0 %vm7013_vm0, %v8563_v63  ;;  %v2390_v44 = vpack.c.bf16 %v2354_v41, %v2353_v31 }
 0x16b   : > { %v6317_v61 = vpop.f32.mrf.mxu0  ;;  %6421 = vmatprep.mubr.msk.bf16.mxu1 %vm7013_vm0, %v8563_v63  ;;  %v1265_v10 = vadd.f32 %v1074_v49, %v7456_v45 }
 0x16c   : > { %v6227_v25 = vpop.f32.mrf.mxu1 }
 0x16d   : > { %v1566_v55 = vpop.f32.mrf.mxu0 }
 0x16e   : > { %v1077_v40 = vpop.f32.mrf.mxu1  ;;  %v7641_v1 = vadd.f32 %v1566_v55, %v1264_v14 }
 0x16f   : > { %v6318_v47 = vpop.f32.mrf.mxu0  ;;  %v1266_v45 = vadd.f32 %v1077_v40, %v7467_v8  ;;  %v2355_v8 = vld [vmem:[#allocation2 + $0xa3] sm:$0xff] }
 0x170   : > { %v6228_v52 = vpop.f32.mrf.mxu1 }
 0x171   : > { %v1571_v58 = vpop.f32.mrf.mxu0  ;;  %6512 = vmatmul.mubr.msk.bf16.gmra.mxu0 %vm379_vm1, %v2389_v38  ;;  %v2356_v38 = vld [vmem:[#allocation2 + $0xab] sm:$0xff] }
 0x172   : > { %v1082_v19 = vpop.f32.mrf.mxu1  ;;  %v7645_v35 = vadd.f32 %v1571_v58, %v1265_v10  ;;  %6422 = vmatmul.mubr.msk.bf16.gmra.mxu1 %vm379_vm1, %v7325_v16  ;;  %6515 = vmatprep.mubr.msk.bf16.mxu0 %vm7013_vm0, %v8563_v63  ;;  %v2391_v52 = vpack.c.bf16 %v2356_v38, %v2355_v8 }
 0x173   : > { %v6321_v26 = vpop.f32.mrf.mxu0  ;;  %6425 = vmatprep.mubr.msk.bf16.mxu1 %vm7013_vm0, %v8563_v63  ;;  %v1267_v16 = vadd.f32 %v1082_v19, %v7473_v24 }
 0x174   : > { %v6231_v4 = vpop.f32.mrf.mxu1 }
 0x175   : > { %v1574_v29 = vpop.f32.mrf.mxu0 }
 0x176   : > { %v1085_v49 = vpop.f32.mrf.mxu1  ;;  %v7654_v0 = vadd.f32 %v1574_v29, %v1266_v45  ;;  %v2358_v29 = vld [vmem:[#allocation2 + $0xbb] sm:$0xff] }
 0x177   : > { %v6322_v9 = vpop.f32.mrf.mxu0  ;;  %v1268_v24 = vadd.f32 %v1085_v49, %v7484_v59  ;;  %v2357_v59 = vld [vmem:[#allocation2 + $0xb3] sm:$0xff] }
 0x178   : > { %v6232_v61 = vpop.f32.mrf.mxu1 }
 0x179   : > { %v1579_v14 = vpop.f32.mrf.mxu0  ;;  %6516 = vmatmul.mubr.msk.bf16.gmra.mxu0 %vm379_vm1, %v2390_v44 }
 0x17a   : > { %v1090_v25 = vpop.f32.mrf.mxu1  ;;  %v7658_v55 = vadd.f32 %v1579_v14, %v1267_v16  ;;  %6426 = vmatmul.mubr.msk.bf16.gmra.mxu1 %vm379_vm1, %v7334_v22  ;;  %6519 = vmatprep.mubr.msk.bf16.mxu0 %vm7013_vm0, %v8563_v63  ;;  %v2392_v16 = vpack.c.bf16 %v2358_v29, %v2357_v59 }
 0x17b   : > { %v6325_v40 = vpop.f32.mrf.mxu0  ;;  %6429 = vmatprep.mubr.msk.bf16.mxu1 %vm7013_vm0, %v8563_v63  ;;  %v1269_v22 = vadd.f32 %v1090_v25, %v7490_v23 }
 0x17c   : > { %v6235_v47 = vpop.f32.mrf.mxu1 }
 0x17d   : > { %v1582_v10 = vpop.f32.mrf.mxu0  ;;  %v2360_v47 = vld [vmem:[#allocation2 + $0xcb] sm:$0xff] }
 0x17e   : > { %v1093_v58 = vpop.f32.mrf.mxu1  ;;  %v7667_v19 = vadd.f32 %v1582_v10, %v1268_v24 }
 0x17f   : > { %v6326_v31 = vpop.f32.mrf.mxu0  ;;  %v1270_v23 = vadd.f32 %v1093_v58, %v7501_v17  ;;  %v2359_v17 = vld [vmem:[#allocation2 + $0xc3] sm:$0xff] }
 0x180   : > { %v6236_v41 = vpop.f32.mrf.mxu1  ;;  %v2393_v31 = vpack.c.bf16 %v2360_v47, %v2359_v17 }
 0x181   : > { %v1587_v26 = vpop.f32.mrf.mxu0  ;;  %6520 = vmatmul.mubr.msk.bf16.gmra.mxu0 %vm379_vm1, %v2391_v52 }
 0x182   : > { %v1098_v45 = vpop.f32.mrf.mxu1  ;;  %v7671_v4 = vadd.f32 %v1587_v26, %v1269_v22  ;;  %6430 = vmatmul.mubr.msk.bf16.gmra.mxu1 %vm379_vm1, %v7343_v28  ;;  %6523 = vmatprep.mubr.msk.bf16.mxu0 %vm7013_vm0, %v8563_v63 }
 0x183   : > { %v6329_v44 = vpop.f32.mrf.mxu0  ;;  %6433 = vmatprep.mubr.msk.bf16.mxu1 %vm7013_vm0, %v8563_v63  ;;  %v1271_v28 = vadd.f32 %v1098_v45, %v7507_v13 }
 0x184   : > { %v6239_v49 = vpop.f32.mrf.mxu1 }
 0x185   : > { %v1590_v9 = vpop.f32.mrf.mxu0 }
 0x186   : > { %v1101_v61 = vpop.f32.mrf.mxu1  ;;  %v7680_v14 = vadd.f32 %v1590_v9, %v1270_v23  ;;  %v2362_v23 = vld [vmem:[#allocation2 + $0xdb] sm:$0xff] }
 0x187   : > { %v6330_v25 = vpop.f32.mrf.mxu0  ;;  %v1272_v13 = vadd.f32 %v1101_v61, %v7520_v30  ;;  %v2361_v30 = vld [vmem:[#allocation2 + $0xd3] sm:$0xff] }
 0x188   : > { %v6240_v8 = vpop.f32.mrf.mxu1  ;;  %v2394_v61 = vpack.c.bf16 %v2362_v23, %v2361_v30  ;;  %v2366_v23 = vld [vmem:[#allocation2 + $0xfb] sm:$0xff] }
 0x189   : > { %v1595_v38 = vpop.f32.mrf.mxu0  ;;  %6524 = vmatmul.mubr.msk.bf16.gmra.mxu0 %vm379_vm1, %v2392_v16 }
 0x18a   : > { %v1106_v40 = vpop.f32.mrf.mxu1  ;;  %v7684_v24 = vadd.f32 %v1595_v38, %v1271_v28  ;;  %6434 = vmatmul.mubr.msk.bf16.gmra.mxu1 %vm379_vm1, %v7352_v36  ;;  %6527 = vmatprep.mubr.msk.bf16.mxu0 %vm7013_vm0, %v8563_v63 }
 0x18b   : > { %v6333_v10 = vpop.f32.mrf.mxu0  ;;  %6437 = vmatprep.mubr.msk.bf16.mxu1 %vm7013_vm0, %v8563_v63  ;;  %v1273_v36 = vadd.f32 %v1106_v40, %v7529_v18 }
 0x18c   : > { %v6243_v52 = vpop.f32.mrf.mxu1  ;;  %v2364_v10 = vld [vmem:[#allocation2 + $0xeb] sm:$0xff] }
 0x18d   : > { %v1598_v58 = vpop.f32.mrf.mxu0 }
 0x18e   : > { %v1109_v22 = vpop.f32.mrf.mxu1  ;;  %v7693_v41 = vadd.f32 %v1598_v58, %v1272_v13 }
 0x18f   : > { %v6334_v26 = vpop.f32.mrf.mxu0  ;;  %v1274_v18 = vadd.f32 %v1109_v22, %v7541_v54  ;;  %v2363_v54 = vld [vmem:[#allocation2 + $0xe3] sm:$0xff] }
 0x190   : > { %v6244_v45 = vpop.f32.mrf.mxu1 }
 0x191   : > { %v1603_v59 = vpop.f32.mrf.mxu0  ;;  %6528 = vmatmul.mubr.msk.bf16.gmra.mxu0 %vm379_vm1, %v2393_v31  ;;  %v2395_v31 = vpack.c.bf16 %v2364_v10, %v2363_v54  ;;  %v2368_v54 = vld [vmem:[#allocation2 + $0x10b] sm:$0xff] }
 0x192   : > { %v1114_v29 = vpop.f32.mrf.mxu1  ;;  %v7697_v44 = vadd.f32 %v1603_v59, %v1273_v36  ;;  %6438 = vmatmul.mubr.msk.bf16.gmra.mxu1 %vm379_vm1, %v7367_v50  ;;  %6531 = vmatprep.mubr.msk.bf16.mxu0 %vm7013_vm0, %v8563_v63 }
 0x193   : > { %v6337_v49 = vpop.f32.mrf.mxu0  ;;  %6441 = vmatprep.mubr.msk.bf16.mxu1 %vm7013_vm0, %v8563_v63  ;;  %v1275_v50 = vadd.f32 %v1114_v29, %v7546_v60 }
 0x194   : > { %v6247_v9 = vpop.f32.mrf.mxu1 }
 0x195   : > { %v1606_v16 = vpop.f32.mrf.mxu0 }
 0x196   : > { %v1117_v25 = vpop.f32.mrf.mxu1  ;;  %v7706_v28 = vadd.f32 %v1606_v16, %v1274_v18 }
 0x197   : > { %v6338_v8 = vpop.f32.mrf.mxu0  ;;  %v1276_v60 = vadd.f32 %v1117_v25, %v7556_v33  ;;  %v2365_v33 = vld [vmem:[#allocation2 + $0xf3] sm:$0xff] }
 0x198   : > { %v6248_v38 = vpop.f32.mrf.mxu1  ;;  %v2396_v16 = vpack.c.bf16 %v2366_v23, %v2365_v33 }
 0x199   : > { %v1611_v40 = vpop.f32.mrf.mxu0  ;;  %6532 = vmatmul.mubr.msk.bf16.gmra.mxu0 %vm379_vm1, %v2394_v61 }
 0x19a   : > { %v1122_v17 = vpop.f32.mrf.mxu1  ;;  %v7710_v47 = vadd.f32 %v1611_v40, %v1275_v50  ;;  %6442 = vmatmul.mubr.msk.bf16.gmra.mxu1 %vm379_vm1, %v7384_v3  ;;  %6535 = vmatprep.mubr.msk.bf16.mxu0 %vm7013_vm0, %v8563_v63 }
 0x19b   : > { %v6341_v13 = vpop.f32.mrf.mxu0  ;;  %6445 = vmatprep.mubr.msk.bf16.mxu1 %vm7013_vm0, %v8563_v63  ;;  %v1277_v3 = vadd.f32 %v1122_v17, %v7358_v39 }
 0x19c   : > { %v6251_v52 = vpop.f32.mrf.mxu1 }
 0x19d   : > { %v1614_v58 = vpop.f32.mrf.mxu0 }
 0x19e   : > { %v1125_v22 = vpop.f32.mrf.mxu1  ;;  %v7719_v26 = vadd.f32 %v1614_v58, %v1276_v60 }
 0x19f   : > { %v6342_v36 = vpop.f32.mrf.mxu0  ;;  %v1278_v39 = vadd.f32 %v1125_v22, %v7369_v51  ;;  %v2367_v51 = vld [vmem:[#allocation2 + $0x103] sm:$0xff] }
 0x1a0   : > { %v6252_v45 = vpop.f32.mrf.mxu1  ;;  %v2397_v52 = vpack.c.bf16 %v2368_v54, %v2367_v51 }
 0x1a1   : > { %v1619_v59 = vpop.f32.mrf.mxu0  ;;  %6536 = vmatmul.mubr.msk.bf16.gmra.mxu0 %vm379_vm1, %v2395_v31 }
 0x1a2   : > { %v1130_v29 = vpop.f32.mrf.mxu1  ;;  %v7723_v30 = vadd.f32 %v1619_v59, %v1277_v3  ;;  %6446 = vmatmul.mubr.msk.bf16.gmra.mxu1 %vm379_vm1, %v7401_v20  ;;  %6539 = vmatprep.mubr.msk.bf16.mxu0 %vm7013_vm0, %v8563_v63 }
 0x1a3   : > { %v6345_v49 = vpop.f32.mrf.mxu0  ;;  %6449 = vmatprep.mubr.msk.bf16.mxu1 %vm7013_vm0, %v8563_v63  ;;  %v1279_v20 = vadd.f32 %v1130_v29, %v7375_v57  ;;  %v2370_v29 = vld [vmem:[#allocation2 + $0x11b] sm:$0xff] }
 0x1a4   : > { %v6255_v18 = vpop.f32.mrf.mxu1 }
 0x1a5   : > { %v1622_v9 = vpop.f32.mrf.mxu0 }
 0x1a6   : > { %v1133_v61 = vpop.f32.mrf.mxu1  ;;  %v7732_v25 = vadd.f32 %v1622_v9, %v1278_v39 }
 0x1a7   : > { %v6346_v8 = vpop.f32.mrf.mxu0  ;;  %v1280_v57 = vadd.f32 %v1133_v61, %v7386_v5  ;;  %v2369_v5 = vld [vmem:[#allocation2 + $0x113] sm:$0xff] }
 0x1a8   : > { %v6256_v50 = vpop.f32.mrf.mxu1  ;;  %v2398_v39 = vpack.c.bf16 %v2370_v29, %v2369_v5  ;;  %v8567_v29 = vld [vmem:[#allocation5_spill] sm:$0xff] }
 0x1a9   : > { %v1627_v38 = vpop.f32.mrf.mxu0  ;;  %6540 = vmatmul.mubr.msk.bf16.gmra.mxu0 %vm379_vm1, %v2396_v16 }
 0x1aa   : > { %v1138_v40 = vpop.f32.mrf.mxu1  ;;  %v7736_v17 = vadd.f32 %v1627_v38, %v1279_v20  ;;  %6450 = vmatmul.mubr.msk.bf16.gmra.mxu1 %vm379_vm1, %v7418_v42  ;;  %6543 = vmatprep.mubr.msk.bf16.mxu0 %vm7013_vm0, %v8563_v63  ;;  %v2372_v38 = vld [vmem:[#allocation2 + $0x12b] sm:$0xff] }
 0x1ab   : > { %v6349_v10 = vpop.f32.mrf.mxu0  ;;  %6453 = vmatprep.mubr.msk.bf16.mxu1 %vm7013_vm0, %v8563_v63  ;;  %v1281_v42 = vadd.f32 %v1138_v40, %v7392_v11 }
 0x1ac   : > { %v6259_v13 = vpop.f32.mrf.mxu1 }
 0x1ad   : > { %v1630_v60 = vpop.f32.mrf.mxu0 }
 0x1ae   : > { %v1141_v58 = vpop.f32.mrf.mxu1  ;;  %v7745_v31 = vadd.f32 %v1630_v60, %v1280_v57 }
 0x1af   : > { %v6350_v22 = vpop.f32.mrf.mxu0  ;;  %v1282_v11 = vadd.f32 %v1141_v58, %v7403_v21  ;;  %v2371_v21 = vld [vmem:[#allocation2 + $0x123] sm:$0xff] }
 0x1b0   : > { %v6260_v36 = vpop.f32.mrf.mxu1  ;;  %v2399_v10 = vpack.c.bf16 %v2372_v38, %v2371_v21 }
 0x1b1   : > { %v1635_v3 = vpop.f32.mrf.mxu0  ;;  %6544 = vmatmul.mubr.msk.bf16.gmra.mxu0 %vm379_vm1, %v2397_v52  ;;  %v8565_v52 = vld [vmem:[#allocation4_spill] sm:$0xff] }
 0x1b2   : > { %v1146_v45 = vpop.f32.mrf.mxu1  ;;  %v7749_v59 = vadd.f32 %v1635_v3, %v1281_v42  ;;  %6454 = vmatmul.mubr.msk.bf16.gmra.mxu1 %vm379_vm1, %v7435_v6  ;;  %6547 = vmatprep.mubr.msk.bf16.mxu0 %vm7013_vm0, %v8563_v63  ;;  %v8566_v3 = vld [vmem:[#allocation9_spill] sm:$0xff] }
 0x1b3   : > { %v6353_v33 = vpop.f32.mrf.mxu0  ;;  %6457 = vmatprep.mubr.msk.bf16.mxu1 %vm7013_vm0, %v8563_v63  ;;  %v1283_v6 = vadd.f32 %v1146_v45, %v7409_v27  ;;  %v2374_v45 = vld [vmem:[#allocation2 + $0x13b] sm:$0xff] }
 0x1b4   : > { %v6263_v23 = vpop.f32.mrf.mxu1 }
 0x1b5   : > { %v1638_v49 = vpop.f32.mrf.mxu0 }
 0x1b6   : > { %v1149_v18 = vpop.f32.mrf.mxu1  ;;  %v7758_v9 = vadd.f32 %v1638_v49, %v1282_v11 }
 0x1b7   : > { %v6354_v16 = vpop.f32.mrf.mxu0  ;;  %v1284_v27 = vadd.f32 %v1149_v18, %v7420_v43  ;;  %v2373_v43 = vld [vmem:[#allocation2 + $0x133] sm:$0xff] }
 0x1b8   : > { %v6264_v61 = vpop.f32.mrf.mxu1  ;;  %v2400_v49 = vpack.c.bf16 %v2374_v45, %v2373_v43 }
 0x1b9   : > { %v1643_v8 = vpop.f32.mrf.mxu0  ;;  %6548 = vmatmul.mubr.msk.bf16.gmra.mxu0 %vm379_vm1, %v2398_v39 }
 0x1ba   : > { %v1154_v20 = vpop.f32.mrf.mxu1  ;;  %v7762_v50 = vadd.f32 %v1643_v8, %v1283_v6  ;;  %6458 = vmatmul.mubr.msk.bf16.gmra.mxu1 %vm379_vm1, %v7452_v32  ;;  %6551 = vmatprep.mubr.msk.bf16.mxu0 %vm7013_vm0, %v8563_v63  ;;  %v8568_v6 = vld [vmem:[#allocation6_spill] sm:$0xff] }
 0x1bb   : > { %v6357_v40 = vpop.f32.mrf.mxu0  ;;  %6461 = vmatprep.mubr.msk.bf16.mxu1 %vm7013_vm0, %v8563_v63  ;;  %v1285_v32 = vadd.f32 %v1154_v20, %v8565_v52 }
 0x1bc   : > { %v6267_v51 = vpop.f32.mrf.mxu1  ;;  %v8569_v40 = vld [vmem:[#allocation12_spill] sm:$0xff] }
 0x1bd   : > { %v1646_v54 = vpop.f32.mrf.mxu0  ;;  %v2376_v51 = vld [vmem:[#allocation2 + $0x14b] sm:$0xff] }
 0x1be   : > { %v1157_v57 = vpop.f32.mrf.mxu1  ;;  %v7771_v13 = vadd.f32 %v1646_v54, %v1284_v27  ;;  %v2375_v27 = vld [vmem:[#allocation2 + $0x143] sm:$0xff] }
 0x1bf   : > { %v6358_v60 = vpop.f32.mrf.mxu0  ;;  %v1286_v33 = vadd.f32 %v1157_v57, %v8567_v29 }
 0x1c0   : > { %v6268_v58 = vpop.f32.mrf.mxu1 }
 0x1c1   : > { %v1651_v22 = vpop.f32.mrf.mxu0  ;;  %6552 = vmatmul.mubr.msk.bf16.gmra.mxu0 %vm379_vm1, %v2399_v10  ;;  %v8570_v10 = vld [vmem:[#allocation7_spill] sm:$0xff] }
 0x1c2   : > { %v1162_v42 = vpop.f32.mrf.mxu1  ;;  %v7775_v36 = vadd.f32 %v1651_v22, %v1285_v32  ;;  %6462 = vmatmul.mubr.msk.bf16.gmra.mxu1 %vm379_vm1, %v8566_v3  ;;  %6555 = vmatprep.mubr.msk.bf16.mxu0 %vm7013_vm0, %v8563_v63  ;;  %v2401_v32 = vpack.c.bf16 %v2376_v51, %v2375_v27  ;;  %v8571_v3 = vld [vmem:[#allocation8_spill] sm:$0xff]  ;;  %v8574_v51 = vld [vmem:[#allocation18_spill] sm:$0xff] }
 0x1c3   : > { %v6361_v5 = vpop.f32.mrf.mxu0  ;;  %6465 = vmatprep.mubr.msk.bf16.mxu1 %vm7013_vm0, %v8563_v63  ;;  %v1287_v61 = vadd.f32 %v1162_v42, %v8568_v6  ;;  %v8573_v6 = vld [vmem:[#allocation10_spill] sm:$0xff] }
 0x1c4   : > { %v6271_v11 = vpop.f32.mrf.mxu1 }
 0x1c5   : > { %v1654_v23 = vpop.f32.mrf.mxu0  ;;  %v8572_v11 = vld [vmem:[#allocation15_spill] sm:$0xff] }
 0x1c6   : > { %v1165_v39 = vpop.f32.mrf.mxu1  ;;  %v7784_v18 = vadd.f32 %v1654_v23, %v1286_v33  ;;  %v2377_v23 = vld [vmem:[#allocation2 + $0x153] sm:$0xff] }
 0x1c7   : > { %v6362_v16 = vpop.f32.mrf.mxu0  ;;  %v1288_v57 = vadd.f32 %v1165_v39, %v8570_v10 }
 0x1c8   : > { %v6272_v8 = vpop.f32.mrf.mxu1  ;;  %v1883_v16 = vld [vmem:[#allocation2 + $0x16a] sm:$0xff] }
 0x1c9   : > { %v1659_v20 = vpop.f32.mrf.mxu0  ;;  %6556 = vmatmul.mubr.msk.bf16.gmra.mxu0 %vm379_vm1, %v2400_v49  ;;  %v2378_v49 = vld [vmem:[#allocation2 + $0x15b] sm:$0xff] }
 0x1ca   : > { %v1170_v21 = vpop.f32.mrf.mxu1  ;;  %v7788_v38 = vadd.f32 %v1659_v20, %v1287_v61  ;;  %6466 = vmatmul.mubr.msk.bf16.gmra.mxu1 %vm379_vm1, %v8569_v40  ;;  %6559 = vmatprep.mubr.msk.bf16.mxu0 %vm7013_vm0, %v8563_v63 }
 0x1cb   : > { %v6365_v54 = vpop.f32.mrf.mxu0  ;;  %6469 = vmatprep.mubr.msk.bf16.mxu1 %vm7013_vm0, %v8563_v63  ;;  %v1289_v43 = vadd.f32 %v1170_v21, %v8571_v3  ;;  %v2402_v21 = vpack.c.bf16 %v2378_v49, %v2377_v23 }
 0x1cc   : > { %v6275_v60 = vpop.f32.mrf.mxu1  ;;  %v1906_v54 = vpack.c.bf16 %v1883_v16, %v8574_v51 }
 0x1cd   : > { %v1662_v52 = vpop.f32.mrf.mxu0 }
 0x1ce   : > { %v1173_v58 = vpop.f32.mrf.mxu1  ;;  %v7797_v22 = vadd.f32 %v1662_v52, %v1288_v57  ;;  %v8575_v57 = vld [vmem:[#allocation11_spill] sm:$0xff] }
 0x1cf   : > { %v6366_v42 = vpop.f32.mrf.mxu0  ;;  %v1290_v61 = vadd.f32 %v1173_v58, %v8573_v6  ;;  %v2379_v58 = vld [vmem:[#allocation2 + $0x163] sm:$0xff] }
 0x1d0   : > { %v6276_v45 = vpop.f32.mrf.mxu1 }
 0x1d1   : > { %v1667_v5 = vpop.f32.mrf.mxu0  ;;  %6560 = vmatmul.mubr.msk.bf16.gmra.mxu0 %vm379_vm1, %v2401_v32 }
 0x1d2   : > { %v1178_v29 = vpop.f32.mrf.mxu1  ;;  %v7801_v33 = vadd.f32 %v1667_v5, %v1289_v43  ;;  %6470 = vmatmul.mubr.msk.bf16.gmra.mxu1 %vm379_vm1, %v8572_v11  ;;  %6563 = vmatprep.mubr.msk.bf16.mxu0 %vm7013_vm0, %v8563_v63  ;;  %v2380_v43 = vld [vmem:[#allocation2 + $0x16b] sm:$0xff] }
 0x1d3   : > { %v6369_v39 = vpop.f32.mrf.mxu0  ;;  %6473 = vmatprep.mubr.msk.bf16.mxu1 %vm7013_vm0, %v8563_v63  ;;  %v1291_v60 = vadd.f32 %v1178_v29, %v8575_v57  ;;  %v1884_v5 = vld [vmem:[#allocation2 + $0x172] sm:$0xff] }
 0x1d4   : > { %v6279_v8 = vpop.f32.mrf.mxu1  ;;  %v8576_v29 = vld [vmem:[#allocation13_spill] sm:$0xff]  ;;  %v2403_v39 = vpack.c.bf16 %v2380_v43, %v2379_v58 }
 0x1d5   : > { %v1670_v20 = vpop.f32.mrf.mxu0 }
 0x1d6   : > { %v1181_v40 = vpop.f32.mrf.mxu1  ;;  %v7810_v27 = vadd.f32 %v1670_v20, %v1290_v61  ;;  %v1907_v61 = vpack.c.bf16 %v1884_v5, %v1884_v5  ;;  %v8577_v20 = vld [vmem:[#allocation14_spill] sm:$0xff] }
 0x1d7   : > { %v6370_v10 = vpop.f32.mrf.mxu0  ;;  %v1292_v11 = vadd.f32 %v1181_v40, %v8576_v29  ;;  %v2381_v40 = vld [vmem:[#allocation2 + $0x173] sm:$0xff] }
 0x1d8   : > { %v6280_v52 = vpop.f32.mrf.mxu1  ;;  %v2404_v5 = vpack.c.bf16 %v2381_v40, %v2381_v40  ;;  %v2837_v40 = vld [vmem:[#allocation2 + $0x2c] sm:$0xff] }
 0x1d9   : > { %v1675_v32 = vpop.f32.mrf.mxu0  ;;  %6564 = vmatmul.mubr.msk.bf16.gmra.mxu0 %vm379_vm1, %v2402_v21  ;;  %v2834_v52 = vld [vmem:[#allocation2 + $0x14] sm:$0xff] }
 0x1da   : > { %v1186_v42 = vpop.f32.mrf.mxu1  ;;  %v7815_v3 = vadd.f32 %v1675_v32, %v1291_v60  ;;  %6474 = vmatmul.mubr.msk.bf16.gmra.mxu1 %vm379_vm1, %v1906_v54  ;;  %6567 = vmatprep.mubr.msk.bf16.mxu0 %vm7013_vm0, %v8563_v63  ;;  %v2835_v32 = vld [vmem:[#allocation2 + $0x1c] sm:$0xff] }
 0x1db   : > { %v6373_v45 = vpop.f32.mrf.mxu0  ;;  %6477 = vmatprep.mubr.msk.bf16.mxu1 %vm7013_vm0, %v8563_v63  ;;  %v1293_v21 = vadd.f32 %v1186_v42, %v8577_v20  ;;  %v8578_v42 = vld [vmem:[#allocation16_spill] sm:$0xff] }
 0x1dc   : > { %v6283_v23 = vpop.f32.mrf.mxu1 }
 0x1dd   : > { %v1678_v49 = vpop.f32.mrf.mxu0  ;;  %v2879_v23 = vpack.c.bf16 %v2835_v32, %v2834_v52 }
 0x1de   : > { %v1189_v16 = vpop.f32.mrf.mxu1  ;;  %v7823_v6 = vadd.f32 %v1678_v49, %v1292_v11 }
 0x1df   : > { %v6374_v8 = vpop.f32.mrf.mxu0  ;;  %v1294_v58 = vadd.f32 %v1189_v16, %v8578_v42 }
 0x1e0   : > { %v6284_v51 = vpop.f32.mrf.mxu1 }
 0x1e1   : > { %v1683_v54 = vpop.f32.mrf.mxu0  ;;  %6568 = vmatmul.mubr.msk.bf16.gmra.mxu0 %vm379_vm1, %v2403_v39  ;;  %v6986_v39 = vld [vmem:[%s8537_s2 + $0x38] sm:$0xff]  }
 0x1e2   : > { %v1194_v10 = vpop.f32.mrf.mxu1  ;;  %v7827_v57 = vadd.f32 %v1683_v54, %v1293_v21  ;;  %6478 = vmatmul.mubr.msk.bf16.gmra.mxu1 %vm379_vm1, %v1907_v61  ;;  %6571 = vmatprep.mubr.msk.bf16.mxu0 %vm7013_vm0, %v8563_v63  ;;  %v8579_v61 = vld [vmem:[#allocation17_spill] sm:$0xff]  ;;  %v2836_v54 = vld [vmem:[#allocation2 + $0x24] sm:$0xff] }
 0x1e3   : > { %v6377_v60 = vpop.f32.mrf.mxu0  ;;  %6577 = vmatprep.mubr.msk.bf16.mxu1 %vm7013_vm0, %v8563_v63  ;;  %v1295_v8 = vadd.f32 %v1194_v10, %v8579_v61  ;;  %v8580_v10 = vld [vmem:[#allocation19_spill] sm:$0xff] }
 0x1e4   : > { %v6287_v43 = vpop.f32.mrf.mxu1 }
 0x1e5   : > { %v1686_v45 = vpop.f32.mrf.mxu0 }
 0x1e6   : > { %v1197_v29 = vpop.f32.mrf.mxu1  ;;  %v7835_v11 = vadd.f32 %v1686_v45, %v1294_v58  ;;  %v2880_v58 = vpack.c.bf16 %v2837_v40, %v2836_v54  ;;  %v2839_v54 = vld [vmem:[#allocation2 + $0x3c] sm:$0xff] }
 0x1e7   : > { %v6378_v49 = vpop.f32.mrf.mxu0  ;;  %v1296_v52 = vadd.f32 %v1197_v29, %v8580_v10  ;;  %v8582_v40 = vld [vmem:[#allocation21_spill] sm:$0xff] }
 0x1e8   : > { %v6288_v20 = vpop.f32.mrf.mxu1  ;;  %v8581_v49 = vld [vmem:[#allocation20_spill] sm:$0xff] }
 0x1e9   : > { %v1691_v21 = vpop.f32.mrf.mxu0  ;;  %6572 = vmatmul.mubr.msk.bf16.gmra.mxu0 %vm379_vm1, %v2404_v5  ;;  %v6987_v5 = vld [vmem:[%s8537_s2 + $0x40] sm:$0xff]  }
 0x1ea   : > { %v1202_v51 = vpop.f32.mrf.mxu1  ;;  %v7842_v16 = vadd.f32 %v1691_v21, %v1295_v8  ;;  %6578 = vmatmul.mubr.msk.bf16.vlgmr.msra.gmra.mxu1 %vm379_vm1, %v2879_v23  ;;  %6671 = vmatprep.mubr.msk.bf16.mxu0 %vm7013_vm0, %v8563_v63  ;;  %v2838_v21 = vld [vmem:[#allocation2 + $0x34] sm:$0xff] }
 0x1eb   : > { %v6381_v60 = vpop.f32.mrf.mxu0  ;;  %6764 = vmatpush3.bf16.msra.mxu1 %v6986_v39  ;;  %6581 = vmatprep.mubr.msk.bf16.mxu1 %vm7013_vm0, %v8563_v63  ;;  %v1297_v61 = vadd.f32 %v1202_v51, %v8581_v49 }
 0x1ec   : > { %v6291_v32 = vpop.f32.mrf.mxu1 }
 0x1ed   : > { %v1694_v42 = vpop.f32.mrf.mxu0  ;;  %v2881_v32 = vpack.c.bf16 %v2839_v54, %v2838_v21 }
 0x1ee   : > { %v1205_v43 = vpop.f32.mrf.mxu1  ;;  %v7850_v45 = vadd.f32 %v1694_v42, %v1296_v52 }
 0x1ef   : > { %v6382_v23 = vpop.f32.mrf.mxu0 }
 0x1f0   : > { %v6292_v8 = vpop.f32.mrf.mxu1 }
 0x1f1   : > { %v1699_v39 = vpop.f32.mrf.mxu0  ;;  %6672 = vmatmul.mubr.msk.bf16.vlgmr.msra.gmra.mxu0 %vm379_vm1, %v2880_v58  ;;  %v2840_v8 = vld [vmem:[#allocation2 + $0x44] sm:$0xff] }
 0x1f2   : > { %v7857_v20 = vadd.f32 %v1699_v39, %v1297_v61  ;;  %v2020_v29 = vpop.f32.mrf.mxu1  ;;  %6582 = vmatmul.mubr.msk.bf16.gmra.mxu1 %vm379_vm1, %v2880_v58  ;;  %6858 = vmatpush3.bf16.msra.mxu0 %v6987_v5  ;;  %v2841_v39 = vld [vmem:[#allocation2 + $0x4c] sm:$0xff] }
 0x1f3   : > { %v2247_v60 = vadd.f32 %v2020_v29, %v8582_v40  ;;  %v6385_v10 = vpop.f32.mrf.mxu0  ;;  %6585 = vmatprep.mubr.msk.bf16.mxu1 %vm7013_vm0, %v8563_v63  ;;  %6675 = vmatprep.mubr.msk.bf16.mxu0 %vm7013_vm0, %v8563_v63  ;;  %v2882_v40 = vpack.c.bf16 %v2841_v39, %v2840_v8 }
 0x1f4   : > { %v6391_v51 = vpop.f32.mrf.mxu1 }
 0x1f5   : > { %v1702_v52 = vpop.f32.mrf.mxu0 }
 0x1f6   : > { %v2023_v42 = vpop.f32.mrf.mxu1 }
 0x1f7   : > { %v2248_v43 = vadd.f32 %v2023_v42, %v7569_v15  ;;  %v6386_v23 = vpop.f32.mrf.mxu0 }
 0x1f8   : > { %v6392_v58 = vpop.f32.mrf.mxu1 }
 0x1f9   : > { %v2517_v5 = vpop.f32.mrf.mxu0  ;;  %6676 = vmatmul.mubr.msk.bf16.gmra.mxu0 %vm379_vm1, %v2881_v32 }
 0x1fa   : > { %v2028_v49 = vpop.f32.mrf.mxu1  ;;  %v7867_v61 = vadd.f32 %v2517_v5, %v2247_v60  ;;  %6586 = vmatmul.mubr.msk.bf16.gmra.mxu1 %vm379_vm1, %v2881_v32  ;;  %6679 = vmatprep.mubr.msk.bf16.mxu0 %vm7013_vm0, %v8563_v63  ;;  %v2843_v5 = vld [vmem:[#allocation2 + $0x5c] sm:$0xff] }
 0x1fb   : > { %v2249_v29 = vadd.f32 %v2028_v49, %v7573_v34  ;;  %v6485_v21 = vpop.f32.mrf.mxu0  ;;  %6589 = vmatprep.mubr.msk.bf16.mxu1 %vm7013_vm0, %v8563_v63  ;;  %v2842_v34 = vld [vmem:[#allocation2 + $0x54] sm:$0xff] }
 0x1fc   : > { %v6395_v15 = vpop.f32.mrf.mxu1  ;;  %v2883_v39 = vpack.c.bf16 %v2843_v5, %v2842_v34 }
 0x1fd   : > { %v2520_v54 = vpop.f32.mrf.mxu0 }
 0x1fe   : > { %v2031_v10 = vpop.f32.mrf.mxu1  ;;  %v7875_v51 = vadd.f32 %v2520_v54, %v2248_v43 }
 0x1ff   : > { %v2250_v60 = vadd.f32 %v2031_v10, %v7582_v7  ;;  %v6486_v52 = vpop.f32.mrf.mxu0 }
 0x200   : > { %v6396_v32 = vpop.f32.mrf.mxu1 }
 0x201   : > { %v2525_v42 = vpop.f32.mrf.mxu0  ;;  %6680 = vmatmul.mubr.msk.bf16.gmra.mxu0 %vm379_vm1, %v2882_v40 }
 0x202   : > { %v2036_v23 = vpop.f32.mrf.mxu1  ;;  %v7879_v58 = vadd.f32 %v2525_v42, %v2249_v29  ;;  %6590 = vmatmul.mubr.msk.bf16.gmra.mxu1 %vm379_vm1, %v2882_v40  ;;  %6683 = vmatprep.mubr.msk.bf16.mxu0 %vm7013_vm0, %v8563_v63  ;;  %v2845_v42 = vld [vmem:[#allocation2 + $0x6c] sm:$0xff] }
 0x203   : > { %v2251_v43 = vadd.f32 %v2036_v23, %v7588_v2  ;;  %v6489_v49 = vpop.f32.mrf.mxu0  ;;  %6593 = vmatprep.mubr.msk.bf16.mxu1 %vm7013_vm0, %v8563_v63  ;;  %v2844_v2 = vld [vmem:[#allocation2 + $0x64] sm:$0xff] }
 0x204   : > { %v6399_v7 = vpop.f32.mrf.mxu1  ;;  %v2884_v5 = vpack.c.bf16 %v2845_v42, %v2844_v2 }
 0x205   : > { %v2528_v8 = vpop.f32.mrf.mxu0 }
 0x206   : > { %v2039_v21 = vpop.f32.mrf.mxu1  ;;  %v7887_v15 = vadd.f32 %v2528_v8, %v2250_v60 }
 0x207   : > { %v2252_v29 = vadd.f32 %v2039_v21, %v7600_v46  ;;  %v6490_v54 = vpop.f32.mrf.mxu0 }
 0x208   : > { %v6400_v40 = vpop.f32.mrf.mxu1 }
 0x209   : > { %v2533_v10 = vpop.f32.mrf.mxu0  ;;  %6684 = vmatmul.mubr.msk.bf16.gmra.mxu0 %vm379_vm1, %v2883_v39 }
 0x20a   : > { %v2044_v52 = vpop.f32.mrf.mxu1  ;;  %v7891_v32 = vadd.f32 %v2533_v10, %v2251_v43  ;;  %6594 = vmatmul.mubr.msk.bf16.gmra.mxu1 %vm379_vm1, %v2883_v39  ;;  %6687 = vmatprep.mubr.msk.bf16.mxu0 %vm7013_vm0, %v8563_v63  ;;  %v5735_v43 = vunpack.c.h.bf16 %v7598_v56  ;;  %v2847_v56 = vld [vmem:[#allocation2 + $0x7c] sm:$0xff] }
 0x20b   : > { %v2253_v60 = vadd.f32 %v2044_v52, %v7606_v37  ;;  %v6493_v23 = vpop.f32.mrf.mxu0  ;;  %6597 = vmatprep.mubr.msk.bf16.mxu1 %vm7013_vm0, %v8563_v63 }
 0x20c   : > { %v6403_v46 = vpop.f32.mrf.mxu1  ;;  %438 = vst.msk [vmem:[#allocation2 + $0x180] sm:$0xff] %vm379_vm1, %v5735_v43  ;;  %v429_v23 = vld [vmem:[%s7273_s14 + $0x10] sm:$0xf] }
 0x20d   : > { %v2536_v34 = vpop.f32.mrf.mxu0 }
 0x20e   : > { %v2047_v49 = vpop.f32.mrf.mxu1  ;;  %v7899_v7 = vadd.f32 %v2536_v34, %v2252_v29  ;;  %v2846_v29 = vld [vmem:[#allocation2 + $0x74] sm:$0xff]  ;;  %v434_v34 = vunpack.c.l.bf16 %v429_v23 }
 0x20f   : > { %v2254_v8 = vadd.f32 %v2047_v49, %v7615_v53  ;;  %v6494_v39 = vpop.f32.mrf.mxu0  ;;  %v2885_v42 = vpack.c.bf16 %v2847_v56, %v2846_v29 }
 0x210   : > { %v6404_v21 = vpop.f32.mrf.mxu1  ;;  %439 = vst.msk [vmem:[#allocation2 + $0x188] sm:$0xff] %vm379_vm1, %v434_v34 }
 0x211   : > { %v2541_v37 = vpop.f32.mrf.mxu0  ;;  %6688 = vmatmul.mubr.msk.bf16.gmra.mxu0 %vm379_vm1, %v2884_v5 }
 0x212   : > { %v2052_v54 = vpop.f32.mrf.mxu1  ;;  %v7905_v40 = vadd.f32 %v2541_v37, %v2253_v60  ;;  %6598 = vmatmul.mubr.msk.bf16.gmra.mxu1 %vm379_vm1, %v2884_v5  ;;  %6691 = vmatprep.mubr.msk.bf16.mxu0 %vm7013_vm0, %v8563_v63  ;;  %v2849_v37 = vld [vmem:[#allocation2 + $0x8c] sm:$0xff] }
 0x213   : > { %v2255_v53 = vadd.f32 %v2052_v54, %v7619_v62  ;;  %v6497_v10 = vpop.f32.mrf.mxu0  ;;  %6601 = vmatprep.mubr.msk.bf16.mxu1 %vm7013_vm0, %v8563_v63 }
 0x214   : > { %v6407_v52 = vpop.f32.mrf.mxu1 }
 0x215   : > { %v2544_v2 = vpop.f32.mrf.mxu0 }
 0x216   : > { %v2055_v46 = vpop.f32.mrf.mxu1  ;;  %v7914_v60 = vadd.f32 %v2544_v2, %v2254_v8  ;;  %v2848_v8 = vld [vmem:[#allocation2 + $0x84] sm:$0xff] }
 0x217   : > { %v2256_v5 = vadd.f32 %v2055_v46, %v7628_v48  ;;  %v6498_v49 = vpop.f32.mrf.mxu0  ;;  %v2886_v10 = vpack.c.bf16 %v2849_v37, %v2848_v8 }
 0x218   : > { %v6408_v43 = vpop.f32.mrf.mxu1 }
 0x219   : > { %v2549_v39 = vpop.f32.mrf.mxu0  ;;  %6692 = vmatmul.mubr.msk.bf16.gmra.mxu0 %vm379_vm1, %v2885_v42  ;;  %v2851_v43 = vld [vmem:[#allocation2 + $0x9c] sm:$0xff] }
 0x21a   : > { %v2060_v62 = vpop.f32.mrf.mxu1  ;;  %v7919_v21 = vadd.f32 %v2549_v39, %v2255_v53  ;;  %6602 = vmatmul.mubr.msk.bf16.gmra.mxu1 %vm379_vm1, %v2885_v42  ;;  %6695 = vmatprep.mubr.msk.bf16.mxu0 %vm7013_vm0, %v8563_v63 }
 0x21b   : > { %v2257_v54 = vadd.f32 %v2060_v62, %v7632_v12  ;;  %v6501_v48 = vpop.f32.mrf.mxu0  ;;  %6605 = vmatprep.mubr.msk.bf16.mxu1 %vm7013_vm0, %v8563_v63  ;;  %v2850_v12 = vld [vmem:[#allocation2 + $0x94] sm:$0xff] }
 0x21c   : > { %v6411_v29 = vpop.f32.mrf.mxu1  ;;  %v2887_v8 = vpack.c.bf16 %v2851_v43, %v2850_v12 }
 0x21d   : > { %v2552_v56 = vpop.f32.mrf.mxu0 }
 0x21e   : > { %v2063_v52 = vpop.f32.mrf.mxu1  ;;  %v7927_v2 = vadd.f32 %v2552_v56, %v2256_v5 }
 0x21f   : > { %v2258_v53 = vadd.f32 %v2063_v52, %v7641_v1  ;;  %v6502_v42 = vpop.f32.mrf.mxu0 }
 0x220   : > { %v6412_v23 = vpop.f32.mrf.mxu1 }
 0x221   : > { %v2557_v46 = vpop.f32.mrf.mxu0  ;;  %6696 = vmatmul.mubr.msk.bf16.gmra.mxu0 %vm379_vm1, %v2886_v10  ;;  %v2853_v23 = vld [vmem:[#allocation2 + $0xac] sm:$0xff] }
 0x222   : > { %v2068_v34 = vpop.f32.mrf.mxu1  ;;  %v7931_v49 = vadd.f32 %v2557_v46, %v2257_v54  ;;  %6606 = vmatmul.mubr.msk.bf16.gmra.mxu1 %vm379_vm1, %v2886_v10  ;;  %6699 = vmatprep.mubr.msk.bf16.mxu0 %vm7013_vm0, %v8563_v63 }
 0x223   : > { %v2259_v5 = vadd.f32 %v2068_v34, %v7645_v35  ;;  %v6505_v39 = vpop.f32.mrf.mxu0  ;;  %6609 = vmatprep.mubr.msk.bf16.mxu1 %vm7013_vm0, %v8563_v63  ;;  %v2852_v35 = vld [vmem:[#allocation2 + $0xa4] sm:$0xff] }
 0x224   : > { %v6415_v1 = vpop.f32.mrf.mxu1  ;;  %v2888_v12 = vpack.c.bf16 %v2853_v23, %v2852_v35 }
 0x225   : > { %v2560_v62 = vpop.f32.mrf.mxu0 }
 0x226   : > { %v2071_v37 = vpop.f32.mrf.mxu1  ;;  %v7939_v48 = vadd.f32 %v2560_v62, %v2258_v53 }
 0x227   : > { %v2260_v54 = vadd.f32 %v2071_v37, %v7654_v0  ;;  %v6506_v29 = vpop.f32.mrf.mxu0 }
 0x228   : > { %v6416_v56 = vpop.f32.mrf.mxu1 }
 0x229   : > { %v2565_v10 = vpop.f32.mrf.mxu0  ;;  %6700 = vmatmul.mubr.msk.bf16.gmra.mxu0 %vm379_vm1, %v2887_v8  ;;  %v2855_v56 = vld [vmem:[#allocation2 + $0xbc] sm:$0xff] }
 0x22a   : > { %v2076_v52 = vpop.f32.mrf.mxu1  ;;  %v7943_v42 = vadd.f32 %v2565_v10, %v2259_v5  ;;  %6610 = vmatmul.mubr.msk.bf16.gmra.mxu1 %vm379_vm1, %v2887_v8  ;;  %6703 = vmatprep.mubr.msk.bf16.mxu0 %vm7013_vm0, %v8563_v63 }
 0x22b   : > { %v2261_v53 = vadd.f32 %v2076_v52, %v7658_v55  ;;  %v6509_v46 = vpop.f32.mrf.mxu0  ;;  %6613 = vmatprep.mubr.msk.bf16.mxu1 %vm7013_vm0, %v8563_v63  ;;  %v2854_v55 = vld [vmem:[#allocation2 + $0xb4] sm:$0xff] }
 0x22c   : > { %v6419_v0 = vpop.f32.mrf.mxu1  ;;  %v2889_v35 = vpack.c.bf16 %v2855_v56, %v2854_v55 }
 0x22d   : > { %v2568_v34 = vpop.f32.mrf.mxu0 }
 0x22e   : > { %v2079_v43 = vpop.f32.mrf.mxu1  ;;  %v7951_v39 = vadd.f32 %v2568_v34, %v2260_v54 }
 0x22f   : > { %v2262_v5 = vadd.f32 %v2079_v43, %v7667_v19  ;;  %v6510_v1 = vpop.f32.mrf.mxu0 }
 0x230   : > { %v6420_v62 = vpop.f32.mrf.mxu1 }
 0x231   : > { %v2573_v8 = vpop.f32.mrf.mxu0  ;;  %6704 = vmatmul.mubr.msk.bf16.gmra.mxu0 %vm379_vm1, %v2888_v12  ;;  %v2857_v62 = vld [vmem:[#allocation2 + $0xcc] sm:$0xff] }
 0x232   : > { %v2084_v37 = vpop.f32.mrf.mxu1  ;;  %v7955_v29 = vadd.f32 %v2573_v8, %v2261_v53  ;;  %6614 = vmatmul.mubr.msk.bf16.gmra.mxu1 %vm379_vm1, %v2888_v12  ;;  %6707 = vmatprep.mubr.msk.bf16.mxu0 %vm7013_vm0, %v8563_v63 }
 0x233   : > { %v2263_v54 = vadd.f32 %v2084_v37, %v7671_v4  ;;  %v6513_v10 = vpop.f32.mrf.mxu0  ;;  %6617 = vmatprep.mubr.msk.bf16.mxu1 %vm7013_vm0, %v8563_v63  ;;  %v2856_v4 = vld [vmem:[#allocation2 + $0xc4] sm:$0xff] }
 0x234   : > { %v6423_v19 = vpop.f32.mrf.mxu1  ;;  %v2890_v55 = vpack.c.bf16 %v2857_v62, %v2856_v4 }
 0x235   : > { %v2576_v52 = vpop.f32.mrf.mxu0 }
 0x236   : > { %v2087_v23 = vpop.f32.mrf.mxu1  ;;  %v7963_v46 = vadd.f32 %v2576_v52, %v2262_v5 }
 0x237   : > { %v2264_v53 = vadd.f32 %v2087_v23, %v7680_v14  ;;  %v6514_v0 = vpop.f32.mrf.mxu0 }
 0x238   : > { %v6424_v34 = vpop.f32.mrf.mxu1 }
 0x239   : > { %v2581_v12 = vpop.f32.mrf.mxu0  ;;  %6708 = vmatmul.mubr.msk.bf16.gmra.mxu0 %vm379_vm1, %v2889_v35  ;;  %v2859_v34 = vld [vmem:[#allocation2 + $0xdc] sm:$0xff] }
 0x23a   : > { %v2092_v43 = vpop.f32.mrf.mxu1  ;;  %v7967_v1 = vadd.f32 %v2581_v12, %v2263_v54  ;;  %6618 = vmatmul.mubr.msk.bf16.gmra.mxu1 %vm379_vm1, %v2889_v35  ;;  %6711 = vmatprep.mubr.msk.bf16.mxu0 %vm7013_vm0, %v8563_v63 }
 0x23b   : > { %v2265_v5 = vadd.f32 %v2092_v43, %v7684_v24  ;;  %v6517_v8 = vpop.f32.mrf.mxu0  ;;  %6621 = vmatprep.mubr.msk.bf16.mxu1 %vm7013_vm0, %v8563_v63  ;;  %v2858_v24 = vld [vmem:[#allocation2 + $0xd4] sm:$0xff] }
 0x23c   : > { %v6427_v14 = vpop.f32.mrf.mxu1  ;;  %v2891_v4 = vpack.c.bf16 %v2859_v34, %v2858_v24 }
 0x23d   : > { %v2584_v37 = vpop.f32.mrf.mxu0 }
 0x23e   : > { %v2095_v56 = vpop.f32.mrf.mxu1  ;;  %v7975_v10 = vadd.f32 %v2584_v37, %v2264_v53 }
 0x23f   : > { %v2266_v54 = vadd.f32 %v2095_v56, %v7693_v41  ;;  %v6518_v19 = vpop.f32.mrf.mxu0 }
 0x240   : > { %v6428_v52 = vpop.f32.mrf.mxu1 }
 0x241   : > { %v2589_v35 = vpop.f32.mrf.mxu0  ;;  %6712 = vmatmul.mubr.msk.bf16.gmra.mxu0 %vm379_vm1, %v2890_v55  ;;  %v2861_v52 = vld [vmem:[#allocation2 + $0xec] sm:$0xff] }
 0x242   : > { %v2100_v23 = vpop.f32.mrf.mxu1  ;;  %v7979_v0 = vadd.f32 %v2589_v35, %v2265_v5  ;;  %6622 = vmatmul.mubr.msk.bf16.gmra.mxu1 %vm379_vm1, %v2890_v55  ;;  %6715 = vmatprep.mubr.msk.bf16.mxu0 %vm7013_vm0, %v8563_v63 }
 0x243   : > { %v2267_v53 = vadd.f32 %v2100_v23, %v7697_v44  ;;  %v6521_v12 = vpop.f32.mrf.mxu0  ;;  %6625 = vmatprep.mubr.msk.bf16.mxu1 %vm7013_vm0, %v8563_v63  ;;  %v2860_v44 = vld [vmem:[#allocation2 + $0xe4] sm:$0xff] }
 0x244   : > { %v6431_v41 = vpop.f32.mrf.mxu1  ;;  %v2892_v24 = vpack.c.bf16 %v2861_v52, %v2860_v44 }
 0x245   : > { %v2592_v43 = vpop.f32.mrf.mxu0 }
 0x246   : > { %v2103_v62 = vpop.f32.mrf.mxu1  ;;  %v7987_v8 = vadd.f32 %v2592_v43, %v2266_v54 }
 0x247   : > { %v2268_v5 = vadd.f32 %v2103_v62, %v7706_v28  ;;  %v6522_v14 = vpop.f32.mrf.mxu0 }
 0x248   : > { %v6432_v37 = vpop.f32.mrf.mxu1 }
 0x249   : > { %v2597_v55 = vpop.f32.mrf.mxu0  ;;  %6716 = vmatmul.mubr.msk.bf16.gmra.mxu0 %vm379_vm1, %v2891_v4  ;;  %v2863_v37 = vld [vmem:[#allocation2 + $0xfc] sm:$0xff] }
 0x24a   : > { %v2108_v56 = vpop.f32.mrf.mxu1  ;;  %v7991_v19 = vadd.f32 %v2597_v55, %v2267_v53  ;;  %6626 = vmatmul.mubr.msk.bf16.gmra.mxu1 %vm379_vm1, %v2891_v4  ;;  %6719 = vmatprep.mubr.msk.bf16.mxu0 %vm7013_vm0, %v8563_v63 }
 0x24b   : > { %v2269_v54 = vadd.f32 %v2108_v56, %v7710_v47  ;;  %v6525_v35 = vpop.f32.mrf.mxu0  ;;  %6629 = vmatprep.mubr.msk.bf16.mxu1 %vm7013_vm0, %v8563_v63  ;;  %v2862_v47 = vld [vmem:[#allocation2 + $0xf4] sm:$0xff] }
 0x24c   : > { %v6435_v28 = vpop.f32.mrf.mxu1  ;;  %v2893_v44 = vpack.c.bf16 %v2863_v37, %v2862_v47 }
 0x24d   : > { %v2600_v23 = vpop.f32.mrf.mxu0 }
 0x24e   : > { %v2111_v34 = vpop.f32.mrf.mxu1  ;;  %v7999_v12 = vadd.f32 %v2600_v23, %v2268_v5 }
 0x24f   : > { %v2270_v53 = vadd.f32 %v2111_v34, %v7719_v26  ;;  %v6526_v41 = vpop.f32.mrf.mxu0 }
 0x250   : > { %v6436_v43 = vpop.f32.mrf.mxu1 }
 0x251   : > { %v2605_v4 = vpop.f32.mrf.mxu0  ;;  %6720 = vmatmul.mubr.msk.bf16.gmra.mxu0 %vm379_vm1, %v2892_v24  ;;  %v2865_v43 = vld [vmem:[#allocation2 + $0x10c] sm:$0xff] }
 0x252   : > { %v2116_v62 = vpop.f32.mrf.mxu1  ;;  %v8003_v14 = vadd.f32 %v2605_v4, %v2269_v54  ;;  %6630 = vmatmul.mubr.msk.bf16.gmra.mxu1 %vm379_vm1, %v2892_v24  ;;  %6723 = vmatprep.mubr.msk.bf16.mxu0 %vm7013_vm0, %v8563_v63 }
 0x253   : > { %v2271_v5 = vadd.f32 %v2116_v62, %v7723_v30  ;;  %v6529_v55 = vpop.f32.mrf.mxu0  ;;  %6633 = vmatprep.mubr.msk.bf16.mxu1 %vm7013_vm0, %v8563_v63  ;;  %v2864_v30 = vld [vmem:[#allocation2 + $0x104] sm:$0xff] }
 0x254   : > { %v6439_v26 = vpop.f32.mrf.mxu1  ;;  %v2894_v47 = vpack.c.bf16 %v2865_v43, %v2864_v30 }
 0x255   : > { %v2608_v56 = vpop.f32.mrf.mxu0 }
 0x256   : > { %v2119_v52 = vpop.f32.mrf.mxu1  ;;  %v8011_v35 = vadd.f32 %v2608_v56, %v2270_v53 }
 0x257   : > { %v2272_v54 = vadd.f32 %v2119_v52, %v7732_v25  ;;  %v6530_v28 = vpop.f32.mrf.mxu0 }
 0x258   : > { %v6440_v23 = vpop.f32.mrf.mxu1 }
 0x259   : > { %v2613_v24 = vpop.f32.mrf.mxu0  ;;  %6724 = vmatmul.mubr.msk.bf16.gmra.mxu0 %vm379_vm1, %v2893_v44  ;;  %v2867_v23 = vld [vmem:[#allocation2 + $0x11c] sm:$0xff] }
 0x25a   : > { %v2124_v34 = vpop.f32.mrf.mxu1  ;;  %v8015_v41 = vadd.f32 %v2613_v24, %v2271_v5  ;;  %6634 = vmatmul.mubr.msk.bf16.gmra.mxu1 %vm379_vm1, %v2893_v44  ;;  %6727 = vmatprep.mubr.msk.bf16.mxu0 %vm7013_vm0, %v8563_v63 }
 0x25b   : > { %v2273_v53 = vadd.f32 %v2124_v34, %v7736_v17  ;;  %v6533_v4 = vpop.f32.mrf.mxu0  ;;  %6637 = vmatprep.mubr.msk.bf16.mxu1 %vm7013_vm0, %v8563_v63  ;;  %v2866_v17 = vld [vmem:[#allocation2 + $0x114] sm:$0xff] }
 0x25c   : > { %v6443_v25 = vpop.f32.mrf.mxu1  ;;  %v2895_v30 = vpack.c.bf16 %v2867_v23, %v2866_v17 }
 0x25d   : > { %v2616_v62 = vpop.f32.mrf.mxu0 }
 0x25e   : > { %v2127_v37 = vpop.f32.mrf.mxu1  ;;  %v8023_v55 = vadd.f32 %v2616_v62, %v2272_v54 }
 0x25f   : > { %v2274_v5 = vadd.f32 %v2127_v37, %v7745_v31  ;;  %v6534_v26 = vpop.f32.mrf.mxu0 }
 0x260   : > { %v6444_v56 = vpop.f32.mrf.mxu1 }
 0x261   : > { %v2621_v44 = vpop.f32.mrf.mxu0  ;;  %6728 = vmatmul.mubr.msk.bf16.gmra.mxu0 %vm379_vm1, %v2894_v47  ;;  %v2869_v56 = vld [vmem:[#allocation2 + $0x12c] sm:$0xff] }
 0x262   : > { %v2132_v52 = vpop.f32.mrf.mxu1  ;;  %v8027_v28 = vadd.f32 %v2621_v44, %v2273_v53  ;;  %6638 = vmatmul.mubr.msk.bf16.gmra.mxu1 %vm379_vm1, %v2894_v47  ;;  %6731 = vmatprep.mubr.msk.bf16.mxu0 %vm7013_vm0, %v8563_v63 }
 0x263   : > { %v2275_v54 = vadd.f32 %v2132_v52, %v7749_v59  ;;  %v6537_v24 = vpop.f32.mrf.mxu0  ;;  %6641 = vmatprep.mubr.msk.bf16.mxu1 %vm7013_vm0, %v8563_v63  ;;  %v2868_v59 = vld [vmem:[#allocation2 + $0x124] sm:$0xff] }
 0x264   : > { %v6447_v31 = vpop.f32.mrf.mxu1  ;;  %v2896_v17 = vpack.c.bf16 %v2869_v56, %v2868_v59 }
 0x265   : > { %v2624_v34 = vpop.f32.mrf.mxu0 }
 0x266   : > { %v2135_v43 = vpop.f32.mrf.mxu1  ;;  %v8035_v4 = vadd.f32 %v2624_v34, %v2274_v5 }
 0x267   : > { %v2276_v53 = vadd.f32 %v2135_v43, %v7758_v9  ;;  %v6538_v25 = vpop.f32.mrf.mxu0 }
 0x268   : > { %v6448_v62 = vpop.f32.mrf.mxu1 }
 0x269   : > { %v2629_v47 = vpop.f32.mrf.mxu0  ;;  %6732 = vmatmul.mubr.msk.bf16.gmra.mxu0 %vm379_vm1, %v2895_v30  ;;  %v2871_v62 = vld [vmem:[#allocation2 + $0x13c] sm:$0xff] }
 0x26a   : > { %v2140_v37 = vpop.f32.mrf.mxu1  ;;  %v8039_v26 = vadd.f32 %v2629_v47, %v2275_v54  ;;  %6642 = vmatmul.mubr.msk.bf16.gmra.mxu1 %vm379_vm1, %v2895_v30  ;;  %6735 = vmatprep.mubr.msk.bf16.mxu0 %vm7013_vm0, %v8563_v63 }
 0x26b   : > { %v2277_v5 = vadd.f32 %v2140_v37, %v7762_v50  ;;  %v6541_v44 = vpop.f32.mrf.mxu0  ;;  %6645 = vmatprep.mubr.msk.bf16.mxu1 %vm7013_vm0, %v8563_v63  ;;  %v2870_v50 = vld [vmem:[#allocation2 + $0x134] sm:$0xff] }
 0x26c   : > { %v6451_v9 = vpop.f32.mrf.mxu1  ;;  %v2897_v59 = vpack.c.bf16 %v2871_v62, %v2870_v50 }
 0x26d   : > { %v2632_v52 = vpop.f32.mrf.mxu0 }
 0x26e   : > { %v2143_v23 = vpop.f32.mrf.mxu1  ;;  %v8047_v24 = vadd.f32 %v2632_v52, %v2276_v53 }
 0x26f   : > { %v2278_v54 = vadd.f32 %v2143_v23, %v7771_v13  ;;  %v6542_v31 = vpop.f32.mrf.mxu0 }
 0x270   : > { %v6452_v34 = vpop.f32.mrf.mxu1 }
 0x271   : > { %v2637_v30 = vpop.f32.mrf.mxu0  ;;  %6736 = vmatmul.mubr.msk.bf16.gmra.mxu0 %vm379_vm1, %v2896_v17  ;;  %v2873_v34 = vld [vmem:[#allocation2 + $0x14c] sm:$0xff] }
 0x272   : > { %v2148_v43 = vpop.f32.mrf.mxu1  ;;  %v8051_v25 = vadd.f32 %v2637_v30, %v2277_v5  ;;  %6646 = vmatmul.mubr.msk.bf16.gmra.mxu1 %vm379_vm1, %v2896_v17  ;;  %6739 = vmatprep.mubr.msk.bf16.mxu0 %vm7013_vm0, %v8563_v63 }
 0x273   : > { %v2279_v53 = vadd.f32 %v2148_v43, %v7775_v36  ;;  %v6545_v47 = vpop.f32.mrf.mxu0  ;;  %6649 = vmatprep.mubr.msk.bf16.mxu1 %vm7013_vm0, %v8563_v63  ;;  %v2872_v36 = vld [vmem:[#allocation2 + $0x144] sm:$0xff] }
 0x274   : > { %v6455_v13 = vpop.f32.mrf.mxu1  ;;  %v2898_v50 = vpack.c.bf16 %v2873_v34, %v2872_v36 }
 0x275   : > { %v2640_v37 = vpop.f32.mrf.mxu0 }
 0x276   : > { %v2151_v56 = vpop.f32.mrf.mxu1  ;;  %v8059_v44 = vadd.f32 %v2640_v37, %v2278_v54 }
 0x277   : > { %v2280_v5 = vadd.f32 %v2151_v56, %v7784_v18  ;;  %v6546_v9 = vpop.f32.mrf.mxu0 }
 0x278   : > { %v6456_v52 = vpop.f32.mrf.mxu1 }
 0x279   : > { %v2645_v17 = vpop.f32.mrf.mxu0  ;;  %6740 = vmatmul.mubr.msk.bf16.gmra.mxu0 %vm379_vm1, %v2897_v59  ;;  %v2875_v52 = vld [vmem:[#allocation2 + $0x15c] sm:$0xff] }
 0x27a   : > { %v2156_v23 = vpop.f32.mrf.mxu1  ;;  %v8063_v31 = vadd.f32 %v2645_v17, %v2279_v53  ;;  %6650 = vmatmul.mubr.msk.bf16.gmra.mxu1 %vm379_vm1, %v2897_v59  ;;  %6743 = vmatprep.mubr.msk.bf16.mxu0 %vm7013_vm0, %v8563_v63 }
 0x27b   : > { %v2281_v54 = vadd.f32 %v2156_v23, %v7788_v38  ;;  %v6549_v30 = vpop.f32.mrf.mxu0  ;;  %6653 = vmatprep.mubr.msk.bf16.mxu1 %vm7013_vm0, %v8563_v63  ;;  %v2874_v38 = vld [vmem:[#allocation2 + $0x154] sm:$0xff] }
 0x27c   : > { %v6459_v18 = vpop.f32.mrf.mxu1  ;;  %v2899_v36 = vpack.c.bf16 %v2875_v52, %v2874_v38 }
 0x27d   : > { %v2648_v43 = vpop.f32.mrf.mxu0 }
 0x27e   : > { %v2159_v62 = vpop.f32.mrf.mxu1  ;;  %v8071_v47 = vadd.f32 %v2648_v43, %v2280_v5 }
 0x27f   : > { %v2282_v53 = vadd.f32 %v2159_v62, %v7797_v22  ;;  %v6550_v13 = vpop.f32.mrf.mxu0 }
 0x280   : > { %v6460_v37 = vpop.f32.mrf.mxu1 }
 0x281   : > { %v2653_v59 = vpop.f32.mrf.mxu0  ;;  %6744 = vmatmul.mubr.msk.bf16.gmra.mxu0 %vm379_vm1, %v2898_v50  ;;  %v2877_v37 = vld [vmem:[#allocation2 + $0x16c] sm:$0xff] }
 0x282   : > { %v2164_v56 = vpop.f32.mrf.mxu1  ;;  %v8075_v9 = vadd.f32 %v2653_v59, %v2281_v54  ;;  %6654 = vmatmul.mubr.msk.bf16.gmra.mxu1 %vm379_vm1, %v2898_v50  ;;  %6747 = vmatprep.mubr.msk.bf16.mxu0 %vm7013_vm0, %v8563_v63 }
 0x283   : > { %v2283_v5 = vadd.f32 %v2164_v56, %v7801_v33  ;;  %v6553_v17 = vpop.f32.mrf.mxu0  ;;  %6657 = vmatprep.mubr.msk.bf16.mxu1 %vm7013_vm0, %v8563_v63  ;;  %v2876_v33 = vld [vmem:[#allocation2 + $0x164] sm:$0xff] }
 0x284   : > { %v6463_v22 = vpop.f32.mrf.mxu1  ;;  %v2900_v38 = vpack.c.bf16 %v2877_v37, %v2876_v33 }
 0x285   : > { %v2656_v23 = vpop.f32.mrf.mxu0 }
 0x286   : > { %v2167_v34 = vpop.f32.mrf.mxu1  ;;  %v8083_v30 = vadd.f32 %v2656_v23, %v2282_v53 }
 0x287   : > { %v2284_v54 = vadd.f32 %v2167_v34, %v7810_v27  ;;  %v6554_v18 = vpop.f32.mrf.mxu0 }
 0x288   : > { %v6464_v43 = vpop.f32.mrf.mxu1 }
 0x289   : > { %v2661_v50 = vpop.f32.mrf.mxu0  ;;  %6748 = vmatmul.mubr.msk.bf16.gmra.mxu0 %vm379_vm1, %v2899_v36  ;;  %v3374_v43 = vld [vmem:[#allocation2 + $0x17c] sm:$0xff] }
 0x28a   : > { %v2172_v62 = vpop.f32.mrf.mxu1  ;;  %v8087_v13 = vadd.f32 %v2661_v50, %v2283_v5  ;;  %6658 = vmatmul.mubr.msk.bf16.gmra.mxu1 %vm379_vm1, %v2899_v36  ;;  %6751 = vmatprep.mubr.msk.bf16.mxu0 %vm7013_vm0, %v8563_v63 }
 0x28b   : > { %v2285_v53 = vadd.f32 %v2172_v62, %v7815_v3  ;;  %v6557_v59 = vpop.f32.mrf.mxu0  ;;  %6661 = vmatprep.mubr.msk.bf16.mxu1 %vm7013_vm0, %v8563_v63  ;;  %v2878_v3 = vld [vmem:[#allocation2 + $0x174] sm:$0xff] }
 0x28c   : > { %v6467_v27 = vpop.f32.mrf.mxu1  ;;  %v3397_v33 = vpack.c.bf16 %v3374_v43, %v2878_v3 }
 0x28d   : > { %v2664_v56 = vpop.f32.mrf.mxu0 }
 0x28e   : > { %v2175_v52 = vpop.f32.mrf.mxu1  ;;  %v8095_v17 = vadd.f32 %v2664_v56, %v2284_v54 }
 0x28f   : > { %v2286_v5 = vadd.f32 %v2175_v52, %v7823_v6  ;;  %v6558_v22 = vpop.f32.mrf.mxu0 }
 0x290   : > { %v6468_v23 = vpop.f32.mrf.mxu1 }
 0x291   : > { %v2669_v36 = vpop.f32.mrf.mxu0  ;;  %6752 = vmatmul.mubr.msk.bf16.gmra.mxu0 %vm379_vm1, %v2900_v38  ;;  %v3375_v23 = vld [vmem:[#allocation2 + $0x184] sm:$0xff] }
 0x292   : > { %v2180_v34 = vpop.f32.mrf.mxu1  ;;  %v8099_v18 = vadd.f32 %v2669_v36, %v2285_v53  ;;  %6662 = vmatmul.mubr.msk.bf16.gmra.mxu1 %vm379_vm1, %v2900_v38  ;;  %6755 = vmatprep.mubr.msk.bf16.mxu0 %vm7013_vm0, %v8563_v63  ;;  %v2901_v53 = vpack.c.bf16 %v2878_v3, %v2878_v3 }
 0x293   : > { %v2287_v54 = vadd.f32 %v2180_v34, %v7827_v57  ;;  %v6561_v50 = vpop.f32.mrf.mxu0  ;;  %6665 = vmatprep.mubr.msk.bf16.mxu1 %vm7013_vm0, %v8563_v63  ;;  %v3829_v34 = vld [vmem:[#allocation2 + $0x2d] sm:$0xff] }
 0x294   : > { %v6471_v6 = vpop.f32.mrf.mxu1  ;;  %v3398_v50 = vpack.c.bf16 %v3375_v23, %v3375_v23 }
 0x295   : > { %v2672_v62 = vpop.f32.mrf.mxu0 }
 0x296   : > { %v2183_v37 = vpop.f32.mrf.mxu1  ;;  %v8107_v59 = vadd.f32 %v2672_v62, %v2286_v5 }
 0x297   : > { %v2288_v27 = vadd.f32 %v2183_v37, %v7835_v11  ;;  %v6562_v56 = vpop.f32.mrf.mxu0  ;;  %v3828_v11 = vld [vmem:[#allocation2 + $0x25] sm:$0xff] }
 0x298   : > { %v6472_v38 = vpop.f32.mrf.mxu1  ;;  %v3873_v62 = vpack.c.bf16 %v3829_v34, %v3828_v11 }
 0x299   : > { %v2677_v52 = vpop.f32.mrf.mxu0  ;;  %6756 = vmatmul.mubr.msk.bf16.gmra.mxu0 %vm379_vm1, %v3397_v33 }
 0x29a   : > { %v2188_v22 = vpop.f32.mrf.mxu1  ;;  %v8111_v57 = vadd.f32 %v2677_v52, %v2287_v54  ;;  %6666 = vmatmul.mubr.msk.bf16.gmra.mxu1 %vm379_vm1, %v2901_v53  ;;  %6759 = vmatprep.mubr.msk.bf16.mxu0 %vm7013_vm0, %v8563_v63  ;;  %v4325_v52 = vld [vmem:[#allocation2 + $0x26] sm:$0xff] }
 0x29b   : > { %v2289_v5 = vadd.f32 %v2188_v22, %v7842_v16  ;;  %v6565_v36 = vpop.f32.mrf.mxu0  ;;  %6765 = vmatprep.mubr.msk.bf16.mxu1 %vm7013_vm0, %v8563_v63  ;;  %v4326_v22 = vld [vmem:[#allocation2 + $0x2e] sm:$0xff] }
 0x29c   : > { %v6475_v3 = vpop.f32.mrf.mxu1  ;;  %v3831_v36 = vld [vmem:[#allocation2 + $0x3d] sm:$0xff] }
 0x29d   : > { %v2680_v43 = vpop.f32.mrf.mxu0  ;;  %v4370_v3 = vpack.c.bf16 %v4326_v22, %v4325_v52  ;;  %v3832_v22 = vld [vmem:[#allocation2 + $0x45] sm:$0xff] }
 0x29e   : > { %v2191_v6 = vpop.f32.mrf.mxu1  ;;  %v8119_v54 = vadd.f32 %v2680_v43, %v2288_v27 }
 0x29f   : > { %v2290_v33 = vadd.f32 %v2191_v6, %v7850_v45  ;;  %v6566_v37 = vpop.f32.mrf.mxu0  ;;  %v3830_v45 = vld [vmem:[#allocation2 + $0x35] sm:$0xff] }
 0x2a0   : > { %v6476_v53 = vpop.f32.mrf.mxu1 }
 0x2a1   : > { %v2685_v56 = vpop.f32.mrf.mxu0  ;;  %6760 = vmatmul.mubr.msk.bf16.gmra.mxu0 %vm379_vm1, %v3398_v50  ;;  %v3874_v50 = vpack.c.bf16 %v3831_v36, %v3830_v45 }
 0x2a2   : > { %v2196_v16 = vpop.f32.mrf.mxu1  ;;  %v8123_v38 = vadd.f32 %v2685_v56, %v2289_v5  ;;  %6766 = vmatmul.mubr.msk.bf16.vlgmr.msra.gmra.mxu1 %vm379_vm1, %v3873_v62  ;;  %6859 = vmatprep.mubr.msk.bf16.mxu0 %vm7013_vm0, %v8563_v63  ;;  %v4327_v56 = vld [vmem:[#allocation2 + $0x36] sm:$0xff] }
 0x2a3   : > { %v2291_v27 = vadd.f32 %v2196_v16, %v7857_v20  ;;  %v6569_v23 = vpop.f32.mrf.mxu0  ;;  %6769 = vmatprep.mubr.msk.bf16.mxu1 %vm7013_vm0, %v8563_v63  ;;  %v4328_v16 = vld [vmem:[#allocation2 + $0x3e] sm:$0xff] }
 0x2a4   : > { %v6479_v11 = vpop.f32.mrf.mxu1  ;;  %v3833_v23 = vld [vmem:[#allocation2 + $0x4d] sm:$0xff] }
 0x2a5   : > { %v2688_v34 = vpop.f32.mrf.mxu0 }
 0x2a6   : > { %v2199_v5 = vpop.f32.mrf.mxu1  ;;  %v8131_v43 = vadd.f32 %v2688_v34, %v2290_v33  ;;  %v3875_v34 = vpack.c.bf16 %v3833_v23, %v3832_v22 }
 0x2a7   : > { %v6570_v6 = vpop.f32.mrf.mxu0 }
 0x2a8   : > { %v6480_v62 = vpop.f32.mrf.mxu1 }
 0x2a9   : > { %v2693_v37 = vpop.f32.mrf.mxu0  ;;  %6860 = vmatmul.mubr.msk.bf16.vlgmr.msra.gmra.mxu0 %vm379_vm1, %v4370_v3 }
 0x2aa   : > { %v8134_v53 = vadd.f32 %v2693_v37, %v2291_v27  ;;  %v3014_v20 = vpop.f32.mrf.mxu1  ;;  %6770 = vmatmul.mubr.msk.bf16.gmra.mxu1 %vm379_vm1, %v3874_v50  ;;  %6863 = vmatprep.mubr.msk.bf16.mxu0 %vm7013_vm0, %v8563_v63  ;;  %v4371_v27 = vpack.c.bf16 %v4328_v16, %v4327_v56  ;;  %v4329_v37 = vld [vmem:[#allocation2 + $0x46] sm:$0xff] }
 0x2ab   : > { %v3241_v52 = vadd.f32 %v3014_v20, %v7867_v61  ;;  %v6573_v33 = vpop.f32.mrf.mxu0  ;;  %6773 = vmatprep.mubr.msk.bf16.mxu1 %vm7013_vm0, %v8563_v63  ;;  %v4330_v20 = vld [vmem:[#allocation2 + $0x4e] sm:$0xff] }
 0x2ac   : > { %v6579_v45 = vpop.f32.mrf.mxu1  ;;  %v3835_v33 = vld [vmem:[#allocation2 + $0x5d] sm:$0xff] }
 0x2ad   : > { %v2696_v36 = vpop.f32.mrf.mxu0  ;;  %v4372_v45 = vpack.c.bf16 %v4330_v20, %v4329_v37  ;;  %v4332_v37 = vld [vmem:[#allocation2 + $0x5e] sm:$0xff] }
 0x2ae   : > { %v3017_v11 = vpop.f32.mrf.mxu1 }
 0x2af   : > { %v3242_v3 = vadd.f32 %v3017_v11, %v7875_v51  ;;  %v6574_v5 = vpop.f32.mrf.mxu0  ;;  %v3834_v51 = vld [vmem:[#allocation2 + $0x55] sm:$0xff] }
 0x2b0   : > { %v6580_v50 = vpop.f32.mrf.mxu1 }
 0x2b1   : > { %v3511_v6 = vpop.f32.mrf.mxu0  ;;  %6864 = vmatmul.mubr.msk.bf16.gmra.mxu0 %vm379_vm1, %v4371_v27  ;;  %v3876_v27 = vpack.c.bf16 %v3835_v33, %v3834_v51 }
 0x2b2   : > { %v3022_v62 = vpop.f32.mrf.mxu1  ;;  %v8144_v61 = vadd.f32 %v3511_v6, %v3241_v52  ;;  %6774 = vmatmul.mubr.msk.bf16.gmra.mxu1 %vm379_vm1, %v3875_v34  ;;  %6867 = vmatprep.mubr.msk.bf16.mxu0 %vm7013_vm0, %v8563_v63 }
 0x2b3   : > { %v3243_v56 = vadd.f32 %v3022_v62, %v7879_v58  ;;  %v6673_v16 = vpop.f32.mrf.mxu0  ;;  %6777 = vmatprep.mubr.msk.bf16.mxu1 %vm7013_vm0, %v8563_v63  ;;  %v4331_v62 = vld [vmem:[#allocation2 + $0x56] sm:$0xff] }
 0x2b4   : > { %v6583_v22 = vpop.f32.mrf.mxu1  ;;  %v3837_v16 = vld [vmem:[#allocation2 + $0x6d] sm:$0xff] }
 0x2b5   : > { %v3514_v23 = vpop.f32.mrf.mxu0  ;;  %v4373_v22 = vpack.c.bf16 %v4332_v37, %v4331_v62  ;;  %v4334_v62 = vld [vmem:[#allocation2 + $0x6e] sm:$0xff] }
 0x2b6   : > { %v3025_v52 = vpop.f32.mrf.mxu1  ;;  %v8152_v36 = vadd.f32 %v3514_v23, %v3242_v3 }
 0x2b7   : > { %v3244_v11 = vadd.f32 %v3025_v52, %v7887_v15  ;;  %v6674_v34 = vpop.f32.mrf.mxu0  ;;  %v3836_v15 = vld [vmem:[#allocation2 + $0x65] sm:$0xff] }
 0x2b8   : > { %v6584_v5 = vpop.f32.mrf.mxu1 }
 0x2b9   : > { %v3519_v50 = vpop.f32.mrf.mxu0  ;;  %6868 = vmatmul.mubr.msk.bf16.gmra.mxu0 %vm379_vm1, %v4372_v45  ;;  %v3877_v45 = vpack.c.bf16 %v3837_v16, %v3836_v15 }
 0x2ba   : > { %v3030_v58 = vpop.f32.mrf.mxu1  ;;  %v8156_v6 = vadd.f32 %v3519_v50, %v3243_v56  ;;  %6778 = vmatmul.mubr.msk.bf16.gmra.mxu1 %vm379_vm1, %v3876_v27  ;;  %6871 = vmatprep.mubr.msk.bf16.mxu0 %vm7013_vm0, %v8563_v63 }
 0x2bb   : > { %v3245_v3 = vadd.f32 %v3030_v58, %v7891_v32  ;;  %v6677_v20 = vpop.f32.mrf.mxu0  ;;  %6781 = vmatprep.mubr.msk.bf16.mxu1 %vm7013_vm0, %v8563_v63  ;;  %v4333_v58 = vld [vmem:[#allocation2 + $0x66] sm:$0xff] }
 0x2bc   : > { %v6587_v51 = vpop.f32.mrf.mxu1  ;;  %v3839_v20 = vld [vmem:[#allocation2 + $0x7d] sm:$0xff] }
 0x2bd   : > { %v3522_v33 = vpop.f32.mrf.mxu0  ;;  %v4374_v51 = vpack.c.bf16 %v4334_v62, %v4333_v58  ;;  %v4336_v58 = vld [vmem:[#allocation2 + $0x7e] sm:$0xff] }
 0x2be   : > { %v3033_v56 = vpop.f32.mrf.mxu1  ;;  %v8164_v23 = vadd.f32 %v3522_v33, %v3244_v11 }
 0x2bf   : > { %v3246_v52 = vadd.f32 %v3033_v56, %v7899_v7  ;;  %v6678_v27 = vpop.f32.mrf.mxu0  ;;  %v3838_v7 = vld [vmem:[#allocation2 + $0x75] sm:$0xff] }
 0x2c0   : > { %v6588_v34 = vpop.f32.mrf.mxu1 }
 0x2c1   : > { %v3527_v5 = vpop.f32.mrf.mxu0  ;;  %6872 = vmatmul.mubr.msk.bf16.gmra.mxu0 %vm379_vm1, %v4373_v22  ;;  %v3878_v22 = vpack.c.bf16 %v3839_v20, %v3838_v7 }
 0x2c2   : > { %v3038_v32 = vpop.f32.mrf.mxu1  ;;  %v8168_v50 = vadd.f32 %v3527_v5, %v3245_v3  ;;  %6782 = vmatmul.mubr.msk.bf16.gmra.mxu1 %vm379_vm1, %v3877_v45  ;;  %6875 = vmatprep.mubr.msk.bf16.mxu0 %vm7013_vm0, %v8563_v63 }
 0x2c3   : > { %v3247_v11 = vadd.f32 %v3038_v32, %v7905_v40  ;;  %v6681_v37 = vpop.f32.mrf.mxu0  ;;  %6785 = vmatprep.mubr.msk.bf16.mxu1 %vm7013_vm0, %v8563_v63  ;;  %v4335_v32 = vld [vmem:[#allocation2 + $0x76] sm:$0xff] }
 0x2c4   : > { %v6591_v15 = vpop.f32.mrf.mxu1  ;;  %v3841_v37 = vld [vmem:[#allocation2 + $0x8d] sm:$0xff] }
 0x2c5   : > { %v3530_v16 = vpop.f32.mrf.mxu0  ;;  %v4375_v15 = vpack.c.bf16 %v4336_v58, %v4335_v32  ;;  %v4338_v32 = vld [vmem:[#allocation2 + $0x8e] sm:$0xff] }
 0x2c6   : > { %v3041_v3 = vpop.f32.mrf.mxu1  ;;  %v8176_v33 = vadd.f32 %v3530_v16, %v3246_v52 }
 0x2c7   : > { %v3248_v56 = vadd.f32 %v3041_v3, %v7914_v60  ;;  %v6682_v45 = vpop.f32.mrf.mxu0  ;;  %v3840_v60 = vld [vmem:[#allocation2 + $0x85] sm:$0xff] }
 0x2c8   : > { %v6592_v27 = vpop.f32.mrf.mxu1 }
 0x2c9   : > { %v3535_v34 = vpop.f32.mrf.mxu0  ;;  %6876 = vmatmul.mubr.msk.bf16.gmra.mxu0 %vm379_vm1, %v4374_v51  ;;  %v3879_v51 = vpack.c.bf16 %v3841_v37, %v3840_v60 }
 0x2ca   : > { %v3046_v40 = vpop.f32.mrf.mxu1  ;;  %v8180_v5 = vadd.f32 %v3535_v34, %v3247_v11  ;;  %6786 = vmatmul.mubr.msk.bf16.gmra.mxu1 %vm379_vm1, %v3878_v22  ;;  %6879 = vmatprep.mubr.msk.bf16.mxu0 %vm7013_vm0, %v8563_v63 }
 0x2cb   : > { %v3249_v52 = vadd.f32 %v3046_v40, %v7919_v21  ;;  %v6685_v62 = vpop.f32.mrf.mxu0  ;;  %6789 = vmatprep.mubr.msk.bf16.mxu1 %vm7013_vm0, %v8563_v63  ;;  %v4337_v40 = vld [vmem:[#allocation2 + $0x86] sm:$0xff] }
 0x2cc   : > { %v6595_v7 = vpop.f32.mrf.mxu1  ;;  %v3843_v62 = vld [vmem:[#allocation2 + $0x9d] sm:$0xff] }
 0x2cd   : > { %v3538_v20 = vpop.f32.mrf.mxu0  ;;  %v4376_v7 = vpack.c.bf16 %v4338_v32, %v4337_v40  ;;  %v4340_v40 = vld [vmem:[#allocation2 + $0x9e] sm:$0xff] }
 0x2ce   : > { %v3049_v11 = vpop.f32.mrf.mxu1  ;;  %v8188_v16 = vadd.f32 %v3538_v20, %v3248_v56 }
 0x2cf   : > { %v3250_v3 = vadd.f32 %v3049_v11, %v7927_v2  ;;  %v6686_v22 = vpop.f32.mrf.mxu0  ;;  %v3842_v2 = vld [vmem:[#allocation2 + $0x95] sm:$0xff] }
 0x2d0   : > { %v6596_v45 = vpop.f32.mrf.mxu1 }
 0x2d1   : > { %v3543_v27 = vpop.f32.mrf.mxu0  ;;  %6880 = vmatmul.mubr.msk.bf16.gmra.mxu0 %vm379_vm1, %v4375_v15  ;;  %v3880_v15 = vpack.c.bf16 %v3843_v62, %v3842_v2 }
 0x2d2   : > { %v3054_v21 = vpop.f32.mrf.mxu1  ;;  %v8192_v34 = vadd.f32 %v3543_v27, %v3249_v52  ;;  %6790 = vmatmul.mubr.msk.bf16.gmra.mxu1 %vm379_vm1, %v3879_v51  ;;  %6883 = vmatprep.mubr.msk.bf16.mxu0 %vm7013_vm0, %v8563_v63 }
 0x2d3   : > { %v3251_v56 = vadd.f32 %v3054_v21, %v7931_v49  ;;  %v6689_v58 = vpop.f32.mrf.mxu0  ;;  %6793 = vmatprep.mubr.msk.bf16.mxu1 %vm7013_vm0, %v8563_v63  ;;  %v4339_v21 = vld [vmem:[#allocation2 + $0x96] sm:$0xff] }
 0x2d4   : > { %v6599_v60 = vpop.f32.mrf.mxu1  ;;  %v3845_v58 = vld [vmem:[#allocation2 + $0xad] sm:$0xff] }
 0x2d5   : > { %v3546_v37 = vpop.f32.mrf.mxu0  ;;  %v4377_v60 = vpack.c.bf16 %v4340_v40, %v4339_v21  ;;  %v4342_v21 = vld [vmem:[#allocation2 + $0xae] sm:$0xff] }
 0x2d6   : > { %v3057_v52 = vpop.f32.mrf.mxu1  ;;  %v8200_v20 = vadd.f32 %v3546_v37, %v3250_v3 }
 0x2d7   : > { %v3252_v11 = vadd.f32 %v3057_v52, %v7939_v48  ;;  %v6690_v51 = vpop.f32.mrf.mxu0  ;;  %v3844_v48 = vld [vmem:[#allocation2 + $0xa5] sm:$0xff] }
 0x2d8   : > { %v6600_v22 = vpop.f32.mrf.mxu1 }
 0x2d9   : > { %v3551_v45 = vpop.f32.mrf.mxu0  ;;  %6884 = vmatmul.mubr.msk.bf16.gmra.mxu0 %vm379_vm1, %v4376_v7  ;;  %v3881_v7 = vpack.c.bf16 %v3845_v58, %v3844_v48 }
 0x2da   : > { %v3062_v49 = vpop.f32.mrf.mxu1  ;;  %v8204_v27 = vadd.f32 %v3551_v45, %v3251_v56  ;;  %6794 = vmatmul.mubr.msk.bf16.gmra.mxu1 %vm379_vm1, %v3880_v15  ;;  %6887 = vmatprep.mubr.msk.bf16.mxu0 %vm7013_vm0, %v8563_v63 }
 0x2db   : > { %v3253_v3 = vadd.f32 %v3062_v49, %v7943_v42  ;;  %v6693_v32 = vpop.f32.mrf.mxu0  ;;  %6797 = vmatprep.mubr.msk.bf16.mxu1 %vm7013_vm0, %v8563_v63  ;;  %v4341_v49 = vld [vmem:[#allocation2 + $0xa6] sm:$0xff] }
 0x2dc   : > { %v6603_v2 = vpop.f32.mrf.mxu1  ;;  %v3847_v32 = vld [vmem:[#allocation2 + $0xbd] sm:$0xff] }
 0x2dd   : > { %v3554_v62 = vpop.f32.mrf.mxu0  ;;  %v4378_v2 = vpack.c.bf16 %v4342_v21, %v4341_v49  ;;  %v4344_v49 = vld [vmem:[#allocation2 + $0xbe] sm:$0xff] }
 0x2de   : > { %v3065_v56 = vpop.f32.mrf.mxu1  ;;  %v8212_v37 = vadd.f32 %v3554_v62, %v3252_v11 }
 0x2df   : > { %v3254_v52 = vadd.f32 %v3065_v56, %v7951_v39  ;;  %v6694_v15 = vpop.f32.mrf.mxu0  ;;  %v3846_v39 = vld [vmem:[#allocation2 + $0xb5] sm:$0xff] }
 0x2e0   : > { %v6604_v51 = vpop.f32.mrf.mxu1 }
 0x2e1   : > { %v3559_v22 = vpop.f32.mrf.mxu0  ;;  %6888 = vmatmul.mubr.msk.bf16.gmra.mxu0 %vm379_vm1, %v4377_v60  ;;  %v3882_v60 = vpack.c.bf16 %v3847_v32, %v3846_v39 }
 0x2e2   : > { %v3070_v42 = vpop.f32.mrf.mxu1  ;;  %v8216_v45 = vadd.f32 %v3559_v22, %v3253_v3  ;;  %6798 = vmatmul.mubr.msk.bf16.gmra.mxu1 %vm379_vm1, %v3881_v7  ;;  %6891 = vmatprep.mubr.msk.bf16.mxu0 %vm7013_vm0, %v8563_v63 }
 0x2e3   : > { %v3255_v11 = vadd.f32 %v3070_v42, %v7955_v29  ;;  %v6697_v40 = vpop.f32.mrf.mxu0  ;;  %6801 = vmatprep.mubr.msk.bf16.mxu1 %vm7013_vm0, %v8563_v63  ;;  %v4343_v42 = vld [vmem:[#allocation2 + $0xb6] sm:$0xff] }
 0x2e4   : > { %v6607_v48 = vpop.f32.mrf.mxu1  ;;  %v3849_v40 = vld [vmem:[#allocation2 + $0xcd] sm:$0xff] }
 0x2e5   : > { %v3562_v58 = vpop.f32.mrf.mxu0  ;;  %v4379_v48 = vpack.c.bf16 %v4344_v49, %v4343_v42  ;;  %v4346_v42 = vld [vmem:[#allocation2 + $0xce] sm:$0xff] }
 0x2e6   : > { %v3073_v3 = vpop.f32.mrf.mxu1  ;;  %v8224_v62 = vadd.f32 %v3562_v58, %v3254_v52 }
 0x2e7   : > { %v3256_v56 = vadd.f32 %v3073_v3, %v7963_v46  ;;  %v6698_v7 = vpop.f32.mrf.mxu0  ;;  %v3848_v46 = vld [vmem:[#allocation2 + $0xc5] sm:$0xff] }
 0x2e8   : > { %v6608_v15 = vpop.f32.mrf.mxu1 }
 0x2e9   : > { %v3567_v51 = vpop.f32.mrf.mxu0  ;;  %6892 = vmatmul.mubr.msk.bf16.gmra.mxu0 %vm379_vm1, %v4378_v2  ;;  %v3883_v2 = vpack.c.bf16 %v3849_v40, %v3848_v46 }
 0x2ea   : > { %v3078_v29 = vpop.f32.mrf.mxu1  ;;  %v8228_v22 = vadd.f32 %v3567_v51, %v3255_v11  ;;  %6802 = vmatmul.mubr.msk.bf16.gmra.mxu1 %vm379_vm1, %v3882_v60  ;;  %6895 = vmatprep.mubr.msk.bf16.mxu0 %vm7013_vm0, %v8563_v63 }
 0x2eb   : > { %v3257_v52 = vadd.f32 %v3078_v29, %v7967_v1  ;;  %v6701_v21 = vpop.f32.mrf.mxu0  ;;  %6805 = vmatprep.mubr.msk.bf16.mxu1 %vm7013_vm0, %v8563_v63  ;;  %v4345_v29 = vld [vmem:[#allocation2 + $0xc6] sm:$0xff] }
 0x2ec   : > { %v6611_v39 = vpop.f32.mrf.mxu1  ;;  %v3851_v21 = vld [vmem:[#allocation2 + $0xdd] sm:$0xff] }
 0x2ed   : > { %v3570_v32 = vpop.f32.mrf.mxu0  ;;  %v4380_v39 = vpack.c.bf16 %v4346_v42, %v4345_v29  ;;  %v4348_v29 = vld [vmem:[#allocation2 + $0xde] sm:$0xff] }
 0x2ee   : > { %v3081_v11 = vpop.f32.mrf.mxu1  ;;  %v8236_v58 = vadd.f32 %v3570_v32, %v3256_v56 }
 0x2ef   : > { %v3258_v3 = vadd.f32 %v3081_v11, %v7975_v10  ;;  %v6702_v60 = vpop.f32.mrf.mxu0  ;;  %v3850_v10 = vld [vmem:[#allocation2 + $0xd5] sm:$0xff] }
 0x2f0   : > { %v6612_v7 = vpop.f32.mrf.mxu1 }
 0x2f1   : > { %v3575_v15 = vpop.f32.mrf.mxu0  ;;  %6896 = vmatmul.mubr.msk.bf16.gmra.mxu0 %vm379_vm1, %v4379_v48  ;;  %v3884_v48 = vpack.c.bf16 %v3851_v21, %v3850_v10 }
 0x2f2   : > { %v3086_v1 = vpop.f32.mrf.mxu1  ;;  %v8240_v51 = vadd.f32 %v3575_v15, %v3257_v52  ;;  %6806 = vmatmul.mubr.msk.bf16.gmra.mxu1 %vm379_vm1, %v3883_v2  ;;  %6899 = vmatprep.mubr.msk.bf16.mxu0 %vm7013_vm0, %v8563_v63 }
 0x2f3   : > { %v3259_v56 = vadd.f32 %v3086_v1, %v7979_v0  ;;  %v6705_v49 = vpop.f32.mrf.mxu0  ;;  %6809 = vmatprep.mubr.msk.bf16.mxu1 %vm7013_vm0, %v8563_v63  ;;  %v4347_v1 = vld [vmem:[#allocation2 + $0xd6] sm:$0xff] }
 0x2f4   : > { %v6615_v46 = vpop.f32.mrf.mxu1  ;;  %v3853_v49 = vld [vmem:[#allocation2 + $0xed] sm:$0xff] }
 0x2f5   : > { %v3578_v40 = vpop.f32.mrf.mxu0  ;;  %v4381_v46 = vpack.c.bf16 %v4348_v29, %v4347_v1  ;;  %v4350_v1 = vld [vmem:[#allocation2 + $0xee] sm:$0xff] }
 0x2f6   : > { %v3089_v52 = vpop.f32.mrf.mxu1  ;;  %v8248_v32 = vadd.f32 %v3578_v40, %v3258_v3 }
 0x2f7   : > { %v3260_v11 = vadd.f32 %v3089_v52, %v7987_v8  ;;  %v6706_v2 = vpop.f32.mrf.mxu0  ;;  %v3852_v8 = vld [vmem:[#allocation2 + $0xe5] sm:$0xff] }
 0x2f8   : > { %v6616_v60 = vpop.f32.mrf.mxu1 }
 0x2f9   : > { %v3583_v7 = vpop.f32.mrf.mxu0  ;;  %6900 = vmatmul.mubr.msk.bf16.gmra.mxu0 %vm379_vm1, %v4380_v39  ;;  %v3885_v39 = vpack.c.bf16 %v3853_v49, %v3852_v8 }
 0x2fa   : > { %v3094_v0 = vpop.f32.mrf.mxu1  ;;  %v8252_v15 = vadd.f32 %v3583_v7, %v3259_v56  ;;  %6810 = vmatmul.mubr.msk.bf16.gmra.mxu1 %vm379_vm1, %v3884_v48  ;;  %6903 = vmatprep.mubr.msk.bf16.mxu0 %vm7013_vm0, %v8563_v63 }
 0x2fb   : > { %v3261_v3 = vadd.f32 %v3094_v0, %v7991_v19  ;;  %v6709_v42 = vpop.f32.mrf.mxu0  ;;  %6813 = vmatprep.mubr.msk.bf16.mxu1 %vm7013_vm0, %v8563_v63  ;;  %v4349_v0 = vld [vmem:[#allocation2 + $0xe6] sm:$0xff] }
 0x2fc   : > { %v6619_v10 = vpop.f32.mrf.mxu1  ;;  %v3855_v42 = vld [vmem:[#allocation2 + $0xfd] sm:$0xff] }
 0x2fd   : > { %v3586_v21 = vpop.f32.mrf.mxu0  ;;  %v4382_v10 = vpack.c.bf16 %v4350_v1, %v4349_v0  ;;  %v4352_v0 = vld [vmem:[#allocation2 + $0xfe] sm:$0xff] }
 0x2fe   : > { %v3097_v56 = vpop.f32.mrf.mxu1  ;;  %v8260_v40 = vadd.f32 %v3586_v21, %v3260_v11 }
 0x2ff   : > { %v3262_v52 = vadd.f32 %v3097_v56, %v7999_v12  ;;  %v6710_v48 = vpop.f32.mrf.mxu0  ;;  %v3854_v12 = vld [vmem:[#allocation2 + $0xf5] sm:$0xff] }
 0x300   : > { %v6620_v2 = vpop.f32.mrf.mxu1 }
 0x301   : > { %v3591_v60 = vpop.f32.mrf.mxu0  ;;  %6904 = vmatmul.mubr.msk.bf16.gmra.mxu0 %vm379_vm1, %v4381_v46  ;;  %v3886_v46 = vpack.c.bf16 %v3855_v42, %v3854_v12 }
 0x302   : > { %v3102_v19 = vpop.f32.mrf.mxu1  ;;  %v8264_v7 = vadd.f32 %v3591_v60, %v3261_v3  ;;  %6814 = vmatmul.mubr.msk.bf16.gmra.mxu1 %vm379_vm1, %v3885_v39  ;;  %6907 = vmatprep.mubr.msk.bf16.mxu0 %vm7013_vm0, %v8563_v63 }
 0x303   : > { %v3263_v11 = vadd.f32 %v3102_v19, %v8003_v14  ;;  %v6713_v29 = vpop.f32.mrf.mxu0  ;;  %6817 = vmatprep.mubr.msk.bf16.mxu1 %vm7013_vm0, %v8563_v63  ;;  %v4351_v19 = vld [vmem:[#allocation2 + $0xf6] sm:$0xff] }
 0x304   : > { %v6623_v8 = vpop.f32.mrf.mxu1  ;;  %v3857_v29 = vld [vmem:[#allocation2 + $0x10d] sm:$0xff] }
 0x305   : > { %v3594_v49 = vpop.f32.mrf.mxu0  ;;  %v4383_v8 = vpack.c.bf16 %v4352_v0, %v4351_v19  ;;  %v4354_v19 = vld [vmem:[#allocation2 + $0x10e] sm:$0xff] }
 0x306   : > { %v3105_v3 = vpop.f32.mrf.mxu1  ;;  %v8272_v21 = vadd.f32 %v3594_v49, %v3262_v52 }
 0x307   : > { %v3264_v56 = vadd.f32 %v3105_v3, %v8011_v35  ;;  %v6714_v39 = vpop.f32.mrf.mxu0  ;;  %v3856_v35 = vld [vmem:[#allocation2 + $0x105] sm:$0xff] }
 0x308   : > { %v6624_v48 = vpop.f32.mrf.mxu1 }
 0x309   : > { %v3599_v2 = vpop.f32.mrf.mxu0  ;;  %6908 = vmatmul.mubr.msk.bf16.gmra.mxu0 %vm379_vm1, %v4382_v10  ;;  %v3887_v10 = vpack.c.bf16 %v3857_v29, %v3856_v35 }
 0x30a   : > { %v3110_v14 = vpop.f32.mrf.mxu1  ;;  %v8276_v60 = vadd.f32 %v3599_v2, %v3263_v11  ;;  %6818 = vmatmul.mubr.msk.bf16.gmra.mxu1 %vm379_vm1, %v3886_v46  ;;  %6911 = vmatprep.mubr.msk.bf16.mxu0 %vm7013_vm0, %v8563_v63 }
 0x30b   : > { %v3265_v52 = vadd.f32 %v3110_v14, %v8015_v41  ;;  %v6717_v1 = vpop.f32.mrf.mxu0  ;;  %6821 = vmatprep.mubr.msk.bf16.mxu1 %vm7013_vm0, %v8563_v63  ;;  %v4353_v14 = vld [vmem:[#allocation2 + $0x106] sm:$0xff] }
 0x30c   : > { %v6627_v12 = vpop.f32.mrf.mxu1  ;;  %v3859_v1 = vld [vmem:[#allocation2 + $0x11d] sm:$0xff] }
 0x30d   : > { %v3602_v42 = vpop.f32.mrf.mxu0  ;;  %v4384_v12 = vpack.c.bf16 %v4354_v19, %v4353_v14  ;;  %v4356_v14 = vld [vmem:[#allocation2 + $0x11e] sm:$0xff] }
 0x30e   : > { %v3113_v11 = vpop.f32.mrf.mxu1  ;;  %v8284_v49 = vadd.f32 %v3602_v42, %v3264_v56 }
 0x30f   : > { %v3266_v3 = vadd.f32 %v3113_v11, %v8023_v55  ;;  %v6718_v46 = vpop.f32.mrf.mxu0  ;;  %v3858_v55 = vld [vmem:[#allocation2 + $0x115] sm:$0xff] }
 0x310   : > { %v6628_v39 = vpop.f32.mrf.mxu1 }
 0x311   : > { %v3607_v48 = vpop.f32.mrf.mxu0  ;;  %6912 = vmatmul.mubr.msk.bf16.gmra.mxu0 %vm379_vm1, %v4383_v8  ;;  %v3888_v8 = vpack.c.bf16 %v3859_v1, %v3858_v55 }
 0x312   : > { %v3118_v41 = vpop.f32.mrf.mxu1  ;;  %v8288_v2 = vadd.f32 %v3607_v48, %v3265_v52  ;;  %6822 = vmatmul.mubr.msk.bf16.gmra.mxu1 %vm379_vm1, %v3887_v10  ;;  %6915 = vmatprep.mubr.msk.bf16.mxu0 %vm7013_vm0, %v8563_v63 }
 0x313   : > { %v3267_v56 = vadd.f32 %v3118_v41, %v8027_v28  ;;  %v6721_v0 = vpop.f32.mrf.mxu0  ;;  %6825 = vmatprep.mubr.msk.bf16.mxu1 %vm7013_vm0, %v8563_v63  ;;  %v4355_v41 = vld [vmem:[#allocation2 + $0x116] sm:$0xff] }
 0x314   : > { %v6631_v35 = vpop.f32.mrf.mxu1  ;;  %v3861_v0 = vld [vmem:[#allocation2 + $0x12d] sm:$0xff] }
 0x315   : > { %v3610_v29 = vpop.f32.mrf.mxu0  ;;  %v4385_v35 = vpack.c.bf16 %v4356_v14, %v4355_v41  ;;  %v4358_v41 = vld [vmem:[#allocation2 + $0x12e] sm:$0xff] }
 0x316   : > { %v3121_v52 = vpop.f32.mrf.mxu1  ;;  %v8296_v42 = vadd.f32 %v3610_v29, %v3266_v3 }
 0x317   : > { %v3268_v11 = vadd.f32 %v3121_v52, %v8035_v4  ;;  %v6722_v10 = vpop.f32.mrf.mxu0  ;;  %v3860_v4 = vld [vmem:[#allocation2 + $0x125] sm:$0xff] }
 0x318   : > { %v6632_v46 = vpop.f32.mrf.mxu1 }
 0x319   : > { %v3615_v39 = vpop.f32.mrf.mxu0  ;;  %6916 = vmatmul.mubr.msk.bf16.gmra.mxu0 %vm379_vm1, %v4384_v12  ;;  %v3889_v12 = vpack.c.bf16 %v3861_v0, %v3860_v4 }
 0x31a   : > { %v3126_v28 = vpop.f32.mrf.mxu1  ;;  %v8300_v48 = vadd.f32 %v3615_v39, %v3267_v56  ;;  %6826 = vmatmul.mubr.msk.bf16.gmra.mxu1 %vm379_vm1, %v3888_v8  ;;  %6919 = vmatprep.mubr.msk.bf16.mxu0 %vm7013_vm0, %v8563_v63 }
 0x31b   : > { %v3269_v3 = vadd.f32 %v3126_v28, %v8039_v26  ;;  %v6725_v19 = vpop.f32.mrf.mxu0  ;;  %6829 = vmatprep.mubr.msk.bf16.mxu1 %vm7013_vm0, %v8563_v63  ;;  %v4357_v28 = vld [vmem:[#allocation2 + $0x126] sm:$0xff] }
 0x31c   : > { %v6635_v55 = vpop.f32.mrf.mxu1  ;;  %v3863_v19 = vld [vmem:[#allocation2 + $0x13d] sm:$0xff] }
 0x31d   : > { %v3618_v1 = vpop.f32.mrf.mxu0  ;;  %v4386_v55 = vpack.c.bf16 %v4358_v41, %v4357_v28  ;;  %v4360_v28 = vld [vmem:[#allocation2 + $0x13e] sm:$0xff] }
 0x31e   : > { %v3129_v56 = vpop.f32.mrf.mxu1  ;;  %v8308_v29 = vadd.f32 %v3618_v1, %v3268_v11 }
 0x31f   : > { %v3270_v52 = vadd.f32 %v3129_v56, %v8047_v24  ;;  %v6726_v8 = vpop.f32.mrf.mxu0  ;;  %v3862_v24 = vld [vmem:[#allocation2 + $0x135] sm:$0xff] }
 0x320   : > { %v6636_v10 = vpop.f32.mrf.mxu1 }
 0x321   : > { %v3623_v46 = vpop.f32.mrf.mxu0  ;;  %6920 = vmatmul.mubr.msk.bf16.gmra.mxu0 %vm379_vm1, %v4385_v35  ;;  %v3890_v35 = vpack.c.bf16 %v3863_v19, %v3862_v24 }
 0x322   : > { %v3134_v26 = vpop.f32.mrf.mxu1  ;;  %v8312_v39 = vadd.f32 %v3623_v46, %v3269_v3  ;;  %6830 = vmatmul.mubr.msk.bf16.gmra.mxu1 %vm379_vm1, %v3889_v12  ;;  %6923 = vmatprep.mubr.msk.bf16.mxu0 %vm7013_vm0, %v8563_v63 }
 0x323   : > { %v3271_v11 = vadd.f32 %v3134_v26, %v8051_v25  ;;  %v6729_v14 = vpop.f32.mrf.mxu0  ;;  %6833 = vmatprep.mubr.msk.bf16.mxu1 %vm7013_vm0, %v8563_v63  ;;  %v4359_v26 = vld [vmem:[#allocation2 + $0x136] sm:$0xff] }
 0x324   : > { %v6639_v4 = vpop.f32.mrf.mxu1  ;;  %v3865_v14 = vld [vmem:[#allocation2 + $0x14d] sm:$0xff] }
 0x325   : > { %v3626_v0 = vpop.f32.mrf.mxu0  ;;  %v4387_v4 = vpack.c.bf16 %v4360_v28, %v4359_v26  ;;  %v4362_v26 = vld [vmem:[#allocation2 + $0x14e] sm:$0xff] }
 0x326   : > { %v3137_v3 = vpop.f32.mrf.mxu1  ;;  %v8320_v1 = vadd.f32 %v3626_v0, %v3270_v52 }
 0x327   : > { %v3272_v56 = vadd.f32 %v3137_v3, %v8059_v44  ;;  %v6730_v12 = vpop.f32.mrf.mxu0  ;;  %v3864_v44 = vld [vmem:[#allocation2 + $0x145] sm:$0xff] }
 0x328   : > { %v6640_v8 = vpop.f32.mrf.mxu1 }
 0x329   : > { %v3631_v10 = vpop.f32.mrf.mxu0  ;;  %6924 = vmatmul.mubr.msk.bf16.gmra.mxu0 %vm379_vm1, %v4386_v55  ;;  %v3891_v55 = vpack.c.bf16 %v3865_v14, %v3864_v44 }
 0x32a   : > { %v3142_v25 = vpop.f32.mrf.mxu1  ;;  %v8324_v46 = vadd.f32 %v3631_v10, %v3271_v11  ;;  %6834 = vmatmul.mubr.msk.bf16.gmra.mxu1 %vm379_vm1, %v3890_v35  ;;  %6927 = vmatprep.mubr.msk.bf16.mxu0 %vm7013_vm0, %v8563_v63 }
 0x32b   : > { %v3273_v52 = vadd.f32 %v3142_v25, %v8063_v31  ;;  %v6733_v41 = vpop.f32.mrf.mxu0  ;;  %6837 = vmatprep.mubr.msk.bf16.mxu1 %vm7013_vm0, %v8563_v63  ;;  %v4361_v25 = vld [vmem:[#allocation2 + $0x146] sm:$0xff] }
 0x32c   : > { %v6643_v24 = vpop.f32.mrf.mxu1  ;;  %v3867_v41 = vld [vmem:[#allocation2 + $0x15d] sm:$0xff] }
 0x32d   : > { %v3634_v19 = vpop.f32.mrf.mxu0  ;;  %v4388_v24 = vpack.c.bf16 %v4362_v26, %v4361_v25  ;;  %v4364_v25 = vld [vmem:[#allocation2 + $0x15e] sm:$0xff] }
 0x32e   : > { %v3145_v11 = vpop.f32.mrf.mxu1  ;;  %v8332_v0 = vadd.f32 %v3634_v19, %v3272_v56 }
 0x32f   : > { %v3274_v3 = vadd.f32 %v3145_v11, %v8071_v47  ;;  %v6734_v35 = vpop.f32.mrf.mxu0  ;;  %v3866_v47 = vld [vmem:[#allocation2 + $0x155] sm:$0xff] }
 0x330   : > { %v6644_v12 = vpop.f32.mrf.mxu1 }
 0x331   : > { %v3639_v8 = vpop.f32.mrf.mxu0  ;;  %6928 = vmatmul.mubr.msk.bf16.gmra.mxu0 %vm379_vm1, %v4387_v4  ;;  %v3892_v4 = vpack.c.bf16 %v3867_v41, %v3866_v47 }
 0x332   : > { %v3150_v31 = vpop.f32.mrf.mxu1  ;;  %v8336_v10 = vadd.f32 %v3639_v8, %v3273_v52  ;;  %6838 = vmatmul.mubr.msk.bf16.gmra.mxu1 %vm379_vm1, %v3891_v55  ;;  %6931 = vmatprep.mubr.msk.bf16.mxu0 %vm7013_vm0, %v8563_v63 }
 0x333   : > { %v3275_v56 = vadd.f32 %v3150_v31, %v8075_v9  ;;  %v6737_v28 = vpop.f32.mrf.mxu0  ;;  %6841 = vmatprep.mubr.msk.bf16.mxu1 %vm7013_vm0, %v8563_v63  ;;  %v4363_v31 = vld [vmem:[#allocation2 + $0x156] sm:$0xff] }
 0x334   : > { %v6647_v44 = vpop.f32.mrf.mxu1  ;;  %v3869_v28 = vld [vmem:[#allocation2 + $0x16d] sm:$0xff] }
 0x335   : > { %v3642_v14 = vpop.f32.mrf.mxu0  ;;  %v4389_v44 = vpack.c.bf16 %v4364_v25, %v4363_v31  ;;  %v4366_v31 = vld [vmem:[#allocation2 + $0x16e] sm:$0xff] }
 0x336   : > { %v3153_v52 = vpop.f32.mrf.mxu1  ;;  %v8344_v19 = vadd.f32 %v3642_v14, %v3274_v3 }
 0x337   : > { %v3276_v11 = vadd.f32 %v3153_v52, %v8083_v30  ;;  %v6738_v55 = vpop.f32.mrf.mxu0  ;;  %v3868_v30 = vld [vmem:[#allocation2 + $0x165] sm:$0xff] }
 0x338   : > { %v6648_v35 = vpop.f32.mrf.mxu1 }
 0x339   : > { %v3647_v12 = vpop.f32.mrf.mxu0  ;;  %6932 = vmatmul.mubr.msk.bf16.gmra.mxu0 %vm379_vm1, %v4388_v24  ;;  %v3893_v24 = vpack.c.bf16 %v3869_v28, %v3868_v30 }
 0x33a   : > { %v3158_v9 = vpop.f32.mrf.mxu1  ;;  %v8348_v8 = vadd.f32 %v3647_v12, %v3275_v56  ;;  %6842 = vmatmul.mubr.msk.bf16.gmra.mxu1 %vm379_vm1, %v3892_v4  ;;  %6935 = vmatprep.mubr.msk.bf16.mxu0 %vm7013_vm0, %v8563_v63 }
 0x33b   : > { %v3277_v3 = vadd.f32 %v3158_v9, %v8087_v13  ;;  %v6741_v26 = vpop.f32.mrf.mxu0  ;;  %6845 = vmatprep.mubr.msk.bf16.mxu1 %vm7013_vm0, %v8563_v63  ;;  %v4365_v9 = vld [vmem:[#allocation2 + $0x166] sm:$0xff] }
 0x33c   : > { %v6651_v47 = vpop.f32.mrf.mxu1  ;;  %v3871_v26 = vld [vmem:[#allocation2 + $0x17d] sm:$0xff] }
 0x33d   : > { %v3650_v41 = vpop.f32.mrf.mxu0  ;;  %v4390_v47 = vpack.c.bf16 %v4366_v31, %v4365_v9  ;;  %v4368_v9 = vld [vmem:[#allocation2 + $0x17e] sm:$0xff] }
 0x33e   : > { %v3161_v56 = vpop.f32.mrf.mxu1  ;;  %v8356_v14 = vadd.f32 %v3650_v41, %v3276_v11 }
 0x33f   : > { %v3278_v52 = vadd.f32 %v3161_v56, %v8095_v17  ;;  %v6742_v4 = vpop.f32.mrf.mxu0  ;;  %v3870_v17 = vld [vmem:[#allocation2 + $0x175] sm:$0xff] }
 0x340   : > { %v6652_v55 = vpop.f32.mrf.mxu1 }
 0x341   : > { %v3655_v35 = vpop.f32.mrf.mxu0  ;;  %6936 = vmatmul.mubr.msk.bf16.gmra.mxu0 %vm379_vm1, %v4389_v44  ;;  %v3894_v44 = vpack.c.bf16 %v3871_v26, %v3870_v17 }
 0x342   : > { %v3166_v13 = vpop.f32.mrf.mxu1  ;;  %v8360_v12 = vadd.f32 %v3655_v35, %v3277_v3  ;;  %6846 = vmatmul.mubr.msk.bf16.gmra.mxu1 %vm379_vm1, %v3893_v24  ;;  %6939 = vmatprep.mubr.msk.bf16.mxu0 %vm7013_vm0, %v8563_v63 }
 0x343   : > { %v3279_v11 = vadd.f32 %v3166_v13, %v8099_v18  ;;  %v6745_v25 = vpop.f32.mrf.mxu0  ;;  %6849 = vmatprep.mubr.msk.bf16.mxu1 %vm7013_vm0, %v8563_v63  ;;  %v4367_v13 = vld [vmem:[#allocation2 + $0x176] sm:$0xff] }
 0x344   : > { %v6655_v30 = vpop.f32.mrf.mxu1  ;;  %v4391_v26 = vpack.c.bf16 %v4368_v9, %v4367_v13 }
 0x345   : > { %v3658_v28 = vpop.f32.mrf.mxu0 }
 0x346   : > { %v3169_v3 = vpop.f32.mrf.mxu1  ;;  %v8368_v41 = vadd.f32 %v3658_v28, %v3278_v52 }
 0x347   : > { %v3280_v56 = vadd.f32 %v3169_v3, %v8107_v59  ;;  %v6746_v24 = vpop.f32.mrf.mxu0  ;;  %v3872_v59 = vld [vmem:[#allocation2 + $0x185] sm:$0xff] }
 0x348   : > { %v6656_v4 = vpop.f32.mrf.mxu1  ;;  %v3895_v28 = vpack.c.bf16 %v3872_v59, %v3872_v59 }
 0x349   : > { %v3663_v55 = vpop.f32.mrf.mxu0  ;;  %6940 = vmatmul.mubr.msk.bf16.gmra.mxu0 %vm379_vm1, %v4390_v47 }
 0x34a   : > { %v3174_v18 = vpop.f32.mrf.mxu1  ;;  %v8372_v35 = vadd.f32 %v3663_v55, %v3279_v11  ;;  %6850 = vmatmul.mubr.msk.bf16.gmra.mxu1 %vm379_vm1, %v3894_v44  ;;  %6943 = vmatprep.mubr.msk.bf16.mxu0 %vm7013_vm0, %v8563_v63  ;;  %v4369_v55 = vld [vmem:[#allocation2 + $0x186] sm:$0xff] }
 0x34b   : > { %v3281_v52 = vadd.f32 %v3174_v18, %v8111_v57  ;;  %v6749_v31 = vpop.f32.mrf.mxu0  ;;  %6853 = vmatprep.mubr.msk.bf16.mxu1 %vm7013_vm0, %v8563_v63 }
 0x34c   : > { %v6659_v25 = vpop.f32.mrf.mxu1 }
 0x34d   : > { %v3666_v17 = vpop.f32.mrf.mxu0 }
 0x34e   : > { %v3177_v30 = vpop.f32.mrf.mxu1  ;;  %v8380_v11 = vadd.f32 %v3666_v17, %v3280_v56 }
 0x34f   : > { %v3282_v47 = vadd.f32 %v3177_v30, %v8119_v54  ;;  %v6750_v3 = vpop.f32.mrf.mxu0  ;;  %v4392_v54 = vpack.c.bf16 %v4369_v55, %v4369_v55 }
 0x350   : > { %v6660_v44 = vpop.f32.mrf.mxu1 }
 0x351   : > { %v3671_v24 = vpop.f32.mrf.mxu0  ;;  %6944 = vmatmul.mubr.msk.bf16.gmra.mxu0 %vm379_vm1, %v4391_v26 }
 0x352   : > { %v3182_v57 = vpop.f32.mrf.mxu1  ;;  %v8384_v4 = vadd.f32 %v3671_v24, %v3281_v52  ;;  %6854 = vmatmul.mubr.msk.bf16.gmra.mxu1 %vm379_vm1, %v3895_v28  ;;  %6947 = vmatprep.mubr.msk.bf16.mxu0 %vm7013_vm0, %v8563_v63 }
 0x353   : > { %v3283_v56 = vadd.f32 %v3182_v57, %v8123_v38  ;;  %v6753_v18 = vpop.f32.mrf.mxu0 }
 0x354   : > { %v6663_v13 = vpop.f32.mrf.mxu1 }
 0x355   : > { %v3674_v9 = vpop.f32.mrf.mxu0 }
 0x356   : > { %v3185_v31 = vpop.f32.mrf.mxu1  ;;  %v8390_v59 = vadd.f32 %v3674_v9, %v3282_v47 }
 0x357   : > { %v3284_v25 = vadd.f32 %v3185_v31, %v8131_v43  ;;  %v6754_v17 = vpop.f32.mrf.mxu0 }
 0x358   : > { %v6664_v52 = vpop.f32.mrf.mxu1 }
 0x359   : > { %v3679_v26 = vpop.f32.mrf.mxu0  ;;  %6948 = vmatmul.mubr.msk.bf16.gmra.mxu0 %vm379_vm1, %v4392_v54 }
 0x35a   : > { %v3190_v30 = vpop.f32.mrf.mxu1  ;;  %v8394_v28 = vadd.f32 %v3679_v26, %v3283_v56 }
 0x35b   : > { %v3285_v63 = vadd.f32 %v3190_v30, %v8134_v53  ;;  %v6757_v38 = vpop.f32.mrf.mxu0 }
 0x35c   : > { %v6667_v3 = vpop.f32.mrf.mxu1  ;;  %v8406_v38 = vld [vmem:[%s8538_s3] ss:$0 sm:$0xff] }
 0x35d   : > { %v3682_v44 = vpop.f32.mrf.mxu0 }
 0x35e   : > { %v3193_v24 = vpop.f32.mrf.mxu1  ;;  %v8397_v57 = vadd.f32 %v3682_v44, %v3284_v25 }
 0x35f   : > { %v6758_v47 = vpop.f32.mrf.mxu0 }
 0x360   : > { %v6668_v55 = vpop.f32.mrf.mxu1 }
 0x361   : > { %v3687_v43 = vpop.f32.mrf.mxu0 }
 0x362   : > { %v8399_v18 = vadd.f32 %v3687_v43, %v3285_v63  ;;  %v4008_v13 = vpop.f32.mrf.mxu1 }
 0x363   : > { %v6761_v9 = vpop.f32.mrf.mxu0  ;;  %v4235_v53 = vadd.f32 %v4008_v13, %v8144_v61 }
 0x364   : > { %v6767_v54 = vpop.f32.mrf.mxu1 }
 0x365   : > { %v3690_v56 = vpop.f32.mrf.mxu0 }
 0x366   : > { %v4011_v31 = vpop.f32.mrf.mxu1 }
 0x367   : > { %v6762_v17 = vpop.f32.mrf.mxu0  ;;  %v4236_v3 = vadd.f32 %v4011_v31, %v8152_v36 }
 0x368   : > { %v6768_v52 = vpop.f32.mrf.mxu1 }
 0x369   : > { %v4505_v26 = vpop.f32.mrf.mxu0 }
 0x36a   : > { %v4016_v30 = vpop.f32.mrf.mxu1  ;;  %v4732_v25 = vadd.f32 %v4505_v26, %v4235_v53 }
 0x36b   : > { %v6861_v63 = vpop.f32.mrf.mxu0  ;;  %v4237_v13 = vadd.f32 %v4016_v30, %v8156_v6 }
 0x36c   : > { %v6771_v44 = vpop.f32.mrf.mxu1  ;;  %v4874_v47 = vadd.f32 %v8406_v38, %v4732_v25 }
 0x36d   : > { %v4508_v24 = vpop.f32.mrf.mxu0 }
 0x36e   : > { %v4019_v55 = vpop.f32.mrf.mxu1  ;;  %v4733_v61 = vadd.f32 %v4508_v24, %v4236_v3  ;;  %v4919_v17 = vmax.f32 %v4874_v47, 0.0 }
 0x36f   : > { %v6862_v43 = vpop.f32.mrf.mxu0  ;;  %v4238_v31 = vadd.f32 %v4019_v55, %v8164_v23 }
 0x370   : > { %v4875_v9 = vadd.f32 %v8406_v38, %v4733_v61  ;;  %v6772_v54 = vpop.f32.mrf.mxu1 }
 0x371   : > { %v4513_v56 = vpop.f32.mrf.mxu0 }
 0x372   : > { %v4920_v53 = vmax.f32 %v4875_v9, 0.0  ;;  %v4024_v52 = vpop.f32.mrf.mxu1  ;;  %v4734_v26 = vadd.f32 %v4513_v56, %v4237_v13 }
 0x373   : > { %v6865_v36 = vpop.f32.mrf.mxu0  ;;  %v4239_v47 = vadd.f32 %v4024_v52, %v8168_v50 }
 0x374   : > { %v5739_v25 = vpack.c.bf16 %v4920_v53, %v4919_v17  ;;  %v6775_v6 = vpop.f32.mrf.mxu1  ;;  %v4876_v63 = vadd.f32 %v8406_v38, %v4734_v26 }
 0x375   : > { %v4516_v30 = vpop.f32.mrf.mxu0 }
 0x376   : > { %5740 = vst [vmem:[%s8416_s6] sm:$0xff] %v5739_v25   ;;  %v4027_v3 = vpop.f32.mrf.mxu1  ;;  %v4735_v44 = vadd.f32 %v4516_v30, %v4238_v31  ;;  %v4921_v9 = vmax.f32 %v4876_v63, 0.0 }
 0x377   : > { %v6866_v24 = vpop.f32.mrf.mxu0  ;;  %v4240_v17 = vadd.f32 %v4027_v3, %v8176_v33 }
 0x378   : > { %v4877_v61 = vadd.f32 %v8406_v38, %v4735_v44  ;;  %v6776_v43 = vpop.f32.mrf.mxu1 }
 0x379   : > { %v4521_v13 = vpop.f32.mrf.mxu0 }
 0x37a   : > { %v4922_v54 = vmax.f32 %v4877_v61, 0.0  ;;  %v4032_v56 = vpop.f32.mrf.mxu1  ;;  %v4736_v23 = vadd.f32 %v4521_v13, %v4239_v47 }
 0x37b   : > { %v6869_v55 = vpop.f32.mrf.mxu0  ;;  %v4241_v6 = vadd.f32 %v4032_v56, %v8180_v5 }
 0x37c   : > { %v5744_v53 = vpack.c.bf16 %v4922_v54, %v4921_v9  ;;  %v6779_v36 = vpop.f32.mrf.mxu1  ;;  %v4878_v31 = vadd.f32 %v8406_v38, %v4736_v23 }
 0x37d   : > { %v4524_v26 = vpop.f32.mrf.mxu0 }
 0x37e   : > { %5868 = vst [vmem:[%s8416_s6 + $0x8] sm:$0xff] %v5744_v53   ;;  %v4035_v25 = vpop.f32.mrf.mxu1  ;;  %v4737_v50 = vadd.f32 %v4524_v26, %v4240_v17  ;;  %v4923_v24 = vmax.f32 %v4878_v31, 0.0 }
 0x37f   : > { %v6870_v52 = vpop.f32.mrf.mxu0  ;;  %v4242_v43 = vadd.f32 %v4035_v25, %v8188_v16 }
 0x380   : > { %v4879_v30 = vadd.f32 %v8406_v38, %v4737_v50  ;;  %v6780_v63 = vpop.f32.mrf.mxu1 }
 0x381   : > { %v4529_v44 = vpop.f32.mrf.mxu0 }
 0x382   : > { %v4924_v47 = vmax.f32 %v4879_v30, 0.0  ;;  %v4040_v61 = vpop.f32.mrf.mxu1  ;;  %v4738_v33 = vadd.f32 %v4529_v44, %v4241_v6 }
 0x383   : > { %v6873_v3 = vpop.f32.mrf.mxu0  ;;  %v4243_v17 = vadd.f32 %v4040_v61, %v8192_v34 }
 0x384   : > { %v5749_v13 = vpack.c.bf16 %v4924_v47, %v4923_v24  ;;  %v6783_v9 = vpop.f32.mrf.mxu1  ;;  %v4880_v23 = vadd.f32 %v8406_v38, %v4738_v33 }
 0x385   : > { %v4532_v54 = vpop.f32.mrf.mxu0 }
 0x386   : > { %5869 = vst [vmem:[%s8416_s6 + $0x10] sm:$0xff] %v5749_v13   ;;  %v4043_v55 = vpop.f32.mrf.mxu1  ;;  %v4739_v5 = vadd.f32 %v4532_v54, %v4242_v43  ;;  %v4925_v31 = vmax.f32 %v4880_v23, 0.0 }
 0x387   : > { %v6874_v56 = vpop.f32.mrf.mxu0  ;;  %v4244_v6 = vadd.f32 %v4043_v55, %v8200_v20 }
 0x388   : > { %v4881_v53 = vadd.f32 %v8406_v38, %v4739_v5  ;;  %v6784_v36 = vpop.f32.mrf.mxu1 }
 0x389   : > { %v4537_v26 = vpop.f32.mrf.mxu0 }
 0x38a   : > { %v4926_v50 = vmax.f32 %v4881_v53, 0.0  ;;  %v4048_v52 = vpop.f32.mrf.mxu1  ;;  %v4740_v16 = vadd.f32 %v4537_v26, %v4243_v17 }
 0x38b   : > { %v6877_v25 = vpop.f32.mrf.mxu0  ;;  %v4245_v33 = vadd.f32 %v4048_v52, %v8204_v27 }
 0x38c   : > { %v5754_v30 = vpack.c.bf16 %v4926_v50, %v4925_v31  ;;  %v6787_v63 = vpop.f32.mrf.mxu1  ;;  %v4882_v24 = vadd.f32 %v8406_v38, %v4740_v16 }
 0x38d   : > { %v4540_v44 = vpop.f32.mrf.mxu0 }
 0x38e   : > { %5870 = vst [vmem:[%s8416_s6 + $0x18] sm:$0xff] %v5754_v30   ;;  %v4051_v47 = vpop.f32.mrf.mxu1  ;;  %v4741_v34 = vadd.f32 %v4540_v44, %v4244_v6  ;;  %v4927_v9 = vmax.f32 %v4882_v24, 0.0 }
 0x38f   : > { %v6878_v61 = vpop.f32.mrf.mxu0  ;;  %v4246_v5 = vadd.f32 %v4051_v47, %v8212_v37 }
 0x390   : > { %v4883_v3 = vadd.f32 %v8406_v38, %v4741_v34  ;;  %v6788_v43 = vpop.f32.mrf.mxu1 }
 0x391   : > { %v4545_v13 = vpop.f32.mrf.mxu0 }
 0x392   : > { %v4928_v54 = vmax.f32 %v4883_v3, 0.0  ;;  %v4056_v23 = vpop.f32.mrf.mxu1  ;;  %v4742_v20 = vadd.f32 %v4545_v13, %v4245_v33 }
 0x393   : > { %v6881_v55 = vpop.f32.mrf.mxu0  ;;  %v4247_v50 = vadd.f32 %v4056_v23, %v8216_v45 }
 0x394   : > { %v5759_v56 = vpack.c.bf16 %v4928_v54, %v4927_v9  ;;  %v6791_v17 = vpop.f32.mrf.mxu1  ;;  %v4884_v36 = vadd.f32 %v8406_v38, %v4742_v20 }
 0x395   : > { %v4548_v53 = vpop.f32.mrf.mxu0 }
 0x396   : > { %5871 = vst [vmem:[%s8416_s6 + $0x20] sm:$0xff] %v5759_v56   ;;  %v4059_v26 = vpop.f32.mrf.mxu1  ;;  %v4743_v27 = vadd.f32 %v4548_v53, %v4246_v5  ;;  %v4929_v6 = vmax.f32 %v4884_v36, 0.0 }
 0x397   : > { %v6882_v31 = vpop.f32.mrf.mxu0  ;;  %v4248_v24 = vadd.f32 %v4059_v26, %v8224_v62 }
 0x398   : > { %v4885_v52 = vadd.f32 %v8406_v38, %v4743_v27  ;;  %v6792_v16 = vpop.f32.mrf.mxu1 }
 0x399   : > { %v4553_v25 = vpop.f32.mrf.mxu0 }
 0x39a   : > { %v4930_v30 = vmax.f32 %v4885_v52, 0.0  ;;  %v4064_v63 = vpop.f32.mrf.mxu1  ;;  %v4744_v37 = vadd.f32 %v4553_v25, %v4247_v50 }
 0x39b   : > { %v6885_v44 = vpop.f32.mrf.mxu0  ;;  %v4249_v13 = vadd.f32 %v4064_v63, %v8228_v22 }
 0x39c   : > { %v5764_v47 = vpack.c.bf16 %v4930_v30, %v4929_v6  ;;  %v6795_v34 = vpop.f32.mrf.mxu1  ;;  %v4886_v33 = vadd.f32 %v8406_v38, %v4744_v37 }
 0x39d   : > { %v4556_v61 = vpop.f32.mrf.mxu0 }
 0x39e   : > { %5872 = vst [vmem:[%s8416_s6 + $0x28] sm:$0xff] %v5764_v47   ;;  %v4067_v3 = vpop.f32.mrf.mxu1  ;;  %v4745_v45 = vadd.f32 %v4556_v61, %v4248_v24  ;;  %v4931_v20 = vmax.f32 %v4886_v33, 0.0 }
 0x39f   : > { %v6886_v43 = vpop.f32.mrf.mxu0  ;;  %v4250_v17 = vadd.f32 %v4067_v3, %v8236_v58 }
 0x3a0   : > { %v4887_v9 = vadd.f32 %v8406_v38, %v4745_v45  ;;  %v6796_v54 = vpop.f32.mrf.mxu1 }
 0x3a1   : > { %v4561_v23 = vpop.f32.mrf.mxu0 }
 0x3a2   : > { %v4932_v55 = vmax.f32 %v4887_v9, 0.0  ;;  %v4072_v5 = vpop.f32.mrf.mxu1  ;;  %v4746_v62 = vadd.f32 %v4561_v23, %v4249_v13 }
 0x3a3   : > { %v6889_v56 = vpop.f32.mrf.mxu0  ;;  %v4251_v52 = vadd.f32 %v4072_v5, %v8240_v51 }
 0x3a4   : > { %v5769_v53 = vpack.c.bf16 %v4932_v55, %v4931_v20  ;;  %v6799_v36 = vpop.f32.mrf.mxu1  ;;  %v4888_v27 = vadd.f32 %v8406_v38, %v4746_v62 }
 0x3a5   : > { %v4564_v26 = vpop.f32.mrf.mxu0 }
 0x3a6   : > { %5873 = vst [vmem:[%s8416_s6 + $0x30] sm:$0xff] %v5769_v53   ;;  %v4075_v31 = vpop.f32.mrf.mxu1  ;;  %v4747_v22 = vadd.f32 %v4564_v26, %v4250_v17  ;;  %v4933_v30 = vmax.f32 %v4888_v27, 0.0 }
 0x3a7   : > { %v6890_v50 = vpop.f32.mrf.mxu0  ;;  %v4252_v24 = vadd.f32 %v4075_v31, %v8248_v32 }
 0x3a8   : > { %v4889_v16 = vadd.f32 %v8406_v38, %v4747_v22  ;;  %v6800_v25 = vpop.f32.mrf.mxu1 }
 0x3a9   : > { %v4569_v6 = vpop.f32.mrf.mxu0 }
 0x3aa   : > { %v4934_v63 = vmax.f32 %v4889_v16, 0.0  ;;  %v4080_v37 = vpop.f32.mrf.mxu1  ;;  %v4748_v58 = vadd.f32 %v4569_v6, %v4251_v52 }
 0x3ab   : > { %v6893_v44 = vpop.f32.mrf.mxu0  ;;  %v4253_v43 = vadd.f32 %v4080_v37, %v8252_v15 }
 0x3ac   : > { %v5774_v47 = vpack.c.bf16 %v4934_v63, %v4933_v30  ;;  %v6803_v34 = vpop.f32.mrf.mxu1  ;;  %v4890_v33 = vadd.f32 %v8406_v38, %v4748_v58 }
 0x3ad   : > { %v4572_v61 = vpop.f32.mrf.mxu0 }
 0x3ae   : > { %5874 = vst [vmem:[%s8416_s6 + $0x38] sm:$0xff] %v5774_v47   ;;  %v4083_v3 = vpop.f32.mrf.mxu1  ;;  %v4749_v51 = vadd.f32 %v4572_v61, %v4252_v24  ;;  %v4935_v23 = vmax.f32 %v4890_v33, 0.0 }
 0x3af   : > { %v6894_v45 = vpop.f32.mrf.mxu0  ;;  %v4254_v62 = vadd.f32 %v4083_v3, %v8260_v40 }
 0x3b0   : > { %v4891_v13 = vadd.f32 %v8406_v38, %v4749_v51  ;;  %v6804_v9 = vpop.f32.mrf.mxu1 }
 0x3b1   : > { %v4577_v54 = vpop.f32.mrf.mxu0 }
 0x3b2   : > { %v4936_v20 = vmax.f32 %v4891_v13, 0.0  ;;  %v4088_v55 = vpop.f32.mrf.mxu1  ;;  %v4750_v32 = vadd.f32 %v4577_v54, %v4253_v43 }
 0x3b3   : > { %v6897_v5 = vpop.f32.mrf.mxu0  ;;  %v4255_v31 = vadd.f32 %v4088_v55, %v8264_v7 }
 0x3b4   : > { %v5779_v56 = vpack.c.bf16 %v4936_v20, %v4935_v23  ;;  %v6807_v17 = vpop.f32.mrf.mxu1  ;;  %v4892_v36 = vadd.f32 %v8406_v38, %v4750_v32 }
 0x3b5   : > { %v4580_v53 = vpop.f32.mrf.mxu0 }
 0x3b6   : > { %5875 = vst [vmem:[%s8416_s6 + $0x40] sm:$0xff] %v5779_v56   ;;  %v4091_v26 = vpop.f32.mrf.mxu1  ;;  %v4751_v15 = vadd.f32 %v4580_v53, %v4254_v62  ;;  %v4937_v16 = vmax.f32 %v4892_v36, 0.0 }
 0x3b7   : > { %v6898_v27 = vpop.f32.mrf.mxu0  ;;  %v4256_v63 = vadd.f32 %v4091_v26, %v8272_v21 }
 0x3b8   : > { %v4893_v22 = vadd.f32 %v8406_v38, %v4751_v15  ;;  %v6808_v50 = vpop.f32.mrf.mxu1 }
 0x3b9   : > { %v4585_v52 = vpop.f32.mrf.mxu0 }
 0x3ba   : > { %v4938_v25 = vmax.f32 %v4893_v22, 0.0  ;;  %v4096_v6 = vpop.f32.mrf.mxu1  ;;  %v4752_v40 = vadd.f32 %v4585_v52, %v4255_v31 }
 0x3bb   : > { %v6901_v30 = vpop.f32.mrf.mxu0  ;;  %v4257_v61 = vadd.f32 %v4096_v6, %v8276_v60 }
 0x3bc   : > { %v5784_v37 = vpack.c.bf16 %v4938_v25, %v4937_v16  ;;  %v6811_v58 = vpop.f32.mrf.mxu1  ;;  %v4894_v24 = vadd.f32 %v8406_v38, %v4752_v40 }
 0x3bd   : > { %v4588_v44 = vpop.f32.mrf.mxu0 }
 0x3be   : > { %5876 = vst [vmem:[%s8416_s6 + $0x48] sm:$0xff] %v5784_v37   ;;  %v4099_v47 = vpop.f32.mrf.mxu1  ;;  %v4753_v7 = vadd.f32 %v4588_v44, %v4256_v63  ;;  %v4939_v45 = vmax.f32 %v4894_v24, 0.0 }
 0x3bf   : > { %v6902_v34 = vpop.f32.mrf.mxu0  ;;  %v4258_v54 = vadd.f32 %v4099_v47, %v8284_v49 }
 0x3c0   : > { %v4895_v33 = vadd.f32 %v8406_v38, %v4753_v7  ;;  %v6812_v3 = vpop.f32.mrf.mxu1 }
 0x3c1   : > { %v4593_v51 = vpop.f32.mrf.mxu0 }
 0x3c2   : > { %v4940_v43 = vmax.f32 %v4895_v33, 0.0  ;;  %v4104_v13 = vpop.f32.mrf.mxu1  ;;  %v4754_v21 = vadd.f32 %v4593_v51, %v4257_v61 }
 0x3c3   : > { %v6905_v9 = vpop.f32.mrf.mxu0  ;;  %v4259_v56 = vadd.f32 %v4104_v13, %v8288_v2 }
 0x3c4   : > { %v5789_v23 = vpack.c.bf16 %v4940_v43, %v4939_v45  ;;  %v6815_v20 = vpop.f32.mrf.mxu1  ;;  %v4896_v32 = vadd.f32 %v8406_v38, %v4754_v21 }
 0x3c5   : > { %v4596_v55 = vpop.f32.mrf.mxu0 }
 0x3c6   : > { %5877 = vst [vmem:[%s8416_s6 + $0x50] sm:$0xff] %v5789_v23   ;;  %v4107_v5 = vpop.f32.mrf.mxu1  ;;  %v4755_v60 = vadd.f32 %v4596_v55, %v4258_v54  ;;  %v4941_v26 = vmax.f32 %v4896_v32, 0.0 }
 0x3c7   : > { %v6906_v62 = vpop.f32.mrf.mxu0  ;;  %v4260_v22 = vadd.f32 %v4107_v5, %v8296_v42 }
 0x3c8   : > { %v4897_v17 = vadd.f32 %v8406_v38, %v4755_v60  ;;  %v6816_v53 = vpop.f32.mrf.mxu1 }
 0x3c9   : > { %v4601_v36 = vpop.f32.mrf.mxu0 }
 0x3ca   : > { %v4942_v15 = vmax.f32 %v4897_v17, 0.0  ;;  %v4112_v27 = vpop.f32.mrf.mxu1  ;;  %v4756_v49 = vadd.f32 %v4601_v36, %v4259_v56 }
 0x3cb   : > { %v6909_v31 = vpop.f32.mrf.mxu0  ;;  %v4261_v30 = vadd.f32 %v4112_v27, %v8300_v48 }
 0x3cc   : > { %v5794_v50 = vpack.c.bf16 %v4942_v15, %v4941_v26  ;;  %v6819_v52 = vpop.f32.mrf.mxu1  ;;  %v4898_v25 = vadd.f32 %v8406_v38, %v4756_v49 }
 0x3cd   : > { %v4604_v16 = vpop.f32.mrf.mxu0 }
 0x3ce   : > { %5878 = vst [vmem:[%s8416_s6 + $0x58] sm:$0xff] %v5794_v50   ;;  %v4115_v6 = vpop.f32.mrf.mxu1  ;;  %v4757_v2 = vadd.f32 %v4604_v16, %v4260_v22  ;;  %v4943_v44 = vmax.f32 %v4898_v25, 0.0 }
 0x3cf   : > { %v6910_v40 = vpop.f32.mrf.mxu0  ;;  %v4262_v34 = vadd.f32 %v4115_v6, %v8308_v29 }
 0x3d0   : > { %v4899_v63 = vadd.f32 %v8406_v38, %v4757_v2  ;;  %v6820_v37 = vpop.f32.mrf.mxu1 }
 0x3d1   : > { %v4609_v58 = vpop.f32.mrf.mxu0 }
 0x3d2   : > { %v4944_v24 = vmax.f32 %v4899_v63, 0.0  ;;  %v4120_v47 = vpop.f32.mrf.mxu1  ;;  %v4758_v42 = vadd.f32 %v4609_v58, %v4261_v30 }
 0x3d3   : > { %v6913_v7 = vpop.f32.mrf.mxu0  ;;  %v4263_v13 = vadd.f32 %v4120_v47, %v8312_v39 }
 0x3d4   : > { %v5799_v61 = vpack.c.bf16 %v4944_v24, %v4943_v44  ;;  %v6823_v33 = vpop.f32.mrf.mxu1  ;;  %v4900_v51 = vadd.f32 %v8406_v38, %v4758_v42 }
 0x3d5   : > { %v4612_v3 = vpop.f32.mrf.mxu0 }
 0x3d6   : > { %5879 = vst [vmem:[%s8416_s6 + $0x60] sm:$0xff] %v5799_v61   ;;  %v4123_v45 = vpop.f32.mrf.mxu1  ;;  %v4759_v48 = vadd.f32 %v4612_v3, %v4262_v34  ;;  %v4945_v23 = vmax.f32 %v4900_v51, 0.0 }
 0x3d7   : > { %v6914_v43 = vpop.f32.mrf.mxu0  ;;  %v4264_v5 = vadd.f32 %v4123_v45, %v8320_v1 }
 0x3d8   : > { %v4901_v21 = vadd.f32 %v8406_v38, %v4759_v48  ;;  %v6824_v9 = vpop.f32.mrf.mxu1 }
 0x3d9   : > { %v4617_v54 = vpop.f32.mrf.mxu0 }
 0x3da   : > { %v4946_v20 = vmax.f32 %v4901_v21, 0.0  ;;  %v4128_v55 = vpop.f32.mrf.mxu1  ;;  %v4760_v29 = vadd.f32 %v4617_v54, %v4263_v13 }
 0x3db   : > { %v6917_v32 = vpop.f32.mrf.mxu0  ;;  %v4265_v26 = vadd.f32 %v4128_v55, %v8324_v46 }
 0x3dc   : > { %v5804_v60 = vpack.c.bf16 %v4946_v20, %v4945_v23  ;;  %v6827_v62 = vpop.f32.mrf.mxu1  ;;  %v4902_v17 = vadd.f32 %v8406_v38, %v4760_v29 }
 0x3dd   : > { %v4620_v56 = vpop.f32.mrf.mxu0 }
 0x3de   : > { %5880 = vst [vmem:[%s8416_s6 + $0x68] sm:$0xff] %v5804_v60   ;;  %v4131_v53 = vpop.f32.mrf.mxu1  ;;  %v4761_v39 = vadd.f32 %v4620_v56, %v4264_v5  ;;  %v4947_v31 = vmax.f32 %v4902_v17, 0.0 }
 0x3df   : > { %v6918_v36 = vpop.f32.mrf.mxu0  ;;  %v4266_v16 = vadd.f32 %v4131_v53, %v8332_v0 }
 0x3e0   : > { %v4903_v15 = vadd.f32 %v8406_v38, %v4761_v39  ;;  %v6828_v27 = vpop.f32.mrf.mxu1 }
 0x3e1   : > { %v4625_v49 = vpop.f32.mrf.mxu0 }
 0x3e2   : > { %v4948_v22 = vmax.f32 %v4903_v15, 0.0  ;;  %v4136_v50 = vpop.f32.mrf.mxu1  ;;  %v4762_v1 = vadd.f32 %v4625_v49, %v4265_v26 }
 0x3e3   : > { %v6921_v52 = vpop.f32.mrf.mxu0  ;;  %v4267_v37 = vadd.f32 %v4136_v50, %v8336_v10 }
 0x3e4   : > { %v5809_v25 = vpack.c.bf16 %v4948_v22, %v4947_v31  ;;  %v6831_v6 = vpop.f32.mrf.mxu1  ;;  %v4904_v40 = vadd.f32 %v8406_v38, %v4762_v1 }
 0x3e5   : > { %v4628_v2 = vpop.f32.mrf.mxu0 }
 0x3e6   : > { %5881 = vst [vmem:[%s8416_s6 + $0x70] sm:$0xff] %v5809_v25   ;;  %v4139_v30 = vpop.f32.mrf.mxu1  ;;  %v4763_v46 = vadd.f32 %v4628_v2, %v4266_v16  ;;  %v4949_v47 = vmax.f32 %v4904_v40, 0.0 }
 0x3e7   : > { %v6922_v63 = vpop.f32.mrf.mxu0  ;;  %v4268_v61 = vadd.f32 %v4139_v30, %v8344_v19 }
 0x3e8   : > { %v4905_v58 = vadd.f32 %v8406_v38, %v4763_v46  ;;  %v6832_v44 = vpop.f32.mrf.mxu1 }
 0x3e9   : > { %v4633_v24 = vpop.f32.mrf.mxu0 }
 0x3ea   : > { %v4950_v42 = vmax.f32 %v4905_v58, 0.0  ;;  %v4144_v7 = vpop.f32.mrf.mxu1  ;;  %v4764_v0 = vadd.f32 %v4633_v24, %v4267_v37 }
 0x3eb   : > { %v6925_v34 = vpop.f32.mrf.mxu0  ;;  %v4269_v13 = vadd.f32 %v4144_v7, %v8348_v8 }
 0x3ec   : > { %v5814_v33 = vpack.c.bf16 %v4950_v42, %v4949_v47  ;;  %v6835_v3 = vpop.f32.mrf.mxu1  ;;  %v4906_v45 = vadd.f32 %v8406_v38, %v4764_v0 }
 0x3ed   : > { %v4636_v51 = vpop.f32.mrf.mxu0 }
 0x3ee   : > { %5882 = vst [vmem:[%s8416_s6 + $0x78] sm:$0xff] %v5814_v33   ;;  %v4147_v48 = vpop.f32.mrf.mxu1  ;;  %v4765_v10 = vadd.f32 %v4636_v51, %v4268_v61  ;;  %v4951_v23 = vmax.f32 %v4906_v45, 0.0 }
 0x3ef   : > { %v6926_v43 = vpop.f32.mrf.mxu0  ;;  %v4270_v32 = vadd.f32 %v4147_v48, %v8356_v14 }
 0x3f0   : > { %v4907_v21 = vadd.f32 %v8406_v38, %v4765_v10  ;;  %v6836_v9 = vpop.f32.mrf.mxu1 }
 0x3f1   : > { %v4641_v54 = vpop.f32.mrf.mxu0 }
 0x3f2   : > { %v4952_v20 = vmax.f32 %v4907_v21, 0.0  ;;  %v4152_v55 = vpop.f32.mrf.mxu1  ;;  %v4766_v19 = vadd.f32 %v4641_v54, %v4269_v13 }
 0x3f3   : > { %v6929_v29 = vpop.f32.mrf.mxu0  ;;  %v4271_v39 = vadd.f32 %v4152_v55, %v8360_v12 }
 0x3f4   : > { %v5819_v5 = vpack.c.bf16 %v4952_v20, %v4951_v23  ;;  %v6839_v60 = vpop.f32.mrf.mxu1  ;;  %v4908_v56 = vadd.f32 %v8406_v38, %v4766_v19 }
 0x3f5   : > { %v4644_v62 = vpop.f32.mrf.mxu0 }
 0x3f6   : > { %5883 = vst [vmem:[%s8416_s6 + $0x80] sm:$0xff] %v5819_v5   ;;  %v4155_v17 = vpop.f32.mrf.mxu1  ;;  %v4767_v8 = vadd.f32 %v4644_v62, %v4270_v32  ;;  %v4953_v27 = vmax.f32 %v4908_v56, 0.0 }
 0x3f7   : > { %v6930_v53 = vpop.f32.mrf.mxu0  ;;  %v4272_v50 = vadd.f32 %v4155_v17, %v8368_v41 }
 0x3f8   : > { %v4909_v36 = vadd.f32 %v8406_v38, %v4767_v8  ;;  %v6840_v26 = vpop.f32.mrf.mxu1 }
 0x3f9   : > { %v4649_v15 = vpop.f32.mrf.mxu0 }
 0x3fa   : > { %v4954_v49 = vmax.f32 %v4909_v36, 0.0  ;;  %v4160_v31 = vpop.f32.mrf.mxu1  ;;  %v4768_v14 = vadd.f32 %v4649_v15, %v4271_v39 }
 0x3fb   : > { %v6933_v22 = vpop.f32.mrf.mxu0  ;;  %v4273_v40 = vadd.f32 %v4160_v31, %v8372_v35 }
 0x3fc   : > { %v5824_v1 = vpack.c.bf16 %v4954_v49, %v4953_v27  ;;  %v6843_v52 = vpop.f32.mrf.mxu1  ;;  %v4910_v25 = vadd.f32 %v8406_v38, %v4768_v14 }
 0x3fd   : > { %v4652_v16 = vpop.f32.mrf.mxu0 }
 0x3fe   : > { %5884 = vst [vmem:[%s8416_s6 + $0x88] sm:$0xff] %v5824_v1   ;;  %v4163_v6 = vpop.f32.mrf.mxu1  ;;  %v4769_v12 = vadd.f32 %v4652_v16, %v4272_v50  ;;  %v4955_v37 = vmax.f32 %v4910_v25, 0.0 }
 0x3ff   : > { %v6934_v2 = vpop.f32.mrf.mxu0  ;;  %v4274_v47 = vadd.f32 %v4163_v6, %v8380_v11 }
 0x400   : > { %v4911_v30 = vadd.f32 %v8406_v38, %v4769_v12  ;;  %v6844_v46 = vpop.f32.mrf.mxu1 }
 0x401   : > { %v4657_v63 = vpop.f32.mrf.mxu0 }
 0x402   : > { %v4956_v58 = vmax.f32 %v4911_v30, 0.0  ;;  %v4168_v44 = vpop.f32.mrf.mxu1  ;;  %v4770_v41 = vadd.f32 %v4657_v63, %v4273_v40 }
 0x403   : > { %v6937_v24 = vpop.f32.mrf.mxu0  ;;  %v4275_v3 = vadd.f32 %v4168_v44, %v8384_v4 }
 0x404   : > { %v5829_v42 = vpack.c.bf16 %v4956_v58, %v4955_v37  ;;  %v6847_v7 = vpop.f32.mrf.mxu1  ;;  %v4912_v34 = vadd.f32 %v8406_v38, %v4770_v41 }
 0x405   : > { %v4660_v0 = vpop.f32.mrf.mxu0 }
 0x406   : > { %5885 = vst [vmem:[%s8416_s6 + $0x90] sm:$0xff] %v5829_v42   ;;  %v4171_v61 = vpop.f32.mrf.mxu1  ;;  %v4771_v35 = vadd.f32 %v4660_v0, %v4274_v47  ;;  %v4957_v10 = vmax.f32 %v4912_v34, 0.0 }
 0x407   : > { %v6938_v33 = vpop.f32.mrf.mxu0  ;;  %v4276_v9 = vadd.f32 %v4171_v61, %v8390_v59 }
 0x408   : > { %v4913_v51 = vadd.f32 %v8406_v38, %v4771_v35  ;;  %v6848_v45 = vpop.f32.mrf.mxu1 }
 0x409   : > { %v4665_v48 = vpop.f32.mrf.mxu0 }
 0x40a   : > { %v4958_v43 = vmax.f32 %v4913_v51, 0.0  ;;  %v4176_v13 = vpop.f32.mrf.mxu1  ;;  %v4772_v11 = vadd.f32 %v4665_v48, %v4275_v3 }
 0x40b   : > { %v6941_v21 = vpop.f32.mrf.mxu0  ;;  %v4277_v32 = vadd.f32 %v4176_v13, %v8394_v28 }
 0x40c   : > { %v5834_v54 = vpack.c.bf16 %v4958_v43, %v4957_v10  ;;  %v6851_v23 = vpop.f32.mrf.mxu1  ;;  %v4914_v55 = vadd.f32 %v8406_v38, %v4772_v11 }
 0x40d   : > { %v4668_v20 = vpop.f32.mrf.mxu0 }
 0x40e   : > { %5886 = vst [vmem:[%s8416_s6 + $0x98] sm:$0xff] %v5834_v54   ;;  %v4179_v19 = vpop.f32.mrf.mxu1  ;;  %v4773_v4 = vadd.f32 %v4668_v20, %v4276_v9  ;;  %v4959_v56 = vmax.f32 %v4914_v55, 0.0 }
 0x40f   : > { %v6942_v29 = vpop.f32.mrf.mxu0  ;;  %v4278_v39 = vadd.f32 %v4179_v19, %v8397_v57 }
 0x410   : > { %v4915_v5 = vadd.f32 %v8406_v38, %v4773_v4  ;;  %v6852_v60 = vpop.f32.mrf.mxu1 }
 0x411   : > { %v4673_v62 = vpop.f32.mrf.mxu0 }
 0x412   : > { %v4960_v17 = vmax.f32 %v4915_v5, 0.0  ;;  %v4184_v8 = vpop.f32.mrf.mxu1  ;;  %v4774_v59 = vadd.f32 %v4673_v62, %v4277_v32 }
 0x413   : > { %v6945_v53 = vpop.f32.mrf.mxu0  ;;  %v4279_v14 = vadd.f32 %v4184_v8, %v8399_v18 }
 0x414   : > { %v5839_v36 = vpack.c.bf16 %v4960_v17, %v4959_v56  ;;  %v6855_v26 = vpop.f32.mrf.mxu1  ;;  %v4916_v27 = vadd.f32 %v8406_v38, %v4774_v59 }
 0x415   : > { %v4676_v15 = vpop.f32.mrf.mxu0 }
 0x416   : > { %5887 = vst [vmem:[%s8416_s6 + $0xa0] sm:$0xff] %v5839_v36   ;;  %v4187_v49 = vpop.f32.mrf.mxu1  ;;  %v4775_v28 = vadd.f32 %v4676_v15, %v4278_v39  ;;  %v4961_v52 = vmax.f32 %v4916_v27, 0.0 }
 0x417   : > { %v6946_v31 = vpop.f32.mrf.mxu0 }
 0x418   : > { %v4917_v22 = vadd.f32 %v8406_v38, %v4775_v28  ;;  %v6856_v50 = vpop.f32.mrf.mxu1 }
 0x419   : > { %v4681_v1 = vpop.f32.mrf.mxu0 }
 0x41a   : > { %v4962_v16 = vmax.f32 %v4917_v22, 0.0  ;;  %v4776_v57 = vadd.f32 %v4681_v1, %v4279_v14 }
 0x41b   : > { %v6949_v25 = vpop.f32.mrf.mxu0 }
 0x41c   : > { %v5844_v6 = vpack.c.bf16 %v4962_v16, %v4961_v52  ;;  %v4918_v12 = vadd.f32 %v8406_v38, %v4776_v57 }
 0x41d   : > { %v4684_v2 = vpop.f32.mrf.mxu0 }
 0x41e   : > { %5888 = vst [vmem:[%s8416_s6 + $0xa8] sm:$0xff] %v5844_v6   ;;  %v4963_v40 = vmax.f32 %v4918_v12, 0.0 }
 0x41f   : > { %v6950_v30 = vpop.f32.mrf.mxu0 }
 0x420   : > { %v5639_v46 = vpack.c.bf16 %v4963_v40, %v4963_v40 }
 0x422   : > { %5189 = vst [vmem:[%s8416_s6 + $0xb0] sm:$0xf] %v5639_v46 }
 0x423 PF: > { %s14_s17 = sadd.s32 1, %s7010_s17   ;;  %s8583_s15 = smov %s7006_s16 }
 0x424   : > { %p11_p7 = scmp.ge.s32.totalorder %s14_s17, 4   ;;  %s8584_s16 = smov %s8586_s18 }
 0x426   :  { %13 = sbr.rel (!%p11_p7) target bundleno = 2 (0x2), region = 83 }

// kernel: basic_block_forward.3
= control target key start
LH: loop header
LB: loop body
LE: loop exit
PB: predicated region body
PF: predicated region fallthrough
CT: control target
= control target key end

     0   :  { %s6962_s18 = smov 0   ;;  %s6964_s19 = smov 0   ;;  %s8512_s0 = inlined_call_operand.vmem [shape: bf16[1080,16], index: 0, kind: input, shape index: {}, may-alias: {0,1}]   ;;  %s8513_s1 = inlined_call_operand.vmem [shape: bf16[1080,16], index: 1, kind: input, shape index: {}, may-alias: {0,1}]   ;;  %s8514_s2 = inlined_call_operand.vmem [shape: bf16[9,16,128], index: 2, kind: input, shape index: {}]   ;;  %s8515_s3 = inlined_call_operand.vmem [shape: f32[1,128], index: 3, kind: input, shape index: {}]   ;;  %s8516_s4 = inlined_call_operand.vmem [shape: bf16[720,128], index: 4, kind: input, shape index: {}]   ;;  %s8517_s5 = inlined_call_operand.vmem [shape: f32[720,128], index: 5, kind: output, shape index: {}]  }
   0x1   :  { %s6966_s20 = smov 0  }
   0x2 LB: > { %s27_s21 = sadd.s32 1, %s6924_s19  ;;  %p5339_p0 = scmp.ge.s32.totalorder %s6928_s20, 1  ;;  %s6928_s20 = sphi %s6966_s20, %s15_s20   ;;  %s6924_s19 = sphi %s6964_s19, %s8562_s19   ;;  %s6920_s18 = sphi %s6962_s18, %s8561_s18  }
   0x3   : > { %p29_p1 = scmp.ge.s32.totalorder %s27_s21, 2  ;;  %p254_p2 = scmp.lt.s32.totalorder %s6928_s20, 3 }
   0x5   : > { %s8564_s21 = smov (%p29_p1, %s27_s21), 0  ;;  %p255_p3 = pnand %p5339_p0, %p254_p2 }
   0x7   : > { %258 = sbr.rel (%p255_p3) target bundleno = 1059 (0x423), region = 40 }
   0xc   : > { %v6897_v0 = vld [vmem:[%s8514_s2] sm:$0xff]   ;;  %v8521_v1 = vmov 0.0   ;;  %s6988_s24 = smul.u32 45, %s6920_s18  ;;  %vm6931_vm0 = vmmov 0   ;;  %vm439_vm1 = vcmask 130048   ;;  %v6898_v56 = vld [vmem:[%s8514_s2 + $0x10] sm:$0xff]  }
   0xd   : > { %6023 = vmatprep.subr.bf16.mxu0 %v8521_v1  ;;  %6869 = vmatprep.subr.bf16.mxu1 %v8521_v1  ;;  %s313_s13 = sadd.s32 1, %s6920_s18 }
   0xe   : > { %6024 = vmatpush3.bf16.msra.mxu0 %v6897_v0  ;;  %6870 = vmatpush3.bf16.msra.mxu1 %v6897_v0  ;;  %p308_p4 = scmp.lt.s32.totalorder %s6988_s24, 134  ;;  %s5341_s14 = smul.u32 45, %s313_s13 }
   0xf   : > { %6025 = vmatprep.mubr.msk.bf16.mxu0 %vm6931_vm0, %v8521_v1  ;;  %6073 = vmatprep.mubr.msk.bf16.mxu1 %vm6931_vm0, %v8521_v1  ;;  %p331_p6 = scmp.lt.s32.totalorder %s6988_s24, 89 }
  0x10   : > { %6211 = vmatprep.subr.bf16.mxu0 %v8521_v1  ;;  %6117 = vmatprep.subr.bf16.mxu1 %v8521_v1  ;;  %s309_s25 = scalar_select %p308_p4, %s6988_s24, 134 }
  0x11   : > { %p316_p5 = scmp.lt.s32.totalorder %s5341_s14, 134  ;;  %s8568_s24 = smov (!%p331_p6, %s6988_s24), 89 }
  0x12   : > { %s5340_s26 = sshll.u32 %s309_s25, 2  ;;  %s5343_s6 = sshll.u32 %s8568_s24, 2 }
  0x13   : > { %s7001_s29 = scalar_lea.vmem %s8512_s0, %s5340_s26  ;;  %s8566_s14 = smov (!%p316_p5, %s5341_s14), 134 }
  0x14   : > { %v5581_v2 = vld [vmem:[%s7001_s29] sm:$0xff]   ;;  %v5764_v4 = vld [vmem:[%s7001_s29 + $0x8] sm:$0xff]   ;;  %v5765_v10 = vld [vmem:[%s7001_s29 + $0x10] sm:$0xff]   ;;  %s5342_s15 = sshll.u32 %s8566_s14, 2  ;;  %s8332_s9 = scalar_lea.vmem %s8516_s4, %s5343_s6 }
  0x15   : > { %v5775_v3 = vld [vmem:[%s7001_s29 + $0x60] sm:$0xff]   ;;  %v5582_v5 = vunpack.c.l.bf16 %v5581_v2  ;;  %v5583_v6 = vunpack.c.h.bf16 %v5581_v2  ;;  %v5776_v9 = vld [vmem:[%s7001_s29 + $0x68] sm:$0xff]   ;;  %v5777_v11 = vld [vmem:[%s7001_s29 + $0x70] sm:$0xff]   ;;  %v5586_v12 = vunpack.c.l.bf16 %v5764_v4  ;;  %v5587_v13 = vunpack.c.h.bf16 %v5764_v4  ;;  %s7196_s18 = scalar_lea.vmem %s8513_s1, %s5342_s15  ;;  %s5344_s12 = sshll.u32 %s8568_s24, 3 }
  0x16   : > { %v5630_v7 = vunpack.c.l.bf16 %v5775_v3  ;;  %v5631_v8 = vunpack.c.h.bf16 %v5775_v3  ;;  %v5634_v14 = vunpack.c.l.bf16 %v5776_v9  ;;  %v5635_v15 = vunpack.c.h.bf16 %v5776_v9  ;;  %v5766_v16 = vld [vmem:[%s7001_s29 + $0x18] sm:$0xff]   ;;  %v5767_v18 = vld [vmem:[%s7001_s29 + $0x20] sm:$0xff]   ;;  %v5768_v24 = vld [vmem:[%s7001_s29 + $0x28] sm:$0xff]   ;;  %s8347_s15 = scalar_lea.vmem %s8517_s5, %s5344_s12 }
  0x17   : > { %v5778_v17 = vld [vmem:[%s7001_s29 + $0x78] sm:$0xff]   ;;  %440 = vst.msk [vmem:[#allocation2] sm:$0xff] %vm439_vm1, %v5582_v5  ;;  %441 = vst.msk [vmem:[#allocation2 + $0x8] sm:$0xff] %vm439_vm1, %v5583_v6  ;;  %v5590_v19 = vunpack.c.l.bf16 %v5765_v10  ;;  %v5591_v20 = vunpack.c.h.bf16 %v5765_v10  ;;  %v5638_v21 = vunpack.c.l.bf16 %v5777_v11  ;;  %v5639_v22 = vunpack.c.h.bf16 %v5777_v11  ;;  %v5779_v23 = vld [vmem:[%s7001_s29 + $0x80] sm:$0xff]  }
  0x18   : > { %464 = vst.msk [vmem:[#allocation2 + $0xc0] sm:$0xff] %vm439_vm1, %v5630_v7  ;;  %465 = vst.msk [vmem:[#allocation2 + $0xc8] sm:$0xff] %vm439_vm1, %v5631_v8  ;;  %v5780_v25 = vld [vmem:[%s7001_s29 + $0x88] sm:$0xff]   ;;  %v5594_v26 = vunpack.c.l.bf16 %v5766_v16  ;;  %v5595_v27 = vunpack.c.h.bf16 %v5766_v16  ;;  %v5642_v28 = vunpack.c.l.bf16 %v5778_v17  ;;  %v5643_v29 = vunpack.c.h.bf16 %v5778_v17  ;;  %v5769_v30 = vld [vmem:[%s7001_s29 + $0x30] sm:$0xff]  }
  0x19   : > { %442 = vst.msk [vmem:[#allocation2 + $0x10] sm:$0xff] %vm439_vm1, %v5586_v12  ;;  %443 = vst.msk [vmem:[#allocation2 + $0x18] sm:$0xff] %vm439_vm1, %v5587_v13  ;;  %v5781_v31 = vld [vmem:[%s7001_s29 + $0x90] sm:$0xff]   ;;  %v5598_v32 = vunpack.c.l.bf16 %v5767_v18  ;;  %v5599_v33 = vunpack.c.h.bf16 %v5767_v18  ;;  %v5646_v34 = vunpack.c.l.bf16 %v5779_v23  ;;  %v5647_v35 = vunpack.c.h.bf16 %v5779_v23  ;;  %v5770_v36 = vld [vmem:[%s7001_s29 + $0x38] sm:$0xff]  }
  0x1a   : > { %466 = vst.msk [vmem:[#allocation2 + $0xd0] sm:$0xff] %vm439_vm1, %v5634_v14  ;;  %467 = vst.msk [vmem:[#allocation2 + $0xd8] sm:$0xff] %vm439_vm1, %v5635_v15  ;;  %v5782_v37 = vld [vmem:[%s7001_s29 + $0x98] sm:$0xff]   ;;  %v5602_v38 = vunpack.c.l.bf16 %v5768_v24  ;;  %v5603_v39 = vunpack.c.h.bf16 %v5768_v24  ;;  %v5650_v40 = vunpack.c.l.bf16 %v5780_v25  ;;  %v5651_v41 = vunpack.c.h.bf16 %v5780_v25  ;;  %v5771_v42 = vld [vmem:[%s7001_s29 + $0x40] sm:$0xff]  }
  0x1b   : > { %444 = vst.msk [vmem:[#allocation2 + $0x20] sm:$0xff] %vm439_vm1, %v5590_v19  ;;  %445 = vst.msk [vmem:[#allocation2 + $0x28] sm:$0xff] %vm439_vm1, %v5591_v20  ;;  %v5783_v43 = vld [vmem:[%s7001_s29 + $0xa0] sm:$0xff]   ;;  %v5606_v44 = vunpack.c.l.bf16 %v5769_v30  ;;  %v5607_v45 = vunpack.c.h.bf16 %v5769_v30  ;;  %v5654_v46 = vunpack.c.l.bf16 %v5781_v31  ;;  %v5655_v47 = vunpack.c.h.bf16 %v5781_v31  ;;  %v5772_v48 = vld [vmem:[%s7001_s29 + $0x48] sm:$0xff]  }
  0x1c   : > { %468 = vst.msk [vmem:[#allocation2 + $0xe0] sm:$0xff] %vm439_vm1, %v5638_v21  ;;  %469 = vst.msk [vmem:[#allocation2 + $0xe8] sm:$0xff] %vm439_vm1, %v5639_v22  ;;  %v5784_v49 = vld [vmem:[%s7001_s29 + $0xa8] sm:$0xff]   ;;  %v5610_v50 = vunpack.c.l.bf16 %v5770_v36  ;;  %v5611_v51 = vunpack.c.h.bf16 %v5770_v36  ;;  %v5658_v52 = vunpack.c.l.bf16 %v5782_v37  ;;  %v5659_v53 = vunpack.c.h.bf16 %v5782_v37  ;;  %v5773_v54 = vld [vmem:[%s7001_s29 + $0x50] sm:$0xff]  }
  0x1d   : > { %446 = vst.msk [vmem:[#allocation2 + $0x30] sm:$0xff] %vm439_vm1, %v5594_v26  ;;  %447 = vst.msk [vmem:[#allocation2 + $0x38] sm:$0xff] %vm439_vm1, %v5595_v27  ;;  %v393_v55 = vld [vmem:[%s7001_s29 + $0xb0] sm:$0xf]  ;;  %v5614_v57 = vunpack.c.l.bf16 %v5771_v42  ;;  %v5615_v58 = vunpack.c.h.bf16 %v5771_v42  ;;  %v5662_v59 = vunpack.c.l.bf16 %v5783_v43  ;;  %v5663_v60 = vunpack.c.h.bf16 %v5783_v43  ;;  %v5774_v61 = vld [vmem:[%s7001_s29 + $0x58] sm:$0xff]  }
  0x1e   : > { %470 = vst.msk [vmem:[#allocation2 + $0xf0] sm:$0xff] %vm439_vm1, %v5642_v28  ;;  %471 = vst.msk [vmem:[#allocation2 + $0xf8] sm:$0xff] %vm439_vm1, %v5643_v29  ;;  %v500_v62 = vld [vmem:[#allocation2] sm:$0xff]  ;;  %v501_v63 = vld [vmem:[#allocation2 + $0x8] sm:$0xff]  ;;  %v5618_v2 = vunpack.c.l.bf16 %v5772_v48  ;;  %v5619_v3 = vunpack.c.h.bf16 %v5772_v48  ;;  %v5666_v4 = vunpack.c.l.bf16 %v5784_v49  ;;  %v5667_v5 = vunpack.c.h.bf16 %v5784_v49 }
  0x1f   : > { %448 = vst.msk [vmem:[#allocation2 + $0x40] sm:$0xff] %vm439_vm1, %v5598_v32  ;;  %449 = vst.msk [vmem:[#allocation2 + $0x48] sm:$0xff] %vm439_vm1, %v5599_v33  ;;  %v524_v0 = vld [vmem:[#allocation2 + $0xc0] sm:$0xff]  ;;  %v545_v6 = vpack.c.bf16 %v501_v63, %v500_v62  ;;  %v525_v7 = vld [vmem:[#allocation2 + $0xc8] sm:$0xff]  ;;  %v5622_v9 = vunpack.c.l.bf16 %v5773_v54  ;;  %v5623_v10 = vunpack.c.h.bf16 %v5773_v54  ;;  %v438_v11 = vunpack.c.l.bf16 %v393_v55 }
  0x20   : > { %472 = vst.msk [vmem:[#allocation2 + $0x100] sm:$0xff] %vm439_vm1, %v5646_v34  ;;  %473 = vst.msk [vmem:[#allocation2 + $0x108] sm:$0xff] %vm439_vm1, %v5647_v35  ;;  %v6899_v8 = vld [vmem:[%s8514_s2 + $0x8] sm:$0xff]   ;;  %v557_v12 = vpack.c.bf16 %v525_v7, %v524_v0  ;;  %v5626_v13 = vunpack.c.l.bf16 %v5774_v61  ;;  %v5627_v14 = vunpack.c.h.bf16 %v5774_v61  ;;  %v502_v15 = vld [vmem:[#allocation2 + $0x10] sm:$0xff] }
  0x21   : > { %450 = vst.msk [vmem:[#allocation2 + $0x50] sm:$0xff] %vm439_vm1, %v5602_v38  ;;  %451 = vst.msk [vmem:[#allocation2 + $0x58] sm:$0xff] %vm439_vm1, %v5603_v39  ;;  %6026 = vmatmul.mubr.msk.bf16.vlgmr.msra.gmra.mxu0 %vm439_vm1, %v545_v6  ;;  %v503_v16 = vld [vmem:[#allocation2 + $0x18] sm:$0xff]  ;;  %v526_v17 = vld [vmem:[#allocation2 + $0xd0] sm:$0xff] }
  0x22   : > { %474 = vst.msk [vmem:[#allocation2 + $0x110] sm:$0xff] %vm439_vm1, %v5650_v40  ;;  %475 = vst.msk [vmem:[#allocation2 + $0x118] sm:$0xff] %vm439_vm1, %v5651_v41  ;;  %6074 = vmatmul.mubr.msk.bf16.vlgmr.msra.gmra.mxu1 %vm439_vm1, %v557_v12  ;;  %6212 = vmatpush3.bf16.msra.mxu0 %v6898_v56  ;;  %v527_v18 = vld [vmem:[#allocation2 + $0xd8] sm:$0xff]  ;;  %v546_v19 = vpack.c.bf16 %v503_v16, %v502_v15  ;;  %v504_v21 = vld [vmem:[#allocation2 + $0x20] sm:$0xff] }
  0x23   : > { %452 = vst.msk [vmem:[#allocation2 + $0x60] sm:$0xff] %vm439_vm1, %v5606_v44  ;;  %453 = vst.msk [vmem:[#allocation2 + $0x68] sm:$0xff] %vm439_vm1, %v5607_v45  ;;  %6118 = vmatpush3.bf16.msra.mxu1 %v6899_v8  ;;  %6029 = vmatprep.mubr.msk.bf16.mxu0 %vm6931_vm0, %v8521_v1  ;;  %v558_v20 = vpack.c.bf16 %v527_v18, %v526_v17  ;;  %v505_v22 = vld [vmem:[#allocation2 + $0x28] sm:$0xff]  ;;  %v528_v23 = vld [vmem:[#allocation2 + $0xe0] sm:$0xff] }
  0x24   : > { %476 = vst.msk [vmem:[#allocation2 + $0x120] sm:$0xff] %vm439_vm1, %v5654_v46  ;;  %477 = vst.msk [vmem:[#allocation2 + $0x128] sm:$0xff] %vm439_vm1, %v5655_v47  ;;  %6077 = vmatprep.mubr.msk.bf16.mxu1 %vm6931_vm0, %v8521_v1  ;;  %6305 = vmatprep.subr.bf16.mxu1 %v8521_v1  ;;  %v529_v24 = vld [vmem:[#allocation2 + $0xe8] sm:$0xff]  ;;  %v547_v25 = vpack.c.bf16 %v505_v22, %v504_v21  ;;  %v506_v27 = vld [vmem:[#allocation2 + $0x30] sm:$0xff] }
  0x25   : > { %454 = vst.msk [vmem:[#allocation2 + $0x70] sm:$0xff] %vm439_vm1, %v5610_v50  ;;  %455 = vst.msk [vmem:[#allocation2 + $0x78] sm:$0xff] %vm439_vm1, %v5611_v51  ;;  %6399 = vmatprep.subr.bf16.mxu0 %v8521_v1  ;;  %v559_v26 = vpack.c.bf16 %v529_v24, %v528_v23  ;;  %v507_v28 = vld [vmem:[#allocation2 + $0x38] sm:$0xff]  ;;  %v530_v29 = vld [vmem:[#allocation2 + $0xf0] sm:$0xff] }
  0x26   : > { %478 = vst.msk [vmem:[#allocation2 + $0x130] sm:$0xff] %vm439_vm1, %v5658_v52  ;;  %479 = vst.msk [vmem:[#allocation2 + $0x138] sm:$0xff] %vm439_vm1, %v5659_v53  ;;  %v531_v30 = vld [vmem:[#allocation2 + $0xf8] sm:$0xff]  ;;  %v548_v31 = vpack.c.bf16 %v507_v28, %v506_v27  ;;  %v508_v33 = vld [vmem:[#allocation2 + $0x40] sm:$0xff] }
  0x27   : > { %456 = vst.msk [vmem:[#allocation2 + $0x80] sm:$0xff] %vm439_vm1, %v5614_v57  ;;  %457 = vst.msk [vmem:[#allocation2 + $0x88] sm:$0xff] %vm439_vm1, %v5615_v58  ;;  %v560_v32 = vpack.c.bf16 %v531_v30, %v530_v29  ;;  %v509_v34 = vld [vmem:[#allocation2 + $0x48] sm:$0xff]  ;;  %v532_v35 = vld [vmem:[#allocation2 + $0x100] sm:$0xff] }
  0x28   : > { %480 = vst.msk [vmem:[#allocation2 + $0x140] sm:$0xff] %vm439_vm1, %v5662_v59  ;;  %481 = vst.msk [vmem:[#allocation2 + $0x148] sm:$0xff] %vm439_vm1, %v5663_v60  ;;  %v533_v36 = vld [vmem:[#allocation2 + $0x108] sm:$0xff]  ;;  %v549_v37 = vpack.c.bf16 %v509_v34, %v508_v33  ;;  %v510_v39 = vld [vmem:[#allocation2 + $0x50] sm:$0xff] }
  0x29   : > { %458 = vst.msk [vmem:[#allocation2 + $0x90] sm:$0xff] %vm439_vm1, %v5618_v2  ;;  %459 = vst.msk [vmem:[#allocation2 + $0x98] sm:$0xff] %vm439_vm1, %v5619_v3  ;;  %6030 = vmatmul.mubr.msk.bf16.gmra.mxu0 %vm439_vm1, %v546_v19  ;;  %v561_v38 = vpack.c.bf16 %v533_v36, %v532_v35  ;;  %v511_v40 = vld [vmem:[#allocation2 + $0x58] sm:$0xff]  ;;  %v534_v41 = vld [vmem:[#allocation2 + $0x110] sm:$0xff] }
  0x2a   : > { %482 = vst.msk [vmem:[#allocation2 + $0x150] sm:$0xff] %vm439_vm1, %v5666_v4  ;;  %483 = vst.msk [vmem:[#allocation2 + $0x158] sm:$0xff] %vm439_vm1, %v5667_v5  ;;  %6078 = vmatmul.mubr.msk.bf16.gmra.mxu1 %vm439_vm1, %v558_v20  ;;  %6033 = vmatprep.mubr.msk.bf16.mxu0 %vm6931_vm0, %v8521_v1  ;;  %v535_v42 = vld [vmem:[#allocation2 + $0x118] sm:$0xff]  ;;  %v550_v43 = vpack.c.bf16 %v511_v40, %v510_v39  ;;  %v512_v45 = vld [vmem:[#allocation2 + $0x60] sm:$0xff] }
  0x2b   : > { %460 = vst.msk [vmem:[#allocation2 + $0xa0] sm:$0xff] %vm439_vm1, %v5622_v9  ;;  %461 = vst.msk [vmem:[#allocation2 + $0xa8] sm:$0xff] %vm439_vm1, %v5623_v10  ;;  %6081 = vmatprep.mubr.msk.bf16.mxu1 %vm6931_vm0, %v8521_v1  ;;  %v562_v44 = vpack.c.bf16 %v535_v42, %v534_v41  ;;  %v513_v46 = vld [vmem:[#allocation2 + $0x68] sm:$0xff]  ;;  %v536_v47 = vld [vmem:[#allocation2 + $0x120] sm:$0xff] }
  0x2c   : > { %484 = vst.msk [vmem:[#allocation2 + $0x160] sm:$0xff] %vm439_vm1, %v438_v11  ;;  %462 = vst.msk [vmem:[#allocation2 + $0xb0] sm:$0xff] %vm439_vm1, %v5626_v13  ;;  %v537_v48 = vld [vmem:[#allocation2 + $0x128] sm:$0xff]  ;;  %v551_v49 = vpack.c.bf16 %v513_v46, %v512_v45  ;;  %v514_v51 = vld [vmem:[#allocation2 + $0x70] sm:$0xff] }
  0x2d   : > { %463 = vst.msk [vmem:[#allocation2 + $0xb8] sm:$0xff] %vm439_vm1, %v5627_v14  ;;  %v563_v50 = vpack.c.bf16 %v537_v48, %v536_v47  ;;  %v515_v52 = vld [vmem:[#allocation2 + $0x78] sm:$0xff]  ;;  %v538_v53 = vld [vmem:[#allocation2 + $0x130] sm:$0xff]  ;;  %v906_v13 = vld [vmem:[#allocation2 + $0x1] sm:$0xff] }
  0x2e   : > { %v539_v54 = vld [vmem:[#allocation2 + $0x138] sm:$0xff]  ;;  %v552_v55 = vpack.c.bf16 %v515_v52, %v514_v51  ;;  %v516_v57 = vld [vmem:[#allocation2 + $0x80] sm:$0xff]  ;;  %v517_v58 = vld [vmem:[#allocation2 + $0x88] sm:$0xff] }
  0x2f   : > { %v564_v56 = vpack.c.bf16 %v539_v54, %v538_v53  ;;  %v540_v59 = vld [vmem:[#allocation2 + $0x140] sm:$0xff]  ;;  %v541_v60 = vld [vmem:[#allocation2 + $0x148] sm:$0xff]  ;;  %v553_v61 = vpack.c.bf16 %v517_v58, %v516_v57  ;;  %v6900_v17 = vld [vmem:[%s8514_s2 + $0x18] sm:$0xff]  }
  0x30   : > { %v565_v62 = vpack.c.bf16 %v541_v60, %v540_v59  ;;  %v518_v63 = vld [vmem:[#allocation2 + $0x90] sm:$0xff]  ;;  %v519_v0 = vld [vmem:[#allocation2 + $0x98] sm:$0xff]  ;;  %v1403_v18 = vld [vmem:[#allocation2 + $0x2] sm:$0xff] }
  0x31   : > { %6034 = vmatmul.mubr.msk.bf16.gmra.mxu0 %vm439_vm1, %v547_v25  ;;  %v542_v2 = vld [vmem:[#allocation2 + $0x150] sm:$0xff]  ;;  %v543_v3 = vld [vmem:[#allocation2 + $0x158] sm:$0xff]  ;;  %v554_v4 = vpack.c.bf16 %v519_v0, %v518_v63  ;;  %v6901_v24 = vld [vmem:[%s8514_s2 + $0x20] sm:$0xff]  }
  0x32   : > { %6082 = vmatmul.mubr.msk.bf16.gmra.mxu1 %vm439_vm1, %v559_v26  ;;  %6037 = vmatprep.mubr.msk.bf16.mxu0 %vm6931_vm0, %v8521_v1  ;;  %v566_v5 = vpack.c.bf16 %v543_v3, %v542_v2  ;;  %v520_v6 = vld [vmem:[#allocation2 + $0xa0] sm:$0xff]  ;;  %v521_v7 = vld [vmem:[#allocation2 + $0xa8] sm:$0xff]  ;;  %v908_v20 = vld [vmem:[#allocation2 + $0x11] sm:$0xff] }
  0x33   : > { %6085 = vmatprep.mubr.msk.bf16.mxu1 %vm6931_vm0, %v8521_v1  ;;  %v544_v8 = vld [vmem:[#allocation2 + $0x160] sm:$0xff]  ;;  %v555_v9 = vpack.c.bf16 %v521_v7, %v520_v6  ;;  %v522_v11 = vld [vmem:[#allocation2 + $0xb0] sm:$0xff] }
  0x34   : > { %v567_v10 = vpack.c.bf16 %v544_v8, %v544_v8  ;;  %v523_v12 = vld [vmem:[#allocation2 + $0xb8] sm:$0xff]  ;;  %v907_v14 = vld [vmem:[#allocation2 + $0x9] sm:$0xff]  ;;  %v910_v27 = vld [vmem:[#allocation2 + $0x21] sm:$0xff] }
  0x35   : > { %v556_v15 = vpack.c.bf16 %v523_v12, %v522_v11  ;;  %v951_v16 = vpack.c.bf16 %v907_v14, %v906_v13  ;;  %v1404_v19 = vld [vmem:[#allocation2 + $0xa] sm:$0xff]  ;;  %v909_v21 = vld [vmem:[#allocation2 + $0x19] sm:$0xff]  ;;  %v914_v39 = vld [vmem:[#allocation2 + $0x41] sm:$0xff] }
  0x36   : > { %v1448_v22 = vpack.c.bf16 %v1404_v19, %v1403_v18  ;;  %v952_v23 = vpack.c.bf16 %v909_v21, %v908_v20  ;;  %v1405_v25 = vld [vmem:[#allocation2 + $0x12] sm:$0xff]  ;;  %v1406_v26 = vld [vmem:[#allocation2 + $0x1a] sm:$0xff]  ;;  %v911_v28 = vld [vmem:[#allocation2 + $0x29] sm:$0xff] }
  0x37   : > { %v7165_v29 = vpack.c.bf16 %v1406_v26, %v1405_v25  ;;  %v953_v30 = vpack.c.bf16 %v911_v28, %v910_v27  ;;  %v912_v33 = vld [vmem:[#allocation2 + $0x31] sm:$0xff]  ;;  %v913_v34 = vld [vmem:[#allocation2 + $0x39] sm:$0xff]  ;;  %v915_v40 = vld [vmem:[#allocation2 + $0x49] sm:$0xff] }
  0x38   : > { %v954_v36 = vpack.c.bf16 %v913_v34, %v912_v33  ;;  %v955_v42 = vpack.c.bf16 %v915_v40, %v914_v39  ;;  %v916_v45 = vld [vmem:[#allocation2 + $0x51] sm:$0xff]  ;;  %v917_v46 = vld [vmem:[#allocation2 + $0x59] sm:$0xff]  ;;  %v918_v53 = vld [vmem:[#allocation2 + $0x61] sm:$0xff] }
  0x39   : > { %6038 = vmatmul.mubr.msk.bf16.gmra.mxu0 %vm439_vm1, %v548_v31  ;;  %v1407_v31 = vld [vmem:[#allocation2 + $0x22] sm:$0xff]  ;;  %v1413_v51 = vld [vmem:[#allocation2 + $0x52] sm:$0xff]  ;;  %v1414_v52 = vld [vmem:[#allocation2 + $0x5a] sm:$0xff] }
  0x3a   : > { %6086 = vmatmul.mubr.msk.bf16.gmra.mxu1 %vm439_vm1, %v560_v32  ;;  %6041 = vmatprep.mubr.msk.bf16.mxu0 %vm6931_vm0, %v8521_v1  ;;  %v1408_v32 = vld [vmem:[#allocation2 + $0x2a] sm:$0xff]  ;;  %v7201_v48 = vld [vmem:[%s7196_s18] sm:$0xff]   ;;  %v1417_v63 = vld [vmem:[#allocation2 + $0x72] sm:$0xff] }
  0x3b   : > { %6089 = vmatprep.mubr.msk.bf16.mxu1 %vm6931_vm0, %v8521_v1  ;;  %v7174_v35 = vpack.c.bf16 %v1408_v32, %v1407_v31  ;;  %v919_v54 = vld [vmem:[#allocation2 + $0x69] sm:$0xff]  ;;  %v920_v59 = vld [vmem:[#allocation2 + $0x71] sm:$0xff]  ;;  %v921_v60 = vld [vmem:[#allocation2 + $0x79] sm:$0xff] }
  0x3c   : > { %v1415_v57 = vld [vmem:[#allocation2 + $0x62] sm:$0xff]  ;;  %v1416_v58 = vld [vmem:[#allocation2 + $0x6a] sm:$0xff]  ;;  %v1418_v0 = vld [vmem:[#allocation2 + $0x7a] sm:$0xff] }
  0x3d   : > { %v922_v2 = vld [vmem:[#allocation2 + $0x81] sm:$0xff]  ;;  %v923_v3 = vld [vmem:[#allocation2 + $0x89] sm:$0xff]  ;;  %v924_v8 = vld [vmem:[#allocation2 + $0x91] sm:$0xff] }
  0x3e   : > { %v1419_v6 = vld [vmem:[#allocation2 + $0x82] sm:$0xff]  ;;  %v1420_v7 = vld [vmem:[#allocation2 + $0x8a] sm:$0xff]  ;;  %v1421_v12 = vld [vmem:[#allocation2 + $0x92] sm:$0xff] }
  0x3f   : > { %v1422_v13 = vld [vmem:[#allocation2 + $0x9a] sm:$0xff]  ;;  %v1423_v18 = vld [vmem:[#allocation2 + $0xa2] sm:$0xff]  ;;  %v1424_v19 = vld [vmem:[#allocation2 + $0xaa] sm:$0xff] }
  0x40   : > { %v926_v14 = vld [vmem:[#allocation2 + $0xa1] sm:$0xff]  ;;  %v928_v20 = vld [vmem:[#allocation2 + $0xb1] sm:$0xff]  ;;  %v929_v21 = vld [vmem:[#allocation2 + $0xb9] sm:$0xff] }
  0x41   : > { %6042 = vmatmul.mubr.msk.bf16.gmra.mxu0 %vm439_vm1, %v549_v37  ;;  %v1409_v37 = vld [vmem:[#allocation2 + $0x32] sm:$0xff]  ;;  %v1426_v25 = vld [vmem:[#allocation2 + $0xba] sm:$0xff]  ;;  %v931_v27 = vld [vmem:[#allocation2 + $0xc9] sm:$0xff] }
  0x42   : > { %6090 = vmatmul.mubr.msk.bf16.gmra.mxu1 %vm439_vm1, %v561_v38  ;;  %6045 = vmatprep.mubr.msk.bf16.mxu0 %vm6931_vm0, %v8521_v1  ;;  %v1410_v38 = vld [vmem:[#allocation2 + $0x3a] sm:$0xff]  ;;  %v1427_v31 = vld [vmem:[#allocation2 + $0xc2] sm:$0xff]  ;;  %v1428_v32 = vld [vmem:[#allocation2 + $0xca] sm:$0xff] }
  0x43   : > { %6093 = vmatprep.mubr.msk.bf16.mxu1 %vm6931_vm0, %v8521_v1  ;;  %v7184_v41 = vpack.c.bf16 %v1410_v38, %v1409_v37  ;;  %v930_v26 = vld [vmem:[#allocation2 + $0xc1] sm:$0xff]  ;;  %v932_v33 = vld [vmem:[#allocation2 + $0xd1] sm:$0xff]  ;;  %v933_v34 = vld [vmem:[#allocation2 + $0xd9] sm:$0xff] }
  0x44   : > { %v964_v37 = vpack.c.bf16 %v933_v34, %v932_v33  ;;  %v1429_v40 = vld [vmem:[#allocation2 + $0xd2] sm:$0xff] }
  0x45   : > { %v940_v33 = vld [vmem:[#allocation2 + $0x111] sm:$0xff]  ;;  %v941_v34 = vld [vmem:[#allocation2 + $0x119] sm:$0xff] }
  0x49   : > { %6046 = vmatmul.mubr.msk.bf16.gmra.mxu0 %vm439_vm1, %v550_v43  ;;  %v1411_v43 = vld [vmem:[#allocation2 + $0x42] sm:$0xff] }
  0x4a   : > { %6094 = vmatmul.mubr.msk.bf16.gmra.mxu1 %vm439_vm1, %v562_v44  ;;  %6049 = vmatprep.mubr.msk.bf16.mxu0 %vm6931_vm0, %v8521_v1  ;;  %v1412_v44 = vld [vmem:[#allocation2 + $0x4a] sm:$0xff] }
  0x4b   : > { %6097 = vmatprep.mubr.msk.bf16.mxu1 %vm6931_vm0, %v8521_v1  ;;  %v7198_v47 = vpack.c.bf16 %v1412_v44, %v1411_v43  ;;  %v934_v44 = vld [vmem:[#allocation2 + $0xe1] sm:$0xff] }
  0x51   : > { %6050 = vmatmul.mubr.msk.bf16.gmra.mxu0 %vm439_vm1, %v551_v49  ;;  %v956_v49 = vpack.c.bf16 %v917_v46, %v916_v45  ;;  %v935_v45 = vld [vmem:[#allocation2 + $0xe9] sm:$0xff] }
  0x52   : > { %6098 = vmatmul.mubr.msk.bf16.gmra.mxu1 %vm439_vm1, %v563_v50  ;;  %6053 = vmatprep.mubr.msk.bf16.mxu0 %vm6931_vm0, %v8521_v1  ;;  %v5670_v50 = vunpack.c.l.bf16 %v7201_v48 }
  0x53   : > { %6101 = vmatprep.mubr.msk.bf16.mxu1 %vm6931_vm0, %v8521_v1 }
  0x54   : > { %495 = vst.msk [vmem:[#allocation2 + $0x168] sm:$0xff] %vm439_vm1, %v5670_v50 }
  0x59   : > { %6054 = vmatmul.mubr.msk.bf16.gmra.mxu0 %vm439_vm1, %v552_v55  ;;  %v7212_v55 = vpack.c.bf16 %v1414_v52, %v1413_v51  ;;  %v965_v52 = vpack.c.bf16 %v935_v45, %v934_v44  ;;  %v968_v44 = vpack.c.bf16 %v941_v34, %v940_v33 }
  0x5a   : > { %6102 = vmatmul.mubr.msk.bf16.gmra.mxu1 %vm439_vm1, %v564_v56  ;;  %6057 = vmatprep.mubr.msk.bf16.mxu0 %vm6931_vm0, %v8521_v1  ;;  %v957_v56 = vpack.c.bf16 %v919_v54, %v918_v53 }
  0x5b   : > { %6105 = vmatprep.mubr.msk.bf16.mxu1 %vm6931_vm0, %v8521_v1 }
  0x61   : > { %6058 = vmatmul.mubr.msk.bf16.gmra.mxu0 %vm439_vm1, %v553_v61  ;;  %v7221_v61 = vpack.c.bf16 %v1416_v58, %v1415_v57  ;;  %v1431_v58 = vld [vmem:[#allocation2 + $0xe2] sm:$0xff] }
  0x62   : > { %6106 = vmatmul.mubr.msk.bf16.gmra.mxu1 %vm439_vm1, %v565_v62  ;;  %6061 = vmatprep.mubr.msk.bf16.mxu0 %vm6931_vm0, %v8521_v1  ;;  %v958_v62 = vpack.c.bf16 %v921_v60, %v920_v59  ;;  %v1432_v59 = vld [vmem:[#allocation2 + $0xea] sm:$0xff] }
  0x63   : > { %6109 = vmatprep.mubr.msk.bf16.mxu1 %vm6931_vm0, %v8521_v1 }
  0x69   : > { %6062 = vmatmul.mubr.msk.bf16.gmra.mxu0 %vm439_vm1, %v554_v4  ;;  %v7230_v4 = vpack.c.bf16 %v1418_v0, %v1417_v63  ;;  %v937_v63 = vld [vmem:[#allocation2 + $0xf9] sm:$0xff] }
  0x6a   : > { %6110 = vmatmul.mubr.msk.bf16.gmra.mxu1 %vm439_vm1, %v566_v5  ;;  %6065 = vmatprep.mubr.msk.bf16.mxu0 %vm6931_vm0, %v8521_v1  ;;  %v959_v5 = vpack.c.bf16 %v923_v3, %v922_v2  ;;  %v7307_v3 = vpack.c.bf16 %v1432_v59, %v1431_v58  ;;  %v1438_v58 = vld [vmem:[#allocation2 + $0x11a] sm:$0xff] }
  0x6b   : > { %6113 = vmatprep.mubr.msk.bf16.mxu1 %vm6931_vm0, %v8521_v1 }
  0x71   : > { %6066 = vmatmul.mubr.msk.bf16.gmra.mxu0 %vm439_vm1, %v555_v9  ;;  %v925_v9 = vld [vmem:[#allocation2 + $0x99] sm:$0xff] }
  0x72   : > { %6114 = vmatmul.mubr.msk.bf16.gmra.mxu1 %vm439_vm1, %v567_v10  ;;  %6069 = vmatprep.mubr.msk.bf16.mxu0 %vm6931_vm0, %v8521_v1  ;;  %v7239_v10 = vpack.c.bf16 %v1420_v7, %v1419_v6  ;;  %v960_v11 = vpack.c.bf16 %v925_v9, %v924_v8 }
  0x73   : > { %6119 = vmatprep.mubr.msk.bf16.mxu1 %vm6931_vm0, %v8521_v1 }
  0x79   : > { %6070 = vmatmul.mubr.msk.bf16.gmra.mxu0 %vm439_vm1, %v556_v15  ;;  %v927_v15 = vld [vmem:[#allocation2 + $0xa9] sm:$0xff] }
  0x7a   : > { %6120 = vmatmul.mubr.msk.bf16.vlgmr.msra.gmra.mxu1 %vm439_vm1, %v951_v16  ;;  %6213 = vmatprep.mubr.msk.bf16.mxu0 %vm6931_vm0, %v8521_v1  ;;  %v7248_v16 = vpack.c.bf16 %v1422_v13, %v1421_v12  ;;  %v1433_v12 = vld [vmem:[#allocation2 + $0xf2] sm:$0xff]  ;;  %v1434_v13 = vld [vmem:[#allocation2 + $0xfa] sm:$0xff] }
  0x7b   : > { %6306 = vmatpush3.bf16.msra.mxu1 %v6900_v17  ;;  %6123 = vmatprep.mubr.msk.bf16.mxu1 %vm6931_vm0, %v8521_v1  ;;  %v961_v17 = vpack.c.bf16 %v927_v15, %v926_v14  ;;  %v938_v15 = vld [vmem:[#allocation2 + $0x101] sm:$0xff] }
  0x7c   : > { %6493 = vmatprep.subr.bf16.mxu1 %v8521_v1 }
  0x81   : > { %6214 = vmatmul.mubr.msk.bf16.vlgmr.msra.gmra.mxu0 %vm439_vm1, %v1448_v22  ;;  %v7257_v22 = vpack.c.bf16 %v1424_v19, %v1423_v18 }
  0x82   : > { %6124 = vmatmul.mubr.msk.bf16.gmra.mxu1 %vm439_vm1, %v952_v23  ;;  %6400 = vmatpush3.bf16.msra.mxu0 %v6901_v24  ;;  %v962_v23 = vpack.c.bf16 %v929_v21, %v928_v20  ;;  %v1425_v24 = vld [vmem:[#allocation2 + $0xb2] sm:$0xff]  ;;  %v7324_v20 = vpack.c.bf16 %v1434_v13, %v1433_v12 }
  0x83   : > { %6127 = vmatprep.mubr.msk.bf16.mxu1 %vm6931_vm0, %v8521_v1  ;;  %6217 = vmatprep.mubr.msk.bf16.mxu0 %vm6931_vm0, %v8521_v1  ;;  %v7266_v28 = vpack.c.bf16 %v1426_v25, %v1425_v24 }
  0x84   : > { %6587 = vmatprep.subr.bf16.mxu0 %v8521_v1 }
  0x89   : > { %6218 = vmatmul.mubr.msk.bf16.gmra.mxu0 %vm439_vm1, %v7165_v29 }
  0x8a   : > { %6128 = vmatmul.mubr.msk.bf16.gmra.mxu1 %vm439_vm1, %v953_v30  ;;  %6221 = vmatprep.mubr.msk.bf16.mxu0 %vm6931_vm0, %v8521_v1  ;;  %v963_v30 = vpack.c.bf16 %v931_v27, %v930_v26 }
  0x8b   : > { %6131 = vmatprep.mubr.msk.bf16.mxu1 %vm6931_vm0, %v8521_v1 }
  0x91   : > { %6222 = vmatmul.mubr.msk.bf16.gmra.mxu0 %vm439_vm1, %v7174_v35 }
  0x92   : > { %6132 = vmatmul.mubr.msk.bf16.gmra.mxu1 %vm439_vm1, %v954_v36  ;;  %6225 = vmatprep.mubr.msk.bf16.mxu0 %vm6931_vm0, %v8521_v1  ;;  %v7275_v36 = vpack.c.bf16 %v1428_v32, %v1427_v31  ;;  %v1436_v31 = vld [vmem:[#allocation2 + $0x10a] sm:$0xff] }
  0x93   : > { %6135 = vmatprep.mubr.msk.bf16.mxu1 %vm6931_vm0, %v8521_v1 }
  0x99   : > { %6226 = vmatmul.mubr.msk.bf16.gmra.mxu0 %vm439_vm1, %v7184_v41 }
  0x9a   : > { %6136 = vmatmul.mubr.msk.bf16.gmra.mxu1 %vm439_vm1, %v955_v42  ;;  %6229 = vmatprep.mubr.msk.bf16.mxu0 %vm6931_vm0, %v8521_v1  ;;  %v1430_v42 = vld [vmem:[#allocation2 + $0xda] sm:$0xff] }
  0x9b   : > { %6139 = vmatprep.mubr.msk.bf16.mxu1 %vm6931_vm0, %v8521_v1  ;;  %v7290_v50 = vpack.c.bf16 %v1430_v42, %v1429_v40 }
  0xa1   : > { %6230 = vmatmul.mubr.msk.bf16.gmra.mxu0 %vm439_vm1, %v7198_v47 }
  0xa2   : > { %6140 = vmatmul.mubr.msk.bf16.gmra.mxu1 %vm439_vm1, %v956_v49  ;;  %6233 = vmatprep.mubr.msk.bf16.mxu0 %vm6931_vm0, %v8521_v1 }
  0xa3   : > { %6143 = vmatprep.mubr.msk.bf16.mxu1 %vm6931_vm0, %v8521_v1 }
  0xa9   : > { %6234 = vmatmul.mubr.msk.bf16.gmra.mxu0 %vm439_vm1, %v7212_v55 }
  0xaa   : > { %6144 = vmatmul.mubr.msk.bf16.gmra.mxu1 %vm439_vm1, %v957_v56  ;;  %6237 = vmatprep.mubr.msk.bf16.mxu0 %vm6931_vm0, %v8521_v1 }
  0xab   : > { %6147 = vmatprep.mubr.msk.bf16.mxu1 %vm6931_vm0, %v8521_v1 }
  0xb1   : > { %6238 = vmatmul.mubr.msk.bf16.gmra.mxu0 %vm439_vm1, %v7221_v61 }
  0xb2   : > { %6148 = vmatmul.mubr.msk.bf16.gmra.mxu1 %vm439_vm1, %v958_v62  ;;  %6241 = vmatprep.mubr.msk.bf16.mxu0 %vm6931_vm0, %v8521_v1  ;;  %v936_v62 = vld [vmem:[#allocation2 + $0xf1] sm:$0xff] }
  0xb3   : > { %6151 = vmatprep.mubr.msk.bf16.mxu1 %vm6931_vm0, %v8521_v1  ;;  %v966_v6 = vpack.c.bf16 %v937_v63, %v936_v62  ;;  %v943_v62 = vld [vmem:[#allocation2 + $0x129] sm:$0xff] }
  0xb9   : > { %6242 = vmatmul.mubr.msk.bf16.gmra.mxu0 %vm439_vm1, %v7230_v4 }
  0xba   : > { %6152 = vmatmul.mubr.msk.bf16.gmra.mxu1 %vm439_vm1, %v959_v5  ;;  %6245 = vmatprep.mubr.msk.bf16.mxu0 %vm6931_vm0, %v8521_v1 }
  0xbb   : > { %6155 = vmatprep.mubr.msk.bf16.mxu1 %vm6931_vm0, %v8521_v1 }
  0xc1   : > { %6246 = vmatmul.mubr.msk.bf16.gmra.mxu0 %vm439_vm1, %v7239_v10 }
  0xc2   : > { %6156 = vmatmul.mubr.msk.bf16.gmra.mxu1 %vm439_vm1, %v960_v11  ;;  %6249 = vmatprep.mubr.msk.bf16.mxu0 %vm6931_vm0, %v8521_v1 }
  0xc3   : > { %6159 = vmatprep.mubr.msk.bf16.mxu1 %vm6931_vm0, %v8521_v1 }
  0xc9   : > { %6250 = vmatmul.mubr.msk.bf16.gmra.mxu0 %vm439_vm1, %v7248_v16 }
  0xca   : > { %6160 = vmatmul.mubr.msk.bf16.gmra.mxu1 %vm439_vm1, %v961_v17  ;;  %6253 = vmatprep.mubr.msk.bf16.mxu0 %vm6931_vm0, %v8521_v1  ;;  %v939_v17 = vld [vmem:[#allocation2 + $0x109] sm:$0xff] }
  0xcb   : > { %6163 = vmatprep.mubr.msk.bf16.mxu1 %vm6931_vm0, %v8521_v1 }
  0xd1   : > { %6254 = vmatmul.mubr.msk.bf16.gmra.mxu0 %vm439_vm1, %v7257_v22 }
  0xd2   : > { %6164 = vmatmul.mubr.msk.bf16.gmra.mxu1 %vm439_vm1, %v962_v23  ;;  %6257 = vmatprep.mubr.msk.bf16.mxu0 %vm6931_vm0, %v8521_v1  ;;  %v967_v23 = vpack.c.bf16 %v939_v17, %v938_v15  ;;  %v1439_v17 = vld [vmem:[#allocation2 + $0x122] sm:$0xff] }
  0xd3   : > { %6167 = vmatprep.mubr.msk.bf16.mxu1 %vm6931_vm0, %v8521_v1 }
  0xd9   : > { %6258 = vmatmul.mubr.msk.bf16.gmra.mxu0 %vm439_vm1, %v7266_v28 }
  0xda   : > { %6168 = vmatmul.mubr.msk.bf16.gmra.mxu1 %vm439_vm1, %v963_v30  ;;  %6261 = vmatprep.mubr.msk.bf16.mxu0 %vm6931_vm0, %v8521_v1  ;;  %v1435_v30 = vld [vmem:[#allocation2 + $0x102] sm:$0xff] }
  0xdb   : > { %6171 = vmatprep.mubr.msk.bf16.mxu1 %vm6931_vm0, %v8521_v1  ;;  %v7341_v42 = vpack.c.bf16 %v1436_v31, %v1435_v30 }
  0xe1   : > { %v7277_v38 = vpop.f32.mrf.mxu0  ;;  %6262 = vmatmul.mubr.msk.bf16.gmra.mxu0 %vm439_vm1, %v7275_v36 }
  0xe2   : > { %v7281_v39 = vpop.f32.mrf.mxu1  ;;  %6172 = vmatmul.mubr.msk.bf16.gmra.mxu1 %vm439_vm1, %v964_v37  ;;  %6265 = vmatprep.mubr.msk.bf16.mxu0 %vm6931_vm0, %v8521_v1 }
  0xe3   : > { %v6027_v43 = vpop.f32.mrf.mxu0  ;;  %6175 = vmatprep.mubr.msk.bf16.mxu1 %vm6931_vm0, %v8521_v1 }
  0xe4   : > { %v6075_v46 = vpop.f32.mrf.mxu1 }
  0xe5   : > { %v7288_v49 = vpop.f32.mrf.mxu0 }
  0xe6   : > { %v7292_v51 = vpop.f32.mrf.mxu1 }
  0xe7   : > { %v6028_v53 = vpop.f32.mrf.mxu0 }
  0xe8   : > { %v6076_v54 = vpop.f32.mrf.mxu1 }
  0xe9   : > { %v7294_v56 = vpop.f32.mrf.mxu0  ;;  %6266 = vmatmul.mubr.msk.bf16.gmra.mxu0 %vm439_vm1, %v7290_v50  ;;  %v1437_v54 = vld [vmem:[#allocation2 + $0x112] sm:$0xff] }
  0xea   : > { %v7298_v57 = vpop.f32.mrf.mxu1  ;;  %6176 = vmatmul.mubr.msk.bf16.gmra.mxu1 %vm439_vm1, %v965_v52  ;;  %6269 = vmatprep.mubr.msk.bf16.mxu0 %vm6931_vm0, %v8521_v1 }
  0xeb   : > { %v6031_v60 = vpop.f32.mrf.mxu0  ;;  %6179 = vmatprep.mubr.msk.bf16.mxu1 %vm6931_vm0, %v8521_v1 }
  0xec   : > { %v6079_v0 = vpop.f32.mrf.mxu1  ;;  %v942_v60 = vld [vmem:[#allocation2 + $0x121] sm:$0xff] }
  0xed   : > { %v7305_v2 = vpop.f32.mrf.mxu0 }
  0xee   : > { %v7309_v5 = vpop.f32.mrf.mxu1 }
  0xef   : > { %v6032_v7 = vpop.f32.mrf.mxu0 }
  0xf0   : > { %v6080_v8 = vpop.f32.mrf.mxu1 }
  0xf1   : > { %v7311_v9 = vpop.f32.mrf.mxu0  ;;  %6270 = vmatmul.mubr.msk.bf16.gmra.mxu0 %vm439_vm1, %v7307_v3  ;;  %v969_v8 = vpack.c.bf16 %v943_v62, %v942_v60  ;;  %v946_v60 = vld [vmem:[#allocation2 + $0x141] sm:$0xff]  ;;  %v947_v62 = vld [vmem:[#allocation2 + $0x149] sm:$0xff] }
  0xf2   : > { %v7315_v11 = vpop.f32.mrf.mxu1  ;;  %6180 = vmatmul.mubr.msk.bf16.gmra.mxu1 %vm439_vm1, %v966_v6  ;;  %6273 = vmatprep.mubr.msk.bf16.mxu0 %vm6931_vm0, %v8521_v1  ;;  %v7358_v6 = vpack.c.bf16 %v1438_v58, %v1437_v54  ;;  %v1441_v54 = vld [vmem:[#allocation2 + $0x132] sm:$0xff]  ;;  %v1442_v58 = vld [vmem:[#allocation2 + $0x13a] sm:$0xff] }
  0xf3   : > { %v6035_v14 = vpop.f32.mrf.mxu0  ;;  %6183 = vmatprep.mubr.msk.bf16.mxu1 %vm6931_vm0, %v8521_v1 }
  0xf4   : > { %v6083_v18 = vpop.f32.mrf.mxu1 }
  0xf5   : > { %v7322_v19 = vpop.f32.mrf.mxu0  ;;  %v1440_v18 = vld [vmem:[#allocation2 + $0x12a] sm:$0xff] }
  0xf6   : > { %v7326_v21 = vpop.f32.mrf.mxu1 }
  0xf7   : > { %v6036_v24 = vpop.f32.mrf.mxu0 }
  0xf8   : > { %v6084_v25 = vpop.f32.mrf.mxu1  ;;  %v944_v24 = vld [vmem:[#allocation2 + $0x131] sm:$0xff] }
  0xf9   : > { %v7328_v26 = vpop.f32.mrf.mxu0  ;;  %6274 = vmatmul.mubr.msk.bf16.gmra.mxu0 %vm439_vm1, %v7324_v20  ;;  %v945_v25 = vld [vmem:[#allocation2 + $0x139] sm:$0xff] }
  0xfa   : > { %v7332_v27 = vpop.f32.mrf.mxu1  ;;  %6184 = vmatmul.mubr.msk.bf16.gmra.mxu1 %vm439_vm1, %v967_v23  ;;  %6277 = vmatprep.mubr.msk.bf16.mxu0 %vm6931_vm0, %v8521_v1  ;;  %v970_v34 = vpack.c.bf16 %v945_v25, %v944_v24 }
  0xfb   : > { %v6039_v32 = vpop.f32.mrf.mxu0  ;;  %6187 = vmatprep.mubr.msk.bf16.mxu1 %vm6931_vm0, %v8521_v1 }
  0xfc   : > { %v6087_v37 = vpop.f32.mrf.mxu1  ;;  %v7375_v32 = vpack.c.bf16 %v1440_v18, %v1439_v17  ;;  %v971_v17 = vpack.c.bf16 %v947_v62, %v946_v60 }
  0xfd   : > { %v7339_v40 = vpop.f32.mrf.mxu0 }
  0xfe   : > { %v7343_v43 = vpop.f32.mrf.mxu1 }
  0xff   : > { %v6040_v45 = vpop.f32.mrf.mxu0 }
 0x100   : > { %v6088_v46 = vpop.f32.mrf.mxu1 }
 0x101   : > { %v7345_v52 = vpop.f32.mrf.mxu0  ;;  %6278 = vmatmul.mubr.msk.bf16.gmra.mxu0 %vm439_vm1, %v7341_v42 }
 0x102   : > { %v7349_v53 = vpop.f32.mrf.mxu1  ;;  %6188 = vmatmul.mubr.msk.bf16.gmra.mxu1 %vm439_vm1, %v968_v44  ;;  %6281 = vmatprep.mubr.msk.bf16.mxu0 %vm6931_vm0, %v8521_v1 }
 0x103   : > { %8524 = vst [vmem:[#allocation4_spill] sm:$0xff] %v7349_v53  ;;  %v6043_v59 = vpop.f32.mrf.mxu0  ;;  %6191 = vmatprep.mubr.msk.bf16.mxu1 %vm6931_vm0, %v8521_v1 }
 0x104   : > { %v6091_v63 = vpop.f32.mrf.mxu1 }
 0x105   : > { %v7356_v0 = vpop.f32.mrf.mxu0 }
 0x106   : > { %v7360_v7 = vpop.f32.mrf.mxu1 }
 0x107   : > { %8525 = vst [vmem:[#allocation5_spill] sm:$0xff] %v7360_v7  ;;  %v6044_v12 = vpop.f32.mrf.mxu0 }
 0x108   : > { %v6092_v13 = vpop.f32.mrf.mxu1  ;;  %v7392_v12 = vpack.c.bf16 %v1442_v58, %v1441_v54  ;;  %v949_v54 = vld [vmem:[#allocation2 + $0x159] sm:$0xff] }
 0x109   : > { %v7362_v14 = vpop.f32.mrf.mxu0  ;;  %6282 = vmatmul.mubr.msk.bf16.gmra.mxu0 %vm439_vm1, %v7358_v6 }
 0x10a   : > { %v7366_v15 = vpop.f32.mrf.mxu1  ;;  %6192 = vmatmul.mubr.msk.bf16.gmra.mxu1 %vm439_vm1, %v969_v8  ;;  %6285 = vmatprep.mubr.msk.bf16.mxu0 %vm6931_vm0, %v8521_v1  ;;  %8529 = vst [vmem:[#allocation9_spill] sm:$0xff] %v7392_v12 }
 0x10b   : > { %8526 = vst [vmem:[#allocation6_spill] sm:$0xff] %v7366_v15  ;;  %v6047_v23 = vpop.f32.mrf.mxu0  ;;  %6195 = vmatprep.mubr.msk.bf16.mxu1 %vm6931_vm0, %v8521_v1 }
 0x10c   : > { %v6095_v30 = vpop.f32.mrf.mxu1 }
 0x10d   : > { %v7373_v31 = vpop.f32.mrf.mxu0  ;;  %v1443_v30 = vld [vmem:[#allocation2 + $0x142] sm:$0xff] }
 0x10e   : > { %v7377_v33 = vpop.f32.mrf.mxu1 }
 0x10f   : > { %8527 = vst [vmem:[#allocation7_spill] sm:$0xff] %v7377_v33  ;;  %v6048_v37 = vpop.f32.mrf.mxu0 }
 0x110   : > { %v6096_v44 = vpop.f32.mrf.mxu1 }
 0x111   : > { %v7379_v45 = vpop.f32.mrf.mxu0  ;;  %6286 = vmatmul.mubr.msk.bf16.gmra.mxu0 %vm439_vm1, %v7375_v32  ;;  %v948_v44 = vld [vmem:[#allocation2 + $0x151] sm:$0xff] }
 0x112   : > { %v7383_v46 = vpop.f32.mrf.mxu1  ;;  %6196 = vmatmul.mubr.msk.bf16.gmra.mxu1 %vm439_vm1, %v970_v34  ;;  %6289 = vmatprep.mubr.msk.bf16.mxu0 %vm6931_vm0, %v8521_v1  ;;  %v1444_v34 = vld [vmem:[#allocation2 + $0x14a] sm:$0xff] }
 0x113   : > { %8528 = vst [vmem:[#allocation8_spill] sm:$0xff] %v7383_v46  ;;  %v6051_v59 = vpop.f32.mrf.mxu0  ;;  %6199 = vmatprep.mubr.msk.bf16.mxu1 %vm6931_vm0, %v8521_v1  ;;  %v7409_v60 = vpack.c.bf16 %v1444_v34, %v1443_v30  ;;  %v1446_v30 = vld [vmem:[#allocation2 + $0x15a] sm:$0xff] }
 0x114   : > { %v6099_v63 = vpop.f32.mrf.mxu1 }
 0x115   : > { %v7390_v8 = vpop.f32.mrf.mxu0  ;;  %8532 = vst [vmem:[#allocation12_spill] sm:$0xff] %v7409_v60  ;;  %v972_v63 = vpack.c.bf16 %v949_v54, %v948_v44  ;;  %v950_v44 = vld [vmem:[#allocation2 + $0x161] sm:$0xff] }
 0x116   : > { %v7394_v13 = vpop.f32.mrf.mxu1 }
 0x117   : > { %8530 = vst [vmem:[#allocation10_spill] sm:$0xff] %v7394_v13  ;;  %v6052_v18 = vpop.f32.mrf.mxu0 }
 0x118   : > { %v6100_v23 = vpop.f32.mrf.mxu1 }
 0x119   : > { %v7396_v24 = vpop.f32.mrf.mxu0  ;;  %6290 = vmatmul.mubr.msk.bf16.gmra.mxu0 %vm439_vm1, %v7392_v12  ;;  %v2402_v12 = vld [vmem:[#allocation2 + $0x3b] sm:$0xff] }
 0x11a   : > { %v7400_v25 = vpop.f32.mrf.mxu1  ;;  %6200 = vmatmul.mubr.msk.bf16.gmra.mxu1 %vm439_vm1, %v971_v17  ;;  %6293 = vmatprep.mubr.msk.bf16.mxu0 %vm6931_vm0, %v8521_v1 }
 0x11b   : > { %8531 = vst [vmem:[#allocation11_spill] sm:$0xff] %v7400_v25  ;;  %v6055_v37 = vpop.f32.mrf.mxu0  ;;  %6203 = vmatprep.mubr.msk.bf16.mxu1 %vm6931_vm0, %v8521_v1 }
 0x11c   : > { %v6103_v58 = vpop.f32.mrf.mxu1 }
 0x11d   : > { %v7407_v59 = vpop.f32.mrf.mxu0  ;;  %v1445_v58 = vld [vmem:[#allocation2 + $0x152] sm:$0xff] }
 0x11e   : > { %v7411_v62 = vpop.f32.mrf.mxu1 }
 0x11f   : > { %8533 = vst [vmem:[#allocation13_spill] sm:$0xff] %v7411_v62  ;;  %v6056_v17 = vpop.f32.mrf.mxu0 }
 0x120   : > { %v6104_v18 = vpop.f32.mrf.mxu1 }
 0x121   : > { %v7413_v23 = vpop.f32.mrf.mxu0  ;;  %6294 = vmatmul.mubr.msk.bf16.gmra.mxu0 %vm439_vm1, %v7409_v60  ;;  %v7426_v18 = vpack.c.bf16 %v1446_v30, %v1445_v58 }
 0x122   : > { %v7417_v37 = vpop.f32.mrf.mxu1  ;;  %6204 = vmatmul.mubr.msk.bf16.gmra.mxu1 %vm439_vm1, %v972_v63  ;;  %6297 = vmatprep.mubr.msk.bf16.mxu0 %vm6931_vm0, %v8521_v1 }
 0x123   : > { %8534 = vst [vmem:[#allocation14_spill] sm:$0xff] %v7417_v37  ;;  %v6059_v34 = vpop.f32.mrf.mxu0  ;;  %6207 = vmatprep.mubr.msk.bf16.mxu1 %vm6931_vm0, %v8521_v1  ;;  %8535 = vst [vmem:[#allocation15_spill] sm:$0xff] %v7426_v18  ;;  %v973_v37 = vpack.c.bf16 %v950_v44, %v950_v44 }
 0x124   : > { %v6107_v54 = vpop.f32.mrf.mxu1 }
 0x125   : > { %v7424_v17 = vpop.f32.mrf.mxu0  ;;  %v7439_v54 = vld [vmem:[#allocation2 + $0x162] sm:$0xff] }
 0x126   : > { %v7428_v62 = vpop.f32.mrf.mxu1  ;;  %8538 = vst [vmem:[#allocation18_spill] sm:$0xff] %v7439_v54  ;;  %v1470_v44 = vpack.c.bf16 %v7439_v54, %v7439_v54 }
 0x127   : > { %8536 = vst [vmem:[#allocation16_spill] sm:$0xff] %v7428_v62  ;;  %v6060_v25 = vpop.f32.mrf.mxu0 }
 0x128   : > { %v6108_v63 = vpop.f32.mrf.mxu1 }
 0x129   : > { %v7430_v13 = vpop.f32.mrf.mxu0  ;;  %6298 = vmatmul.mubr.msk.bf16.gmra.mxu0 %vm439_vm1, %v7426_v18 }
 0x12a   : > { %v7434_v34 = vpop.f32.mrf.mxu1  ;;  %6208 = vmatmul.mubr.msk.bf16.gmra.mxu1 %vm439_vm1, %v973_v37  ;;  %6301 = vmatprep.mubr.msk.bf16.mxu0 %vm6931_vm0, %v8521_v1  ;;  %v6902_v37 = vld [vmem:[%s8514_s2 + $0x28] sm:$0xff]  }
 0x12b   : > { %8537 = vst [vmem:[#allocation17_spill] sm:$0xff] %v7434_v34  ;;  %v6063_v58 = vpop.f32.mrf.mxu0  ;;  %6307 = vmatprep.mubr.msk.bf16.mxu1 %vm6931_vm0, %v8521_v1 }
 0x12c   : > { %v6111_v25 = vpop.f32.mrf.mxu1 }
 0x12d   : > { %v7443_v30 = vpop.f32.mrf.mxu0  ;;  %v2397_v25 = vld [vmem:[#allocation2 + $0x13] sm:$0xff] }
 0x12e   : > { %v7447_v63 = vpop.f32.mrf.mxu1 }
 0x12f   : > { %8539 = vst [vmem:[#allocation19_spill] sm:$0xff] %v7447_v63  ;;  %v6064_v34 = vpop.f32.mrf.mxu0  ;;  %v2398_v63 = vld [vmem:[#allocation2 + $0x1b] sm:$0xff] }
 0x130   : > { %v6112_v62 = vpop.f32.mrf.mxu1 }
 0x131   : > { %v7452_v18 = vpop.f32.mrf.mxu0  ;;  %6302 = vmatmul.mubr.msk.bf16.gmra.mxu0 %vm439_vm1, %v1470_v44  ;;  %v2442_v44 = vpack.c.bf16 %v2398_v63, %v2397_v25  ;;  %v8541_v63 = vmov 0.0  }
 0x132   : > { %v7455_v58 = vpop.f32.mrf.mxu1  ;;  %6308 = vmatmul.mubr.msk.bf16.vlgmr.msra.gmra.mxu1 %vm439_vm1, %v7165_v29  ;;  %6401 = vmatprep.mubr.msk.bf16.mxu0 %vm6931_vm0, %v8521_v1  ;;  %v6903_v29 = vld [vmem:[%s8514_s2 + $0x30] sm:$0xff]  }
 0x133   : > { %8540 = vst [vmem:[#allocation20_spill] sm:$0xff] %v7455_v58  ;;  %v6067_v34 = vpop.f32.mrf.mxu0  ;;  %6494 = vmatpush3.bf16.msra.mxu1 %v6902_v37  ;;  %6311 = vmatprep.mubr.msk.bf16.mxu1 %vm6931_vm0, %v8521_v1 }
 0x134   : > { %v6115_v62 = vpop.f32.mrf.mxu1  ;;  %6681 = vmatprep.subr.bf16.mxu1 %v8521_v1  ;;  %v2399_v34 = vld [vmem:[#allocation2 + $0x23] sm:$0xff] }
 0x135   : > { %v7464_v54 = vpop.f32.mrf.mxu0  ;;  %v2400_v62 = vld [vmem:[#allocation2 + $0x2b] sm:$0xff] }
 0x136   : > { %v858_v58 = vpop.f32.mrf.mxu1 }
 0x137   : > { %v6068_v46 = vpop.f32.mrf.mxu0  ;;  %v2443_v58 = vpack.c.bf16 %v2400_v62, %v2399_v34 }
 0x138   : > { %v6116_v33 = vpop.f32.mrf.mxu1 }
 0x139   : > { %v7469_v60 = vpop.f32.mrf.mxu0  ;;  %6402 = vmatmul.mubr.msk.bf16.vlgmr.msra.gmra.mxu0 %vm439_vm1, %v2442_v44 }
 0x13a   : > { %v1086_v37 = vpop.f32.mrf.mxu1  ;;  %6312 = vmatmul.mubr.msk.bf16.gmra.mxu1 %vm439_vm1, %v7174_v35  ;;  %6588 = vmatpush3.bf16.msra.mxu0 %v6903_v29 }
 0x13b   : > { %v6071_v1 = vpop.f32.mrf.mxu0  ;;  %6315 = vmatprep.mubr.msk.bf16.mxu1 %vm6931_vm0, %v8541_v63  ;;  %6405 = vmatprep.mubr.msk.bf16.mxu0 %vm6931_vm0, %v8541_v63  ;;  %v1313_v35 = vadd.f32 %v1086_v37, %v7277_v38 }
 0x13c   : > { %v6121_v46 = vpop.f32.mrf.mxu1  ;;  %6775 = vmatprep.subr.bf16.mxu0 %v8541_v63 }
 0x13d   : > { %v7479_v33 = vpop.f32.mrf.mxu0  ;;  %v2401_v46 = vld [vmem:[#allocation2 + $0x33] sm:$0xff] }
 0x13e   : > { %v1089_v25 = vpop.f32.mrf.mxu1 }
 0x13f   : > { %v6072_v44 = vpop.f32.mrf.mxu0  ;;  %v1314_v38 = vadd.f32 %v1089_v25, %v7288_v49  ;;  %v2403_v49 = vld [vmem:[#allocation2 + $0x43] sm:$0xff] }
 0x140   : > { %v6122_v29 = vpop.f32.mrf.mxu1 }
 0x141   : > { %v1583_v15 = vpop.f32.mrf.mxu0  ;;  %6406 = vmatmul.mubr.msk.bf16.gmra.mxu0 %vm439_vm1, %v2443_v58  ;;  %v2444_v58 = vpack.c.bf16 %v2402_v12, %v2401_v46  ;;  %v2404_v12 = vld [vmem:[#allocation2 + $0x4b] sm:$0xff] }
 0x142   : > { %v1094_v1 = vpop.f32.mrf.mxu1  ;;  %v7483_v7 = vadd.f32 %v1583_v15, %v1313_v35  ;;  %6316 = vmatmul.mubr.msk.bf16.gmra.mxu1 %vm439_vm1, %v7184_v41  ;;  %6409 = vmatprep.mubr.msk.bf16.mxu0 %vm6931_vm0, %v8541_v63 }
 0x143   : > { %v6215_v34 = vpop.f32.mrf.mxu0  ;;  %6319 = vmatprep.mubr.msk.bf16.mxu1 %vm6931_vm0, %v8541_v63  ;;  %v1315_v41 = vadd.f32 %v1094_v1, %v7294_v56 }
 0x144   : > { %8542 = vst [vmem:[#allocation21_spill] sm:$0xff] %v7483_v7  ;;  %v6125_v37 = vpop.f32.mrf.mxu1 }
 0x145   : > { %v1586_v62 = vpop.f32.mrf.mxu0 }
 0x146   : > { %v1097_v44 = vpop.f32.mrf.mxu1  ;;  %v7492_v15 = vadd.f32 %v1586_v62, %v1314_v38  ;;  %v2445_v38 = vpack.c.bf16 %v2404_v12, %v2403_v49  ;;  %v5671_v62 = vunpack.c.h.bf16 %v7201_v48  ;;  %v2405_v48 = vld [vmem:[#allocation2 + $0x53] sm:$0xff] }
 0x147   : > { %v6216_v35 = vpop.f32.mrf.mxu0  ;;  %v1316_v56 = vadd.f32 %v1097_v44, %v7305_v2  ;;  %v2406_v44 = vld [vmem:[#allocation2 + $0x5b] sm:$0xff] }
 0x148   : > { %v6126_v29 = vpop.f32.mrf.mxu1  ;;  %496 = vst.msk [vmem:[#allocation2 + $0x170] sm:$0xff] %vm439_vm1, %v5671_v62 }
 0x149   : > { %v1591_v7 = vpop.f32.mrf.mxu0  ;;  %6410 = vmatmul.mubr.msk.bf16.gmra.mxu0 %vm439_vm1, %v2444_v58 }
 0x14a   : > { %v1102_v53 = vpop.f32.mrf.mxu1  ;;  %v7496_v34 = vadd.f32 %v1591_v7, %v1315_v41  ;;  %6320 = vmatmul.mubr.msk.bf16.gmra.mxu1 %vm439_vm1, %v7198_v47  ;;  %6413 = vmatprep.mubr.msk.bf16.mxu0 %vm6931_vm0, %v8541_v63 }
 0x14b   : > { %v6219_v25 = vpop.f32.mrf.mxu0  ;;  %6323 = vmatprep.mubr.msk.bf16.mxu1 %vm6931_vm0, %v8541_v63  ;;  %v1317_v58 = vadd.f32 %v1102_v53, %v7311_v9 }
 0x14c   : > { %v6129_v1 = vpop.f32.mrf.mxu1  ;;  %v2446_v25 = vpack.c.bf16 %v2406_v44, %v2405_v48 }
 0x14d   : > { %v1594_v46 = vpop.f32.mrf.mxu0 }
 0x14e   : > { %v1105_v37 = vpop.f32.mrf.mxu1  ;;  %v7505_v7 = vadd.f32 %v1594_v46, %v1316_v56  ;;  %v7521_v56 = vld [vmem:[%s7196_s18 + $0x8] sm:$0xff]  }
 0x14f   : > { %v6220_v47 = vpop.f32.mrf.mxu0  ;;  %v1318_v9 = vadd.f32 %v1105_v37, %v7322_v19 }
 0x150   : > { %v6130_v35 = vpop.f32.mrf.mxu1 }
 0x151   : > { %v1599_v41 = vpop.f32.mrf.mxu0  ;;  %6414 = vmatmul.mubr.msk.bf16.gmra.mxu0 %vm439_vm1, %v2445_v38  ;;  %v2407_v35 = vld [vmem:[#allocation2 + $0x63] sm:$0xff] }
 0x152   : > { %v1110_v29 = vpop.f32.mrf.mxu1  ;;  %v7511_v2 = vadd.f32 %v1599_v41, %v1317_v58  ;;  %6324 = vmatmul.mubr.msk.bf16.gmra.mxu1 %vm439_vm1, %v7212_v55  ;;  %6417 = vmatprep.mubr.msk.bf16.mxu0 %vm6931_vm0, %v8541_v63  ;;  %v5674_v55 = vunpack.c.l.bf16 %v7521_v56  ;;  %v2408_v41 = vld [vmem:[#allocation2 + $0x6b] sm:$0xff] }
 0x153   : > { %v6223_v49 = vpop.f32.mrf.mxu0  ;;  %6327 = vmatprep.mubr.msk.bf16.mxu1 %vm6931_vm0, %v8541_v63  ;;  %v1319_v62 = vadd.f32 %v1110_v29, %v7328_v26 }
 0x154   : > { %v6133_v53 = vpop.f32.mrf.mxu1  ;;  %497 = vst.msk [vmem:[#allocation2 + $0x178] sm:$0xff] %vm439_vm1, %v5674_v55  ;;  %v2447_v49 = vpack.c.bf16 %v2408_v41, %v2407_v35 }
 0x155   : > { %v1602_v12 = vpop.f32.mrf.mxu0 }
 0x156   : > { %v1113_v1 = vpop.f32.mrf.mxu1  ;;  %v7523_v46 = vadd.f32 %v1602_v12, %v1318_v9 }
 0x157   : > { %v6224_v38 = vpop.f32.mrf.mxu0  ;;  %v1320_v26 = vadd.f32 %v1113_v1, %v7339_v40  ;;  %v2409_v40 = vld [vmem:[#allocation2 + $0x73] sm:$0xff]  ;;  %v2410_v1 = vld [vmem:[#allocation2 + $0x7b] sm:$0xff] }
 0x158   : > { %v6134_v47 = vpop.f32.mrf.mxu1  ;;  %v2448_v35 = vpack.c.bf16 %v2410_v1, %v2409_v40 }
 0x159   : > { %v1607_v58 = vpop.f32.mrf.mxu0  ;;  %6418 = vmatmul.mubr.msk.bf16.gmra.mxu0 %vm439_vm1, %v2446_v25 }
 0x15a   : > { %v1118_v19 = vpop.f32.mrf.mxu1  ;;  %v7529_v37 = vadd.f32 %v1607_v58, %v1319_v62  ;;  %6328 = vmatmul.mubr.msk.bf16.gmra.mxu1 %vm439_vm1, %v7221_v61  ;;  %6421 = vmatprep.mubr.msk.bf16.mxu0 %vm6931_vm0, %v8541_v63 }
 0x15b   : > { %v6227_v48 = vpop.f32.mrf.mxu0  ;;  %6331 = vmatprep.mubr.msk.bf16.mxu1 %vm6931_vm0, %v8541_v63  ;;  %v1321_v61 = vadd.f32 %v1118_v19, %v7345_v52 }
 0x15c   : > { %v6137_v29 = vpop.f32.mrf.mxu1 }
 0x15d   : > { %v1610_v44 = vpop.f32.mrf.mxu0 }
 0x15e   : > { %v1121_v9 = vpop.f32.mrf.mxu1  ;;  %v7538_v53 = vadd.f32 %v1610_v44, %v1320_v26 }
 0x15f   : > { %v6228_v12 = vpop.f32.mrf.mxu0  ;;  %v1322_v52 = vadd.f32 %v1121_v9, %v7356_v0  ;;  %v2411_v0 = vld [vmem:[#allocation2 + $0x83] sm:$0xff]  ;;  %v2412_v9 = vld [vmem:[#allocation2 + $0x8b] sm:$0xff] }
 0x160   : > { %v6138_v25 = vpop.f32.mrf.mxu1 }
 0x161   : > { %v1615_v55 = vpop.f32.mrf.mxu0  ;;  %6422 = vmatmul.mubr.msk.bf16.gmra.mxu0 %vm439_vm1, %v2447_v49 }
 0x162   : > { %v1126_v38 = vpop.f32.mrf.mxu1  ;;  %v7542_v62 = vadd.f32 %v1615_v55, %v1321_v61  ;;  %6332 = vmatmul.mubr.msk.bf16.gmra.mxu1 %vm439_vm1, %v7230_v4  ;;  %6425 = vmatprep.mubr.msk.bf16.mxu0 %vm6931_vm0, %v8541_v63 }
 0x163   : > { %v6231_v47 = vpop.f32.mrf.mxu0  ;;  %6335 = vmatprep.mubr.msk.bf16.mxu1 %vm6931_vm0, %v8541_v63  ;;  %v1323_v4 = vadd.f32 %v1126_v38, %v7362_v14  ;;  %v2449_v38 = vpack.c.bf16 %v2412_v9, %v2411_v0 }
 0x164   : > { %v6141_v58 = vpop.f32.mrf.mxu1 }
 0x165   : > { %v1618_v19 = vpop.f32.mrf.mxu0 }
 0x166   : > { %v1129_v41 = vpop.f32.mrf.mxu1  ;;  %v7551_v48 = vadd.f32 %v1618_v19, %v1322_v52 }
 0x167   : > { %v6232_v26 = vpop.f32.mrf.mxu0  ;;  %v1324_v14 = vadd.f32 %v1129_v41, %v7373_v31  ;;  %v2413_v31 = vld [vmem:[#allocation2 + $0x93] sm:$0xff]  ;;  %v2414_v41 = vld [vmem:[#allocation2 + $0x9b] sm:$0xff] }
 0x168   : > { %v6142_v29 = vpop.f32.mrf.mxu1 }
 0x169   : > { %v1623_v44 = vpop.f32.mrf.mxu0  ;;  %6426 = vmatmul.mubr.msk.bf16.gmra.mxu0 %vm439_vm1, %v2448_v35 }
 0x16a   : > { %v1134_v49 = vpop.f32.mrf.mxu1  ;;  %v7555_v12 = vadd.f32 %v1623_v44, %v1323_v4  ;;  %6336 = vmatmul.mubr.msk.bf16.gmra.mxu1 %vm439_vm1, %v7239_v10  ;;  %6429 = vmatprep.mubr.msk.bf16.mxu0 %vm6931_vm0, %v8541_v63  ;;  %v2450_v44 = vpack.c.bf16 %v2414_v41, %v2413_v31 }
 0x16b   : > { %v6235_v61 = vpop.f32.mrf.mxu0  ;;  %6339 = vmatprep.mubr.msk.bf16.mxu1 %vm6931_vm0, %v8541_v63  ;;  %v1325_v10 = vadd.f32 %v1134_v49, %v7379_v45 }
 0x16c   : > { %v6145_v25 = vpop.f32.mrf.mxu1 }
 0x16d   : > { %v1626_v55 = vpop.f32.mrf.mxu0 }
 0x16e   : > { %v1137_v40 = vpop.f32.mrf.mxu1  ;;  %v7564_v1 = vadd.f32 %v1626_v55, %v1324_v14 }
 0x16f   : > { %v6236_v47 = vpop.f32.mrf.mxu0  ;;  %v1326_v45 = vadd.f32 %v1137_v40, %v7390_v8  ;;  %v2415_v8 = vld [vmem:[#allocation2 + $0xa3] sm:$0xff] }
 0x170   : > { %v6146_v52 = vpop.f32.mrf.mxu1 }
 0x171   : > { %v1631_v58 = vpop.f32.mrf.mxu0  ;;  %6430 = vmatmul.mubr.msk.bf16.gmra.mxu0 %vm439_vm1, %v2449_v38  ;;  %v2416_v38 = vld [vmem:[#allocation2 + $0xab] sm:$0xff] }
 0x172   : > { %v1142_v19 = vpop.f32.mrf.mxu1  ;;  %v7568_v35 = vadd.f32 %v1631_v58, %v1325_v10  ;;  %6340 = vmatmul.mubr.msk.bf16.gmra.mxu1 %vm439_vm1, %v7248_v16  ;;  %6433 = vmatprep.mubr.msk.bf16.mxu0 %vm6931_vm0, %v8541_v63  ;;  %v2451_v52 = vpack.c.bf16 %v2416_v38, %v2415_v8 }
 0x173   : > { %v6239_v26 = vpop.f32.mrf.mxu0  ;;  %6343 = vmatprep.mubr.msk.bf16.mxu1 %vm6931_vm0, %v8541_v63  ;;  %v1327_v16 = vadd.f32 %v1142_v19, %v7396_v24 }
 0x174   : > { %v6149_v4 = vpop.f32.mrf.mxu1 }
 0x175   : > { %v1634_v29 = vpop.f32.mrf.mxu0 }
 0x176   : > { %v1145_v49 = vpop.f32.mrf.mxu1  ;;  %v7577_v0 = vadd.f32 %v1634_v29, %v1326_v45  ;;  %v2418_v29 = vld [vmem:[#allocation2 + $0xbb] sm:$0xff] }
 0x177   : > { %v6240_v9 = vpop.f32.mrf.mxu0  ;;  %v1328_v24 = vadd.f32 %v1145_v49, %v7407_v59  ;;  %v2417_v59 = vld [vmem:[#allocation2 + $0xb3] sm:$0xff] }
 0x178   : > { %v6150_v61 = vpop.f32.mrf.mxu1 }
 0x179   : > { %v1639_v14 = vpop.f32.mrf.mxu0  ;;  %6434 = vmatmul.mubr.msk.bf16.gmra.mxu0 %vm439_vm1, %v2450_v44 }
 0x17a   : > { %v1150_v25 = vpop.f32.mrf.mxu1  ;;  %v7581_v55 = vadd.f32 %v1639_v14, %v1327_v16  ;;  %6344 = vmatmul.mubr.msk.bf16.gmra.mxu1 %vm439_vm1, %v7257_v22  ;;  %6437 = vmatprep.mubr.msk.bf16.mxu0 %vm6931_vm0, %v8541_v63  ;;  %v2452_v16 = vpack.c.bf16 %v2418_v29, %v2417_v59 }
 0x17b   : > { %v6243_v40 = vpop.f32.mrf.mxu0  ;;  %6347 = vmatprep.mubr.msk.bf16.mxu1 %vm6931_vm0, %v8541_v63  ;;  %v1329_v22 = vadd.f32 %v1150_v25, %v7413_v23 }
 0x17c   : > { %v6153_v47 = vpop.f32.mrf.mxu1 }
 0x17d   : > { %v1642_v10 = vpop.f32.mrf.mxu0  ;;  %v2420_v47 = vld [vmem:[#allocation2 + $0xcb] sm:$0xff] }
 0x17e   : > { %v1153_v58 = vpop.f32.mrf.mxu1  ;;  %v7590_v19 = vadd.f32 %v1642_v10, %v1328_v24 }
 0x17f   : > { %v6244_v31 = vpop.f32.mrf.mxu0  ;;  %v1330_v23 = vadd.f32 %v1153_v58, %v7424_v17  ;;  %v2419_v17 = vld [vmem:[#allocation2 + $0xc3] sm:$0xff] }
 0x180   : > { %v6154_v41 = vpop.f32.mrf.mxu1  ;;  %v2453_v31 = vpack.c.bf16 %v2420_v47, %v2419_v17 }
 0x181   : > { %v1647_v26 = vpop.f32.mrf.mxu0  ;;  %6438 = vmatmul.mubr.msk.bf16.gmra.mxu0 %vm439_vm1, %v2451_v52 }
 0x182   : > { %v1158_v45 = vpop.f32.mrf.mxu1  ;;  %v7594_v4 = vadd.f32 %v1647_v26, %v1329_v22  ;;  %6348 = vmatmul.mubr.msk.bf16.gmra.mxu1 %vm439_vm1, %v7266_v28  ;;  %6441 = vmatprep.mubr.msk.bf16.mxu0 %vm6931_vm0, %v8541_v63 }
 0x183   : > { %v6247_v44 = vpop.f32.mrf.mxu0  ;;  %6351 = vmatprep.mubr.msk.bf16.mxu1 %vm6931_vm0, %v8541_v63  ;;  %v1331_v28 = vadd.f32 %v1158_v45, %v7430_v13 }
 0x184   : > { %v6157_v49 = vpop.f32.mrf.mxu1 }
 0x185   : > { %v1650_v9 = vpop.f32.mrf.mxu0 }
 0x186   : > { %v1161_v61 = vpop.f32.mrf.mxu1  ;;  %v7603_v14 = vadd.f32 %v1650_v9, %v1330_v23  ;;  %v2422_v23 = vld [vmem:[#allocation2 + $0xdb] sm:$0xff] }
 0x187   : > { %v6248_v25 = vpop.f32.mrf.mxu0  ;;  %v1332_v13 = vadd.f32 %v1161_v61, %v7443_v30  ;;  %v2421_v30 = vld [vmem:[#allocation2 + $0xd3] sm:$0xff] }
 0x188   : > { %v6158_v8 = vpop.f32.mrf.mxu1  ;;  %v2454_v61 = vpack.c.bf16 %v2422_v23, %v2421_v30  ;;  %v2426_v23 = vld [vmem:[#allocation2 + $0xfb] sm:$0xff] }
 0x189   : > { %v1655_v38 = vpop.f32.mrf.mxu0  ;;  %6442 = vmatmul.mubr.msk.bf16.gmra.mxu0 %vm439_vm1, %v2452_v16 }
 0x18a   : > { %v1166_v40 = vpop.f32.mrf.mxu1  ;;  %v7607_v24 = vadd.f32 %v1655_v38, %v1331_v28  ;;  %6352 = vmatmul.mubr.msk.bf16.gmra.mxu1 %vm439_vm1, %v7275_v36  ;;  %6445 = vmatprep.mubr.msk.bf16.mxu0 %vm6931_vm0, %v8541_v63 }
 0x18b   : > { %v6251_v10 = vpop.f32.mrf.mxu0  ;;  %6355 = vmatprep.mubr.msk.bf16.mxu1 %vm6931_vm0, %v8541_v63  ;;  %v1333_v36 = vadd.f32 %v1166_v40, %v7452_v18 }
 0x18c   : > { %v6161_v52 = vpop.f32.mrf.mxu1  ;;  %v2424_v10 = vld [vmem:[#allocation2 + $0xeb] sm:$0xff] }
 0x18d   : > { %v1658_v58 = vpop.f32.mrf.mxu0 }
 0x18e   : > { %v1169_v22 = vpop.f32.mrf.mxu1  ;;  %v7616_v41 = vadd.f32 %v1658_v58, %v1332_v13 }
 0x18f   : > { %v6252_v26 = vpop.f32.mrf.mxu0  ;;  %v1334_v18 = vadd.f32 %v1169_v22, %v7464_v54  ;;  %v2423_v54 = vld [vmem:[#allocation2 + $0xe3] sm:$0xff] }
 0x190   : > { %v6162_v45 = vpop.f32.mrf.mxu1 }
 0x191   : > { %v1663_v59 = vpop.f32.mrf.mxu0  ;;  %6446 = vmatmul.mubr.msk.bf16.gmra.mxu0 %vm439_vm1, %v2453_v31  ;;  %v2455_v31 = vpack.c.bf16 %v2424_v10, %v2423_v54  ;;  %v2428_v54 = vld [vmem:[#allocation2 + $0x10b] sm:$0xff] }
 0x192   : > { %v1174_v29 = vpop.f32.mrf.mxu1  ;;  %v7620_v44 = vadd.f32 %v1663_v59, %v1333_v36  ;;  %6356 = vmatmul.mubr.msk.bf16.gmra.mxu1 %vm439_vm1, %v7290_v50  ;;  %6449 = vmatprep.mubr.msk.bf16.mxu0 %vm6931_vm0, %v8541_v63 }
 0x193   : > { %v6255_v49 = vpop.f32.mrf.mxu0  ;;  %6359 = vmatprep.mubr.msk.bf16.mxu1 %vm6931_vm0, %v8541_v63  ;;  %v1335_v50 = vadd.f32 %v1174_v29, %v7469_v60 }
 0x194   : > { %v6165_v9 = vpop.f32.mrf.mxu1 }
 0x195   : > { %v1666_v16 = vpop.f32.mrf.mxu0 }
 0x196   : > { %v1177_v25 = vpop.f32.mrf.mxu1  ;;  %v7629_v28 = vadd.f32 %v1666_v16, %v1334_v18 }
 0x197   : > { %v6256_v8 = vpop.f32.mrf.mxu0  ;;  %v1336_v60 = vadd.f32 %v1177_v25, %v7479_v33  ;;  %v2425_v33 = vld [vmem:[#allocation2 + $0xf3] sm:$0xff] }
 0x198   : > { %v6166_v38 = vpop.f32.mrf.mxu1  ;;  %v2456_v16 = vpack.c.bf16 %v2426_v23, %v2425_v33 }
 0x199   : > { %v1671_v40 = vpop.f32.mrf.mxu0  ;;  %6450 = vmatmul.mubr.msk.bf16.gmra.mxu0 %vm439_vm1, %v2454_v61 }
 0x19a   : > { %v1182_v17 = vpop.f32.mrf.mxu1  ;;  %v7633_v47 = vadd.f32 %v1671_v40, %v1335_v50  ;;  %6360 = vmatmul.mubr.msk.bf16.gmra.mxu1 %vm439_vm1, %v7307_v3  ;;  %6453 = vmatprep.mubr.msk.bf16.mxu0 %vm6931_vm0, %v8541_v63 }
 0x19b   : > { %v6259_v13 = vpop.f32.mrf.mxu0  ;;  %6363 = vmatprep.mubr.msk.bf16.mxu1 %vm6931_vm0, %v8541_v63  ;;  %v1337_v3 = vadd.f32 %v1182_v17, %v7281_v39 }
 0x19c   : > { %v6169_v52 = vpop.f32.mrf.mxu1 }
 0x19d   : > { %v1674_v58 = vpop.f32.mrf.mxu0 }
 0x19e   : > { %v1185_v22 = vpop.f32.mrf.mxu1  ;;  %v7642_v26 = vadd.f32 %v1674_v58, %v1336_v60 }
 0x19f   : > { %v6260_v36 = vpop.f32.mrf.mxu0  ;;  %v1338_v39 = vadd.f32 %v1185_v22, %v7292_v51  ;;  %v2427_v51 = vld [vmem:[#allocation2 + $0x103] sm:$0xff] }
 0x1a0   : > { %v6170_v45 = vpop.f32.mrf.mxu1  ;;  %v2457_v52 = vpack.c.bf16 %v2428_v54, %v2427_v51 }
 0x1a1   : > { %v1679_v59 = vpop.f32.mrf.mxu0  ;;  %6454 = vmatmul.mubr.msk.bf16.gmra.mxu0 %vm439_vm1, %v2455_v31 }
 0x1a2   : > { %v1190_v29 = vpop.f32.mrf.mxu1  ;;  %v7646_v30 = vadd.f32 %v1679_v59, %v1337_v3  ;;  %6364 = vmatmul.mubr.msk.bf16.gmra.mxu1 %vm439_vm1, %v7324_v20  ;;  %6457 = vmatprep.mubr.msk.bf16.mxu0 %vm6931_vm0, %v8541_v63 }
 0x1a3   : > { %v6263_v49 = vpop.f32.mrf.mxu0  ;;  %6367 = vmatprep.mubr.msk.bf16.mxu1 %vm6931_vm0, %v8541_v63  ;;  %v1339_v20 = vadd.f32 %v1190_v29, %v7298_v57  ;;  %v2430_v29 = vld [vmem:[#allocation2 + $0x11b] sm:$0xff] }
 0x1a4   : > { %v6173_v18 = vpop.f32.mrf.mxu1 }
 0x1a5   : > { %v1682_v9 = vpop.f32.mrf.mxu0 }
 0x1a6   : > { %v1193_v61 = vpop.f32.mrf.mxu1  ;;  %v7655_v25 = vadd.f32 %v1682_v9, %v1338_v39 }
 0x1a7   : > { %v6264_v8 = vpop.f32.mrf.mxu0  ;;  %v1340_v57 = vadd.f32 %v1193_v61, %v7309_v5  ;;  %v2429_v5 = vld [vmem:[#allocation2 + $0x113] sm:$0xff] }
 0x1a8   : > { %v6174_v50 = vpop.f32.mrf.mxu1  ;;  %v2458_v39 = vpack.c.bf16 %v2430_v29, %v2429_v5  ;;  %v8545_v29 = vld [vmem:[#allocation5_spill] sm:$0xff] }
 0x1a9   : > { %v1687_v38 = vpop.f32.mrf.mxu0  ;;  %6458 = vmatmul.mubr.msk.bf16.gmra.mxu0 %vm439_vm1, %v2456_v16 }
 0x1aa   : > { %v1198_v40 = vpop.f32.mrf.mxu1  ;;  %v7659_v17 = vadd.f32 %v1687_v38, %v1339_v20  ;;  %6368 = vmatmul.mubr.msk.bf16.gmra.mxu1 %vm439_vm1, %v7341_v42  ;;  %6461 = vmatprep.mubr.msk.bf16.mxu0 %vm6931_vm0, %v8541_v63  ;;  %v2432_v38 = vld [vmem:[#allocation2 + $0x12b] sm:$0xff] }
 0x1ab   : > { %v6267_v10 = vpop.f32.mrf.mxu0  ;;  %6371 = vmatprep.mubr.msk.bf16.mxu1 %vm6931_vm0, %v8541_v63  ;;  %v1341_v42 = vadd.f32 %v1198_v40, %v7315_v11 }
 0x1ac   : > { %v6177_v13 = vpop.f32.mrf.mxu1 }
 0x1ad   : > { %v1690_v60 = vpop.f32.mrf.mxu0 }
 0x1ae   : > { %v1201_v58 = vpop.f32.mrf.mxu1  ;;  %v7668_v31 = vadd.f32 %v1690_v60, %v1340_v57 }
 0x1af   : > { %v6268_v22 = vpop.f32.mrf.mxu0  ;;  %v1342_v11 = vadd.f32 %v1201_v58, %v7326_v21  ;;  %v2431_v21 = vld [vmem:[#allocation2 + $0x123] sm:$0xff] }
 0x1b0   : > { %v6178_v36 = vpop.f32.mrf.mxu1  ;;  %v2459_v10 = vpack.c.bf16 %v2432_v38, %v2431_v21 }
 0x1b1   : > { %v1695_v3 = vpop.f32.mrf.mxu0  ;;  %6462 = vmatmul.mubr.msk.bf16.gmra.mxu0 %vm439_vm1, %v2457_v52  ;;  %v8543_v52 = vld [vmem:[#allocation4_spill] sm:$0xff] }
 0x1b2   : > { %v1206_v45 = vpop.f32.mrf.mxu1  ;;  %v7672_v59 = vadd.f32 %v1695_v3, %v1341_v42  ;;  %6372 = vmatmul.mubr.msk.bf16.gmra.mxu1 %vm439_vm1, %v7358_v6  ;;  %6465 = vmatprep.mubr.msk.bf16.mxu0 %vm6931_vm0, %v8541_v63  ;;  %v8544_v3 = vld [vmem:[#allocation9_spill] sm:$0xff] }
 0x1b3   : > { %v6271_v33 = vpop.f32.mrf.mxu0  ;;  %6375 = vmatprep.mubr.msk.bf16.mxu1 %vm6931_vm0, %v8541_v63  ;;  %v1343_v6 = vadd.f32 %v1206_v45, %v7332_v27  ;;  %v2434_v45 = vld [vmem:[#allocation2 + $0x13b] sm:$0xff] }
 0x1b4   : > { %v6181_v23 = vpop.f32.mrf.mxu1 }
 0x1b5   : > { %v1698_v49 = vpop.f32.mrf.mxu0 }
 0x1b6   : > { %v1209_v18 = vpop.f32.mrf.mxu1  ;;  %v7681_v9 = vadd.f32 %v1698_v49, %v1342_v11 }
 0x1b7   : > { %v6272_v16 = vpop.f32.mrf.mxu0  ;;  %v1344_v27 = vadd.f32 %v1209_v18, %v7343_v43  ;;  %v2433_v43 = vld [vmem:[#allocation2 + $0x133] sm:$0xff] }
 0x1b8   : > { %v6182_v61 = vpop.f32.mrf.mxu1  ;;  %v2460_v49 = vpack.c.bf16 %v2434_v45, %v2433_v43 }
 0x1b9   : > { %v1703_v8 = vpop.f32.mrf.mxu0  ;;  %6466 = vmatmul.mubr.msk.bf16.gmra.mxu0 %vm439_vm1, %v2458_v39 }
 0x1ba   : > { %v1214_v20 = vpop.f32.mrf.mxu1  ;;  %v7685_v50 = vadd.f32 %v1703_v8, %v1343_v6  ;;  %6376 = vmatmul.mubr.msk.bf16.gmra.mxu1 %vm439_vm1, %v7375_v32  ;;  %6469 = vmatprep.mubr.msk.bf16.mxu0 %vm6931_vm0, %v8541_v63  ;;  %v8546_v6 = vld [vmem:[#allocation6_spill] sm:$0xff] }
 0x1bb   : > { %v6275_v40 = vpop.f32.mrf.mxu0  ;;  %6379 = vmatprep.mubr.msk.bf16.mxu1 %vm6931_vm0, %v8541_v63  ;;  %v1345_v32 = vadd.f32 %v1214_v20, %v8543_v52 }
 0x1bc   : > { %v6185_v51 = vpop.f32.mrf.mxu1  ;;  %v8547_v40 = vld [vmem:[#allocation12_spill] sm:$0xff] }
 0x1bd   : > { %v1706_v54 = vpop.f32.mrf.mxu0  ;;  %v2436_v51 = vld [vmem:[#allocation2 + $0x14b] sm:$0xff] }
 0x1be   : > { %v1217_v57 = vpop.f32.mrf.mxu1  ;;  %v7694_v13 = vadd.f32 %v1706_v54, %v1344_v27  ;;  %v2435_v27 = vld [vmem:[#allocation2 + $0x143] sm:$0xff] }
 0x1bf   : > { %v6276_v60 = vpop.f32.mrf.mxu0  ;;  %v1346_v33 = vadd.f32 %v1217_v57, %v8545_v29 }
 0x1c0   : > { %v6186_v58 = vpop.f32.mrf.mxu1 }
 0x1c1   : > { %v1711_v22 = vpop.f32.mrf.mxu0  ;;  %6470 = vmatmul.mubr.msk.bf16.gmra.mxu0 %vm439_vm1, %v2459_v10  ;;  %v8548_v10 = vld [vmem:[#allocation7_spill] sm:$0xff] }
 0x1c2   : > { %v1222_v42 = vpop.f32.mrf.mxu1  ;;  %v7698_v36 = vadd.f32 %v1711_v22, %v1345_v32  ;;  %6380 = vmatmul.mubr.msk.bf16.gmra.mxu1 %vm439_vm1, %v8544_v3  ;;  %6473 = vmatprep.mubr.msk.bf16.mxu0 %vm6931_vm0, %v8541_v63  ;;  %v2461_v32 = vpack.c.bf16 %v2436_v51, %v2435_v27  ;;  %v8549_v3 = vld [vmem:[#allocation8_spill] sm:$0xff]  ;;  %v8552_v51 = vld [vmem:[#allocation18_spill] sm:$0xff] }
 0x1c3   : > { %v6279_v5 = vpop.f32.mrf.mxu0  ;;  %6383 = vmatprep.mubr.msk.bf16.mxu1 %vm6931_vm0, %v8541_v63  ;;  %v1347_v61 = vadd.f32 %v1222_v42, %v8546_v6  ;;  %v8551_v6 = vld [vmem:[#allocation10_spill] sm:$0xff] }
 0x1c4   : > { %v6189_v11 = vpop.f32.mrf.mxu1 }
 0x1c5   : > { %v1714_v23 = vpop.f32.mrf.mxu0  ;;  %v8550_v11 = vld [vmem:[#allocation15_spill] sm:$0xff] }
 0x1c6   : > { %v1225_v39 = vpop.f32.mrf.mxu1  ;;  %v7707_v18 = vadd.f32 %v1714_v23, %v1346_v33  ;;  %v2437_v23 = vld [vmem:[#allocation2 + $0x153] sm:$0xff] }
 0x1c7   : > { %v6280_v16 = vpop.f32.mrf.mxu0  ;;  %v1348_v57 = vadd.f32 %v1225_v39, %v8548_v10 }
 0x1c8   : > { %v6190_v8 = vpop.f32.mrf.mxu1  ;;  %v1943_v16 = vld [vmem:[#allocation2 + $0x16a] sm:$0xff] }
 0x1c9   : > { %v1719_v20 = vpop.f32.mrf.mxu0  ;;  %6474 = vmatmul.mubr.msk.bf16.gmra.mxu0 %vm439_vm1, %v2460_v49  ;;  %v2438_v49 = vld [vmem:[#allocation2 + $0x15b] sm:$0xff] }
 0x1ca   : > { %v1230_v21 = vpop.f32.mrf.mxu1  ;;  %v7711_v38 = vadd.f32 %v1719_v20, %v1347_v61  ;;  %6384 = vmatmul.mubr.msk.bf16.gmra.mxu1 %vm439_vm1, %v8547_v40  ;;  %6477 = vmatprep.mubr.msk.bf16.mxu0 %vm6931_vm0, %v8541_v63 }
 0x1cb   : > { %v6283_v54 = vpop.f32.mrf.mxu0  ;;  %6387 = vmatprep.mubr.msk.bf16.mxu1 %vm6931_vm0, %v8541_v63  ;;  %v1349_v43 = vadd.f32 %v1230_v21, %v8549_v3  ;;  %v2462_v21 = vpack.c.bf16 %v2438_v49, %v2437_v23 }
 0x1cc   : > { %v6193_v60 = vpop.f32.mrf.mxu1  ;;  %v1966_v54 = vpack.c.bf16 %v1943_v16, %v8552_v51 }
 0x1cd   : > { %v1722_v52 = vpop.f32.mrf.mxu0 }
 0x1ce   : > { %v1233_v58 = vpop.f32.mrf.mxu1  ;;  %v7720_v22 = vadd.f32 %v1722_v52, %v1348_v57  ;;  %v8553_v57 = vld [vmem:[#allocation11_spill] sm:$0xff] }
 0x1cf   : > { %v6284_v42 = vpop.f32.mrf.mxu0  ;;  %v1350_v61 = vadd.f32 %v1233_v58, %v8551_v6  ;;  %v2439_v58 = vld [vmem:[#allocation2 + $0x163] sm:$0xff] }
 0x1d0   : > { %v6194_v45 = vpop.f32.mrf.mxu1 }
 0x1d1   : > { %v1727_v5 = vpop.f32.mrf.mxu0  ;;  %6478 = vmatmul.mubr.msk.bf16.gmra.mxu0 %vm439_vm1, %v2461_v32 }
 0x1d2   : > { %v1238_v29 = vpop.f32.mrf.mxu1  ;;  %v7724_v33 = vadd.f32 %v1727_v5, %v1349_v43  ;;  %6388 = vmatmul.mubr.msk.bf16.gmra.mxu1 %vm439_vm1, %v8550_v11  ;;  %6481 = vmatprep.mubr.msk.bf16.mxu0 %vm6931_vm0, %v8541_v63  ;;  %v2440_v43 = vld [vmem:[#allocation2 + $0x16b] sm:$0xff] }
 0x1d3   : > { %v6287_v39 = vpop.f32.mrf.mxu0  ;;  %6391 = vmatprep.mubr.msk.bf16.mxu1 %vm6931_vm0, %v8541_v63  ;;  %v1351_v60 = vadd.f32 %v1238_v29, %v8553_v57  ;;  %v1944_v5 = vld [vmem:[#allocation2 + $0x172] sm:$0xff] }
 0x1d4   : > { %v6197_v8 = vpop.f32.mrf.mxu1  ;;  %v8554_v29 = vld [vmem:[#allocation13_spill] sm:$0xff]  ;;  %v2463_v39 = vpack.c.bf16 %v2440_v43, %v2439_v58 }
 0x1d5   : > { %v1730_v20 = vpop.f32.mrf.mxu0 }
 0x1d6   : > { %v1241_v40 = vpop.f32.mrf.mxu1  ;;  %v7733_v27 = vadd.f32 %v1730_v20, %v1350_v61  ;;  %v1967_v61 = vpack.c.bf16 %v1944_v5, %v1944_v5  ;;  %v8555_v20 = vld [vmem:[#allocation14_spill] sm:$0xff] }
 0x1d7   : > { %v6288_v10 = vpop.f32.mrf.mxu0  ;;  %v1352_v11 = vadd.f32 %v1241_v40, %v8554_v29  ;;  %v2441_v40 = vld [vmem:[#allocation2 + $0x173] sm:$0xff] }
 0x1d8   : > { %v6198_v52 = vpop.f32.mrf.mxu1  ;;  %v2464_v5 = vpack.c.bf16 %v2441_v40, %v2441_v40  ;;  %v2897_v40 = vld [vmem:[#allocation2 + $0x2c] sm:$0xff] }
 0x1d9   : > { %v1735_v32 = vpop.f32.mrf.mxu0  ;;  %6482 = vmatmul.mubr.msk.bf16.gmra.mxu0 %vm439_vm1, %v2462_v21  ;;  %v2894_v52 = vld [vmem:[#allocation2 + $0x14] sm:$0xff] }
 0x1da   : > { %v1246_v42 = vpop.f32.mrf.mxu1  ;;  %v7738_v3 = vadd.f32 %v1735_v32, %v1351_v60  ;;  %6392 = vmatmul.mubr.msk.bf16.gmra.mxu1 %vm439_vm1, %v1966_v54  ;;  %6485 = vmatprep.mubr.msk.bf16.mxu0 %vm6931_vm0, %v8541_v63  ;;  %v2895_v32 = vld [vmem:[#allocation2 + $0x1c] sm:$0xff] }
 0x1db   : > { %v6291_v45 = vpop.f32.mrf.mxu0  ;;  %6395 = vmatprep.mubr.msk.bf16.mxu1 %vm6931_vm0, %v8541_v63  ;;  %v1353_v21 = vadd.f32 %v1246_v42, %v8555_v20  ;;  %v8556_v42 = vld [vmem:[#allocation16_spill] sm:$0xff] }
 0x1dc   : > { %v6201_v23 = vpop.f32.mrf.mxu1 }
 0x1dd   : > { %v1738_v49 = vpop.f32.mrf.mxu0  ;;  %v2939_v23 = vpack.c.bf16 %v2895_v32, %v2894_v52 }
 0x1de   : > { %v1249_v16 = vpop.f32.mrf.mxu1  ;;  %v7746_v6 = vadd.f32 %v1738_v49, %v1352_v11 }
 0x1df   : > { %v6292_v8 = vpop.f32.mrf.mxu0  ;;  %v1354_v58 = vadd.f32 %v1249_v16, %v8556_v42 }
 0x1e0   : > { %v6202_v51 = vpop.f32.mrf.mxu1 }
 0x1e1   : > { %v1743_v54 = vpop.f32.mrf.mxu0  ;;  %6486 = vmatmul.mubr.msk.bf16.gmra.mxu0 %vm439_vm1, %v2463_v39  ;;  %v6904_v39 = vld [vmem:[%s8514_s2 + $0x38] sm:$0xff]  }
 0x1e2   : > { %v1254_v10 = vpop.f32.mrf.mxu1  ;;  %v7750_v57 = vadd.f32 %v1743_v54, %v1353_v21  ;;  %6396 = vmatmul.mubr.msk.bf16.gmra.mxu1 %vm439_vm1, %v1967_v61  ;;  %6489 = vmatprep.mubr.msk.bf16.mxu0 %vm6931_vm0, %v8541_v63  ;;  %v8557_v61 = vld [vmem:[#allocation17_spill] sm:$0xff]  ;;  %v2896_v54 = vld [vmem:[#allocation2 + $0x24] sm:$0xff] }
 0x1e3   : > { %v6295_v60 = vpop.f32.mrf.mxu0  ;;  %6495 = vmatprep.mubr.msk.bf16.mxu1 %vm6931_vm0, %v8541_v63  ;;  %v1355_v8 = vadd.f32 %v1254_v10, %v8557_v61  ;;  %v8558_v10 = vld [vmem:[#allocation19_spill] sm:$0xff] }
 0x1e4   : > { %v6205_v43 = vpop.f32.mrf.mxu1 }
 0x1e5   : > { %v1746_v45 = vpop.f32.mrf.mxu0 }
 0x1e6   : > { %v1257_v29 = vpop.f32.mrf.mxu1  ;;  %v7758_v11 = vadd.f32 %v1746_v45, %v1354_v58  ;;  %v2940_v58 = vpack.c.bf16 %v2897_v40, %v2896_v54  ;;  %v2899_v54 = vld [vmem:[#allocation2 + $0x3c] sm:$0xff] }
 0x1e7   : > { %v6296_v49 = vpop.f32.mrf.mxu0  ;;  %v1356_v52 = vadd.f32 %v1257_v29, %v8558_v10  ;;  %v8560_v40 = vld [vmem:[#allocation21_spill] sm:$0xff] }
 0x1e8   : > { %v6206_v20 = vpop.f32.mrf.mxu1  ;;  %v8559_v49 = vld [vmem:[#allocation20_spill] sm:$0xff] }
 0x1e9   : > { %v1751_v21 = vpop.f32.mrf.mxu0  ;;  %6490 = vmatmul.mubr.msk.bf16.gmra.mxu0 %vm439_vm1, %v2464_v5  ;;  %v6905_v5 = vld [vmem:[%s8514_s2 + $0x40] sm:$0xff]  }
 0x1ea   : > { %v1262_v51 = vpop.f32.mrf.mxu1  ;;  %v7765_v16 = vadd.f32 %v1751_v21, %v1355_v8  ;;  %6496 = vmatmul.mubr.msk.bf16.vlgmr.msra.gmra.mxu1 %vm439_vm1, %v2939_v23  ;;  %6589 = vmatprep.mubr.msk.bf16.mxu0 %vm6931_vm0, %v8541_v63  ;;  %v2898_v21 = vld [vmem:[#allocation2 + $0x34] sm:$0xff] }
 0x1eb   : > { %v6299_v60 = vpop.f32.mrf.mxu0  ;;  %6682 = vmatpush3.bf16.msra.mxu1 %v6904_v39  ;;  %6499 = vmatprep.mubr.msk.bf16.mxu1 %vm6931_vm0, %v8541_v63  ;;  %v1357_v61 = vadd.f32 %v1262_v51, %v8559_v49 }
 0x1ec   : > { %v6209_v32 = vpop.f32.mrf.mxu1 }
 0x1ed   : > { %v1754_v42 = vpop.f32.mrf.mxu0  ;;  %v2941_v32 = vpack.c.bf16 %v2899_v54, %v2898_v21 }
 0x1ee   : > { %v1265_v43 = vpop.f32.mrf.mxu1  ;;  %v7773_v45 = vadd.f32 %v1754_v42, %v1356_v52 }
 0x1ef   : > { %v6300_v23 = vpop.f32.mrf.mxu0 }
 0x1f0   : > { %v6210_v8 = vpop.f32.mrf.mxu1 }
 0x1f1   : > { %v1759_v39 = vpop.f32.mrf.mxu0  ;;  %6590 = vmatmul.mubr.msk.bf16.vlgmr.msra.gmra.mxu0 %vm439_vm1, %v2940_v58  ;;  %v2900_v8 = vld [vmem:[#allocation2 + $0x44] sm:$0xff] }
 0x1f2   : > { %v7780_v20 = vadd.f32 %v1759_v39, %v1357_v61  ;;  %v2080_v29 = vpop.f32.mrf.mxu1  ;;  %6500 = vmatmul.mubr.msk.bf16.gmra.mxu1 %vm439_vm1, %v2940_v58  ;;  %6776 = vmatpush3.bf16.msra.mxu0 %v6905_v5  ;;  %v2901_v39 = vld [vmem:[#allocation2 + $0x4c] sm:$0xff] }
 0x1f3   : > { %v2307_v60 = vadd.f32 %v2080_v29, %v8560_v40  ;;  %v6303_v10 = vpop.f32.mrf.mxu0  ;;  %6503 = vmatprep.mubr.msk.bf16.mxu1 %vm6931_vm0, %v8541_v63  ;;  %6593 = vmatprep.mubr.msk.bf16.mxu0 %vm6931_vm0, %v8541_v63  ;;  %v2942_v40 = vpack.c.bf16 %v2901_v39, %v2900_v8 }
 0x1f4   : > { %v6309_v51 = vpop.f32.mrf.mxu1 }
 0x1f5   : > { %v1762_v52 = vpop.f32.mrf.mxu0 }
 0x1f6   : > { %v2083_v42 = vpop.f32.mrf.mxu1 }
 0x1f7   : > { %v2308_v43 = vadd.f32 %v2083_v42, %v7492_v15  ;;  %v6304_v23 = vpop.f32.mrf.mxu0 }
 0x1f8   : > { %v6310_v58 = vpop.f32.mrf.mxu1 }
 0x1f9   : > { %v2577_v5 = vpop.f32.mrf.mxu0  ;;  %6594 = vmatmul.mubr.msk.bf16.gmra.mxu0 %vm439_vm1, %v2941_v32 }
 0x1fa   : > { %v2088_v49 = vpop.f32.mrf.mxu1  ;;  %v7790_v61 = vadd.f32 %v2577_v5, %v2307_v60  ;;  %6504 = vmatmul.mubr.msk.bf16.gmra.mxu1 %vm439_vm1, %v2941_v32  ;;  %6597 = vmatprep.mubr.msk.bf16.mxu0 %vm6931_vm0, %v8541_v63  ;;  %v2903_v5 = vld [vmem:[#allocation2 + $0x5c] sm:$0xff] }
 0x1fb   : > { %v2309_v29 = vadd.f32 %v2088_v49, %v7496_v34  ;;  %v6403_v21 = vpop.f32.mrf.mxu0  ;;  %6507 = vmatprep.mubr.msk.bf16.mxu1 %vm6931_vm0, %v8541_v63  ;;  %v2902_v34 = vld [vmem:[#allocation2 + $0x54] sm:$0xff] }
 0x1fc   : > { %v6313_v15 = vpop.f32.mrf.mxu1  ;;  %v2943_v39 = vpack.c.bf16 %v2903_v5, %v2902_v34 }
 0x1fd   : > { %v2580_v54 = vpop.f32.mrf.mxu0 }
 0x1fe   : > { %v2091_v10 = vpop.f32.mrf.mxu1  ;;  %v7798_v51 = vadd.f32 %v2580_v54, %v2308_v43 }
 0x1ff   : > { %v2310_v60 = vadd.f32 %v2091_v10, %v7505_v7  ;;  %v6404_v52 = vpop.f32.mrf.mxu0 }
 0x200   : > { %v6314_v32 = vpop.f32.mrf.mxu1 }
 0x201   : > { %v2585_v42 = vpop.f32.mrf.mxu0  ;;  %6598 = vmatmul.mubr.msk.bf16.gmra.mxu0 %vm439_vm1, %v2942_v40 }
 0x202   : > { %v2096_v23 = vpop.f32.mrf.mxu1  ;;  %v7802_v58 = vadd.f32 %v2585_v42, %v2309_v29  ;;  %6508 = vmatmul.mubr.msk.bf16.gmra.mxu1 %vm439_vm1, %v2942_v40  ;;  %6601 = vmatprep.mubr.msk.bf16.mxu0 %vm6931_vm0, %v8541_v63  ;;  %v2905_v42 = vld [vmem:[#allocation2 + $0x6c] sm:$0xff] }
 0x203   : > { %v2311_v43 = vadd.f32 %v2096_v23, %v7511_v2  ;;  %v6407_v49 = vpop.f32.mrf.mxu0  ;;  %6511 = vmatprep.mubr.msk.bf16.mxu1 %vm6931_vm0, %v8541_v63  ;;  %v2904_v2 = vld [vmem:[#allocation2 + $0x64] sm:$0xff] }
 0x204   : > { %v6317_v7 = vpop.f32.mrf.mxu1  ;;  %v2944_v5 = vpack.c.bf16 %v2905_v42, %v2904_v2 }
 0x205   : > { %v2588_v8 = vpop.f32.mrf.mxu0 }
 0x206   : > { %v2099_v21 = vpop.f32.mrf.mxu1  ;;  %v7810_v15 = vadd.f32 %v2588_v8, %v2310_v60 }
 0x207   : > { %v2312_v29 = vadd.f32 %v2099_v21, %v7523_v46  ;;  %v6408_v54 = vpop.f32.mrf.mxu0 }
 0x208   : > { %v6318_v40 = vpop.f32.mrf.mxu1 }
 0x209   : > { %v2593_v10 = vpop.f32.mrf.mxu0  ;;  %6602 = vmatmul.mubr.msk.bf16.gmra.mxu0 %vm439_vm1, %v2943_v39 }
 0x20a   : > { %v2104_v52 = vpop.f32.mrf.mxu1  ;;  %v7814_v32 = vadd.f32 %v2593_v10, %v2311_v43  ;;  %6512 = vmatmul.mubr.msk.bf16.gmra.mxu1 %vm439_vm1, %v2943_v39  ;;  %6605 = vmatprep.mubr.msk.bf16.mxu0 %vm6931_vm0, %v8541_v63  ;;  %v5675_v43 = vunpack.c.h.bf16 %v7521_v56  ;;  %v2907_v56 = vld [vmem:[#allocation2 + $0x7c] sm:$0xff] }
 0x20b   : > { %v2313_v60 = vadd.f32 %v2104_v52, %v7529_v37  ;;  %v6411_v23 = vpop.f32.mrf.mxu0  ;;  %6515 = vmatprep.mubr.msk.bf16.mxu1 %vm6931_vm0, %v8541_v63 }
 0x20c   : > { %v6321_v46 = vpop.f32.mrf.mxu1  ;;  %498 = vst.msk [vmem:[#allocation2 + $0x180] sm:$0xff] %vm439_vm1, %v5675_v43  ;;  %v489_v23 = vld [vmem:[%s7196_s18 + $0x10] sm:$0xf] }
 0x20d   : > { %v2596_v34 = vpop.f32.mrf.mxu0 }
 0x20e   : > { %v2107_v49 = vpop.f32.mrf.mxu1  ;;  %v7822_v7 = vadd.f32 %v2596_v34, %v2312_v29  ;;  %v2906_v29 = vld [vmem:[#allocation2 + $0x74] sm:$0xff]  ;;  %v494_v34 = vunpack.c.l.bf16 %v489_v23 }
 0x20f   : > { %v2314_v8 = vadd.f32 %v2107_v49, %v7538_v53  ;;  %v6412_v39 = vpop.f32.mrf.mxu0  ;;  %v2945_v42 = vpack.c.bf16 %v2907_v56, %v2906_v29 }
 0x210   : > { %v6322_v21 = vpop.f32.mrf.mxu1  ;;  %499 = vst.msk [vmem:[#allocation2 + $0x188] sm:$0xff] %vm439_vm1, %v494_v34 }
 0x211   : > { %v2601_v37 = vpop.f32.mrf.mxu0  ;;  %6606 = vmatmul.mubr.msk.bf16.gmra.mxu0 %vm439_vm1, %v2944_v5 }
 0x212   : > { %v2112_v54 = vpop.f32.mrf.mxu1  ;;  %v7828_v40 = vadd.f32 %v2601_v37, %v2313_v60  ;;  %6516 = vmatmul.mubr.msk.bf16.gmra.mxu1 %vm439_vm1, %v2944_v5  ;;  %6609 = vmatprep.mubr.msk.bf16.mxu0 %vm6931_vm0, %v8541_v63  ;;  %v2909_v37 = vld [vmem:[#allocation2 + $0x8c] sm:$0xff] }
 0x213   : > { %v2315_v53 = vadd.f32 %v2112_v54, %v7542_v62  ;;  %v6415_v10 = vpop.f32.mrf.mxu0  ;;  %6519 = vmatprep.mubr.msk.bf16.mxu1 %vm6931_vm0, %v8541_v63 }
 0x214   : > { %v6325_v52 = vpop.f32.mrf.mxu1 }
 0x215   : > { %v2604_v2 = vpop.f32.mrf.mxu0 }
 0x216   : > { %v2115_v46 = vpop.f32.mrf.mxu1  ;;  %v7837_v60 = vadd.f32 %v2604_v2, %v2314_v8  ;;  %v2908_v8 = vld [vmem:[#allocation2 + $0x84] sm:$0xff] }
 0x217   : > { %v2316_v5 = vadd.f32 %v2115_v46, %v7551_v48  ;;  %v6416_v49 = vpop.f32.mrf.mxu0  ;;  %v2946_v10 = vpack.c.bf16 %v2909_v37, %v2908_v8 }
 0x218   : > { %v6326_v43 = vpop.f32.mrf.mxu1 }
 0x219   : > { %v2609_v39 = vpop.f32.mrf.mxu0  ;;  %6610 = vmatmul.mubr.msk.bf16.gmra.mxu0 %vm439_vm1, %v2945_v42  ;;  %v2911_v43 = vld [vmem:[#allocation2 + $0x9c] sm:$0xff] }
 0x21a   : > { %v2120_v62 = vpop.f32.mrf.mxu1  ;;  %v7842_v21 = vadd.f32 %v2609_v39, %v2315_v53  ;;  %6520 = vmatmul.mubr.msk.bf16.gmra.mxu1 %vm439_vm1, %v2945_v42  ;;  %6613 = vmatprep.mubr.msk.bf16.mxu0 %vm6931_vm0, %v8541_v63 }
 0x21b   : > { %v2317_v54 = vadd.f32 %v2120_v62, %v7555_v12  ;;  %v6419_v48 = vpop.f32.mrf.mxu0  ;;  %6523 = vmatprep.mubr.msk.bf16.mxu1 %vm6931_vm0, %v8541_v63  ;;  %v2910_v12 = vld [vmem:[#allocation2 + $0x94] sm:$0xff] }
 0x21c   : > { %v6329_v29 = vpop.f32.mrf.mxu1  ;;  %v2947_v8 = vpack.c.bf16 %v2911_v43, %v2910_v12 }
 0x21d   : > { %v2612_v56 = vpop.f32.mrf.mxu0 }
 0x21e   : > { %v2123_v52 = vpop.f32.mrf.mxu1  ;;  %v7850_v2 = vadd.f32 %v2612_v56, %v2316_v5 }
 0x21f   : > { %v2318_v53 = vadd.f32 %v2123_v52, %v7564_v1  ;;  %v6420_v42 = vpop.f32.mrf.mxu0 }
 0x220   : > { %v6330_v23 = vpop.f32.mrf.mxu1 }
 0x221   : > { %v2617_v46 = vpop.f32.mrf.mxu0  ;;  %6614 = vmatmul.mubr.msk.bf16.gmra.mxu0 %vm439_vm1, %v2946_v10  ;;  %v2913_v23 = vld [vmem:[#allocation2 + $0xac] sm:$0xff] }
 0x222   : > { %v2128_v34 = vpop.f32.mrf.mxu1  ;;  %v7854_v49 = vadd.f32 %v2617_v46, %v2317_v54  ;;  %6524 = vmatmul.mubr.msk.bf16.gmra.mxu1 %vm439_vm1, %v2946_v10  ;;  %6617 = vmatprep.mubr.msk.bf16.mxu0 %vm6931_vm0, %v8541_v63 }
 0x223   : > { %v2319_v5 = vadd.f32 %v2128_v34, %v7568_v35  ;;  %v6423_v39 = vpop.f32.mrf.mxu0  ;;  %6527 = vmatprep.mubr.msk.bf16.mxu1 %vm6931_vm0, %v8541_v63  ;;  %v2912_v35 = vld [vmem:[#allocation2 + $0xa4] sm:$0xff] }
 0x224   : > { %v6333_v1 = vpop.f32.mrf.mxu1  ;;  %v2948_v12 = vpack.c.bf16 %v2913_v23, %v2912_v35 }
 0x225   : > { %v2620_v62 = vpop.f32.mrf.mxu0 }
 0x226   : > { %v2131_v37 = vpop.f32.mrf.mxu1  ;;  %v7862_v48 = vadd.f32 %v2620_v62, %v2318_v53 }
 0x227   : > { %v2320_v54 = vadd.f32 %v2131_v37, %v7577_v0  ;;  %v6424_v29 = vpop.f32.mrf.mxu0 }
 0x228   : > { %v6334_v56 = vpop.f32.mrf.mxu1 }
 0x229   : > { %v2625_v10 = vpop.f32.mrf.mxu0  ;;  %6618 = vmatmul.mubr.msk.bf16.gmra.mxu0 %vm439_vm1, %v2947_v8  ;;  %v2915_v56 = vld [vmem:[#allocation2 + $0xbc] sm:$0xff] }
 0x22a   : > { %v2136_v52 = vpop.f32.mrf.mxu1  ;;  %v7866_v42 = vadd.f32 %v2625_v10, %v2319_v5  ;;  %6528 = vmatmul.mubr.msk.bf16.gmra.mxu1 %vm439_vm1, %v2947_v8  ;;  %6621 = vmatprep.mubr.msk.bf16.mxu0 %vm6931_vm0, %v8541_v63 }
 0x22b   : > { %v2321_v53 = vadd.f32 %v2136_v52, %v7581_v55  ;;  %v6427_v46 = vpop.f32.mrf.mxu0  ;;  %6531 = vmatprep.mubr.msk.bf16.mxu1 %vm6931_vm0, %v8541_v63  ;;  %v2914_v55 = vld [vmem:[#allocation2 + $0xb4] sm:$0xff] }
 0x22c   : > { %v6337_v0 = vpop.f32.mrf.mxu1  ;;  %v2949_v35 = vpack.c.bf16 %v2915_v56, %v2914_v55 }
 0x22d   : > { %v2628_v34 = vpop.f32.mrf.mxu0 }
 0x22e   : > { %v2139_v43 = vpop.f32.mrf.mxu1  ;;  %v7874_v39 = vadd.f32 %v2628_v34, %v2320_v54 }
 0x22f   : > { %v2322_v5 = vadd.f32 %v2139_v43, %v7590_v19  ;;  %v6428_v1 = vpop.f32.mrf.mxu0 }
 0x230   : > { %v6338_v62 = vpop.f32.mrf.mxu1 }
 0x231   : > { %v2633_v8 = vpop.f32.mrf.mxu0  ;;  %6622 = vmatmul.mubr.msk.bf16.gmra.mxu0 %vm439_vm1, %v2948_v12  ;;  %v2917_v62 = vld [vmem:[#allocation2 + $0xcc] sm:$0xff] }
 0x232   : > { %v2144_v37 = vpop.f32.mrf.mxu1  ;;  %v7878_v29 = vadd.f32 %v2633_v8, %v2321_v53  ;;  %6532 = vmatmul.mubr.msk.bf16.gmra.mxu1 %vm439_vm1, %v2948_v12  ;;  %6625 = vmatprep.mubr.msk.bf16.mxu0 %vm6931_vm0, %v8541_v63 }
 0x233   : > { %v2323_v54 = vadd.f32 %v2144_v37, %v7594_v4  ;;  %v6431_v10 = vpop.f32.mrf.mxu0  ;;  %6535 = vmatprep.mubr.msk.bf16.mxu1 %vm6931_vm0, %v8541_v63  ;;  %v2916_v4 = vld [vmem:[#allocation2 + $0xc4] sm:$0xff] }
 0x234   : > { %v6341_v19 = vpop.f32.mrf.mxu1  ;;  %v2950_v55 = vpack.c.bf16 %v2917_v62, %v2916_v4 }
 0x235   : > { %v2636_v52 = vpop.f32.mrf.mxu0 }
 0x236   : > { %v2147_v23 = vpop.f32.mrf.mxu1  ;;  %v7886_v46 = vadd.f32 %v2636_v52, %v2322_v5 }
 0x237   : > { %v2324_v53 = vadd.f32 %v2147_v23, %v7603_v14  ;;  %v6432_v0 = vpop.f32.mrf.mxu0 }
 0x238   : > { %v6342_v34 = vpop.f32.mrf.mxu1 }
 0x239   : > { %v2641_v12 = vpop.f32.mrf.mxu0  ;;  %6626 = vmatmul.mubr.msk.bf16.gmra.mxu0 %vm439_vm1, %v2949_v35  ;;  %v2919_v34 = vld [vmem:[#allocation2 + $0xdc] sm:$0xff] }
 0x23a   : > { %v2152_v43 = vpop.f32.mrf.mxu1  ;;  %v7890_v1 = vadd.f32 %v2641_v12, %v2323_v54  ;;  %6536 = vmatmul.mubr.msk.bf16.gmra.mxu1 %vm439_vm1, %v2949_v35  ;;  %6629 = vmatprep.mubr.msk.bf16.mxu0 %vm6931_vm0, %v8541_v63 }
 0x23b   : > { %v2325_v5 = vadd.f32 %v2152_v43, %v7607_v24  ;;  %v6435_v8 = vpop.f32.mrf.mxu0  ;;  %6539 = vmatprep.mubr.msk.bf16.mxu1 %vm6931_vm0, %v8541_v63  ;;  %v2918_v24 = vld [vmem:[#allocation2 + $0xd4] sm:$0xff] }
 0x23c   : > { %v6345_v14 = vpop.f32.mrf.mxu1  ;;  %v2951_v4 = vpack.c.bf16 %v2919_v34, %v2918_v24 }
 0x23d   : > { %v2644_v37 = vpop.f32.mrf.mxu0 }
 0x23e   : > { %v2155_v56 = vpop.f32.mrf.mxu1  ;;  %v7898_v10 = vadd.f32 %v2644_v37, %v2324_v53 }
 0x23f   : > { %v2326_v54 = vadd.f32 %v2155_v56, %v7616_v41  ;;  %v6436_v19 = vpop.f32.mrf.mxu0 }
 0x240   : > { %v6346_v52 = vpop.f32.mrf.mxu1 }
 0x241   : > { %v2649_v35 = vpop.f32.mrf.mxu0  ;;  %6630 = vmatmul.mubr.msk.bf16.gmra.mxu0 %vm439_vm1, %v2950_v55  ;;  %v2921_v52 = vld [vmem:[#allocation2 + $0xec] sm:$0xff] }
 0x242   : > { %v2160_v23 = vpop.f32.mrf.mxu1  ;;  %v7902_v0 = vadd.f32 %v2649_v35, %v2325_v5  ;;  %6540 = vmatmul.mubr.msk.bf16.gmra.mxu1 %vm439_vm1, %v2950_v55  ;;  %6633 = vmatprep.mubr.msk.bf16.mxu0 %vm6931_vm0, %v8541_v63 }
 0x243   : > { %v2327_v53 = vadd.f32 %v2160_v23, %v7620_v44  ;;  %v6439_v12 = vpop.f32.mrf.mxu0  ;;  %6543 = vmatprep.mubr.msk.bf16.mxu1 %vm6931_vm0, %v8541_v63  ;;  %v2920_v44 = vld [vmem:[#allocation2 + $0xe4] sm:$0xff] }
 0x244   : > { %v6349_v41 = vpop.f32.mrf.mxu1  ;;  %v2952_v24 = vpack.c.bf16 %v2921_v52, %v2920_v44 }
 0x245   : > { %v2652_v43 = vpop.f32.mrf.mxu0 }
 0x246   : > { %v2163_v62 = vpop.f32.mrf.mxu1  ;;  %v7910_v8 = vadd.f32 %v2652_v43, %v2326_v54 }
 0x247   : > { %v2328_v5 = vadd.f32 %v2163_v62, %v7629_v28  ;;  %v6440_v14 = vpop.f32.mrf.mxu0 }
 0x248   : > { %v6350_v37 = vpop.f32.mrf.mxu1 }
 0x249   : > { %v2657_v55 = vpop.f32.mrf.mxu0  ;;  %6634 = vmatmul.mubr.msk.bf16.gmra.mxu0 %vm439_vm1, %v2951_v4  ;;  %v2923_v37 = vld [vmem:[#allocation2 + $0xfc] sm:$0xff] }
 0x24a   : > { %v2168_v56 = vpop.f32.mrf.mxu1  ;;  %v7914_v19 = vadd.f32 %v2657_v55, %v2327_v53  ;;  %6544 = vmatmul.mubr.msk.bf16.gmra.mxu1 %vm439_vm1, %v2951_v4  ;;  %6637 = vmatprep.mubr.msk.bf16.mxu0 %vm6931_vm0, %v8541_v63 }
 0x24b   : > { %v2329_v54 = vadd.f32 %v2168_v56, %v7633_v47  ;;  %v6443_v35 = vpop.f32.mrf.mxu0  ;;  %6547 = vmatprep.mubr.msk.bf16.mxu1 %vm6931_vm0, %v8541_v63  ;;  %v2922_v47 = vld [vmem:[#allocation2 + $0xf4] sm:$0xff] }
 0x24c   : > { %v6353_v28 = vpop.f32.mrf.mxu1  ;;  %v2953_v44 = vpack.c.bf16 %v2923_v37, %v2922_v47 }
 0x24d   : > { %v2660_v23 = vpop.f32.mrf.mxu0 }
 0x24e   : > { %v2171_v34 = vpop.f32.mrf.mxu1  ;;  %v7922_v12 = vadd.f32 %v2660_v23, %v2328_v5 }
 0x24f   : > { %v2330_v53 = vadd.f32 %v2171_v34, %v7642_v26  ;;  %v6444_v41 = vpop.f32.mrf.mxu0 }
 0x250   : > { %v6354_v43 = vpop.f32.mrf.mxu1 }
 0x251   : > { %v2665_v4 = vpop.f32.mrf.mxu0  ;;  %6638 = vmatmul.mubr.msk.bf16.gmra.mxu0 %vm439_vm1, %v2952_v24  ;;  %v2925_v43 = vld [vmem:[#allocation2 + $0x10c] sm:$0xff] }
 0x252   : > { %v2176_v62 = vpop.f32.mrf.mxu1  ;;  %v7926_v14 = vadd.f32 %v2665_v4, %v2329_v54  ;;  %6548 = vmatmul.mubr.msk.bf16.gmra.mxu1 %vm439_vm1, %v2952_v24  ;;  %6641 = vmatprep.mubr.msk.bf16.mxu0 %vm6931_vm0, %v8541_v63 }
 0x253   : > { %v2331_v5 = vadd.f32 %v2176_v62, %v7646_v30  ;;  %v6447_v55 = vpop.f32.mrf.mxu0  ;;  %6551 = vmatprep.mubr.msk.bf16.mxu1 %vm6931_vm0, %v8541_v63  ;;  %v2924_v30 = vld [vmem:[#allocation2 + $0x104] sm:$0xff] }
 0x254   : > { %v6357_v26 = vpop.f32.mrf.mxu1  ;;  %v2954_v47 = vpack.c.bf16 %v2925_v43, %v2924_v30 }
 0x255   : > { %v2668_v56 = vpop.f32.mrf.mxu0 }
 0x256   : > { %v2179_v52 = vpop.f32.mrf.mxu1  ;;  %v7934_v35 = vadd.f32 %v2668_v56, %v2330_v53 }
 0x257   : > { %v2332_v54 = vadd.f32 %v2179_v52, %v7655_v25  ;;  %v6448_v28 = vpop.f32.mrf.mxu0 }
 0x258   : > { %v6358_v23 = vpop.f32.mrf.mxu1 }
 0x259   : > { %v2673_v24 = vpop.f32.mrf.mxu0  ;;  %6642 = vmatmul.mubr.msk.bf16.gmra.mxu0 %vm439_vm1, %v2953_v44  ;;  %v2927_v23 = vld [vmem:[#allocation2 + $0x11c] sm:$0xff] }
 0x25a   : > { %v2184_v34 = vpop.f32.mrf.mxu1  ;;  %v7938_v41 = vadd.f32 %v2673_v24, %v2331_v5  ;;  %6552 = vmatmul.mubr.msk.bf16.gmra.mxu1 %vm439_vm1, %v2953_v44  ;;  %6645 = vmatprep.mubr.msk.bf16.mxu0 %vm6931_vm0, %v8541_v63 }
 0x25b   : > { %v2333_v53 = vadd.f32 %v2184_v34, %v7659_v17  ;;  %v6451_v4 = vpop.f32.mrf.mxu0  ;;  %6555 = vmatprep.mubr.msk.bf16.mxu1 %vm6931_vm0, %v8541_v63  ;;  %v2926_v17 = vld [vmem:[#allocation2 + $0x114] sm:$0xff] }
 0x25c   : > { %v6361_v25 = vpop.f32.mrf.mxu1  ;;  %v2955_v30 = vpack.c.bf16 %v2927_v23, %v2926_v17 }
 0x25d   : > { %v2676_v62 = vpop.f32.mrf.mxu0 }
 0x25e   : > { %v2187_v37 = vpop.f32.mrf.mxu1  ;;  %v7946_v55 = vadd.f32 %v2676_v62, %v2332_v54 }
 0x25f   : > { %v2334_v5 = vadd.f32 %v2187_v37, %v7668_v31  ;;  %v6452_v26 = vpop.f32.mrf.mxu0 }
 0x260   : > { %v6362_v56 = vpop.f32.mrf.mxu1 }
 0x261   : > { %v2681_v44 = vpop.f32.mrf.mxu0  ;;  %6646 = vmatmul.mubr.msk.bf16.gmra.mxu0 %vm439_vm1, %v2954_v47  ;;  %v2929_v56 = vld [vmem:[#allocation2 + $0x12c] sm:$0xff] }
 0x262   : > { %v2192_v52 = vpop.f32.mrf.mxu1  ;;  %v7950_v28 = vadd.f32 %v2681_v44, %v2333_v53  ;;  %6556 = vmatmul.mubr.msk.bf16.gmra.mxu1 %vm439_vm1, %v2954_v47  ;;  %6649 = vmatprep.mubr.msk.bf16.mxu0 %vm6931_vm0, %v8541_v63 }
 0x263   : > { %v2335_v54 = vadd.f32 %v2192_v52, %v7672_v59  ;;  %v6455_v24 = vpop.f32.mrf.mxu0  ;;  %6559 = vmatprep.mubr.msk.bf16.mxu1 %vm6931_vm0, %v8541_v63  ;;  %v2928_v59 = vld [vmem:[#allocation2 + $0x124] sm:$0xff] }
 0x264   : > { %v6365_v31 = vpop.f32.mrf.mxu1  ;;  %v2956_v17 = vpack.c.bf16 %v2929_v56, %v2928_v59 }
 0x265   : > { %v2684_v34 = vpop.f32.mrf.mxu0 }
 0x266   : > { %v2195_v43 = vpop.f32.mrf.mxu1  ;;  %v7958_v4 = vadd.f32 %v2684_v34, %v2334_v5 }
 0x267   : > { %v2336_v53 = vadd.f32 %v2195_v43, %v7681_v9  ;;  %v6456_v25 = vpop.f32.mrf.mxu0 }
 0x268   : > { %v6366_v62 = vpop.f32.mrf.mxu1 }
 0x269   : > { %v2689_v47 = vpop.f32.mrf.mxu0  ;;  %6650 = vmatmul.mubr.msk.bf16.gmra.mxu0 %vm439_vm1, %v2955_v30  ;;  %v2931_v62 = vld [vmem:[#allocation2 + $0x13c] sm:$0xff] }
 0x26a   : > { %v2200_v37 = vpop.f32.mrf.mxu1  ;;  %v7962_v26 = vadd.f32 %v2689_v47, %v2335_v54  ;;  %6560 = vmatmul.mubr.msk.bf16.gmra.mxu1 %vm439_vm1, %v2955_v30  ;;  %6653 = vmatprep.mubr.msk.bf16.mxu0 %vm6931_vm0, %v8541_v63 }
 0x26b   : > { %v2337_v5 = vadd.f32 %v2200_v37, %v7685_v50  ;;  %v6459_v44 = vpop.f32.mrf.mxu0  ;;  %6563 = vmatprep.mubr.msk.bf16.mxu1 %vm6931_vm0, %v8541_v63  ;;  %v2930_v50 = vld [vmem:[#allocation2 + $0x134] sm:$0xff] }
 0x26c   : > { %v6369_v9 = vpop.f32.mrf.mxu1  ;;  %v2957_v59 = vpack.c.bf16 %v2931_v62, %v2930_v50 }
 0x26d   : > { %v2692_v52 = vpop.f32.mrf.mxu0 }
 0x26e   : > { %v2203_v23 = vpop.f32.mrf.mxu1  ;;  %v7970_v24 = vadd.f32 %v2692_v52, %v2336_v53 }
 0x26f   : > { %v2338_v54 = vadd.f32 %v2203_v23, %v7694_v13  ;;  %v6460_v31 = vpop.f32.mrf.mxu0 }
 0x270   : > { %v6370_v34 = vpop.f32.mrf.mxu1 }
 0x271   : > { %v2697_v30 = vpop.f32.mrf.mxu0  ;;  %6654 = vmatmul.mubr.msk.bf16.gmra.mxu0 %vm439_vm1, %v2956_v17  ;;  %v2933_v34 = vld [vmem:[#allocation2 + $0x14c] sm:$0xff] }
 0x272   : > { %v2208_v43 = vpop.f32.mrf.mxu1  ;;  %v7974_v25 = vadd.f32 %v2697_v30, %v2337_v5  ;;  %6564 = vmatmul.mubr.msk.bf16.gmra.mxu1 %vm439_vm1, %v2956_v17  ;;  %6657 = vmatprep.mubr.msk.bf16.mxu0 %vm6931_vm0, %v8541_v63 }
 0x273   : > { %v2339_v53 = vadd.f32 %v2208_v43, %v7698_v36  ;;  %v6463_v47 = vpop.f32.mrf.mxu0  ;;  %6567 = vmatprep.mubr.msk.bf16.mxu1 %vm6931_vm0, %v8541_v63  ;;  %v2932_v36 = vld [vmem:[#allocation2 + $0x144] sm:$0xff] }
 0x274   : > { %v6373_v13 = vpop.f32.mrf.mxu1  ;;  %v2958_v50 = vpack.c.bf16 %v2933_v34, %v2932_v36 }
 0x275   : > { %v2700_v37 = vpop.f32.mrf.mxu0 }
 0x276   : > { %v2211_v56 = vpop.f32.mrf.mxu1  ;;  %v7982_v44 = vadd.f32 %v2700_v37, %v2338_v54 }
 0x277   : > { %v2340_v5 = vadd.f32 %v2211_v56, %v7707_v18  ;;  %v6464_v9 = vpop.f32.mrf.mxu0 }
 0x278   : > { %v6374_v52 = vpop.f32.mrf.mxu1 }
 0x279   : > { %v2705_v17 = vpop.f32.mrf.mxu0  ;;  %6658 = vmatmul.mubr.msk.bf16.gmra.mxu0 %vm439_vm1, %v2957_v59  ;;  %v2935_v52 = vld [vmem:[#allocation2 + $0x15c] sm:$0xff] }
 0x27a   : > { %v2216_v23 = vpop.f32.mrf.mxu1  ;;  %v7986_v31 = vadd.f32 %v2705_v17, %v2339_v53  ;;  %6568 = vmatmul.mubr.msk.bf16.gmra.mxu1 %vm439_vm1, %v2957_v59  ;;  %6661 = vmatprep.mubr.msk.bf16.mxu0 %vm6931_vm0, %v8541_v63 }
 0x27b   : > { %v2341_v54 = vadd.f32 %v2216_v23, %v7711_v38  ;;  %v6467_v30 = vpop.f32.mrf.mxu0  ;;  %6571 = vmatprep.mubr.msk.bf16.mxu1 %vm6931_vm0, %v8541_v63  ;;  %v2934_v38 = vld [vmem:[#allocation2 + $0x154] sm:$0xff] }
 0x27c   : > { %v6377_v18 = vpop.f32.mrf.mxu1  ;;  %v2959_v36 = vpack.c.bf16 %v2935_v52, %v2934_v38 }
 0x27d   : > { %v2708_v43 = vpop.f32.mrf.mxu0 }
 0x27e   : > { %v2219_v62 = vpop.f32.mrf.mxu1  ;;  %v7994_v47 = vadd.f32 %v2708_v43, %v2340_v5 }
 0x27f   : > { %v2342_v53 = vadd.f32 %v2219_v62, %v7720_v22  ;;  %v6468_v13 = vpop.f32.mrf.mxu0 }
 0x280   : > { %v6378_v37 = vpop.f32.mrf.mxu1 }
 0x281   : > { %v2713_v59 = vpop.f32.mrf.mxu0  ;;  %6662 = vmatmul.mubr.msk.bf16.gmra.mxu0 %vm439_vm1, %v2958_v50  ;;  %v2937_v37 = vld [vmem:[#allocation2 + $0x16c] sm:$0xff] }
 0x282   : > { %v2224_v56 = vpop.f32.mrf.mxu1  ;;  %v7998_v9 = vadd.f32 %v2713_v59, %v2341_v54  ;;  %6572 = vmatmul.mubr.msk.bf16.gmra.mxu1 %vm439_vm1, %v2958_v50  ;;  %6665 = vmatprep.mubr.msk.bf16.mxu0 %vm6931_vm0, %v8541_v63 }
 0x283   : > { %v2343_v5 = vadd.f32 %v2224_v56, %v7724_v33  ;;  %v6471_v17 = vpop.f32.mrf.mxu0  ;;  %6575 = vmatprep.mubr.msk.bf16.mxu1 %vm6931_vm0, %v8541_v63  ;;  %v2936_v33 = vld [vmem:[#allocation2 + $0x164] sm:$0xff] }
 0x284   : > { %v6381_v22 = vpop.f32.mrf.mxu1  ;;  %v2960_v38 = vpack.c.bf16 %v2937_v37, %v2936_v33 }
 0x285   : > { %v2716_v23 = vpop.f32.mrf.mxu0 }
 0x286   : > { %v2227_v34 = vpop.f32.mrf.mxu1  ;;  %v8006_v30 = vadd.f32 %v2716_v23, %v2342_v53 }
 0x287   : > { %v2344_v54 = vadd.f32 %v2227_v34, %v7733_v27  ;;  %v6472_v18 = vpop.f32.mrf.mxu0 }
 0x288   : > { %v6382_v43 = vpop.f32.mrf.mxu1 }
 0x289   : > { %v2721_v50 = vpop.f32.mrf.mxu0  ;;  %6666 = vmatmul.mubr.msk.bf16.gmra.mxu0 %vm439_vm1, %v2959_v36  ;;  %v3434_v43 = vld [vmem:[#allocation2 + $0x17c] sm:$0xff] }
 0x28a   : > { %v2232_v62 = vpop.f32.mrf.mxu1  ;;  %v8010_v13 = vadd.f32 %v2721_v50, %v2343_v5  ;;  %6576 = vmatmul.mubr.msk.bf16.gmra.mxu1 %vm439_vm1, %v2959_v36  ;;  %6669 = vmatprep.mubr.msk.bf16.mxu0 %vm6931_vm0, %v8541_v63 }
 0x28b   : > { %v2345_v53 = vadd.f32 %v2232_v62, %v7738_v3  ;;  %v6475_v59 = vpop.f32.mrf.mxu0  ;;  %6579 = vmatprep.mubr.msk.bf16.mxu1 %vm6931_vm0, %v8541_v63  ;;  %v2938_v3 = vld [vmem:[#allocation2 + $0x174] sm:$0xff] }
 0x28c   : > { %v6385_v27 = vpop.f32.mrf.mxu1  ;;  %v3457_v33 = vpack.c.bf16 %v3434_v43, %v2938_v3 }
 0x28d   : > { %v2724_v56 = vpop.f32.mrf.mxu0 }
 0x28e   : > { %v2235_v52 = vpop.f32.mrf.mxu1  ;;  %v8018_v17 = vadd.f32 %v2724_v56, %v2344_v54 }
 0x28f   : > { %v2346_v5 = vadd.f32 %v2235_v52, %v7746_v6  ;;  %v6476_v22 = vpop.f32.mrf.mxu0 }
 0x290   : > { %v6386_v23 = vpop.f32.mrf.mxu1 }
 0x291   : > { %v2729_v36 = vpop.f32.mrf.mxu0  ;;  %6670 = vmatmul.mubr.msk.bf16.gmra.mxu0 %vm439_vm1, %v2960_v38  ;;  %v3435_v23 = vld [vmem:[#allocation2 + $0x184] sm:$0xff] }
 0x292   : > { %v2240_v34 = vpop.f32.mrf.mxu1  ;;  %v8022_v18 = vadd.f32 %v2729_v36, %v2345_v53  ;;  %6580 = vmatmul.mubr.msk.bf16.gmra.mxu1 %vm439_vm1, %v2960_v38  ;;  %6673 = vmatprep.mubr.msk.bf16.mxu0 %vm6931_vm0, %v8541_v63  ;;  %v2961_v53 = vpack.c.bf16 %v2938_v3, %v2938_v3 }
 0x293   : > { %v2347_v54 = vadd.f32 %v2240_v34, %v7750_v57  ;;  %v6479_v50 = vpop.f32.mrf.mxu0  ;;  %6583 = vmatprep.mubr.msk.bf16.mxu1 %vm6931_vm0, %v8541_v63  ;;  %v3889_v34 = vld [vmem:[#allocation2 + $0x2d] sm:$0xff] }
 0x294   : > { %v6389_v6 = vpop.f32.mrf.mxu1  ;;  %v3458_v50 = vpack.c.bf16 %v3435_v23, %v3435_v23 }
 0x295   : > { %v2732_v62 = vpop.f32.mrf.mxu0 }
 0x296   : > { %v2243_v37 = vpop.f32.mrf.mxu1  ;;  %v8030_v59 = vadd.f32 %v2732_v62, %v2346_v5 }
 0x297   : > { %v2348_v27 = vadd.f32 %v2243_v37, %v7758_v11  ;;  %v6480_v56 = vpop.f32.mrf.mxu0  ;;  %v3888_v11 = vld [vmem:[#allocation2 + $0x25] sm:$0xff] }
 0x298   : > { %v6390_v38 = vpop.f32.mrf.mxu1  ;;  %v3933_v62 = vpack.c.bf16 %v3889_v34, %v3888_v11 }
 0x299   : > { %v2737_v52 = vpop.f32.mrf.mxu0  ;;  %6674 = vmatmul.mubr.msk.bf16.gmra.mxu0 %vm439_vm1, %v3457_v33 }
 0x29a   : > { %v2248_v22 = vpop.f32.mrf.mxu1  ;;  %v8034_v57 = vadd.f32 %v2737_v52, %v2347_v54  ;;  %6584 = vmatmul.mubr.msk.bf16.gmra.mxu1 %vm439_vm1, %v2961_v53  ;;  %6677 = vmatprep.mubr.msk.bf16.mxu0 %vm6931_vm0, %v8541_v63  ;;  %v4385_v52 = vld [vmem:[#allocation2 + $0x26] sm:$0xff] }
 0x29b   : > { %v2349_v5 = vadd.f32 %v2248_v22, %v7765_v16  ;;  %v6483_v36 = vpop.f32.mrf.mxu0  ;;  %6683 = vmatprep.mubr.msk.bf16.mxu1 %vm6931_vm0, %v8541_v63  ;;  %v4386_v22 = vld [vmem:[#allocation2 + $0x2e] sm:$0xff] }
 0x29c   : > { %v6393_v3 = vpop.f32.mrf.mxu1  ;;  %v3891_v36 = vld [vmem:[#allocation2 + $0x3d] sm:$0xff] }
 0x29d   : > { %v2740_v43 = vpop.f32.mrf.mxu0  ;;  %v4430_v3 = vpack.c.bf16 %v4386_v22, %v4385_v52  ;;  %v3892_v22 = vld [vmem:[#allocation2 + $0x45] sm:$0xff] }
 0x29e   : > { %v2251_v6 = vpop.f32.mrf.mxu1  ;;  %v8042_v54 = vadd.f32 %v2740_v43, %v2348_v27 }
 0x29f   : > { %v2350_v33 = vadd.f32 %v2251_v6, %v7773_v45  ;;  %v6484_v37 = vpop.f32.mrf.mxu0  ;;  %v3890_v45 = vld [vmem:[#allocation2 + $0x35] sm:$0xff] }
 0x2a0   : > { %v6394_v53 = vpop.f32.mrf.mxu1 }
 0x2a1   : > { %v2745_v56 = vpop.f32.mrf.mxu0  ;;  %6678 = vmatmul.mubr.msk.bf16.gmra.mxu0 %vm439_vm1, %v3458_v50  ;;  %v3934_v50 = vpack.c.bf16 %v3891_v36, %v3890_v45 }
 0x2a2   : > { %v2256_v16 = vpop.f32.mrf.mxu1  ;;  %v8046_v38 = vadd.f32 %v2745_v56, %v2349_v5  ;;  %6684 = vmatmul.mubr.msk.bf16.vlgmr.msra.gmra.mxu1 %vm439_vm1, %v3933_v62  ;;  %6777 = vmatprep.mubr.msk.bf16.mxu0 %vm6931_vm0, %v8541_v63  ;;  %v4387_v56 = vld [vmem:[#allocation2 + $0x36] sm:$0xff] }
 0x2a3   : > { %v2351_v27 = vadd.f32 %v2256_v16, %v7780_v20  ;;  %v6487_v23 = vpop.f32.mrf.mxu0  ;;  %6687 = vmatprep.mubr.msk.bf16.mxu1 %vm6931_vm0, %v8541_v63  ;;  %v4388_v16 = vld [vmem:[#allocation2 + $0x3e] sm:$0xff] }
 0x2a4   : > { %v6397_v11 = vpop.f32.mrf.mxu1  ;;  %v3893_v23 = vld [vmem:[#allocation2 + $0x4d] sm:$0xff] }
 0x2a5   : > { %v2748_v34 = vpop.f32.mrf.mxu0 }
 0x2a6   : > { %v2259_v5 = vpop.f32.mrf.mxu1  ;;  %v8054_v43 = vadd.f32 %v2748_v34, %v2350_v33  ;;  %v3935_v34 = vpack.c.bf16 %v3893_v23, %v3892_v22 }
 0x2a7   : > { %v6488_v6 = vpop.f32.mrf.mxu0 }
 0x2a8   : > { %v6398_v62 = vpop.f32.mrf.mxu1 }
 0x2a9   : > { %v2753_v37 = vpop.f32.mrf.mxu0  ;;  %6778 = vmatmul.mubr.msk.bf16.vlgmr.msra.gmra.mxu0 %vm439_vm1, %v4430_v3 }
 0x2aa   : > { %v8057_v53 = vadd.f32 %v2753_v37, %v2351_v27  ;;  %v3074_v20 = vpop.f32.mrf.mxu1  ;;  %6688 = vmatmul.mubr.msk.bf16.gmra.mxu1 %vm439_vm1, %v3934_v50  ;;  %6781 = vmatprep.mubr.msk.bf16.mxu0 %vm6931_vm0, %v8541_v63  ;;  %v4431_v27 = vpack.c.bf16 %v4388_v16, %v4387_v56  ;;  %v4389_v37 = vld [vmem:[#allocation2 + $0x46] sm:$0xff] }
 0x2ab   : > { %v3301_v52 = vadd.f32 %v3074_v20, %v7790_v61  ;;  %v6491_v33 = vpop.f32.mrf.mxu0  ;;  %6691 = vmatprep.mubr.msk.bf16.mxu1 %vm6931_vm0, %v8541_v63  ;;  %v4390_v20 = vld [vmem:[#allocation2 + $0x4e] sm:$0xff] }
 0x2ac   : > { %v6497_v45 = vpop.f32.mrf.mxu1  ;;  %v3895_v33 = vld [vmem:[#allocation2 + $0x5d] sm:$0xff] }
 0x2ad   : > { %v2756_v36 = vpop.f32.mrf.mxu0  ;;  %v4432_v45 = vpack.c.bf16 %v4390_v20, %v4389_v37  ;;  %v4392_v37 = vld [vmem:[#allocation2 + $0x5e] sm:$0xff] }
 0x2ae   : > { %v3077_v11 = vpop.f32.mrf.mxu1 }
 0x2af   : > { %v3302_v3 = vadd.f32 %v3077_v11, %v7798_v51  ;;  %v6492_v5 = vpop.f32.mrf.mxu0  ;;  %v3894_v51 = vld [vmem:[#allocation2 + $0x55] sm:$0xff] }
 0x2b0   : > { %v6498_v50 = vpop.f32.mrf.mxu1 }
 0x2b1   : > { %v3571_v6 = vpop.f32.mrf.mxu0  ;;  %6782 = vmatmul.mubr.msk.bf16.gmra.mxu0 %vm439_vm1, %v4431_v27  ;;  %v3936_v27 = vpack.c.bf16 %v3895_v33, %v3894_v51 }
 0x2b2   : > { %v3082_v62 = vpop.f32.mrf.mxu1  ;;  %v8067_v61 = vadd.f32 %v3571_v6, %v3301_v52  ;;  %6692 = vmatmul.mubr.msk.bf16.gmra.mxu1 %vm439_vm1, %v3935_v34  ;;  %6785 = vmatprep.mubr.msk.bf16.mxu0 %vm6931_vm0, %v8541_v63 }
 0x2b3   : > { %v3303_v56 = vadd.f32 %v3082_v62, %v7802_v58  ;;  %v6591_v16 = vpop.f32.mrf.mxu0  ;;  %6695 = vmatprep.mubr.msk.bf16.mxu1 %vm6931_vm0, %v8541_v63  ;;  %v4391_v62 = vld [vmem:[#allocation2 + $0x56] sm:$0xff] }
 0x2b4   : > { %v6501_v22 = vpop.f32.mrf.mxu1  ;;  %v3897_v16 = vld [vmem:[#allocation2 + $0x6d] sm:$0xff] }
 0x2b5   : > { %v3574_v23 = vpop.f32.mrf.mxu0  ;;  %v4433_v22 = vpack.c.bf16 %v4392_v37, %v4391_v62  ;;  %v4394_v62 = vld [vmem:[#allocation2 + $0x6e] sm:$0xff] }
 0x2b6   : > { %v3085_v52 = vpop.f32.mrf.mxu1  ;;  %v8075_v36 = vadd.f32 %v3574_v23, %v3302_v3 }
 0x2b7   : > { %v3304_v11 = vadd.f32 %v3085_v52, %v7810_v15  ;;  %v6592_v34 = vpop.f32.mrf.mxu0  ;;  %v3896_v15 = vld [vmem:[#allocation2 + $0x65] sm:$0xff] }
 0x2b8   : > { %v6502_v5 = vpop.f32.mrf.mxu1 }
 0x2b9   : > { %v3579_v50 = vpop.f32.mrf.mxu0  ;;  %6786 = vmatmul.mubr.msk.bf16.gmra.mxu0 %vm439_vm1, %v4432_v45  ;;  %v3937_v45 = vpack.c.bf16 %v3897_v16, %v3896_v15 }
 0x2ba   : > { %v3090_v58 = vpop.f32.mrf.mxu1  ;;  %v8079_v6 = vadd.f32 %v3579_v50, %v3303_v56  ;;  %6696 = vmatmul.mubr.msk.bf16.gmra.mxu1 %vm439_vm1, %v3936_v27  ;;  %6789 = vmatprep.mubr.msk.bf16.mxu0 %vm6931_vm0, %v8541_v63 }
 0x2bb   : > { %v3305_v3 = vadd.f32 %v3090_v58, %v7814_v32  ;;  %v6595_v20 = vpop.f32.mrf.mxu0  ;;  %6699 = vmatprep.mubr.msk.bf16.mxu1 %vm6931_vm0, %v8541_v63  ;;  %v4393_v58 = vld [vmem:[#allocation2 + $0x66] sm:$0xff] }
 0x2bc   : > { %v6505_v51 = vpop.f32.mrf.mxu1  ;;  %v3899_v20 = vld [vmem:[#allocation2 + $0x7d] sm:$0xff] }
 0x2bd   : > { %v3582_v33 = vpop.f32.mrf.mxu0  ;;  %v4434_v51 = vpack.c.bf16 %v4394_v62, %v4393_v58  ;;  %v4396_v58 = vld [vmem:[#allocation2 + $0x7e] sm:$0xff] }
 0x2be   : > { %v3093_v56 = vpop.f32.mrf.mxu1  ;;  %v8087_v23 = vadd.f32 %v3582_v33, %v3304_v11 }
 0x2bf   : > { %v3306_v52 = vadd.f32 %v3093_v56, %v7822_v7  ;;  %v6596_v27 = vpop.f32.mrf.mxu0  ;;  %v3898_v7 = vld [vmem:[#allocation2 + $0x75] sm:$0xff] }
 0x2c0   : > { %v6506_v34 = vpop.f32.mrf.mxu1 }
 0x2c1   : > { %v3587_v5 = vpop.f32.mrf.mxu0  ;;  %6790 = vmatmul.mubr.msk.bf16.gmra.mxu0 %vm439_vm1, %v4433_v22  ;;  %v3938_v22 = vpack.c.bf16 %v3899_v20, %v3898_v7 }
 0x2c2   : > { %v3098_v32 = vpop.f32.mrf.mxu1  ;;  %v8091_v50 = vadd.f32 %v3587_v5, %v3305_v3  ;;  %6700 = vmatmul.mubr.msk.bf16.gmra.mxu1 %vm439_vm1, %v3937_v45  ;;  %6793 = vmatprep.mubr.msk.bf16.mxu0 %vm6931_vm0, %v8541_v63 }
 0x2c3   : > { %v3307_v11 = vadd.f32 %v3098_v32, %v7828_v40  ;;  %v6599_v37 = vpop.f32.mrf.mxu0  ;;  %6703 = vmatprep.mubr.msk.bf16.mxu1 %vm6931_vm0, %v8541_v63  ;;  %v4395_v32 = vld [vmem:[#allocation2 + $0x76] sm:$0xff] }
 0x2c4   : > { %v6509_v15 = vpop.f32.mrf.mxu1  ;;  %v3901_v37 = vld [vmem:[#allocation2 + $0x8d] sm:$0xff] }
 0x2c5   : > { %v3590_v16 = vpop.f32.mrf.mxu0  ;;  %v4435_v15 = vpack.c.bf16 %v4396_v58, %v4395_v32  ;;  %v4398_v32 = vld [vmem:[#allocation2 + $0x8e] sm:$0xff] }
 0x2c6   : > { %v3101_v3 = vpop.f32.mrf.mxu1  ;;  %v8099_v33 = vadd.f32 %v3590_v16, %v3306_v52 }
 0x2c7   : > { %v3308_v56 = vadd.f32 %v3101_v3, %v7837_v60  ;;  %v6600_v45 = vpop.f32.mrf.mxu0  ;;  %v3900_v60 = vld [vmem:[#allocation2 + $0x85] sm:$0xff] }
 0x2c8   : > { %v6510_v27 = vpop.f32.mrf.mxu1 }
 0x2c9   : > { %v3595_v34 = vpop.f32.mrf.mxu0  ;;  %6794 = vmatmul.mubr.msk.bf16.gmra.mxu0 %vm439_vm1, %v4434_v51  ;;  %v3939_v51 = vpack.c.bf16 %v3901_v37, %v3900_v60 }
 0x2ca   : > { %v3106_v40 = vpop.f32.mrf.mxu1  ;;  %v8103_v5 = vadd.f32 %v3595_v34, %v3307_v11  ;;  %6704 = vmatmul.mubr.msk.bf16.gmra.mxu1 %vm439_vm1, %v3938_v22  ;;  %6797 = vmatprep.mubr.msk.bf16.mxu0 %vm6931_vm0, %v8541_v63 }
 0x2cb   : > { %v3309_v52 = vadd.f32 %v3106_v40, %v7842_v21  ;;  %v6603_v62 = vpop.f32.mrf.mxu0  ;;  %6707 = vmatprep.mubr.msk.bf16.mxu1 %vm6931_vm0, %v8541_v63  ;;  %v4397_v40 = vld [vmem:[#allocation2 + $0x86] sm:$0xff] }
 0x2cc   : > { %v6513_v7 = vpop.f32.mrf.mxu1  ;;  %v3903_v62 = vld [vmem:[#allocation2 + $0x9d] sm:$0xff] }
 0x2cd   : > { %v3598_v20 = vpop.f32.mrf.mxu0  ;;  %v4436_v7 = vpack.c.bf16 %v4398_v32, %v4397_v40  ;;  %v4400_v40 = vld [vmem:[#allocation2 + $0x9e] sm:$0xff] }
 0x2ce   : > { %v3109_v11 = vpop.f32.mrf.mxu1  ;;  %v8111_v16 = vadd.f32 %v3598_v20, %v3308_v56 }
 0x2cf   : > { %v3310_v3 = vadd.f32 %v3109_v11, %v7850_v2  ;;  %v6604_v22 = vpop.f32.mrf.mxu0  ;;  %v3902_v2 = vld [vmem:[#allocation2 + $0x95] sm:$0xff] }
 0x2d0   : > { %v6514_v45 = vpop.f32.mrf.mxu1 }
 0x2d1   : > { %v3603_v27 = vpop.f32.mrf.mxu0  ;;  %6798 = vmatmul.mubr.msk.bf16.gmra.mxu0 %vm439_vm1, %v4435_v15  ;;  %v3940_v15 = vpack.c.bf16 %v3903_v62, %v3902_v2 }
 0x2d2   : > { %v3114_v21 = vpop.f32.mrf.mxu1  ;;  %v8115_v34 = vadd.f32 %v3603_v27, %v3309_v52  ;;  %6708 = vmatmul.mubr.msk.bf16.gmra.mxu1 %vm439_vm1, %v3939_v51  ;;  %6801 = vmatprep.mubr.msk.bf16.mxu0 %vm6931_vm0, %v8541_v63 }
 0x2d3   : > { %v3311_v56 = vadd.f32 %v3114_v21, %v7854_v49  ;;  %v6607_v58 = vpop.f32.mrf.mxu0  ;;  %6711 = vmatprep.mubr.msk.bf16.mxu1 %vm6931_vm0, %v8541_v63  ;;  %v4399_v21 = vld [vmem:[#allocation2 + $0x96] sm:$0xff] }
 0x2d4   : > { %v6517_v60 = vpop.f32.mrf.mxu1  ;;  %v3905_v58 = vld [vmem:[#allocation2 + $0xad] sm:$0xff] }
 0x2d5   : > { %v3606_v37 = vpop.f32.mrf.mxu0  ;;  %v4437_v60 = vpack.c.bf16 %v4400_v40, %v4399_v21  ;;  %v4402_v21 = vld [vmem:[#allocation2 + $0xae] sm:$0xff] }
 0x2d6   : > { %v3117_v52 = vpop.f32.mrf.mxu1  ;;  %v8123_v20 = vadd.f32 %v3606_v37, %v3310_v3 }
 0x2d7   : > { %v3312_v11 = vadd.f32 %v3117_v52, %v7862_v48  ;;  %v6608_v51 = vpop.f32.mrf.mxu0  ;;  %v3904_v48 = vld [vmem:[#allocation2 + $0xa5] sm:$0xff] }
 0x2d8   : > { %v6518_v22 = vpop.f32.mrf.mxu1 }
 0x2d9   : > { %v3611_v45 = vpop.f32.mrf.mxu0  ;;  %6802 = vmatmul.mubr.msk.bf16.gmra.mxu0 %vm439_vm1, %v4436_v7  ;;  %v3941_v7 = vpack.c.bf16 %v3905_v58, %v3904_v48 }
 0x2da   : > { %v3122_v49 = vpop.f32.mrf.mxu1  ;;  %v8127_v27 = vadd.f32 %v3611_v45, %v3311_v56  ;;  %6712 = vmatmul.mubr.msk.bf16.gmra.mxu1 %vm439_vm1, %v3940_v15  ;;  %6805 = vmatprep.mubr.msk.bf16.mxu0 %vm6931_vm0, %v8541_v63 }
 0x2db   : > { %v3313_v3 = vadd.f32 %v3122_v49, %v7866_v42  ;;  %v6611_v32 = vpop.f32.mrf.mxu0  ;;  %6715 = vmatprep.mubr.msk.bf16.mxu1 %vm6931_vm0, %v8541_v63  ;;  %v4401_v49 = vld [vmem:[#allocation2 + $0xa6] sm:$0xff] }
 0x2dc   : > { %v6521_v2 = vpop.f32.mrf.mxu1  ;;  %v3907_v32 = vld [vmem:[#allocation2 + $0xbd] sm:$0xff] }
 0x2dd   : > { %v3614_v62 = vpop.f32.mrf.mxu0  ;;  %v4438_v2 = vpack.c.bf16 %v4402_v21, %v4401_v49  ;;  %v4404_v49 = vld [vmem:[#allocation2 + $0xbe] sm:$0xff] }
 0x2de   : > { %v3125_v56 = vpop.f32.mrf.mxu1  ;;  %v8135_v37 = vadd.f32 %v3614_v62, %v3312_v11 }
 0x2df   : > { %v3314_v52 = vadd.f32 %v3125_v56, %v7874_v39  ;;  %v6612_v15 = vpop.f32.mrf.mxu0  ;;  %v3906_v39 = vld [vmem:[#allocation2 + $0xb5] sm:$0xff] }
 0x2e0   : > { %v6522_v51 = vpop.f32.mrf.mxu1 }
 0x2e1   : > { %v3619_v22 = vpop.f32.mrf.mxu0  ;;  %6806 = vmatmul.mubr.msk.bf16.gmra.mxu0 %vm439_vm1, %v4437_v60  ;;  %v3942_v60 = vpack.c.bf16 %v3907_v32, %v3906_v39 }
 0x2e2   : > { %v3130_v42 = vpop.f32.mrf.mxu1  ;;  %v8139_v45 = vadd.f32 %v3619_v22, %v3313_v3  ;;  %6716 = vmatmul.mubr.msk.bf16.gmra.mxu1 %vm439_vm1, %v3941_v7  ;;  %6809 = vmatprep.mubr.msk.bf16.mxu0 %vm6931_vm0, %v8541_v63 }
 0x2e3   : > { %v3315_v11 = vadd.f32 %v3130_v42, %v7878_v29  ;;  %v6615_v40 = vpop.f32.mrf.mxu0  ;;  %6719 = vmatprep.mubr.msk.bf16.mxu1 %vm6931_vm0, %v8541_v63  ;;  %v4403_v42 = vld [vmem:[#allocation2 + $0xb6] sm:$0xff] }
 0x2e4   : > { %v6525_v48 = vpop.f32.mrf.mxu1  ;;  %v3909_v40 = vld [vmem:[#allocation2 + $0xcd] sm:$0xff] }
 0x2e5   : > { %v3622_v58 = vpop.f32.mrf.mxu0  ;;  %v4439_v48 = vpack.c.bf16 %v4404_v49, %v4403_v42  ;;  %v4406_v42 = vld [vmem:[#allocation2 + $0xce] sm:$0xff] }
 0x2e6   : > { %v3133_v3 = vpop.f32.mrf.mxu1  ;;  %v8147_v62 = vadd.f32 %v3622_v58, %v3314_v52 }
 0x2e7   : > { %v3316_v56 = vadd.f32 %v3133_v3, %v7886_v46  ;;  %v6616_v7 = vpop.f32.mrf.mxu0  ;;  %v3908_v46 = vld [vmem:[#allocation2 + $0xc5] sm:$0xff] }
 0x2e8   : > { %v6526_v15 = vpop.f32.mrf.mxu1 }
 0x2e9   : > { %v3627_v51 = vpop.f32.mrf.mxu0  ;;  %6810 = vmatmul.mubr.msk.bf16.gmra.mxu0 %vm439_vm1, %v4438_v2  ;;  %v3943_v2 = vpack.c.bf16 %v3909_v40, %v3908_v46 }
 0x2ea   : > { %v3138_v29 = vpop.f32.mrf.mxu1  ;;  %v8151_v22 = vadd.f32 %v3627_v51, %v3315_v11  ;;  %6720 = vmatmul.mubr.msk.bf16.gmra.mxu1 %vm439_vm1, %v3942_v60  ;;  %6813 = vmatprep.mubr.msk.bf16.mxu0 %vm6931_vm0, %v8541_v63 }
 0x2eb   : > { %v3317_v52 = vadd.f32 %v3138_v29, %v7890_v1  ;;  %v6619_v21 = vpop.f32.mrf.mxu0  ;;  %6723 = vmatprep.mubr.msk.bf16.mxu1 %vm6931_vm0, %v8541_v63  ;;  %v4405_v29 = vld [vmem:[#allocation2 + $0xc6] sm:$0xff] }
 0x2ec   : > { %v6529_v39 = vpop.f32.mrf.mxu1  ;;  %v3911_v21 = vld [vmem:[#allocation2 + $0xdd] sm:$0xff] }
 0x2ed   : > { %v3630_v32 = vpop.f32.mrf.mxu0  ;;  %v4440_v39 = vpack.c.bf16 %v4406_v42, %v4405_v29  ;;  %v4408_v29 = vld [vmem:[#allocation2 + $0xde] sm:$0xff] }
 0x2ee   : > { %v3141_v11 = vpop.f32.mrf.mxu1  ;;  %v8159_v58 = vadd.f32 %v3630_v32, %v3316_v56 }
 0x2ef   : > { %v3318_v3 = vadd.f32 %v3141_v11, %v7898_v10  ;;  %v6620_v60 = vpop.f32.mrf.mxu0  ;;  %v3910_v10 = vld [vmem:[#allocation2 + $0xd5] sm:$0xff] }
 0x2f0   : > { %v6530_v7 = vpop.f32.mrf.mxu1 }
 0x2f1   : > { %v3635_v15 = vpop.f32.mrf.mxu0  ;;  %6814 = vmatmul.mubr.msk.bf16.gmra.mxu0 %vm439_vm1, %v4439_v48  ;;  %v3944_v48 = vpack.c.bf16 %v3911_v21, %v3910_v10 }
 0x2f2   : > { %v3146_v1 = vpop.f32.mrf.mxu1  ;;  %v8163_v51 = vadd.f32 %v3635_v15, %v3317_v52  ;;  %6724 = vmatmul.mubr.msk.bf16.gmra.mxu1 %vm439_vm1, %v3943_v2  ;;  %6817 = vmatprep.mubr.msk.bf16.mxu0 %vm6931_vm0, %v8541_v63 }
 0x2f3   : > { %v3319_v56 = vadd.f32 %v3146_v1, %v7902_v0  ;;  %v6623_v49 = vpop.f32.mrf.mxu0  ;;  %6727 = vmatprep.mubr.msk.bf16.mxu1 %vm6931_vm0, %v8541_v63  ;;  %v4407_v1 = vld [vmem:[#allocation2 + $0xd6] sm:$0xff] }
 0x2f4   : > { %v6533_v46 = vpop.f32.mrf.mxu1  ;;  %v3913_v49 = vld [vmem:[#allocation2 + $0xed] sm:$0xff] }
 0x2f5   : > { %v3638_v40 = vpop.f32.mrf.mxu0  ;;  %v4441_v46 = vpack.c.bf16 %v4408_v29, %v4407_v1  ;;  %v4410_v1 = vld [vmem:[#allocation2 + $0xee] sm:$0xff] }
 0x2f6   : > { %v3149_v52 = vpop.f32.mrf.mxu1  ;;  %v8171_v32 = vadd.f32 %v3638_v40, %v3318_v3 }
 0x2f7   : > { %v3320_v11 = vadd.f32 %v3149_v52, %v7910_v8  ;;  %v6624_v2 = vpop.f32.mrf.mxu0  ;;  %v3912_v8 = vld [vmem:[#allocation2 + $0xe5] sm:$0xff] }
 0x2f8   : > { %v6534_v60 = vpop.f32.mrf.mxu1 }
 0x2f9   : > { %v3643_v7 = vpop.f32.mrf.mxu0  ;;  %6818 = vmatmul.mubr.msk.bf16.gmra.mxu0 %vm439_vm1, %v4440_v39  ;;  %v3945_v39 = vpack.c.bf16 %v3913_v49, %v3912_v8 }
 0x2fa   : > { %v3154_v0 = vpop.f32.mrf.mxu1  ;;  %v8175_v15 = vadd.f32 %v3643_v7, %v3319_v56  ;;  %6728 = vmatmul.mubr.msk.bf16.gmra.mxu1 %vm439_vm1, %v3944_v48  ;;  %6821 = vmatprep.mubr.msk.bf16.mxu0 %vm6931_vm0, %v8541_v63 }
 0x2fb   : > { %v3321_v3 = vadd.f32 %v3154_v0, %v7914_v19  ;;  %v6627_v42 = vpop.f32.mrf.mxu0  ;;  %6731 = vmatprep.mubr.msk.bf16.mxu1 %vm6931_vm0, %v8541_v63  ;;  %v4409_v0 = vld [vmem:[#allocation2 + $0xe6] sm:$0xff] }
 0x2fc   : > { %v6537_v10 = vpop.f32.mrf.mxu1  ;;  %v3915_v42 = vld [vmem:[#allocation2 + $0xfd] sm:$0xff] }
 0x2fd   : > { %v3646_v21 = vpop.f32.mrf.mxu0  ;;  %v4442_v10 = vpack.c.bf16 %v4410_v1, %v4409_v0  ;;  %v4412_v0 = vld [vmem:[#allocation2 + $0xfe] sm:$0xff] }
 0x2fe   : > { %v3157_v56 = vpop.f32.mrf.mxu1  ;;  %v8183_v40 = vadd.f32 %v3646_v21, %v3320_v11 }
 0x2ff   : > { %v3322_v52 = vadd.f32 %v3157_v56, %v7922_v12  ;;  %v6628_v48 = vpop.f32.mrf.mxu0  ;;  %v3914_v12 = vld [vmem:[#allocation2 + $0xf5] sm:$0xff] }
 0x300   : > { %v6538_v2 = vpop.f32.mrf.mxu1 }
 0x301   : > { %v3651_v60 = vpop.f32.mrf.mxu0  ;;  %6822 = vmatmul.mubr.msk.bf16.gmra.mxu0 %vm439_vm1, %v4441_v46  ;;  %v3946_v46 = vpack.c.bf16 %v3915_v42, %v3914_v12 }
 0x302   : > { %v3162_v19 = vpop.f32.mrf.mxu1  ;;  %v8187_v7 = vadd.f32 %v3651_v60, %v3321_v3  ;;  %6732 = vmatmul.mubr.msk.bf16.gmra.mxu1 %vm439_vm1, %v3945_v39  ;;  %6825 = vmatprep.mubr.msk.bf16.mxu0 %vm6931_vm0, %v8541_v63 }
 0x303   : > { %v3323_v11 = vadd.f32 %v3162_v19, %v7926_v14  ;;  %v6631_v29 = vpop.f32.mrf.mxu0  ;;  %6735 = vmatprep.mubr.msk.bf16.mxu1 %vm6931_vm0, %v8541_v63  ;;  %v4411_v19 = vld [vmem:[#allocation2 + $0xf6] sm:$0xff] }
 0x304   : > { %v6541_v8 = vpop.f32.mrf.mxu1  ;;  %v3917_v29 = vld [vmem:[#allocation2 + $0x10d] sm:$0xff] }
 0x305   : > { %v3654_v49 = vpop.f32.mrf.mxu0  ;;  %v4443_v8 = vpack.c.bf16 %v4412_v0, %v4411_v19  ;;  %v4414_v19 = vld [vmem:[#allocation2 + $0x10e] sm:$0xff] }
 0x306   : > { %v3165_v3 = vpop.f32.mrf.mxu1  ;;  %v8195_v21 = vadd.f32 %v3654_v49, %v3322_v52 }
 0x307   : > { %v3324_v56 = vadd.f32 %v3165_v3, %v7934_v35  ;;  %v6632_v39 = vpop.f32.mrf.mxu0  ;;  %v3916_v35 = vld [vmem:[#allocation2 + $0x105] sm:$0xff] }
 0x308   : > { %v6542_v48 = vpop.f32.mrf.mxu1 }
 0x309   : > { %v3659_v2 = vpop.f32.mrf.mxu0  ;;  %6826 = vmatmul.mubr.msk.bf16.gmra.mxu0 %vm439_vm1, %v4442_v10  ;;  %v3947_v10 = vpack.c.bf16 %v3917_v29, %v3916_v35 }
 0x30a   : > { %v3170_v14 = vpop.f32.mrf.mxu1  ;;  %v8199_v60 = vadd.f32 %v3659_v2, %v3323_v11  ;;  %6736 = vmatmul.mubr.msk.bf16.gmra.mxu1 %vm439_vm1, %v3946_v46  ;;  %6829 = vmatprep.mubr.msk.bf16.mxu0 %vm6931_vm0, %v8541_v63 }
 0x30b   : > { %v3325_v52 = vadd.f32 %v3170_v14, %v7938_v41  ;;  %v6635_v1 = vpop.f32.mrf.mxu0  ;;  %6739 = vmatprep.mubr.msk.bf16.mxu1 %vm6931_vm0, %v8541_v63  ;;  %v4413_v14 = vld [vmem:[#allocation2 + $0x106] sm:$0xff] }
 0x30c   : > { %v6545_v12 = vpop.f32.mrf.mxu1  ;;  %v3919_v1 = vld [vmem:[#allocation2 + $0x11d] sm:$0xff] }
 0x30d   : > { %v3662_v42 = vpop.f32.mrf.mxu0  ;;  %v4444_v12 = vpack.c.bf16 %v4414_v19, %v4413_v14  ;;  %v4416_v14 = vld [vmem:[#allocation2 + $0x11e] sm:$0xff] }
 0x30e   : > { %v3173_v11 = vpop.f32.mrf.mxu1  ;;  %v8207_v49 = vadd.f32 %v3662_v42, %v3324_v56 }
 0x30f   : > { %v3326_v3 = vadd.f32 %v3173_v11, %v7946_v55  ;;  %v6636_v46 = vpop.f32.mrf.mxu0  ;;  %v3918_v55 = vld [vmem:[#allocation2 + $0x115] sm:$0xff] }
 0x310   : > { %v6546_v39 = vpop.f32.mrf.mxu1 }
 0x311   : > { %v3667_v48 = vpop.f32.mrf.mxu0  ;;  %6830 = vmatmul.mubr.msk.bf16.gmra.mxu0 %vm439_vm1, %v4443_v8  ;;  %v3948_v8 = vpack.c.bf16 %v3919_v1, %v3918_v55 }
 0x312   : > { %v3178_v41 = vpop.f32.mrf.mxu1  ;;  %v8211_v2 = vadd.f32 %v3667_v48, %v3325_v52  ;;  %6740 = vmatmul.mubr.msk.bf16.gmra.mxu1 %vm439_vm1, %v3947_v10  ;;  %6833 = vmatprep.mubr.msk.bf16.mxu0 %vm6931_vm0, %v8541_v63 }
 0x313   : > { %v3327_v56 = vadd.f32 %v3178_v41, %v7950_v28  ;;  %v6639_v0 = vpop.f32.mrf.mxu0  ;;  %6743 = vmatprep.mubr.msk.bf16.mxu1 %vm6931_vm0, %v8541_v63  ;;  %v4415_v41 = vld [vmem:[#allocation2 + $0x116] sm:$0xff] }
 0x314   : > { %v6549_v35 = vpop.f32.mrf.mxu1  ;;  %v3921_v0 = vld [vmem:[#allocation2 + $0x12d] sm:$0xff] }
 0x315   : > { %v3670_v29 = vpop.f32.mrf.mxu0  ;;  %v4445_v35 = vpack.c.bf16 %v4416_v14, %v4415_v41  ;;  %v4418_v41 = vld [vmem:[#allocation2 + $0x12e] sm:$0xff] }
 0x316   : > { %v3181_v52 = vpop.f32.mrf.mxu1  ;;  %v8219_v42 = vadd.f32 %v3670_v29, %v3326_v3 }
 0x317   : > { %v3328_v11 = vadd.f32 %v3181_v52, %v7958_v4  ;;  %v6640_v10 = vpop.f32.mrf.mxu0  ;;  %v3920_v4 = vld [vmem:[#allocation2 + $0x125] sm:$0xff] }
 0x318   : > { %v6550_v46 = vpop.f32.mrf.mxu1 }
 0x319   : > { %v3675_v39 = vpop.f32.mrf.mxu0  ;;  %6834 = vmatmul.mubr.msk.bf16.gmra.mxu0 %vm439_vm1, %v4444_v12  ;;  %v3949_v12 = vpack.c.bf16 %v3921_v0, %v3920_v4 }
 0x31a   : > { %v3186_v28 = vpop.f32.mrf.mxu1  ;;  %v8223_v48 = vadd.f32 %v3675_v39, %v3327_v56  ;;  %6744 = vmatmul.mubr.msk.bf16.gmra.mxu1 %vm439_vm1, %v3948_v8  ;;  %6837 = vmatprep.mubr.msk.bf16.mxu0 %vm6931_vm0, %v8541_v63 }
 0x31b   : > { %v3329_v3 = vadd.f32 %v3186_v28, %v7962_v26  ;;  %v6643_v19 = vpop.f32.mrf.mxu0  ;;  %6747 = vmatprep.mubr.msk.bf16.mxu1 %vm6931_vm0, %v8541_v63  ;;  %v4417_v28 = vld [vmem:[#allocation2 + $0x126] sm:$0xff] }
 0x31c   : > { %v6553_v55 = vpop.f32.mrf.mxu1  ;;  %v3923_v19 = vld [vmem:[#allocation2 + $0x13d] sm:$0xff] }
 0x31d   : > { %v3678_v1 = vpop.f32.mrf.mxu0  ;;  %v4446_v55 = vpack.c.bf16 %v4418_v41, %v4417_v28  ;;  %v4420_v28 = vld [vmem:[#allocation2 + $0x13e] sm:$0xff] }
 0x31e   : > { %v3189_v56 = vpop.f32.mrf.mxu1  ;;  %v8231_v29 = vadd.f32 %v3678_v1, %v3328_v11 }
 0x31f   : > { %v3330_v52 = vadd.f32 %v3189_v56, %v7970_v24  ;;  %v6644_v8 = vpop.f32.mrf.mxu0  ;;  %v3922_v24 = vld [vmem:[#allocation2 + $0x135] sm:$0xff] }
 0x320   : > { %v6554_v10 = vpop.f32.mrf.mxu1 }
 0x321   : > { %v3683_v46 = vpop.f32.mrf.mxu0  ;;  %6838 = vmatmul.mubr.msk.bf16.gmra.mxu0 %vm439_vm1, %v4445_v35  ;;  %v3950_v35 = vpack.c.bf16 %v3923_v19, %v3922_v24 }
 0x322   : > { %v3194_v26 = vpop.f32.mrf.mxu1  ;;  %v8235_v39 = vadd.f32 %v3683_v46, %v3329_v3  ;;  %6748 = vmatmul.mubr.msk.bf16.gmra.mxu1 %vm439_vm1, %v3949_v12  ;;  %6841 = vmatprep.mubr.msk.bf16.mxu0 %vm6931_vm0, %v8541_v63 }
 0x323   : > { %v3331_v11 = vadd.f32 %v3194_v26, %v7974_v25  ;;  %v6647_v14 = vpop.f32.mrf.mxu0  ;;  %6751 = vmatprep.mubr.msk.bf16.mxu1 %vm6931_vm0, %v8541_v63  ;;  %v4419_v26 = vld [vmem:[#allocation2 + $0x136] sm:$0xff] }
 0x324   : > { %v6557_v4 = vpop.f32.mrf.mxu1  ;;  %v3925_v14 = vld [vmem:[#allocation2 + $0x14d] sm:$0xff] }
 0x325   : > { %v3686_v0 = vpop.f32.mrf.mxu0  ;;  %v4447_v4 = vpack.c.bf16 %v4420_v28, %v4419_v26  ;;  %v4422_v26 = vld [vmem:[#allocation2 + $0x14e] sm:$0xff] }
 0x326   : > { %v3197_v3 = vpop.f32.mrf.mxu1  ;;  %v8243_v1 = vadd.f32 %v3686_v0, %v3330_v52 }
 0x327   : > { %v3332_v56 = vadd.f32 %v3197_v3, %v7982_v44  ;;  %v6648_v12 = vpop.f32.mrf.mxu0  ;;  %v3924_v44 = vld [vmem:[#allocation2 + $0x145] sm:$0xff] }
 0x328   : > { %v6558_v8 = vpop.f32.mrf.mxu1 }
 0x329   : > { %v3691_v10 = vpop.f32.mrf.mxu0  ;;  %6842 = vmatmul.mubr.msk.bf16.gmra.mxu0 %vm439_vm1, %v4446_v55  ;;  %v3951_v55 = vpack.c.bf16 %v3925_v14, %v3924_v44 }
 0x32a   : > { %v3202_v25 = vpop.f32.mrf.mxu1  ;;  %v8247_v46 = vadd.f32 %v3691_v10, %v3331_v11  ;;  %6752 = vmatmul.mubr.msk.bf16.gmra.mxu1 %vm439_vm1, %v3950_v35  ;;  %6845 = vmatprep.mubr.msk.bf16.mxu0 %vm6931_vm0, %v8541_v63 }
 0x32b   : > { %v3333_v52 = vadd.f32 %v3202_v25, %v7986_v31  ;;  %v6651_v41 = vpop.f32.mrf.mxu0  ;;  %6755 = vmatprep.mubr.msk.bf16.mxu1 %vm6931_vm0, %v8541_v63  ;;  %v4421_v25 = vld [vmem:[#allocation2 + $0x146] sm:$0xff] }
 0x32c   : > { %v6561_v24 = vpop.f32.mrf.mxu1  ;;  %v3927_v41 = vld [vmem:[#allocation2 + $0x15d] sm:$0xff] }
 0x32d   : > { %v3694_v19 = vpop.f32.mrf.mxu0  ;;  %v4448_v24 = vpack.c.bf16 %v4422_v26, %v4421_v25  ;;  %v4424_v25 = vld [vmem:[#allocation2 + $0x15e] sm:$0xff] }
 0x32e   : > { %v3205_v11 = vpop.f32.mrf.mxu1  ;;  %v8255_v0 = vadd.f32 %v3694_v19, %v3332_v56 }
 0x32f   : > { %v3334_v3 = vadd.f32 %v3205_v11, %v7994_v47  ;;  %v6652_v35 = vpop.f32.mrf.mxu0  ;;  %v3926_v47 = vld [vmem:[#allocation2 + $0x155] sm:$0xff] }
 0x330   : > { %v6562_v12 = vpop.f32.mrf.mxu1 }
 0x331   : > { %v3699_v8 = vpop.f32.mrf.mxu0  ;;  %6846 = vmatmul.mubr.msk.bf16.gmra.mxu0 %vm439_vm1, %v4447_v4  ;;  %v3952_v4 = vpack.c.bf16 %v3927_v41, %v3926_v47 }
 0x332   : > { %v3210_v31 = vpop.f32.mrf.mxu1  ;;  %v8259_v10 = vadd.f32 %v3699_v8, %v3333_v52  ;;  %6756 = vmatmul.mubr.msk.bf16.gmra.mxu1 %vm439_vm1, %v3951_v55  ;;  %6849 = vmatprep.mubr.msk.bf16.mxu0 %vm6931_vm0, %v8541_v63 }
 0x333   : > { %v3335_v56 = vadd.f32 %v3210_v31, %v7998_v9  ;;  %v6655_v28 = vpop.f32.mrf.mxu0  ;;  %6759 = vmatprep.mubr.msk.bf16.mxu1 %vm6931_vm0, %v8541_v63  ;;  %v4423_v31 = vld [vmem:[#allocation2 + $0x156] sm:$0xff] }
 0x334   : > { %v6565_v44 = vpop.f32.mrf.mxu1  ;;  %v3929_v28 = vld [vmem:[#allocation2 + $0x16d] sm:$0xff] }
 0x335   : > { %v3702_v14 = vpop.f32.mrf.mxu0  ;;  %v4449_v44 = vpack.c.bf16 %v4424_v25, %v4423_v31  ;;  %v4426_v31 = vld [vmem:[#allocation2 + $0x16e] sm:$0xff] }
 0x336   : > { %v3213_v52 = vpop.f32.mrf.mxu1  ;;  %v8267_v19 = vadd.f32 %v3702_v14, %v3334_v3 }
 0x337   : > { %v3336_v11 = vadd.f32 %v3213_v52, %v8006_v30  ;;  %v6656_v55 = vpop.f32.mrf.mxu0  ;;  %v3928_v30 = vld [vmem:[#allocation2 + $0x165] sm:$0xff] }
 0x338   : > { %v6566_v35 = vpop.f32.mrf.mxu1 }
 0x339   : > { %v3707_v12 = vpop.f32.mrf.mxu0  ;;  %6850 = vmatmul.mubr.msk.bf16.gmra.mxu0 %vm439_vm1, %v4448_v24  ;;  %v3953_v24 = vpack.c.bf16 %v3929_v28, %v3928_v30 }
 0x33a   : > { %v3218_v9 = vpop.f32.mrf.mxu1  ;;  %v8271_v8 = vadd.f32 %v3707_v12, %v3335_v56  ;;  %6760 = vmatmul.mubr.msk.bf16.gmra.mxu1 %vm439_vm1, %v3952_v4  ;;  %6853 = vmatprep.mubr.msk.bf16.mxu0 %vm6931_vm0, %v8541_v63 }
 0x33b   : > { %v3337_v3 = vadd.f32 %v3218_v9, %v8010_v13  ;;  %v6659_v26 = vpop.f32.mrf.mxu0  ;;  %6763 = vmatprep.mubr.msk.bf16.mxu1 %vm6931_vm0, %v8541_v63  ;;  %v4425_v9 = vld [vmem:[#allocation2 + $0x166] sm:$0xff] }
 0x33c   : > { %v6569_v47 = vpop.f32.mrf.mxu1  ;;  %v3931_v26 = vld [vmem:[#allocation2 + $0x17d] sm:$0xff] }
 0x33d   : > { %v3710_v41 = vpop.f32.mrf.mxu0  ;;  %v4450_v47 = vpack.c.bf16 %v4426_v31, %v4425_v9  ;;  %v4428_v9 = vld [vmem:[#allocation2 + $0x17e] sm:$0xff] }
 0x33e   : > { %v3221_v56 = vpop.f32.mrf.mxu1  ;;  %v8279_v14 = vadd.f32 %v3710_v41, %v3336_v11 }
 0x33f   : > { %v3338_v52 = vadd.f32 %v3221_v56, %v8018_v17  ;;  %v6660_v4 = vpop.f32.mrf.mxu0  ;;  %v3930_v17 = vld [vmem:[#allocation2 + $0x175] sm:$0xff] }
 0x340   : > { %v6570_v55 = vpop.f32.mrf.mxu1 }
 0x341   : > { %v3715_v35 = vpop.f32.mrf.mxu0  ;;  %6854 = vmatmul.mubr.msk.bf16.gmra.mxu0 %vm439_vm1, %v4449_v44  ;;  %v3954_v44 = vpack.c.bf16 %v3931_v26, %v3930_v17 }
 0x342   : > { %v3226_v13 = vpop.f32.mrf.mxu1  ;;  %v8283_v12 = vadd.f32 %v3715_v35, %v3337_v3  ;;  %6764 = vmatmul.mubr.msk.bf16.gmra.mxu1 %vm439_vm1, %v3953_v24  ;;  %6857 = vmatprep.mubr.msk.bf16.mxu0 %vm6931_vm0, %v8541_v63 }
 0x343   : > { %v3339_v11 = vadd.f32 %v3226_v13, %v8022_v18  ;;  %v6663_v25 = vpop.f32.mrf.mxu0  ;;  %6767 = vmatprep.mubr.msk.bf16.mxu1 %vm6931_vm0, %v8541_v63  ;;  %v4427_v13 = vld [vmem:[#allocation2 + $0x176] sm:$0xff] }
 0x344   : > { %v6573_v30 = vpop.f32.mrf.mxu1  ;;  %v4451_v26 = vpack.c.bf16 %v4428_v9, %v4427_v13 }
 0x345   : > { %v3718_v28 = vpop.f32.mrf.mxu0 }
 0x346   : > { %v3229_v3 = vpop.f32.mrf.mxu1  ;;  %v8291_v41 = vadd.f32 %v3718_v28, %v3338_v52 }
 0x347   : > { %v3340_v56 = vadd.f32 %v3229_v3, %v8030_v59  ;;  %v6664_v24 = vpop.f32.mrf.mxu0  ;;  %v3932_v59 = vld [vmem:[#allocation2 + $0x185] sm:$0xff] }
 0x348   : > { %v6574_v4 = vpop.f32.mrf.mxu1  ;;  %v3955_v28 = vpack.c.bf16 %v3932_v59, %v3932_v59 }
 0x349   : > { %v3723_v55 = vpop.f32.mrf.mxu0  ;;  %6858 = vmatmul.mubr.msk.bf16.gmra.mxu0 %vm439_vm1, %v4450_v47 }
 0x34a   : > { %v3234_v18 = vpop.f32.mrf.mxu1  ;;  %v8295_v35 = vadd.f32 %v3723_v55, %v3339_v11  ;;  %6768 = vmatmul.mubr.msk.bf16.gmra.mxu1 %vm439_vm1, %v3954_v44  ;;  %6861 = vmatprep.mubr.msk.bf16.mxu0 %vm6931_vm0, %v8541_v63  ;;  %v4429_v55 = vld [vmem:[#allocation2 + $0x186] sm:$0xff] }
 0x34b   : > { %v3341_v52 = vadd.f32 %v3234_v18, %v8034_v57  ;;  %v6667_v31 = vpop.f32.mrf.mxu0  ;;  %6771 = vmatprep.mubr.msk.bf16.mxu1 %vm6931_vm0, %v8541_v63  ;;  %v4452_v9 = vpack.c.bf16 %v4429_v55, %v4429_v55 }
 0x34c   : > { %v6577_v25 = vpop.f32.mrf.mxu1 }
 0x34d   : > { %v3726_v17 = vpop.f32.mrf.mxu0 }
 0x34e   : > { %v3237_v30 = vpop.f32.mrf.mxu1  ;;  %v8303_v11 = vadd.f32 %v3726_v17, %v3340_v56 }
 0x34f   : > { %v3342_v47 = vadd.f32 %v3237_v30, %v8042_v54  ;;  %v6668_v3 = vpop.f32.mrf.mxu0 }
 0x350   : > { %v6578_v44 = vpop.f32.mrf.mxu1 }
 0x351   : > { %v3731_v24 = vpop.f32.mrf.mxu0  ;;  %6862 = vmatmul.mubr.msk.bf16.gmra.mxu0 %vm439_vm1, %v4451_v26 }
 0x352   : > { %v3242_v57 = vpop.f32.mrf.mxu1  ;;  %v8307_v4 = vadd.f32 %v3731_v24, %v3341_v52  ;;  %6772 = vmatmul.mubr.msk.bf16.gmra.mxu1 %vm439_vm1, %v3955_v28  ;;  %6865 = vmatprep.mubr.msk.bf16.mxu0 %vm6931_vm0, %v8541_v63 }
 0x353   : > { %v3343_v56 = vadd.f32 %v3242_v57, %v8046_v38  ;;  %v6671_v18 = vpop.f32.mrf.mxu0 }
 0x354   : > { %v6581_v13 = vpop.f32.mrf.mxu1 }
 0x355   : > { %v3734_v54 = vpop.f32.mrf.mxu0 }
 0x356   : > { %v3245_v31 = vpop.f32.mrf.mxu1  ;;  %v8313_v59 = vadd.f32 %v3734_v54, %v3342_v47 }
 0x357   : > { %v3344_v52 = vadd.f32 %v3245_v31, %v8054_v43  ;;  %v6672_v25 = vpop.f32.mrf.mxu0 }
 0x358   : > { %v6582_v17 = vpop.f32.mrf.mxu1 }
 0x359   : > { %v3739_v26 = vpop.f32.mrf.mxu0  ;;  %6866 = vmatmul.mubr.msk.bf16.gmra.mxu0 %vm439_vm1, %v4452_v9 }
 0x35a   : > { %v3250_v63 = vpop.f32.mrf.mxu1  ;;  %v8318_v30 = vadd.f32 %v3739_v26, %v3343_v56 }
 0x35b   : > { %v3345_v38 = vadd.f32 %v3250_v63, %v8057_v53  ;;  %v6675_v28 = vpop.f32.mrf.mxu0  ;;  %v8339_v63 = vld [vmem:[%s8515_s3] ss:$0 sm:$0xff] }
 0x35c   : > { %v6585_v3 = vpop.f32.mrf.mxu1 }
 0x35d   : > { %v3742_v44 = vpop.f32.mrf.mxu0 }
 0x35e   : > { %v3253_v47 = vpop.f32.mrf.mxu1  ;;  %v8324_v24 = vadd.f32 %v3742_v44, %v3344_v52  ;;  %v5677_v52 = vld [vmem:[%s8332_s9] sm:$0xff]  }
 0x35f   : > { %v6676_v43 = vpop.f32.mrf.mxu0  ;;  %v5678_v3 = vunpack.c.l.bf16 %v5677_v52 }
 0x360   : > { %v6586_v57 = vpop.f32.mrf.mxu1 }
 0x361   : > { %v3747_v55 = vpop.f32.mrf.mxu0 }
 0x362   : > { %v8327_v18 = vadd.f32 %v3747_v55, %v3345_v38  ;;  %v4068_v13 = vpop.f32.mrf.mxu1 }
 0x363   : > { %v6679_v56 = vpop.f32.mrf.mxu0  ;;  %v4295_v25 = vadd.f32 %v4068_v13, %v8067_v61 }
 0x364   : > { %v6685_v54 = vpop.f32.mrf.mxu1 }
 0x365   : > { %v3750_v53 = vpop.f32.mrf.mxu0  ;;  %v5679_v54 = vunpack.c.h.bf16 %v5677_v52 }
 0x366   : > { %v4071_v9 = vpop.f32.mrf.mxu1 }
 0x367   : > { %v6680_v31 = vpop.f32.mrf.mxu0  ;;  %v4296_v47 = vadd.f32 %v4071_v9, %v8075_v36 }
 0x368   : > { %v6686_v17 = vpop.f32.mrf.mxu1  ;;  %v5786_v31 = vld [vmem:[%s8332_s9 + $0x8] sm:$0xff]  }
 0x369   : > { %v4565_v26 = vpop.f32.mrf.mxu0 }
 0x36a   : > { %v4076_v38 = vpop.f32.mrf.mxu1  ;;  %v4792_v28 = vadd.f32 %v4565_v26, %v4295_v25 }
 0x36b   : > { %v6779_v44 = vpop.f32.mrf.mxu0  ;;  %v4297_v25 = vadd.f32 %v4076_v38, %v8079_v6 }
 0x36c   : > { %v4934_v43 = vadd.f32 %v8339_v63, %v4792_v28  ;;  %v6689_v57 = vpop.f32.mrf.mxu1  ;;  %v5682_v44 = vunpack.c.l.bf16 %v5786_v31 }
 0x36d   : > { %v4568_v55 = vpop.f32.mrf.mxu0 }
 0x36e   : > { %v5069_v61 = vadd.f32 %v5678_v3, %v4934_v43  ;;  %v4079_v13 = vpop.f32.mrf.mxu1  ;;  %v4793_v56 = vadd.f32 %v4568_v55, %v4296_v47 }
 0x36f   : > { %v6780_v53 = vpop.f32.mrf.mxu0  ;;  %v4298_v43 = vadd.f32 %v4079_v13, %v8087_v23 }
 0x370   : > { %v5114_v36 = vmax.f32 %v5069_v61, 0.0  ;;  %v4935_v9 = vadd.f32 %v8339_v63, %v4793_v56  ;;  %v6690_v17 = vpop.f32.mrf.mxu1 }
 0x371   : > { %v4573_v26 = vpop.f32.mrf.mxu0  ;;  %v5683_v17 = vunpack.c.h.bf16 %v5786_v31 }
 0x372   : > { %5159 = vst [vmem:[%s8347_s15] sm:$0xff] %v5114_v36  ;;  %v5070_v28 = vadd.f32 %v5679_v54, %v4935_v9  ;;  %v4084_v52 = vpop.f32.mrf.mxu1  ;;  %v4794_v3 = vadd.f32 %v4573_v26, %v4297_v25  ;;  %v5787_v54 = vld [vmem:[%s8332_s9 + $0x10] sm:$0xff]  }
 0x373   : > { %v6783_v47 = vpop.f32.mrf.mxu0  ;;  %v4299_v9 = vadd.f32 %v4084_v52, %v8091_v50 }
 0x374   : > { %v5115_v57 = vmax.f32 %v5070_v28, 0.0  ;;  %v4936_v55 = vadd.f32 %v8339_v63, %v4794_v3  ;;  %v6693_v6 = vpop.f32.mrf.mxu1 }
 0x375   : > { %v4576_v38 = vpop.f32.mrf.mxu0 }
 0x376   : > { %5160 = vst [vmem:[%s8347_s15 + $0x8] sm:$0xff] %v5115_v57  ;;  %v5071_v61 = vadd.f32 %v5682_v44, %v4936_v55  ;;  %v4087_v56 = vpop.f32.mrf.mxu1  ;;  %v4795_v53 = vadd.f32 %v4576_v38, %v4298_v43  ;;  %v5686_v57 = vunpack.c.l.bf16 %v5787_v54 }
 0x377   : > { %v6784_v36 = vpop.f32.mrf.mxu0  ;;  %v4300_v43 = vadd.f32 %v4087_v56, %v8099_v33 }
 0x378   : > { %v5116_v25 = vmax.f32 %v5071_v61, 0.0  ;;  %v4937_v26 = vadd.f32 %v8339_v63, %v4795_v53  ;;  %v6694_v23 = vpop.f32.mrf.mxu1  ;;  %v5687_v53 = vunpack.c.h.bf16 %v5787_v54 }
 0x379   : > { %v4581_v13 = vpop.f32.mrf.mxu0 }
 0x37a   : > { %5161 = vst [vmem:[%s8347_s15 + $0x10] sm:$0xff] %v5116_v25  ;;  %v5072_v28 = vadd.f32 %v5683_v17, %v4937_v26  ;;  %v4092_v3 = vpop.f32.mrf.mxu1  ;;  %v4796_v47 = vadd.f32 %v4581_v13, %v4299_v9  ;;  %v5788_v17 = vld [vmem:[%s8332_s9 + $0x18] sm:$0xff]  }
 0x37b   : > { %v6787_v44 = vpop.f32.mrf.mxu0  ;;  %v4301_v25 = vadd.f32 %v4092_v3, %v8103_v5 }
 0x37c   : > { %v5117_v31 = vmax.f32 %v5072_v28, 0.0  ;;  %v4938_v55 = vadd.f32 %v8339_v63, %v4796_v47  ;;  %v6697_v50 = vpop.f32.mrf.mxu1  ;;  %v5690_v47 = vunpack.c.l.bf16 %v5788_v17 }
 0x37d   : > { %v4584_v52 = vpop.f32.mrf.mxu0 }
 0x37e   : > { %5162 = vst [vmem:[%s8347_s15 + $0x18] sm:$0xff] %v5117_v31  ;;  %v5073_v6 = vadd.f32 %v5686_v57, %v4938_v55  ;;  %v4095_v38 = vpop.f32.mrf.mxu1  ;;  %v4797_v61 = vadd.f32 %v4584_v52, %v4300_v43  ;;  %v5691_v52 = vunpack.c.h.bf16 %v5788_v17 }
 0x37f   : > { %v6788_v36 = vpop.f32.mrf.mxu0  ;;  %v4302_v44 = vadd.f32 %v4095_v38, %v8111_v16 }
 0x380   : > { %v5118_v9 = vmax.f32 %v5073_v6, 0.0  ;;  %v4939_v26 = vadd.f32 %v8339_v63, %v4797_v61  ;;  %v6698_v33 = vpop.f32.mrf.mxu1  ;;  %v5789_v61 = vld [vmem:[%s8332_s9 + $0x20] sm:$0xff]  }
 0x381   : > { %v4589_v56 = vpop.f32.mrf.mxu0 }
 0x382   : > { %5163 = vst [vmem:[%s8347_s15 + $0x20] sm:$0xff] %v5118_v9  ;;  %v5074_v23 = vadd.f32 %v5687_v53, %v4939_v26  ;;  %v4100_v13 = vpop.f32.mrf.mxu1  ;;  %v4798_v28 = vadd.f32 %v4589_v56, %v4301_v25  ;;  %v5694_v56 = vunpack.c.l.bf16 %v5789_v61 }
 0x383   : > { %v6791_v57 = vpop.f32.mrf.mxu0  ;;  %v4303_v53 = vadd.f32 %v4100_v13, %v8115_v34 }
 0x384   : > { %v5119_v54 = vmax.f32 %v5074_v23, 0.0  ;;  %v4940_v43 = vadd.f32 %v8339_v63, %v4798_v28  ;;  %v6701_v5 = vpop.f32.mrf.mxu1 }
 0x385   : > { %v4592_v3 = vpop.f32.mrf.mxu0 }
 0x386   : > { %5164 = vst [vmem:[%s8347_s15 + $0x28] sm:$0xff] %v5119_v54  ;;  %v5075_v31 = vadd.f32 %v5690_v47, %v4940_v43  ;;  %v4103_v55 = vpop.f32.mrf.mxu1  ;;  %v4799_v50 = vadd.f32 %v4592_v3, %v4302_v44  ;;  %v5695_v43 = vunpack.c.h.bf16 %v5789_v61  ;;  %v5790_v3 = vld [vmem:[%s8332_s9 + $0x28] sm:$0xff]  }
 0x387   : > { %v6792_v6 = vpop.f32.mrf.mxu0  ;;  %v4304_v28 = vadd.f32 %v4103_v55, %v8123_v20 }
 0x388   : > { %v5120_v36 = vmax.f32 %v5075_v31, 0.0  ;;  %v4941_v25 = vadd.f32 %v8339_v63, %v4799_v50  ;;  %v6702_v16 = vpop.f32.mrf.mxu1 }
 0x389   : > { %v4597_v38 = vpop.f32.mrf.mxu0 }
 0x38a   : > { %5165 = vst [vmem:[%s8347_s15 + $0x30] sm:$0xff] %v5120_v36  ;;  %v5076_v9 = vadd.f32 %v5691_v52, %v4941_v25  ;;  %v4108_v26 = vpop.f32.mrf.mxu1  ;;  %v4800_v33 = vadd.f32 %v4597_v38, %v4303_v53  ;;  %v5698_v25 = vunpack.c.l.bf16 %v5790_v3 }
 0x38b   : > { %v6795_v23 = vpop.f32.mrf.mxu0  ;;  %v4305_v31 = vadd.f32 %v4108_v26, %v8127_v27 }
 0x38c   : > { %v5121_v17 = vmax.f32 %v5076_v9, 0.0  ;;  %v4942_v47 = vadd.f32 %v8339_v63, %v4800_v33  ;;  %v6705_v34 = vpop.f32.mrf.mxu1 }
 0x38d   : > { %v4600_v13 = vpop.f32.mrf.mxu0 }
 0x38e   : > { %5166 = vst [vmem:[%s8347_s15 + $0x38] sm:$0xff] %v5121_v17  ;;  %v5077_v57 = vadd.f32 %v5694_v56, %v4942_v47  ;;  %v4111_v44 = vpop.f32.mrf.mxu1  ;;  %v4801_v54 = vadd.f32 %v4600_v13, %v4304_v28  ;;  %v5699_v28 = vunpack.c.h.bf16 %v5790_v3  ;;  %v5791_v47 = vld [vmem:[%s8332_s9 + $0x30] sm:$0xff]  }
 0x38f   : > { %v6796_v5 = vpop.f32.mrf.mxu0  ;;  %v4306_v38 = vadd.f32 %v4111_v44, %v8135_v37 }
 0x390   : > { %v5122_v50 = vmax.f32 %v5077_v57, 0.0  ;;  %v4943_v52 = vadd.f32 %v8339_v63, %v4801_v54  ;;  %v6706_v20 = vpop.f32.mrf.mxu1 }
 0x391   : > { %v4605_v55 = vpop.f32.mrf.mxu0 }
 0x392   : > { %5167 = vst [vmem:[%s8347_s15 + $0x40] sm:$0xff] %v5122_v50  ;;  %v5078_v6 = vadd.f32 %v5695_v43, %v4943_v52  ;;  %v4116_v53 = vpop.f32.mrf.mxu1  ;;  %v4802_v36 = vadd.f32 %v4605_v55, %v4305_v31  ;;  %v5702_v31 = vunpack.c.l.bf16 %v5791_v47 }
 0x393   : > { %v6799_v16 = vpop.f32.mrf.mxu0  ;;  %v4307_v34 = vadd.f32 %v4116_v53, %v8139_v45 }
 0x394   : > { %v5123_v61 = vmax.f32 %v5078_v6, 0.0  ;;  %v4944_v9 = vadd.f32 %v8339_v63, %v4802_v36  ;;  %v6709_v27 = vpop.f32.mrf.mxu1 }
 0x395   : > { %v4608_v26 = vpop.f32.mrf.mxu0 }
 0x396   : > { %5168 = vst [vmem:[%s8347_s15 + $0x48] sm:$0xff] %v5123_v61  ;;  %v5079_v33 = vadd.f32 %v5698_v25, %v4944_v9  ;;  %v4119_v56 = vpop.f32.mrf.mxu1  ;;  %v4803_v23 = vadd.f32 %v4608_v26, %v4306_v38  ;;  %v5703_v25 = vunpack.c.h.bf16 %v5791_v47  ;;  %v5792_v38 = vld [vmem:[%s8332_s9 + $0x38] sm:$0xff]  }
 0x397   : > { %v6800_v17 = vpop.f32.mrf.mxu0  ;;  %v4308_v52 = vadd.f32 %v4119_v56, %v8147_v62 }
 0x398   : > { %v5124_v13 = vmax.f32 %v5079_v33, 0.0  ;;  %v4945_v57 = vadd.f32 %v8339_v63, %v4803_v23  ;;  %v6710_v37 = vpop.f32.mrf.mxu1 }
 0x399   : > { %v4613_v44 = vpop.f32.mrf.mxu0 }
 0x39a   : > { %5169 = vst [vmem:[%s8347_s15 + $0x50] sm:$0xff] %v5124_v13  ;;  %v5080_v54 = vadd.f32 %v5699_v28, %v4945_v57  ;;  %v4124_v43 = vpop.f32.mrf.mxu1  ;;  %v4804_v5 = vadd.f32 %v4613_v44, %v4307_v34  ;;  %v5706_v28 = vunpack.c.l.bf16 %v5792_v38 }
 0x39b   : > { %v6803_v50 = vpop.f32.mrf.mxu0  ;;  %v4309_v61 = vadd.f32 %v4124_v43, %v8151_v22  ;;  %v5707_v43 = vunpack.c.h.bf16 %v5792_v38 }
 0x39c   : > { %v5125_v3 = vmax.f32 %v5080_v54, 0.0  ;;  %v4946_v20 = vadd.f32 %v8339_v63, %v4804_v5  ;;  %v6713_v45 = vpop.f32.mrf.mxu1 }
 0x39d   : > { %v4616_v55 = vpop.f32.mrf.mxu0 }
 0x39e   : > { %5170 = vst [vmem:[%s8347_s15 + $0x58] sm:$0xff] %v5125_v3  ;;  %v5081_v6 = vadd.f32 %v5702_v31, %v4946_v20  ;;  %v4127_v53 = vpop.f32.mrf.mxu1  ;;  %v4805_v36 = vadd.f32 %v4616_v55, %v4308_v52  ;;  %v5793_v31 = vld [vmem:[%s8332_s9 + $0x40] sm:$0xff]  }
 0x39f   : > { %v6804_v16 = vpop.f32.mrf.mxu0  ;;  %v4310_v34 = vadd.f32 %v4127_v53, %v8159_v58  ;;  %v5710_v53 = vunpack.c.l.bf16 %v5793_v31 }
 0x3a0   : > { %v5126_v9 = vmax.f32 %v5081_v6, 0.0  ;;  %v4947_v27 = vadd.f32 %v8339_v63, %v4805_v36  ;;  %v6714_v62 = vpop.f32.mrf.mxu1 }
 0x3a1   : > { %v4621_v26 = vpop.f32.mrf.mxu0 }
 0x3a2   : > { %5171 = vst [vmem:[%s8347_s15 + $0x60] sm:$0xff] %v5126_v9  ;;  %v5082_v33 = vadd.f32 %v5703_v25, %v4947_v27  ;;  %v4132_v56 = vpop.f32.mrf.mxu1  ;;  %v4806_v23 = vadd.f32 %v4621_v26, %v4309_v61  ;;  %v5711_v26 = vunpack.c.h.bf16 %v5793_v31 }
 0x3a3   : > { %v6807_v17 = vpop.f32.mrf.mxu0  ;;  %v4311_v50 = vadd.f32 %v4132_v56, %v8163_v51  ;;  %v5794_v56 = vld [vmem:[%s8332_s9 + $0x48] sm:$0xff]  }
 0x3a4   : > { %v5127_v47 = vmax.f32 %v5082_v33, 0.0  ;;  %v4948_v13 = vadd.f32 %v8339_v63, %v4806_v23  ;;  %v6717_v22 = vpop.f32.mrf.mxu1 }
 0x3a5   : > { %v4624_v57 = vpop.f32.mrf.mxu0 }
 0x3a6   : > { %5172 = vst [vmem:[%s8347_s15 + $0x68] sm:$0xff] %v5127_v47  ;;  %v5083_v37 = vadd.f32 %v5706_v28, %v4948_v13  ;;  %v4135_v44 = vpop.f32.mrf.mxu1  ;;  %v4807_v54 = vadd.f32 %v4624_v57, %v4310_v34  ;;  %v5714_v57 = vunpack.c.l.bf16 %v5794_v56 }
 0x3a7   : > { %v6808_v5 = vpop.f32.mrf.mxu0  ;;  %v4312_v25 = vadd.f32 %v4135_v44, %v8171_v32 }
 0x3a8   : > { %v5128_v52 = vmax.f32 %v5083_v37, 0.0  ;;  %v4949_v3 = vadd.f32 %v8339_v63, %v4807_v54  ;;  %v6718_v58 = vpop.f32.mrf.mxu1 }
 0x3a9   : > { %v4629_v20 = vpop.f32.mrf.mxu0 }
 0x3aa   : > { %5173 = vst [vmem:[%s8347_s15 + $0x70] sm:$0xff] %v5128_v52  ;;  %v5084_v45 = vadd.f32 %v5707_v43, %v4949_v3  ;;  %v4140_v55 = vpop.f32.mrf.mxu1  ;;  %v4808_v6 = vadd.f32 %v4629_v20, %v4311_v50  ;;  %v5715_v3 = vunpack.c.h.bf16 %v5794_v56  ;;  %v5795_v20 = vld [vmem:[%s8332_s9 + $0x50] sm:$0xff]  }
 0x3ab   : > { %v6811_v36 = vpop.f32.mrf.mxu0  ;;  %v4313_v23 = vadd.f32 %v4140_v55, %v8175_v15 }
 0x3ac   : > { %v5129_v16 = vmax.f32 %v5084_v45, 0.0  ;;  %v4950_v38 = vadd.f32 %v8339_v63, %v4808_v6  ;;  %v6721_v51 = vpop.f32.mrf.mxu1 }
 0x3ad   : > { %v4632_v61 = vpop.f32.mrf.mxu0 }
 0x3ae   : > { %5174 = vst [vmem:[%s8347_s15 + $0x78] sm:$0xff] %v5129_v16  ;;  %v5085_v9 = vadd.f32 %v5710_v53, %v4950_v38  ;;  %v4143_v27 = vpop.f32.mrf.mxu1  ;;  %v4809_v62 = vadd.f32 %v4632_v61, %v4312_v25  ;;  %v5718_v38 = vunpack.c.l.bf16 %v5795_v20 }
 0x3af   : > { %v6812_v33 = vpop.f32.mrf.mxu0  ;;  %v4314_v44 = vadd.f32 %v4143_v27, %v8183_v40 }
 0x3b0   : > { %v5130_v28 = vmax.f32 %v5085_v9, 0.0  ;;  %v4951_v17 = vadd.f32 %v8339_v63, %v4809_v62  ;;  %v6722_v32 = vpop.f32.mrf.mxu1 }
 0x3b1   : > { %v4637_v34 = vpop.f32.mrf.mxu0 }
 0x3b2   : > { %5175 = vst [vmem:[%s8347_s15 + $0x80] sm:$0xff] %v5130_v28  ;;  %v5086_v47 = vadd.f32 %v5711_v26, %v4951_v17  ;;  %v4148_v13 = vpop.f32.mrf.mxu1  ;;  %v4810_v22 = vadd.f32 %v4637_v34, %v4313_v23  ;;  %v5719_v23 = vunpack.c.h.bf16 %v5795_v20  ;;  %v5796_v17 = vld [vmem:[%s8332_s9 + $0x58] sm:$0xff]  }
 0x3b3   : > { %v6815_v37 = vpop.f32.mrf.mxu0  ;;  %v4315_v45 = vadd.f32 %v4148_v13, %v8187_v7 }
 0x3b4   : > { %v5131_v54 = vmax.f32 %v5086_v47, 0.0  ;;  %v4952_v43 = vadd.f32 %v8339_v63, %v4810_v22  ;;  %v6725_v15 = vpop.f32.mrf.mxu1 }
 0x3b5   : > { %v4640_v5 = vpop.f32.mrf.mxu0 }
 0x3b6   : > { %5176 = vst [vmem:[%s8347_s15 + $0x88] sm:$0xff] %v5131_v54  ;;  %v5087_v31 = vadd.f32 %v5714_v57, %v4952_v43  ;;  %v4151_v50 = vpop.f32.mrf.mxu1  ;;  %v4811_v52 = vadd.f32 %v4640_v5, %v4314_v44  ;;  %v5722_v44 = vunpack.c.l.bf16 %v5796_v17 }
 0x3b7   : > { %v6816_v58 = vpop.f32.mrf.mxu0  ;;  %v4316_v61 = vadd.f32 %v4151_v50, %v8195_v21 }
 0x3b8   : > { %v5132_v55 = vmax.f32 %v5087_v31, 0.0  ;;  %v4953_v6 = vadd.f32 %v8339_v63, %v4811_v52  ;;  %v6726_v40 = vpop.f32.mrf.mxu1  ;;  %v5723_v58 = vunpack.c.h.bf16 %v5796_v17 }
 0x3b9   : > { %v4645_v53 = vpop.f32.mrf.mxu0 }
 0x3ba   : > { %5177 = vst [vmem:[%s8347_s15 + $0x90] sm:$0xff] %v5132_v55  ;;  %v5088_v36 = vadd.f32 %v5715_v3, %v4953_v6  ;;  %v4156_v25 = vpop.f32.mrf.mxu1  ;;  %v4812_v16 = vadd.f32 %v4645_v53, %v4315_v45  ;;  %v5797_v45 = vld [vmem:[%s8332_s9 + $0x60] sm:$0xff]  }
 0x3bb   : > { %v6819_v51 = vpop.f32.mrf.mxu0  ;;  %v4317_v32 = vadd.f32 %v4156_v25, %v8199_v60 }
 0x3bc   : > { %v5133_v9 = vmax.f32 %v5088_v36, 0.0  ;;  %v4954_v27 = vadd.f32 %v8339_v63, %v4812_v16  ;;  %v6729_v7 = vpop.f32.mrf.mxu1 }
 0x3bd   : > { %v4648_v62 = vpop.f32.mrf.mxu0 }
 0x3be   : > { %5178 = vst [vmem:[%s8347_s15 + $0x98] sm:$0xff] %v5133_v9  ;;  %v5089_v26 = vadd.f32 %v5718_v38, %v4954_v27  ;;  %v4159_v33 = vpop.f32.mrf.mxu1  ;;  %v4813_v56 = vadd.f32 %v4648_v62, %v4316_v61  ;;  %v5726_v38 = vunpack.c.l.bf16 %v5797_v45 }
 0x3bf   : > { %v6820_v28 = vpop.f32.mrf.mxu0  ;;  %v4318_v43 = vadd.f32 %v4159_v33, %v8207_v49 }
 0x3c0   : > { %v5134_v34 = vmax.f32 %v5089_v26, 0.0  ;;  %v4955_v47 = vadd.f32 %v8339_v63, %v4813_v56  ;;  %v6730_v21 = vpop.f32.mrf.mxu1  ;;  %v5727_v56 = vunpack.c.h.bf16 %v5797_v45  ;;  %v5798_v28 = vld [vmem:[%s8332_s9 + $0x68] sm:$0xff]  }
 0x3c1   : > { %v4653_v13 = vpop.f32.mrf.mxu0 }
 0x3c2   : > { %5179 = vst [vmem:[%s8347_s15 + $0xa0] sm:$0xff] %v5134_v34  ;;  %v5090_v22 = vadd.f32 %v5719_v23, %v4955_v47  ;;  %v4164_v57 = vpop.f32.mrf.mxu1  ;;  %v4814_v37 = vadd.f32 %v4653_v13, %v4317_v32 }
 0x3c3   : > { %v6823_v54 = vpop.f32.mrf.mxu0  ;;  %v4319_v55 = vadd.f32 %v4164_v57, %v8211_v2  ;;  %v5730_v57 = vunpack.c.l.bf16 %v5798_v28 }
 0x3c4   : > { %v5135_v15 = vmax.f32 %v5090_v22, 0.0  ;;  %v4956_v5 = vadd.f32 %v8339_v63, %v4814_v37  ;;  %v6733_v60 = vpop.f32.mrf.mxu1 }
 0x3c5   : > { %v4656_v31 = vpop.f32.mrf.mxu0 }
 0x3c6   : > { %5180 = vst [vmem:[%s8347_s15 + $0xa8] sm:$0xff] %v5135_v15  ;;  %v5091_v50 = vadd.f32 %v5722_v44, %v4956_v5  ;;  %v4167_v52 = vpop.f32.mrf.mxu1  ;;  %v4815_v3 = vadd.f32 %v4656_v31, %v4318_v43 }
 0x3c7   : > { %v6824_v20 = vpop.f32.mrf.mxu0  ;;  %v4320_v61 = vadd.f32 %v4167_v52, %v8219_v42 }
 0x3c8   : > { %v5136_v6 = vmax.f32 %v5091_v50, 0.0  ;;  %v4957_v40 = vadd.f32 %v8339_v63, %v4815_v3  ;;  %v6734_v49 = vpop.f32.mrf.mxu1  ;;  %v5731_v50 = vunpack.c.h.bf16 %v5798_v28  ;;  %v5799_v3 = vld [vmem:[%s8332_s9 + $0x70] sm:$0xff]  }
 0x3c9   : > { %v4661_v53 = vpop.f32.mrf.mxu0 }
 0x3ca   : > { %5181 = vst [vmem:[%s8347_s15 + $0xb0] sm:$0xff] %v5136_v6  ;;  %v5092_v36 = vadd.f32 %v5723_v58, %v4957_v40  ;;  %v4172_v25 = vpop.f32.mrf.mxu1  ;;  %v4816_v16 = vadd.f32 %v4661_v53, %v4319_v55  ;;  %v5734_v53 = vunpack.c.l.bf16 %v5799_v3 }
 0x3cb   : > { %v6827_v51 = vpop.f32.mrf.mxu0  ;;  %v4321_v17 = vadd.f32 %v4172_v25, %v8223_v48 }
 0x3cc   : > { %v5137_v9 = vmax.f32 %v5092_v36, 0.0  ;;  %v4958_v27 = vadd.f32 %v8339_v63, %v4816_v16  ;;  %v6737_v2 = vpop.f32.mrf.mxu1 }
 0x3cd   : > { %v4664_v7 = vpop.f32.mrf.mxu0  ;;  %v5735_v2 = vunpack.c.h.bf16 %v5799_v3 }
 0x3ce   : > { %5182 = vst [vmem:[%s8347_s15 + $0xb8] sm:$0xff] %v5137_v9  ;;  %v5093_v62 = vadd.f32 %v5726_v38, %v4958_v27  ;;  %v4175_v26 = vpop.f32.mrf.mxu1  ;;  %v4817_v33 = vadd.f32 %v4664_v7, %v4320_v61 }
 0x3cf   : > { %v6828_v23 = vpop.f32.mrf.mxu0  ;;  %v4322_v44 = vadd.f32 %v4175_v26, %v8231_v29 }
 0x3d0   : > { %v5138_v32 = vmax.f32 %v5093_v62, 0.0  ;;  %v4959_v34 = vadd.f32 %v8339_v63, %v4817_v33  ;;  %v6738_v42 = vpop.f32.mrf.mxu1  ;;  %v5800_v62 = vld [vmem:[%s8332_s9 + $0x78] sm:$0xff]  }
 0x3d1   : > { %v4669_v47 = vpop.f32.mrf.mxu0 }
 0x3d2   : > { %5183 = vst [vmem:[%s8347_s15 + $0xc0] sm:$0xff] %v5138_v32  ;;  %v5094_v21 = vadd.f32 %v5727_v56, %v4959_v34  ;;  %v4180_v13 = vpop.f32.mrf.mxu1  ;;  %v4818_v22 = vadd.f32 %v4669_v47, %v4321_v17  ;;  %v5738_v34 = vunpack.c.l.bf16 %v5800_v62 }
 0x3d3   : > { %v6831_v37 = vpop.f32.mrf.mxu0  ;;  %v4323_v58 = vadd.f32 %v4180_v13, %v8235_v39 }
 0x3d4   : > { %v5139_v54 = vmax.f32 %v5094_v21, 0.0  ;;  %v4960_v43 = vadd.f32 %v8339_v63, %v4818_v22  ;;  %v6741_v48 = vpop.f32.mrf.mxu1 }
 0x3d5   : > { %v4672_v15 = vpop.f32.mrf.mxu0  ;;  %v5801_v48 = vld [vmem:[%s8332_s9 + $0x80] sm:$0xff]  }
 0x3d6   : > { %5184 = vst [vmem:[%s8347_s15 + $0xc8] sm:$0xff] %v5139_v54  ;;  %v5095_v5 = vadd.f32 %v5730_v57, %v4960_v43  ;;  %v4183_v60 = vpop.f32.mrf.mxu1  ;;  %v4819_v31 = vadd.f32 %v4672_v15, %v4322_v44  ;;  %v5739_v54 = vunpack.c.h.bf16 %v5800_v62 }
 0x3d7   : > { %v6832_v52 = vpop.f32.mrf.mxu0  ;;  %v4324_v25 = vadd.f32 %v4183_v60, %v8243_v1 }
 0x3d8   : > { %v5140_v20 = vmax.f32 %v5095_v5, 0.0  ;;  %v4961_v45 = vadd.f32 %v8339_v63, %v4819_v31  ;;  %v6742_v29 = vpop.f32.mrf.mxu1 }
 0x3d9   : > { %v4677_v55 = vpop.f32.mrf.mxu0 }
 0x3da   : > { %5185 = vst [vmem:[%s8347_s15 + $0xd0] sm:$0xff] %v5140_v20  ;;  %v5096_v6 = vadd.f32 %v5731_v50, %v4961_v45  ;;  %v4188_v40 = vpop.f32.mrf.mxu1  ;;  %v4820_v49 = vadd.f32 %v4677_v55, %v4323_v58  ;;  %v5742_v58 = vunpack.c.l.bf16 %v5801_v48 }
 0x3db   : > { %v6835_v36 = vpop.f32.mrf.mxu0  ;;  %v4325_v26 = vadd.f32 %v4188_v40, %v8247_v46 }
 0x3dc   : > { %v5141_v16 = vmax.f32 %v5096_v6, 0.0  ;;  %v4962_v38 = vadd.f32 %v8339_v63, %v4820_v49  ;;  %v6745_v39 = vpop.f32.mrf.mxu1  ;;  %v5743_v36 = vunpack.c.h.bf16 %v5801_v48 }
 0x3dd   : > { %v4680_v51 = vpop.f32.mrf.mxu0 }
 0x3de   : > { %5186 = vst [vmem:[%s8347_s15 + $0xd8] sm:$0xff] %v5141_v16  ;;  %v5097_v61 = vadd.f32 %v5734_v53, %v4962_v38  ;;  %v4191_v9 = vpop.f32.mrf.mxu1  ;;  %v4821_v27 = vadd.f32 %v4680_v51, %v4324_v25  ;;  %v5802_v16 = vld [vmem:[%s8332_s9 + $0x88] sm:$0xff]  }
 0x3df   : > { %v6836_v7 = vpop.f32.mrf.mxu0  ;;  %v4326_v47 = vadd.f32 %v4191_v9, %v8255_v0 }
 0x3e0   : > { %v5142_v33 = vmax.f32 %v5097_v61, 0.0  ;;  %v4963_v56 = vadd.f32 %v8339_v63, %v4821_v27  ;;  %v6746_v1 = vpop.f32.mrf.mxu1  ;;  %v5746_v7 = vunpack.c.l.bf16 %v5802_v16 }
 0x3e1   : > { %v4685_v23 = vpop.f32.mrf.mxu0 }
 0x3e2   : > { %5187 = vst [vmem:[%s8347_s15 + $0xe0] sm:$0xff] %v5142_v33  ;;  %v5098_v28 = vadd.f32 %v5735_v2, %v4963_v56  ;;  %v4196_v17 = vpop.f32.mrf.mxu1  ;;  %v4822_v32 = vadd.f32 %v4685_v23, %v4325_v26 }
 0x3e3   : > { %v6839_v42 = vpop.f32.mrf.mxu0  ;;  %v4327_v15 = vadd.f32 %v4196_v17, %v8259_v10 }
 0x3e4   : > { %v5143_v21 = vmax.f32 %v5098_v28, 0.0  ;;  %v4964_v13 = vadd.f32 %v8339_v63, %v4822_v32  ;;  %v6749_v46 = vpop.f32.mrf.mxu1  ;;  %v5747_v32 = vunpack.c.h.bf16 %v5802_v16  ;;  %v5803_v42 = vld [vmem:[%s8332_s9 + $0x90] sm:$0xff]  }
 0x3e5   : > { %v4688_v22 = vpop.f32.mrf.mxu0 }
 0x3e6   : > { %5188 = vst [vmem:[%s8347_s15 + $0xe8] sm:$0xff] %v5143_v21  ;;  %v5099_v57 = vadd.f32 %v5738_v34, %v4964_v13  ;;  %v4199_v37 = vpop.f32.mrf.mxu1  ;;  %v4823_v44 = vadd.f32 %v4688_v22, %v4326_v47 }
 0x3e7   : > { %v6840_v43 = vpop.f32.mrf.mxu0  ;;  %v4328_v45 = vadd.f32 %v4199_v37, %v8267_v19 }
 0x3e8   : > { %v5144_v5 = vmax.f32 %v5099_v57, 0.0  ;;  %v4965_v60 = vadd.f32 %v8339_v63, %v4823_v44  ;;  %v6750_v0 = vpop.f32.mrf.mxu1  ;;  %v5750_v44 = vunpack.c.l.bf16 %v5803_v42 }
 0x3e9   : > { %v4693_v31 = vpop.f32.mrf.mxu0 }
 0x3ea   : > { %5189 = vst [vmem:[%s8347_s15 + $0xf0] sm:$0xff] %v5144_v5  ;;  %v5100_v50 = vadd.f32 %v5739_v54, %v4965_v60  ;;  %v4204_v52 = vpop.f32.mrf.mxu1  ;;  %v4824_v3 = vadd.f32 %v4693_v31, %v4327_v15 }
 0x3eb   : > { %v6843_v20 = vpop.f32.mrf.mxu0  ;;  %v4329_v38 = vadd.f32 %v4204_v52, %v8271_v8 }
 0x3ec   : > { %v5145_v29 = vmax.f32 %v5100_v50, 0.0  ;;  %v4966_v55 = vadd.f32 %v8339_v63, %v4824_v3  ;;  %v6753_v10 = vpop.f32.mrf.mxu1  ;;  %v5751_v50 = vunpack.c.h.bf16 %v5803_v42  ;;  %v5804_v3 = vld [vmem:[%s8332_s9 + $0x98] sm:$0xff]  }
 0x3ed   : > { %v4696_v6 = vpop.f32.mrf.mxu0 }
 0x3ee   : > { %5190 = vst [vmem:[%s8347_s15 + $0xf8] sm:$0xff] %v5145_v29  ;;  %v5101_v40 = vadd.f32 %v5742_v58, %v4966_v55  ;;  %v4207_v49 = vpop.f32.mrf.mxu1  ;;  %v4825_v53 = vadd.f32 %v4696_v6, %v4328_v45 }
 0x3ef   : > { %v6844_v25 = vpop.f32.mrf.mxu0  ;;  %v4330_v26 = vadd.f32 %v4207_v49, %v8279_v14 }
 0x3f0   : > { %v5146_v39 = vmax.f32 %v5101_v40, 0.0  ;;  %v4967_v51 = vadd.f32 %v8339_v63, %v4825_v53  ;;  %v6754_v19 = vpop.f32.mrf.mxu1  ;;  %v5754_v40 = vunpack.c.l.bf16 %v5804_v3 }
 0x3f1   : > { %v4701_v61 = vpop.f32.mrf.mxu0  ;;  %v5755_v19 = vunpack.c.h.bf16 %v5804_v3 }
 0x3f2   : > { %5191 = vst [vmem:[%s8347_s15 + $0x100] sm:$0xff] %v5146_v39  ;;  %v5102_v9 = vadd.f32 %v5743_v36, %v4967_v51  ;;  %v4212_v27 = vpop.f32.mrf.mxu1  ;;  %v4826_v2 = vadd.f32 %v4701_v61, %v4329_v38 }
 0x3f3   : > { %v6847_v62 = vpop.f32.mrf.mxu0  ;;  %v4331_v47 = vadd.f32 %v4212_v27, %v8283_v12 }
 0x3f4   : > { %v5147_v33 = vmax.f32 %v5102_v9, 0.0  ;;  %v4968_v56 = vadd.f32 %v8339_v63, %v4826_v2  ;;  %v6757_v8 = vpop.f32.mrf.mxu1  ;;  %v5805_v9 = vld [vmem:[%s8332_s9 + $0xa0] sm:$0xff]  }
 0x3f5   : > { %v4704_v1 = vpop.f32.mrf.mxu0  ;;  %v5758_v8 = vunpack.c.l.bf16 %v5805_v9 }
 0x3f6   : > { %5192 = vst [vmem:[%s8347_s15 + $0x108] sm:$0xff] %v5147_v33  ;;  %v5103_v23 = vadd.f32 %v5746_v7, %v4968_v56  ;;  %v4215_v28 = vpop.f32.mrf.mxu1  ;;  %v4827_v17 = vadd.f32 %v4704_v1, %v4330_v26 }
 0x3f7   : > { %v6848_v34 = vpop.f32.mrf.mxu0  ;;  %v4332_v43 = vadd.f32 %v4215_v28, %v8291_v41 }
 0x3f8   : > { %v5148_v21 = vmax.f32 %v5103_v23, 0.0  ;;  %v4969_v13 = vadd.f32 %v8339_v63, %v4827_v17  ;;  %v6758_v14 = vpop.f32.mrf.mxu1 }
 0x3f9   : > { %v4709_v46 = vpop.f32.mrf.mxu0  ;;  %v5806_v14 = vld [vmem:[%s8332_s9 + $0xa8] sm:$0xff]  }
 0x3fa   : > { %5193 = vst [vmem:[%s8347_s15 + $0x110] sm:$0xff] %v5148_v21  ;;  %v5104_v22 = vadd.f32 %v5747_v32, %v4969_v13  ;;  %v4220_v57 = vpop.f32.mrf.mxu1  ;;  %v4828_v37 = vadd.f32 %v4709_v46, %v4331_v47  ;;  %v5759_v21 = vunpack.c.h.bf16 %v5805_v9  ;;  %v5763_v3 = vunpack.c.h.bf16 %v5806_v14 }
 0x3fb   : > { %v6851_v54 = vpop.f32.mrf.mxu0  ;;  %v4333_v58 = vadd.f32 %v4220_v57, %v8295_v35 }
 0x3fc   : > { %v5149_v48 = vmax.f32 %v5104_v22, 0.0  ;;  %v4970_v15 = vadd.f32 %v8339_v63, %v4828_v37  ;;  %v6761_v12 = vpop.f32.mrf.mxu1 }
 0x3fd   : > { %v4712_v5 = vpop.f32.mrf.mxu0 }
 0x3fe   : > { %5194 = vst [vmem:[%s8347_s15 + $0x118] sm:$0xff] %v5149_v48  ;;  %v5105_v60 = vadd.f32 %v5750_v44, %v4970_v15  ;;  %v4223_v0 = vpop.f32.mrf.mxu1  ;;  %v4829_v31 = vadd.f32 %v4712_v5, %v4332_v43  ;;  %v5762_v48 = vunpack.c.l.bf16 %v5806_v14 }
 0x3ff   : > { %v6852_v52 = vpop.f32.mrf.mxu0  ;;  %v4334_v53 = vadd.f32 %v4223_v0, %v8303_v11 }
 0x400   : > { %v5150_v20 = vmax.f32 %v5105_v60, 0.0  ;;  %v4971_v45 = vadd.f32 %v8339_v63, %v4829_v31  ;;  %v6762_v41 = vpop.f32.mrf.mxu1 }
 0x401   : > { %v4717_v29 = vpop.f32.mrf.mxu0 }
 0x402   : > { %5195 = vst [vmem:[%s8347_s15 + $0x120] sm:$0xff] %v5150_v20  ;;  %v5106_v55 = vadd.f32 %v5751_v50, %v4971_v45  ;;  %v4228_v10 = vpop.f32.mrf.mxu1  ;;  %v4830_v6 = vadd.f32 %v4717_v29, %v4333_v58  ;;  %v5023_v20 = vld [vmem:[%s8332_s9 + $0xb0] sm:$0xf] }
 0x403   : > { %v6855_v49 = vpop.f32.mrf.mxu0  ;;  %v4335_v27 = vadd.f32 %v4228_v10, %v8307_v4 }
 0x404   : > { %v5151_v36 = vmax.f32 %v5106_v55, 0.0  ;;  %v4972_v25 = vadd.f32 %v8339_v63, %v4830_v6  ;;  %v6765_v35 = vpop.f32.mrf.mxu1 }
 0x405   : > { %v4720_v16 = vpop.f32.mrf.mxu0 }
 0x406   : > { %5196 = vst [vmem:[%s8347_s15 + $0x128] sm:$0xff] %v5151_v36  ;;  %v5107_v38 = vadd.f32 %v5754_v40, %v4972_v25  ;;  %v4231_v39 = vpop.f32.mrf.mxu1  ;;  %v4831_v51 = vadd.f32 %v4720_v16, %v4334_v53  ;;  %v5068_v40 = vunpack.c.l.bf16 %v5023_v20 }
 0x407   : > { %v6856_v61 = vpop.f32.mrf.mxu0  ;;  %v4336_v23 = vadd.f32 %v4231_v39, %v8313_v59 }
 0x408   : > { %v5152_v2 = vmax.f32 %v5107_v38, 0.0  ;;  %v4973_v7 = vadd.f32 %v8339_v63, %v4831_v51  ;;  %v6766_v11 = vpop.f32.mrf.mxu1 }
 0x409   : > { %v4725_v62 = vpop.f32.mrf.mxu0 }
 0x40a   : > { %5197 = vst [vmem:[%s8347_s15 + $0x130] sm:$0xff] %v5152_v2  ;;  %v5108_v26 = vadd.f32 %v5755_v19, %v4973_v7  ;;  %v4236_v33 = vpop.f32.mrf.mxu1  ;;  %v4832_v56 = vadd.f32 %v4725_v62, %v4335_v27 }
 0x40b   : > { %v6859_v1 = vpop.f32.mrf.mxu0  ;;  %v4337_v46 = vadd.f32 %v4236_v33, %v8318_v30 }
 0x40c   : > { %v5153_v28 = vmax.f32 %v5108_v26, 0.0  ;;  %v4974_v17 = vadd.f32 %v8339_v63, %v4832_v56  ;;  %v6769_v4 = vpop.f32.mrf.mxu1 }
 0x40d   : > { %v4728_v32 = vpop.f32.mrf.mxu0 }
 0x40e   : > { %5198 = vst [vmem:[%s8347_s15 + $0x138] sm:$0xff] %v5153_v28  ;;  %v5109_v34 = vadd.f32 %v5758_v8, %v4974_v17  ;;  %v4239_v42 = vpop.f32.mrf.mxu1  ;;  %v4833_v47 = vadd.f32 %v4728_v32, %v4336_v23 }
 0x40f   : > { %v6860_v13 = vpop.f32.mrf.mxu0  ;;  %v4338_v12 = vadd.f32 %v4239_v42, %v8324_v24 }
 0x410   : > { %v5154_v22 = vmax.f32 %v5109_v34, 0.0  ;;  %v4975_v57 = vadd.f32 %v8339_v63, %v4833_v47  ;;  %v6770_v59 = vpop.f32.mrf.mxu1 }
 0x411   : > { %v4733_v37 = vpop.f32.mrf.mxu0 }
 0x412   : > { %5199 = vst [vmem:[%s8347_s15 + $0x140] sm:$0xff] %v5154_v22  ;;  %v5110_v44 = vadd.f32 %v5759_v21, %v4975_v57  ;;  %v4244_v54 = vpop.f32.mrf.mxu1  ;;  %v4834_v43 = vadd.f32 %v4733_v37, %v4337_v46 }
 0x413   : > { %v6863_v15 = vpop.f32.mrf.mxu0  ;;  %v4339_v45 = vadd.f32 %v4244_v54, %v8327_v18 }
 0x414   : > { %v5155_v5 = vmax.f32 %v5110_v44, 0.0  ;;  %v4976_v60 = vadd.f32 %v8339_v63, %v4834_v43  ;;  %v6773_v30 = vpop.f32.mrf.mxu1 }
 0x415   : > { %v4736_v0 = vpop.f32.mrf.mxu0 }
 0x416   : > { %5200 = vst [vmem:[%s8347_s15 + $0x148] sm:$0xff] %v5155_v5  ;;  %v5111_v31 = vadd.f32 %v5762_v48, %v4976_v60  ;;  %v4247_v50 = vpop.f32.mrf.mxu1  ;;  %v4835_v52 = vadd.f32 %v4736_v0, %v4338_v12 }
 0x417   : > { %v6864_v58 = vpop.f32.mrf.mxu0 }
 0x418   : > { %v5156_v41 = vmax.f32 %v5111_v31, 0.0  ;;  %v4977_v24 = vadd.f32 %v8339_v63, %v4835_v52  ;;  %v6774_v29 = vpop.f32.mrf.mxu1 }
 0x419   : > { %v4741_v55 = vpop.f32.mrf.mxu0 }
 0x41a   : > { %5201 = vst [vmem:[%s8347_s15 + $0x150] sm:$0xff] %v5156_v41  ;;  %v5112_v10 = vadd.f32 %v5763_v3, %v4977_v24  ;;  %v4836_v6 = vadd.f32 %v4741_v55, %v4339_v45 }
 0x41b   : > { %v6867_v49 = vpop.f32.mrf.mxu0 }
 0x41c   : > { %v5157_v53 = vmax.f32 %v5112_v10, 0.0  ;;  %v4978_v36 = vadd.f32 %v8339_v63, %v4836_v6 }
 0x41d   : > { %v4744_v25 = vpop.f32.mrf.mxu0 }
 0x41e   : > { %5202 = vst [vmem:[%s8347_s15 + $0x158] sm:$0xff] %v5157_v53  ;;  %v5113_v35 = vadd.f32 %v5068_v40, %v4978_v36 }
 0x41f   : > { %v6868_v16 = vpop.f32.mrf.mxu0 }
 0x420   : > { %v5158_v38 = vmax.f32 %v5113_v35, 0.0 }
 0x422   : > { %5203 = vst [vmem:[%s8347_s15 + $0x160] sm:$0xff] %v5158_v38 }
 0x423 PF: > { %s15_s20 = sadd.s32 1, %s6928_s20   ;;  %s8561_s18 = smov %s6924_s19 }
 0x424   : > { %p12_p7 = scmp.ge.s32.totalorder %s15_s20, 4   ;;  %s8562_s19 = smov %s8564_s21 }
 0x426   :  { %14 = sbr.rel (!%p12_p7) target bundleno = 2 (0x2), region = 90 }

</bundles_post_ra>
